<compile_context>
chip_gen: v7x
topology: tpu7x:2x2x1
jax: 0.10.0
libtpu: 0.0.40
codegen_flags: <defaults>
</compile_context>

<pallas_src>
import functools

import jax
import jax.numpy as jnp
import numpy as np
from jax.experimental import pallas as pl
from jax.experimental.pallas import tpu as pltpu


# ----------------------------------------------------------------------------
# Fused kernel: the entire reduction block for one batch element.
# ----------------------------------------------------------------------------
def _reduction_block_kernel(
    xz_ref,            # (1, H+2, W+2, Cin)   zero-padded input  (for convs)
    xm_ref,            # (1, H+2, W+2, Cin)   -inf-padded input  (for max-pool)
    w0_ref, b0_ref,    # branch1 1x1 conv : (Cin, C6),    (1, C6)
    w1_ref, b1_ref,    # branch1 3x3 conv : (9, C6, C7),  (1, C7)
    w2_ref, b2_ref,    # branch1 3x3 conv : (9, C7, C8),  (1, C8)
    w3_ref, b3_ref,    # branch2 3x3 conv : (9, Cin, C12),(1, C12)
    alpha_ref,         # SMEM (4,) PReLU slopes
    out_ref,           # (1, H, W, C8 + C12 + Cin)
    y0p_ref,           # VMEM scratch (H+2, W+2*padw, C6)  zero-padded interm.
    y1p_ref,           # VMEM scratch (H+2, W+2*padw, C7)  zero-padded interm.
    *, padw,
):
    _, H, W, _ = out_ref.shape
    cin = xz_ref.shape[3]

    def prelu(y, a):
        return jnp.where(y > 0, y, a * y)

    def conv3x3(load, cin_l, w_ref, b_ref, a):
        # 3x3 / stride-1 conv as 9 shifted MXU matmuls, f32 accumulation.
        acc = None
        for dh in range(3):
            for dw in range(3):
                xs = load(dh, dw).reshape(H * W, cin_l)
                d = jnp.dot(xs, w_ref[dh * 3 + dw],
                            preferred_element_type=jnp.float32)
                acc = d if acc is None else acc + d
        return prelu(acc + b_ref[...], a)

    # ---------------- branch1: 1x1 -> 3x3 -> 3x3 ----------------
    c6 = w0_ref.shape[1]
    x_in = xz_ref[0, 1:H + 1, 1:W + 1, :].reshape(H * W, cin)
    y0 = prelu(jnp.dot(x_in, w0_ref[...], preferred_element_type=jnp.float32)
               + b0_ref[...], alpha_ref[0])
    y0p_ref[...] = jnp.zeros_like(y0p_ref)
    y0p_ref[1:H + 1, padw:padw + W, :] = y0.reshape(H, W, c6)

    c7 = w1_ref.shape[2]
    y1 = conv3x3(
        lambda dh, dw: y0p_ref[dh:dh + H, padw - 1 + dw:padw - 1 + dw + W, :],
        c6, w1_ref, b1_ref, alpha_ref[1])
    y1p_ref[...] = jnp.zeros_like(y1p_ref)
    y1p_ref[1:H + 1, padw:padw + W, :] = y1.reshape(H, W, c7)

    c8 = w2_ref.shape[2]
    br1 = conv3x3(
        lambda dh, dw: y1p_ref[dh:dh + H, padw - 1 + dw:padw - 1 + dw + W, :],
        c7, w2_ref, b2_ref, alpha_ref[2])

    # ---------------- branch2: 3x3 conv on the input ----------------
    c12 = w3_ref.shape[2]
    br2 = conv3x3(
        lambda dh, dw: xz_ref[0, dh:dh + H, dw:dw + W, :],
        cin, w3_ref, b3_ref, alpha_ref[3])

    # ---------------- branch3: 3x3 / s1 / p1 max-pool ----------------
    m = xm_ref[0, 1:H + 1, 1:W + 1, :]                # center tap
    for dh in range(3):
        for dw in range(3):
            if dh == 1 and dw == 1:
                continue
            m = jnp.maximum(m, xm_ref[0, dh:dh + H, dw:dw + W, :])

    # ---------------- channel concat + single store ----------------
    out = jnp.concatenate(
        [br1.reshape(H, W, c8), br2.reshape(H, W, c12), m], axis=-1)
    out_ref[0] = out.astype(out_ref.dtype)


# ----------------------------------------------------------------------------
# Wrapper: fold BN into weights, pad input, call the fused kernel.
# ----------------------------------------------------------------------------
def _fold_conv_bn(p):
    """Fold inference-mode BatchNorm into conv weight & bias.
    Returns (w_folded (kh*kw, Cin, Cout), bias (1, Cout))."""
    w = p["w"]                                            # (Cout, Cin, kh, kw)
    cout, cin, kh, kw = w.shape
    scale = p["gamma"] / jnp.sqrt(p["var"] + 1e-5)        # (Cout,)
    wf = (jnp.transpose(w, (2, 3, 1, 0)) * scale)         # (kh, kw, Cin, Cout)
    wf = wf.reshape(kh * kw, cin, cout).astype(jnp.float32)
    bias = (scale * (p["b"] - p["mean"]) + p["beta"]).reshape(1, cout)
    return wf, bias.astype(jnp.float32)


def reduction_block_a_forward(x_nchw, params):
    # NCHW (PyTorch) -> NHWC (channels on the 128-lane axis)
    x = jnp.transpose(x_nchw, (0, 2, 3, 1)).astype(jnp.float32)
    N, H, W, cin = x.shape
    xz = jnp.pad(x, ((0, 0), (1, 1), (1, 1), (0, 0)))                   # convs
    xm = jnp.pad(x, ((0, 0), (1, 1), (1, 1), (0, 0)),
                 constant_values=-jnp.inf)                              # pool

    w0, b0 = _fold_conv_bn(params["b1_0"])
    w0 = w0.reshape(w0.shape[1], w0.shape[2])             # 1x1 -> (Cin, C6)
    w1, b1 = _fold_conv_bn(params["b1_1"])
    w2, b2 = _fold_conv_bn(params["b1_2"])
    w3, b3 = _fold_conv_bn(params["b2_0"])
    alphas = jnp.stack([params["b1_0"]["alpha"], params["b1_1"]["alpha"],
                        params["b1_2"]["alpha"], params["b2_0"]["alpha"]]
                       ).astype(jnp.float32)

    c6, c7 = w0.shape[1], w1.shape[2]
    c8, c12 = w2.shape[2], w3.shape[2]
    ctot = c8 + c12 + cin
    PADW = 8  # interior of padded scratch sits at a sublane-aligned column

    # TODO(synk): for realistic inception sizes (35x35/17x17, 192+ channels)
    # tile H instead of whole-image blocks so this also fits v7x's 64 MiB VMEM.
    kernel = functools.partial(_reduction_block_kernel, padw=PADW)
    out_nhwc = pl.pallas_call(
        kernel,
        out_shape=jax.ShapeDtypeStruct((N, H, W, ctot), jnp.float32),
        grid=(N,),
        in_specs=[
            pl.BlockSpec((1, H + 2, W + 2, cin), lambda n: (n, 0, 0, 0)),
            pl.BlockSpec((1, H + 2, W + 2, cin), lambda n: (n, 0, 0, 0)),
            pl.BlockSpec((cin, c6), lambda n: (0, 0)),
            pl.BlockSpec((1, c6), lambda n: (0, 0)),
            pl.BlockSpec((9, c6, c7), lambda n: (0, 0, 0)),
            pl.BlockSpec((1, c7), lambda n: (0, 0)),
            pl.BlockSpec((9, c7, c8), lambda n: (0, 0, 0)),
            pl.BlockSpec((1, c8), lambda n: (0, 0)),
            pl.BlockSpec((9, cin, c12), lambda n: (0, 0, 0)),
            pl.BlockSpec((1, c12), lambda n: (0, 0)),
            pl.BlockSpec(memory_space=pltpu.SMEM),
        ],
        out_specs=pl.BlockSpec((1, H, W, ctot), lambda n: (n, 0, 0, 0)),
        scratch_shapes=[
            pltpu.VMEM((H + 2, W + 2 * PADW, c6), jnp.float32),
            pltpu.VMEM((H + 2, W + 2 * PADW, c7), jnp.float32),
        ],
        compiler_params=pltpu.CompilerParams(
            dimension_semantics=("parallel",)),
    )(xz, xm, w0, b0, w1, b1, w2, b2, w3, b3, alphas)
    return jnp.transpose(out_nhwc, (0, 3, 1, 2))          # NHWC -> NCHW


# ----------------------------------------------------------------------------
# Pure-JAX reference (for correctness check)
# ----------------------------------------------------------------------------
def _conv_block_ref(x_nchw, p, padding):
    y = jax.lax.conv_general_dilated(
        x_nchw, p["w"], (1, 1), [(padding, padding), (padding, padding)],
        dimension_numbers=("NCHW", "OIHW", "NCHW"))
    y = y + p["b"][None, :, None, None]
    scale = p["gamma"] / jnp.sqrt(p["var"] + 1e-5)
    y = scale[None, :, None, None] * (y - p["mean"][None, :, None, None]) \
        + p["beta"][None, :, None, None]
    return jnp.where(y > 0, y, p["alpha"] * y)


def reduction_block_a_ref(x_nchw, params):
    b1 = _conv_block_ref(x_nchw, params["b1_0"], 0)
    b1 = _conv_block_ref(b1, params["b1_1"], 1)
    b1 = _conv_block_ref(b1, params["b1_2"], 1)
    b2 = _conv_block_ref(x_nchw, params["b2_0"], 1)
    b3 = jax.lax.reduce_window(x_nchw, -jnp.inf, jax.lax.max,
                               (1, 1, 3, 3), (1, 1, 1, 1),
                               [(0, 0), (0, 0), (1, 1), (1, 1)])
    return jnp.concatenate([b1, b2, b3], axis=1)


# ----------------------------------------------------------------------------
# Deterministic parameter init (shapes per conv_Block.__init__)
# ----------------------------------------------------------------------------
def init_conv_block_params(key, cin, cout, ksize):
    k1, k2, k3, k4, k5, k6, k7 = jax.random.split(key, 7)
    return {
        "w": 0.1 * jax.random.normal(k1, (cout, cin, ksize, ksize), jnp.float32),
        "b": 0.1 * jax.random.normal(k2, (cout,), jnp.float32),
        "gamma": 1.0 + 0.1 * jax.random.normal(k3, (cout,), jnp.float32),
        "beta": 0.1 * jax.random.normal(k4, (cout,), jnp.float32),
        "mean": 0.1 * jax.random.normal(k5, (cout,), jnp.float32),
        "var": 1.0 + 0.5 * jax.random.uniform(k6, (cout,), jnp.float32),
        # nn.PReLU() default is 0.25; perturb slightly so the check is stricter
        "alpha": jnp.float32(0.25) + 0.05 * jax.random.normal(k7, (), jnp.float32),
    }


if __name__ == "__main__":
    key = jax.random.PRNGKey(0)
    in_channels, initial_size = 4, 4
    N, H, W = 2, 16, 16
    S6, S7 = 6 * initial_size, 7 * initial_size
    S8, S12 = 8 * initial_size, 12 * initial_size

    keys = jax.random.split(key, 5)
    params = {
        "b1_0": init_conv_block_params(keys[0], in_channels, S6, 1),
        "b1_1": init_conv_block_params(keys[1], S6, S7, 3),
        "b1_2": init_conv_block_params(keys[2], S7, S8, 3),
        "b2_0": init_conv_block_params(keys[3], in_channels, S12, 3),
    }
    x = jax.random.normal(keys[4], (N, in_channels, H, W), jnp.float32)

    fwd = jax.jit(reduction_block_a_forward)
    out = jax.block_until_ready(fwd(x, params))

    assert out.shape == (N, S8 + S12 + in_channels, H, W), out.shape
    ref = jax.block_until_ready(reduction_block_a_ref(x, params))
    np.testing.assert_allclose(np.asarray(out), np.asarray(ref),
                               rtol=2e-3, atol=2e-3)
    print("KERNEL_OK")
</pallas_src>

<mosaic_0001>
module attributes {stable_mosaic.version = 11 : i64} {
  func.func @_reduction_block_kernel(%arg0: i32, %arg1: memref<1x18x18x4xf32, #tpu.memory_space<vmem>>, %arg2: memref<1x18x18x4xf32, #tpu.memory_space<vmem>>, %arg3: memref<4x24xf32, #tpu.memory_space<vmem>>, %arg4: memref<1x24xf32, #tpu.memory_space<vmem>>, %arg5: memref<9x24x28xf32, #tpu.memory_space<vmem>>, %arg6: memref<1x28xf32, #tpu.memory_space<vmem>>, %arg7: memref<9x28x32xf32, #tpu.memory_space<vmem>>, %arg8: memref<1x32xf32, #tpu.memory_space<vmem>>, %arg9: memref<9x4x48xf32, #tpu.memory_space<vmem>>, %arg10: memref<1x48xf32, #tpu.memory_space<vmem>>, %arg11: memref<4xf32, #tpu.memory_space<smem>>, %arg12: memref<1x16x16x84xf32, #tpu.memory_space<vmem>>, %arg13: memref<18x32x24xf32, #tpu.memory_space<vmem>>, %arg14: memref<18x32x28xf32, #tpu.memory_space<vmem>>) attributes {dimension_semantics = [#tpu.dimension_semantics<parallel>], iteration_bounds = array<i64: 2>, scalar_prefetch = 0 : i64, scratch_operands = 2 : i64, tpu.core_type = #tpu.core_type<tc>, window_params = [{transform_indices = @transform_0, window_bounds = array<i64: 1, 18, 18, 4>}, {transform_indices = @transform_1, window_bounds = array<i64: 1, 18, 18, 4>}, {pipeline_mode = #tpu.pipeline_mode<synchronous>, transform_indices = @transform_2, window_bounds = array<i64: 4, 24>}, {pipeline_mode = #tpu.pipeline_mode<synchronous>, transform_indices = @transform_3, window_bounds = array<i64: 1, 24>}, {pipeline_mode = #tpu.pipeline_mode<synchronous>, transform_indices = @transform_4, window_bounds = array<i64: 9, 24, 28>}, {pipeline_mode = #tpu.pipeline_mode<synchronous>, transform_indices = @transform_5, window_bounds = array<i64: 1, 28>}, {pipeline_mode = #tpu.pipeline_mode<synchronous>, transform_indices = @transform_6, window_bounds = array<i64: 9, 28, 32>}, {pipeline_mode = #tpu.pipeline_mode<synchronous>, transform_indices = @transform_7, window_bounds = array<i64: 1, 32>}, {pipeline_mode = #tpu.pipeline_mode<synchronous>, transform_indices = @transform_8, window_bounds = array<i64: 9, 4, 48>}, {pipeline_mode = #tpu.pipeline_mode<synchronous>, transform_indices = @transform_9, window_bounds = array<i64: 1, 48>}, {transform_indices = @transform_10, window_bounds = array<i64: 4>}, {transform_indices = @transform_11, window_bounds = array<i64: 1, 16, 16, 84>}]} {
    %c0 = arith.constant 0 : index
    %c1 = arith.constant 1 : index
    %c1_0 = arith.constant 1 : index
    %c0_1 = arith.constant 0 : index
    %0 = vector.load %arg1[%c0, %c1, %c1_0, %c0_1] : memref<1x18x18x4xf32, #tpu.memory_space<vmem>>, vector<1x16x16x4xf32>
    %1 = vector.shape_cast %0 : vector<1x16x16x4xf32> to vector<16x16x4xf32>
    %2 = vector.shape_cast %1 : vector<16x16x4xf32> to vector<256x4xf32>
    %c0_2 = arith.constant 0 : index
    %c0_3 = arith.constant 0 : index
    %3 = vector.load %arg3[%c0_2, %c0_3] : memref<4x24xf32, #tpu.memory_space<vmem>>, vector<4x24xf32>
    %cst = arith.constant dense<0.000000e+00> : vector<256x24xf32>
    %4 = tpu.matmul %2, %3, %cst {dimension_numbers = #tpu.dot_dimension_numbers<[1], [0], [0], [1], [0, 0, 1, 1], [], []>} : vector<256x4xf32>, vector<4x24xf32>, vector<256x24xf32> -> vector<256x24xf32>
    %c0_4 = arith.constant 0 : index
    %c0_5 = arith.constant 0 : index
    %5 = vector.load %arg4[%c0_4, %c0_5] : memref<1x24xf32, #tpu.memory_space<vmem>>, vector<1x24xf32>
    %6 = vector.broadcast %5 : vector<1x24xf32> to vector<256x24xf32>
    %7 = arith.addf %4, %6 : vector<256x24xf32>
    %c0_6 = arith.constant 0 : index
    %8 = memref.load %arg11[%c0_6] : memref<4xf32, #tpu.memory_space<smem>>
    %cst_7 = arith.constant 0.000000e+00 : f32
    %9 = vector.broadcast %cst_7 : f32 to vector<256x24xf32>
    %10 = arith.cmpf ogt, %7, %9 : vector<256x24xf32>
    %11 = vector.broadcast %8 : f32 to vector<256x24xf32>
    %12 = arith.mulf %11, %7 : vector<256x24xf32>
    %13 = arith.select %10, %7, %12 : vector<256x24xi1>, vector<256x24xf32>
    %cst_8 = arith.constant 0.000000e+00 : f32
    %14 = vector.broadcast %cst_8 : f32 to vector<18x32x24xf32>
    %c0_9 = arith.constant 0 : index
    %c0_10 = arith.constant 0 : index
    %c0_11 = arith.constant 0 : index
    %15 = vector.load %arg13[%c0_9, %c0_10, %c0_11] : memref<18x32x24xf32, #tpu.memory_space<vmem>>, vector<18x32x24xf32>
    tpu.vector_store %arg13[%c0_9, %c0_10, %c0_11], %14 {strides = array<i32>} : memref<18x32x24xf32, #tpu.memory_space<vmem>>, vector<18x32x24xf32>,
    %16 = vector.shape_cast %13 : vector<256x24xf32> to vector<16x16x24xf32>
    %c1_12 = arith.constant 1 : index
    %c8 = arith.constant 8 : index
    %c0_13 = arith.constant 0 : index
    %17 = vector.load %arg13[%c1_12, %c8, %c0_13] : memref<18x32x24xf32, #tpu.memory_space<vmem>>, vector<16x16x24xf32>
    tpu.vector_store %arg13[%c1_12, %c8, %c0_13], %16 {strides = array<i32>} : memref<18x32x24xf32, #tpu.memory_space<vmem>>, vector<16x16x24xf32>,
    %c1_14 = arith.constant 1 : index
    %18 = memref.load %arg11[%c1_14] : memref<4xf32, #tpu.memory_space<smem>>
    %c0_15 = arith.constant 0 : index
    %c7 = arith.constant 7 : index
    %c0_16 = arith.constant 0 : index
    %19 = vector.load %arg13[%c0_15, %c7, %c0_16] : memref<18x32x24xf32, #tpu.memory_space<vmem>>, vector<16x16x24xf32>
    %20 = vector.shape_cast %19 : vector<16x16x24xf32> to vector<256x24xf32>
    %c0_17 = arith.constant 0 : index
    %c0_18 = arith.constant 0 : index
    %c0_19 = arith.constant 0 : index
    %21 = vector.load %arg5[%c0_17, %c0_18, %c0_19] : memref<9x24x28xf32, #tpu.memory_space<vmem>>, vector<1x24x28xf32>
    %22 = vector.shape_cast %21 : vector<1x24x28xf32> to vector<24x28xf32>
    %cst_20 = arith.constant dense<0.000000e+00> : vector<256x28xf32>
    %23 = tpu.matmul %20, %22, %cst_20 {dimension_numbers = #tpu.dot_dimension_numbers<[1], [0], [0], [1], [0, 0, 1, 1], [], []>} : vector<256x24xf32>, vector<24x28xf32>, vector<256x28xf32> -> vector<256x28xf32>
    %c0_21 = arith.constant 0 : index
    %c8_22 = arith.constant 8 : index
    %c0_23 = arith.constant 0 : index
    %24 = vector.load %arg13[%c0_21, %c8_22, %c0_23] : memref<18x32x24xf32, #tpu.memory_space<vmem>>, vector<16x16x24xf32>
    %25 = vector.shape_cast %24 : vector<16x16x24xf32> to vector<256x24xf32>
    %c1_24 = arith.constant 1 : index
    %c0_25 = arith.constant 0 : index
    %c0_26 = arith.constant 0 : index
    %26 = vector.load %arg5[%c1_24, %c0_25, %c0_26] : memref<9x24x28xf32, #tpu.memory_space<vmem>>, vector<1x24x28xf32>
    %27 = vector.shape_cast %26 : vector<1x24x28xf32> to vector<24x28xf32>
    %cst_27 = arith.constant dense<0.000000e+00> : vector<256x28xf32>
    %28 = tpu.matmul %25, %27, %cst_27 {dimension_numbers = #tpu.dot_dimension_numbers<[1], [0], [0], [1], [0, 0, 1, 1], [], []>} : vector<256x24xf32>, vector<24x28xf32>, vector<256x28xf32> -> vector<256x28xf32>
    %29 = arith.addf %23, %28 : vector<256x28xf32>
    %c0_28 = arith.constant 0 : index
    %c9 = arith.constant 9 : index
    %c0_29 = arith.constant 0 : index
    %30 = vector.load %arg13[%c0_28, %c9, %c0_29] : memref<18x32x24xf32, #tpu.memory_space<vmem>>, vector<16x16x24xf32>
    %31 = vector.shape_cast %30 : vector<16x16x24xf32> to vector<256x24xf32>
    %c2 = arith.constant 2 : index
    %c0_30 = arith.constant 0 : index
    %c0_31 = arith.constant 0 : index
    %32 = vector.load %arg5[%c2, %c0_30, %c0_31] : memref<9x24x28xf32, #tpu.memory_space<vmem>>, vector<1x24x28xf32>
    %33 = vector.shape_cast %32 : vector<1x24x28xf32> to vector<24x28xf32>
    %cst_32 = arith.constant dense<0.000000e+00> : vector<256x28xf32>
    %34 = tpu.matmul %31, %33, %cst_32 {dimension_numbers = #tpu.dot_dimension_numbers<[1], [0], [0], [1], [0, 0, 1, 1], [], []>} : vector<256x24xf32>, vector<24x28xf32>, vector<256x28xf32> -> vector<256x28xf32>
    %35 = arith.addf %29, %34 : vector<256x28xf32>
    %c1_33 = arith.constant 1 : index
    %c7_34 = arith.constant 7 : index
    %c0_35 = arith.constant 0 : index
    %36 = vector.load %arg13[%c1_33, %c7_34, %c0_35] : memref<18x32x24xf32, #tpu.memory_space<vmem>>, vector<16x16x24xf32>
    %37 = vector.shape_cast %36 : vector<16x16x24xf32> to vector<256x24xf32>
    %c3 = arith.constant 3 : index
    %c0_36 = arith.constant 0 : index
    %c0_37 = arith.constant 0 : index
    %38 = vector.load %arg5[%c3, %c0_36, %c0_37] : memref<9x24x28xf32, #tpu.memory_space<vmem>>, vector<1x24x28xf32>
    %39 = vector.shape_cast %38 : vector<1x24x28xf32> to vector<24x28xf32>
    %cst_38 = arith.constant dense<0.000000e+00> : vector<256x28xf32>
    %40 = tpu.matmul %37, %39, %cst_38 {dimension_numbers = #tpu.dot_dimension_numbers<[1], [0], [0], [1], [0, 0, 1, 1], [], []>} : vector<256x24xf32>, vector<24x28xf32>, vector<256x28xf32> -> vector<256x28xf32>
    %41 = arith.addf %35, %40 : vector<256x28xf32>
    %c1_39 = arith.constant 1 : index
    %c8_40 = arith.constant 8 : index
    %c0_41 = arith.constant 0 : index
    %42 = vector.load %arg13[%c1_39, %c8_40, %c0_41] : memref<18x32x24xf32, #tpu.memory_space<vmem>>, vector<16x16x24xf32>
    %43 = vector.shape_cast %42 : vector<16x16x24xf32> to vector<256x24xf32>
    %c4 = arith.constant 4 : index
    %c0_42 = arith.constant 0 : index
    %c0_43 = arith.constant 0 : index
    %44 = vector.load %arg5[%c4, %c0_42, %c0_43] : memref<9x24x28xf32, #tpu.memory_space<vmem>>, vector<1x24x28xf32>
    %45 = vector.shape_cast %44 : vector<1x24x28xf32> to vector<24x28xf32>
    %cst_44 = arith.constant dense<0.000000e+00> : vector<256x28xf32>
    %46 = tpu.matmul %43, %45, %cst_44 {dimension_numbers = #tpu.dot_dimension_numbers<[1], [0], [0], [1], [0, 0, 1, 1], [], []>} : vector<256x24xf32>, vector<24x28xf32>, vector<256x28xf32> -> vector<256x28xf32>
    %47 = arith.addf %41, %46 : vector<256x28xf32>
    %c1_45 = arith.constant 1 : index
    %c9_46 = arith.constant 9 : index
    %c0_47 = arith.constant 0 : index
    %48 = vector.load %arg13[%c1_45, %c9_46, %c0_47] : memref<18x32x24xf32, #tpu.memory_space<vmem>>, vector<16x16x24xf32>
    %49 = vector.shape_cast %48 : vector<16x16x24xf32> to vector<256x24xf32>
    %c5 = arith.constant 5 : index
    %c0_48 = arith.constant 0 : index
    %c0_49 = arith.constant 0 : index
    %50 = vector.load %arg5[%c5, %c0_48, %c0_49] : memref<9x24x28xf32, #tpu.memory_space<vmem>>, vector<1x24x28xf32>
    %51 = vector.shape_cast %50 : vector<1x24x28xf32> to vector<24x28xf32>
    %cst_50 = arith.constant dense<0.000000e+00> : vector<256x28xf32>
    %52 = tpu.matmul %49, %51, %cst_50 {dimension_numbers = #tpu.dot_dimension_numbers<[1], [0], [0], [1], [0, 0, 1, 1], [], []>} : vector<256x24xf32>, vector<24x28xf32>, vector<256x28xf32> -> vector<256x28xf32>
    %53 = arith.addf %47, %52 : vector<256x28xf32>
    %c2_51 = arith.constant 2 : index
    %c7_52 = arith.constant 7 : index
    %c0_53 = arith.constant 0 : index
    %54 = vector.load %arg13[%c2_51, %c7_52, %c0_53] : memref<18x32x24xf32, #tpu.memory_space<vmem>>, vector<16x16x24xf32>
    %55 = vector.shape_cast %54 : vector<16x16x24xf32> to vector<256x24xf32>
    %c6 = arith.constant 6 : index
    %c0_54 = arith.constant 0 : index
    %c0_55 = arith.constant 0 : index
    %56 = vector.load %arg5[%c6, %c0_54, %c0_55] : memref<9x24x28xf32, #tpu.memory_space<vmem>>, vector<1x24x28xf32>
    %57 = vector.shape_cast %56 : vector<1x24x28xf32> to vector<24x28xf32>
    %cst_56 = arith.constant dense<0.000000e+00> : vector<256x28xf32>
    %58 = tpu.matmul %55, %57, %cst_56 {dimension_numbers = #tpu.dot_dimension_numbers<[1], [0], [0], [1], [0, 0, 1, 1], [], []>} : vector<256x24xf32>, vector<24x28xf32>, vector<256x28xf32> -> vector<256x28xf32>
    %59 = arith.addf %53, %58 : vector<256x28xf32>
    %c2_57 = arith.constant 2 : index
    %c8_58 = arith.constant 8 : index
    %c0_59 = arith.constant 0 : index
    %60 = vector.load %arg13[%c2_57, %c8_58, %c0_59] : memref<18x32x24xf32, #tpu.memory_space<vmem>>, vector<16x16x24xf32>
    %61 = vector.shape_cast %60 : vector<16x16x24xf32> to vector<256x24xf32>
    %c7_60 = arith.constant 7 : index
    %c0_61 = arith.constant 0 : index
    %c0_62 = arith.constant 0 : index
    %62 = vector.load %arg5[%c7_60, %c0_61, %c0_62] : memref<9x24x28xf32, #tpu.memory_space<vmem>>, vector<1x24x28xf32>
    %63 = vector.shape_cast %62 : vector<1x24x28xf32> to vector<24x28xf32>
    %cst_63 = arith.constant dense<0.000000e+00> : vector<256x28xf32>
    %64 = tpu.matmul %61, %63, %cst_63 {dimension_numbers = #tpu.dot_dimension_numbers<[1], [0], [0], [1], [0, 0, 1, 1], [], []>} : vector<256x24xf32>, vector<24x28xf32>, vector<256x28xf32> -> vector<256x28xf32>
    %65 = arith.addf %59, %64 : vector<256x28xf32>
    %c2_64 = arith.constant 2 : index
    %c9_65 = arith.constant 9 : index
    %c0_66 = arith.constant 0 : index
    %66 = vector.load %arg13[%c2_64, %c9_65, %c0_66] : memref<18x32x24xf32, #tpu.memory_space<vmem>>, vector<16x16x24xf32>
    %67 = vector.shape_cast %66 : vector<16x16x24xf32> to vector<256x24xf32>
    %c8_67 = arith.constant 8 : index
    %c0_68 = arith.constant 0 : index
    %c0_69 = arith.constant 0 : index
    %68 = vector.load %arg5[%c8_67, %c0_68, %c0_69] : memref<9x24x28xf32, #tpu.memory_space<vmem>>, vector<1x24x28xf32>
    %69 = vector.shape_cast %68 : vector<1x24x28xf32> to vector<24x28xf32>
    %cst_70 = arith.constant dense<0.000000e+00> : vector<256x28xf32>
    %70 = tpu.matmul %67, %69, %cst_70 {dimension_numbers = #tpu.dot_dimension_numbers<[1], [0], [0], [1], [0, 0, 1, 1], [], []>} : vector<256x24xf32>, vector<24x28xf32>, vector<256x28xf32> -> vector<256x28xf32>
    %71 = arith.addf %65, %70 : vector<256x28xf32>
    %c0_71 = arith.constant 0 : index
    %c0_72 = arith.constant 0 : index
    %72 = vector.load %arg6[%c0_71, %c0_72] : memref<1x28xf32, #tpu.memory_space<vmem>>, vector<1x28xf32>
    %73 = vector.broadcast %72 : vector<1x28xf32> to vector<256x28xf32>
    %74 = arith.addf %71, %73 : vector<256x28xf32>
    %cst_73 = arith.constant 0.000000e+00 : f32
    %75 = vector.broadcast %cst_73 : f32 to vector<256x28xf32>
    %76 = arith.cmpf ogt, %74, %75 : vector<256x28xf32>
    %77 = vector.broadcast %18 : f32 to vector<256x28xf32>
    %78 = arith.mulf %77, %74 : vector<256x28xf32>
    %79 = arith.select %76, %74, %78 : vector<256x28xi1>, vector<256x28xf32>
    %cst_74 = arith.constant 0.000000e+00 : f32
    %80 = vector.broadcast %cst_74 : f32 to vector<18x32x28xf32>
    %c0_75 = arith.constant 0 : index
    %c0_76 = arith.constant 0 : index
    %c0_77 = arith.constant 0 : index
    %81 = vector.load %arg14[%c0_75, %c0_76, %c0_77] : memref<18x32x28xf32, #tpu.memory_space<vmem>>, vector<18x32x28xf32>
    tpu.vector_store %arg14[%c0_75, %c0_76, %c0_77], %80 {strides = array<i32>} : memref<18x32x28xf32, #tpu.memory_space<vmem>>, vector<18x32x28xf32>,
    %82 = vector.shape_cast %79 : vector<256x28xf32> to vector<16x16x28xf32>
    %c1_78 = arith.constant 1 : index
    %c8_79 = arith.constant 8 : index
    %c0_80 = arith.constant 0 : index
    %83 = vector.load %arg14[%c1_78, %c8_79, %c0_80] : memref<18x32x28xf32, #tpu.memory_space<vmem>>, vector<16x16x28xf32>
    tpu.vector_store %arg14[%c1_78, %c8_79, %c0_80], %82 {strides = array<i32>} : memref<18x32x28xf32, #tpu.memory_space<vmem>>, vector<16x16x28xf32>,
    %c2_81 = arith.constant 2 : index
    %84 = memref.load %arg11[%c2_81] : memref<4xf32, #tpu.memory_space<smem>>
    %c0_82 = arith.constant 0 : index
    %c7_83 = arith.constant 7 : index
    %c0_84 = arith.constant 0 : index
    %85 = vector.load %arg14[%c0_82, %c7_83, %c0_84] : memref<18x32x28xf32, #tpu.memory_space<vmem>>, vector<16x16x28xf32>
    %86 = vector.shape_cast %85 : vector<16x16x28xf32> to vector<256x28xf32>
    %c0_85 = arith.constant 0 : index
    %c0_86 = arith.constant 0 : index
    %c0_87 = arith.constant 0 : index
    %87 = vector.load %arg7[%c0_85, %c0_86, %c0_87] : memref<9x28x32xf32, #tpu.memory_space<vmem>>, vector<1x28x32xf32>
    %88 = vector.shape_cast %87 : vector<1x28x32xf32> to vector<28x32xf32>
    %cst_88 = arith.constant dense<0.000000e+00> : vector<256x32xf32>
    %89 = tpu.matmul %86, %88, %cst_88 {dimension_numbers = #tpu.dot_dimension_numbers<[1], [0], [0], [1], [0, 0, 1, 1], [], []>} : vector<256x28xf32>, vector<28x32xf32>, vector<256x32xf32> -> vector<256x32xf32>
    %c0_89 = arith.constant 0 : index
    %c8_90 = arith.constant 8 : index
    %c0_91 = arith.constant 0 : index
    %90 = vector.load %arg14[%c0_89, %c8_90, %c0_91] : memref<18x32x28xf32, #tpu.memory_space<vmem>>, vector<16x16x28xf32>
    %91 = vector.shape_cast %90 : vector<16x16x28xf32> to vector<256x28xf32>
    %c1_92 = arith.constant 1 : index
    %c0_93 = arith.constant 0 : index
    %c0_94 = arith.constant 0 : index
    %92 = vector.load %arg7[%c1_92, %c0_93, %c0_94] : memref<9x28x32xf32, #tpu.memory_space<vmem>>, vector<1x28x32xf32>
    %93 = vector.shape_cast %92 : vector<1x28x32xf32> to vector<28x32xf32>
    %cst_95 = arith.constant dense<0.000000e+00> : vector<256x32xf32>
    %94 = tpu.matmul %91, %93, %cst_95 {dimension_numbers = #tpu.dot_dimension_numbers<[1], [0], [0], [1], [0, 0, 1, 1], [], []>} : vector<256x28xf32>, vector<28x32xf32>, vector<256x32xf32> -> vector<256x32xf32>
    %95 = arith.addf %89, %94 : vector<256x32xf32>
    %c0_96 = arith.constant 0 : index
    %c9_97 = arith.constant 9 : index
    %c0_98 = arith.constant 0 : index
    %96 = vector.load %arg14[%c0_96, %c9_97, %c0_98] : memref<18x32x28xf32, #tpu.memory_space<vmem>>, vector<16x16x28xf32>
    %97 = vector.shape_cast %96 : vector<16x16x28xf32> to vector<256x28xf32>
    %c2_99 = arith.constant 2 : index
    %c0_100 = arith.constant 0 : index
    %c0_101 = arith.constant 0 : index
    %98 = vector.load %arg7[%c2_99, %c0_100, %c0_101] : memref<9x28x32xf32, #tpu.memory_space<vmem>>, vector<1x28x32xf32>
    %99 = vector.shape_cast %98 : vector<1x28x32xf32> to vector<28x32xf32>
    %cst_102 = arith.constant dense<0.000000e+00> : vector<256x32xf32>
    %100 = tpu.matmul %97, %99, %cst_102 {dimension_numbers = #tpu.dot_dimension_numbers<[1], [0], [0], [1], [0, 0, 1, 1], [], []>} : vector<256x28xf32>, vector<28x32xf32>, vector<256x32xf32> -> vector<256x32xf32>
    %101 = arith.addf %95, %100 : vector<256x32xf32>
    %c1_103 = arith.constant 1 : index
    %c7_104 = arith.constant 7 : index
    %c0_105 = arith.constant 0 : index
    %102 = vector.load %arg14[%c1_103, %c7_104, %c0_105] : memref<18x32x28xf32, #tpu.memory_space<vmem>>, vector<16x16x28xf32>
    %103 = vector.shape_cast %102 : vector<16x16x28xf32> to vector<256x28xf32>
    %c3_106 = arith.constant 3 : index
    %c0_107 = arith.constant 0 : index
    %c0_108 = arith.constant 0 : index
    %104 = vector.load %arg7[%c3_106, %c0_107, %c0_108] : memref<9x28x32xf32, #tpu.memory_space<vmem>>, vector<1x28x32xf32>
    %105 = vector.shape_cast %104 : vector<1x28x32xf32> to vector<28x32xf32>
    %cst_109 = arith.constant dense<0.000000e+00> : vector<256x32xf32>
    %106 = tpu.matmul %103, %105, %cst_109 {dimension_numbers = #tpu.dot_dimension_numbers<[1], [0], [0], [1], [0, 0, 1, 1], [], []>} : vector<256x28xf32>, vector<28x32xf32>, vector<256x32xf32> -> vector<256x32xf32>
    %107 = arith.addf %101, %106 : vector<256x32xf32>
    %c1_110 = arith.constant 1 : index
    %c8_111 = arith.constant 8 : index
    %c0_112 = arith.constant 0 : index
    %108 = vector.load %arg14[%c1_110, %c8_111, %c0_112] : memref<18x32x28xf32, #tpu.memory_space<vmem>>, vector<16x16x28xf32>
    %109 = vector.shape_cast %108 : vector<16x16x28xf32> to vector<256x28xf32>
    %c4_113 = arith.constant 4 : index
    %c0_114 = arith.constant 0 : index
    %c0_115 = arith.constant 0 : index
    %110 = vector.load %arg7[%c4_113, %c0_114, %c0_115] : memref<9x28x32xf32, #tpu.memory_space<vmem>>, vector<1x28x32xf32>
    %111 = vector.shape_cast %110 : vector<1x28x32xf32> to vector<28x32xf32>
    %cst_116 = arith.constant dense<0.000000e+00> : vector<256x32xf32>
    %112 = tpu.matmul %109, %111, %cst_116 {dimension_numbers = #tpu.dot_dimension_numbers<[1], [0], [0], [1], [0, 0, 1, 1], [], []>} : vector<256x28xf32>, vector<28x32xf32>, vector<256x32xf32> -> vector<256x32xf32>
    %113 = arith.addf %107, %112 : vector<256x32xf32>
    %c1_117 = arith.constant 1 : index
    %c9_118 = arith.constant 9 : index
    %c0_119 = arith.constant 0 : index
    %114 = vector.load %arg14[%c1_117, %c9_118, %c0_119] : memref<18x32x28xf32, #tpu.memory_space<vmem>>, vector<16x16x28xf32>
    %115 = vector.shape_cast %114 : vector<16x16x28xf32> to vector<256x28xf32>
    %c5_120 = arith.constant 5 : index
    %c0_121 = arith.constant 0 : index
    %c0_122 = arith.constant 0 : index
    %116 = vector.load %arg7[%c5_120, %c0_121, %c0_122] : memref<9x28x32xf32, #tpu.memory_space<vmem>>, vector<1x28x32xf32>
    %117 = vector.shape_cast %116 : vector<1x28x32xf32> to vector<28x32xf32>
    %cst_123 = arith.constant dense<0.000000e+00> : vector<256x32xf32>
    %118 = tpu.matmul %115, %117, %cst_123 {dimension_numbers = #tpu.dot_dimension_numbers<[1], [0], [0], [1], [0, 0, 1, 1], [], []>} : vector<256x28xf32>, vector<28x32xf32>, vector<256x32xf32> -> vector<256x32xf32>
    %119 = arith.addf %113, %118 : vector<256x32xf32>
    %c2_124 = arith.constant 2 : index
    %c7_125 = arith.constant 7 : index
    %c0_126 = arith.constant 0 : index
    %120 = vector.load %arg14[%c2_124, %c7_125, %c0_126] : memref<18x32x28xf32, #tpu.memory_space<vmem>>, vector<16x16x28xf32>
    %121 = vector.shape_cast %120 : vector<16x16x28xf32> to vector<256x28xf32>
    %c6_127 = arith.constant 6 : index
    %c0_128 = arith.constant 0 : index
    %c0_129 = arith.constant 0 : index
    %122 = vector.load %arg7[%c6_127, %c0_128, %c0_129] : memref<9x28x32xf32, #tpu.memory_space<vmem>>, vector<1x28x32xf32>
    %123 = vector.shape_cast %122 : vector<1x28x32xf32> to vector<28x32xf32>
    %cst_130 = arith.constant dense<0.000000e+00> : vector<256x32xf32>
    %124 = tpu.matmul %121, %123, %cst_130 {dimension_numbers = #tpu.dot_dimension_numbers<[1], [0], [0], [1], [0, 0, 1, 1], [], []>} : vector<256x28xf32>, vector<28x32xf32>, vector<256x32xf32> -> vector<256x32xf32>
    %125 = arith.addf %119, %124 : vector<256x32xf32>
    %c2_131 = arith.constant 2 : index
    %c8_132 = arith.constant 8 : index
    %c0_133 = arith.constant 0 : index
    %126 = vector.load %arg14[%c2_131, %c8_132, %c0_133] : memref<18x32x28xf32, #tpu.memory_space<vmem>>, vector<16x16x28xf32>
    %127 = vector.shape_cast %126 : vector<16x16x28xf32> to vector<256x28xf32>
    %c7_134 = arith.constant 7 : index
    %c0_135 = arith.constant 0 : index
    %c0_136 = arith.constant 0 : index
    %128 = vector.load %arg7[%c7_134, %c0_135, %c0_136] : memref<9x28x32xf32, #tpu.memory_space<vmem>>, vector<1x28x32xf32>
    %129 = vector.shape_cast %128 : vector<1x28x32xf32> to vector<28x32xf32>
    %cst_137 = arith.constant dense<0.000000e+00> : vector<256x32xf32>
    %130 = tpu.matmul %127, %129, %cst_137 {dimension_numbers = #tpu.dot_dimension_numbers<[1], [0], [0], [1], [0, 0, 1, 1], [], []>} : vector<256x28xf32>, vector<28x32xf32>, vector<256x32xf32> -> vector<256x32xf32>
    %131 = arith.addf %125, %130 : vector<256x32xf32>
    %c2_138 = arith.constant 2 : index
    %c9_139 = arith.constant 9 : index
    %c0_140 = arith.constant 0 : index
    %132 = vector.load %arg14[%c2_138, %c9_139, %c0_140] : memref<18x32x28xf32, #tpu.memory_space<vmem>>, vector<16x16x28xf32>
    %133 = vector.shape_cast %132 : vector<16x16x28xf32> to vector<256x28xf32>
    %c8_141 = arith.constant 8 : index
    %c0_142 = arith.constant 0 : index
    %c0_143 = arith.constant 0 : index
    %134 = vector.load %arg7[%c8_141, %c0_142, %c0_143] : memref<9x28x32xf32, #tpu.memory_space<vmem>>, vector<1x28x32xf32>
    %135 = vector.shape_cast %134 : vector<1x28x32xf32> to vector<28x32xf32>
    %cst_144 = arith.constant dense<0.000000e+00> : vector<256x32xf32>
    %136 = tpu.matmul %133, %135, %cst_144 {dimension_numbers = #tpu.dot_dimension_numbers<[1], [0], [0], [1], [0, 0, 1, 1], [], []>} : vector<256x28xf32>, vector<28x32xf32>, vector<256x32xf32> -> vector<256x32xf32>
    %137 = arith.addf %131, %136 : vector<256x32xf32>
    %c0_145 = arith.constant 0 : index
    %c0_146 = arith.constant 0 : index
    %138 = vector.load %arg8[%c0_145, %c0_146] : memref<1x32xf32, #tpu.memory_space<vmem>>, vector<1x32xf32>
    %139 = vector.broadcast %138 : vector<1x32xf32> to vector<256x32xf32>
    %140 = arith.addf %137, %139 : vector<256x32xf32>
    %cst_147 = arith.constant 0.000000e+00 : f32
    %141 = vector.broadcast %cst_147 : f32 to vector<256x32xf32>
    %142 = arith.cmpf ogt, %140, %141 : vector<256x32xf32>
    %143 = vector.broadcast %84 : f32 to vector<256x32xf32>
    %144 = arith.mulf %143, %140 : vector<256x32xf32>
    %145 = arith.select %142, %140, %144 : vector<256x32xi1>, vector<256x32xf32>
    %c3_148 = arith.constant 3 : index
    %146 = memref.load %arg11[%c3_148] : memref<4xf32, #tpu.memory_space<smem>>
    %c0_149 = arith.constant 0 : index
    %c0_150 = arith.constant 0 : index
    %c0_151 = arith.constant 0 : index
    %c0_152 = arith.constant 0 : index
    %147 = vector.load %arg1[%c0_149, %c0_150, %c0_151, %c0_152] : memref<1x18x18x4xf32, #tpu.memory_space<vmem>>, vector<1x16x16x4xf32>
    %148 = vector.shape_cast %147 : vector<1x16x16x4xf32> to vector<16x16x4xf32>
    %149 = vector.shape_cast %148 : vector<16x16x4xf32> to vector<256x4xf32>
    %c0_153 = arith.constant 0 : index
    %c0_154 = arith.constant 0 : index
    %c0_155 = arith.constant 0 : index
    %150 = vector.load %arg9[%c0_153, %c0_154, %c0_155] : memref<9x4x48xf32, #tpu.memory_space<vmem>>, vector<1x4x48xf32>
    %151 = vector.shape_cast %150 : vector<1x4x48xf32> to vector<4x48xf32>
    %cst_156 = arith.constant dense<0.000000e+00> : vector<256x48xf32>
    %152 = tpu.matmul %149, %151, %cst_156 {dimension_numbers = #tpu.dot_dimension_numbers<[1], [0], [0], [1], [0, 0, 1, 1], [], []>} : vector<256x4xf32>, vector<4x48xf32>, vector<256x48xf32> -> vector<256x48xf32>
    %c0_157 = arith.constant 0 : index
    %c0_158 = arith.constant 0 : index
    %c1_159 = arith.constant 1 : index
    %c0_160 = arith.constant 0 : index
    %153 = vector.load %arg1[%c0_157, %c0_158, %c1_159, %c0_160] : memref<1x18x18x4xf32, #tpu.memory_space<vmem>>, vector<1x16x16x4xf32>
    %154 = vector.shape_cast %153 : vector<1x16x16x4xf32> to vector<16x16x4xf32>
    %155 = vector.shape_cast %154 : vector<16x16x4xf32> to vector<256x4xf32>
    %c1_161 = arith.constant 1 : index
    %c0_162 = arith.constant 0 : index
    %c0_163 = arith.constant 0 : index
    %156 = vector.load %arg9[%c1_161, %c0_162, %c0_163] : memref<9x4x48xf32, #tpu.memory_space<vmem>>, vector<1x4x48xf32>
    %157 = vector.shape_cast %156 : vector<1x4x48xf32> to vector<4x48xf32>
    %cst_164 = arith.constant dense<0.000000e+00> : vector<256x48xf32>
    %158 = tpu.matmul %155, %157, %cst_164 {dimension_numbers = #tpu.dot_dimension_numbers<[1], [0], [0], [1], [0, 0, 1, 1], [], []>} : vector<256x4xf32>, vector<4x48xf32>, vector<256x48xf32> -> vector<256x48xf32>
    %159 = arith.addf %152, %158 : vector<256x48xf32>
    %c0_165 = arith.constant 0 : index
    %c0_166 = arith.constant 0 : index
    %c2_167 = arith.constant 2 : index
    %c0_168 = arith.constant 0 : index
    %160 = vector.load %arg1[%c0_165, %c0_166, %c2_167, %c0_168] : memref<1x18x18x4xf32, #tpu.memory_space<vmem>>, vector<1x16x16x4xf32>
    %161 = vector.shape_cast %160 : vector<1x16x16x4xf32> to vector<16x16x4xf32>
    %162 = vector.shape_cast %161 : vector<16x16x4xf32> to vector<256x4xf32>
    %c2_169 = arith.constant 2 : index
    %c0_170 = arith.constant 0 : index
    %c0_171 = arith.constant 0 : index
    %163 = vector.load %arg9[%c2_169, %c0_170, %c0_171] : memref<9x4x48xf32, #tpu.memory_space<vmem>>, vector<1x4x48xf32>
    %164 = vector.shape_cast %163 : vector<1x4x48xf32> to vector<4x48xf32>
    %cst_172 = arith.constant dense<0.000000e+00> : vector<256x48xf32>
    %165 = tpu.matmul %162, %164, %cst_172 {dimension_numbers = #tpu.dot_dimension_numbers<[1], [0], [0], [1], [0, 0, 1, 1], [], []>} : vector<256x4xf32>, vector<4x48xf32>, vector<256x48xf32> -> vector<256x48xf32>
    %166 = arith.addf %159, %165 : vector<256x48xf32>
    %c0_173 = arith.constant 0 : index
    %c1_174 = arith.constant 1 : index
    %c0_175 = arith.constant 0 : index
    %c0_176 = arith.constant 0 : index
    %167 = vector.load %arg1[%c0_173, %c1_174, %c0_175, %c0_176] : memref<1x18x18x4xf32, #tpu.memory_space<vmem>>, vector<1x16x16x4xf32>
    %168 = vector.shape_cast %167 : vector<1x16x16x4xf32> to vector<16x16x4xf32>
    %169 = vector.shape_cast %168 : vector<16x16x4xf32> to vector<256x4xf32>
    %c3_177 = arith.constant 3 : index
    %c0_178 = arith.constant 0 : index
    %c0_179 = arith.constant 0 : index
    %170 = vector.load %arg9[%c3_177, %c0_178, %c0_179] : memref<9x4x48xf32, #tpu.memory_space<vmem>>, vector<1x4x48xf32>
    %171 = vector.shape_cast %170 : vector<1x4x48xf32> to vector<4x48xf32>
    %cst_180 = arith.constant dense<0.000000e+00> : vector<256x48xf32>
    %172 = tpu.matmul %169, %171, %cst_180 {dimension_numbers = #tpu.dot_dimension_numbers<[1], [0], [0], [1], [0, 0, 1, 1], [], []>} : vector<256x4xf32>, vector<4x48xf32>, vector<256x48xf32> -> vector<256x48xf32>
    %173 = arith.addf %166, %172 : vector<256x48xf32>
    %c0_181 = arith.constant 0 : index
    %c1_182 = arith.constant 1 : index
    %c1_183 = arith.constant 1 : index
    %c0_184 = arith.constant 0 : index
    %174 = vector.load %arg1[%c0_181, %c1_182, %c1_183, %c0_184] : memref<1x18x18x4xf32, #tpu.memory_space<vmem>>, vector<1x16x16x4xf32>
    %175 = vector.shape_cast %174 : vector<1x16x16x4xf32> to vector<16x16x4xf32>
    %176 = vector.shape_cast %175 : vector<16x16x4xf32> to vector<256x4xf32>
    %c4_185 = arith.constant 4 : index
    %c0_186 = arith.constant 0 : index
    %c0_187 = arith.constant 0 : index
    %177 = vector.load %arg9[%c4_185, %c0_186, %c0_187] : memref<9x4x48xf32, #tpu.memory_space<vmem>>, vector<1x4x48xf32>
    %178 = vector.shape_cast %177 : vector<1x4x48xf32> to vector<4x48xf32>
    %cst_188 = arith.constant dense<0.000000e+00> : vector<256x48xf32>
    %179 = tpu.matmul %176, %178, %cst_188 {dimension_numbers = #tpu.dot_dimension_numbers<[1], [0], [0], [1], [0, 0, 1, 1], [], []>} : vector<256x4xf32>, vector<4x48xf32>, vector<256x48xf32> -> vector<256x48xf32>
    %180 = arith.addf %173, %179 : vector<256x48xf32>
    %c0_189 = arith.constant 0 : index
    %c1_190 = arith.constant 1 : index
    %c2_191 = arith.constant 2 : index
    %c0_192 = arith.constant 0 : index
    %181 = vector.load %arg1[%c0_189, %c1_190, %c2_191, %c0_192] : memref<1x18x18x4xf32, #tpu.memory_space<vmem>>, vector<1x16x16x4xf32>
    %182 = vector.shape_cast %181 : vector<1x16x16x4xf32> to vector<16x16x4xf32>
    %183 = vector.shape_cast %182 : vector<16x16x4xf32> to vector<256x4xf32>
    %c5_193 = arith.constant 5 : index
    %c0_194 = arith.constant 0 : index
    %c0_195 = arith.constant 0 : index
    %184 = vector.load %arg9[%c5_193, %c0_194, %c0_195] : memref<9x4x48xf32, #tpu.memory_space<vmem>>, vector<1x4x48xf32>
    %185 = vector.shape_cast %184 : vector<1x4x48xf32> to vector<4x48xf32>
    %cst_196 = arith.constant dense<0.000000e+00> : vector<256x48xf32>
    %186 = tpu.matmul %183, %185, %cst_196 {dimension_numbers = #tpu.dot_dimension_numbers<[1], [0], [0], [1], [0, 0, 1, 1], [], []>} : vector<256x4xf32>, vector<4x48xf32>, vector<256x48xf32> -> vector<256x48xf32>
    %187 = arith.addf %180, %186 : vector<256x48xf32>
    %c0_197 = arith.constant 0 : index
    %c2_198 = arith.constant 2 : index
    %c0_199 = arith.constant 0 : index
    %c0_200 = arith.constant 0 : index
    %188 = vector.load %arg1[%c0_197, %c2_198, %c0_199, %c0_200] : memref<1x18x18x4xf32, #tpu.memory_space<vmem>>, vector<1x16x16x4xf32>
    %189 = vector.shape_cast %188 : vector<1x16x16x4xf32> to vector<16x16x4xf32>
    %190 = vector.shape_cast %189 : vector<16x16x4xf32> to vector<256x4xf32>
    %c6_201 = arith.constant 6 : index
    %c0_202 = arith.constant 0 : index
    %c0_203 = arith.constant 0 : index
    %191 = vector.load %arg9[%c6_201, %c0_202, %c0_203] : memref<9x4x48xf32, #tpu.memory_space<vmem>>, vector<1x4x48xf32>
    %192 = vector.shape_cast %191 : vector<1x4x48xf32> to vector<4x48xf32>
    %cst_204 = arith.constant dense<0.000000e+00> : vector<256x48xf32>
    %193 = tpu.matmul %190, %192, %cst_204 {dimension_numbers = #tpu.dot_dimension_numbers<[1], [0], [0], [1], [0, 0, 1, 1], [], []>} : vector<256x4xf32>, vector<4x48xf32>, vector<256x48xf32> -> vector<256x48xf32>
    %194 = arith.addf %187, %193 : vector<256x48xf32>
    %c0_205 = arith.constant 0 : index
    %c2_206 = arith.constant 2 : index
    %c1_207 = arith.constant 1 : index
    %c0_208 = arith.constant 0 : index
    %195 = vector.load %arg1[%c0_205, %c2_206, %c1_207, %c0_208] : memref<1x18x18x4xf32, #tpu.memory_space<vmem>>, vector<1x16x16x4xf32>
    %196 = vector.shape_cast %195 : vector<1x16x16x4xf32> to vector<16x16x4xf32>
    %197 = vector.shape_cast %196 : vector<16x16x4xf32> to vector<256x4xf32>
    %c7_209 = arith.constant 7 : index
    %c0_210 = arith.constant 0 : index
    %c0_211 = arith.constant 0 : index
    %198 = vector.load %arg9[%c7_209, %c0_210, %c0_211] : memref<9x4x48xf32, #tpu.memory_space<vmem>>, vector<1x4x48xf32>
    %199 = vector.shape_cast %198 : vector<1x4x48xf32> to vector<4x48xf32>
    %cst_212 = arith.constant dense<0.000000e+00> : vector<256x48xf32>
    %200 = tpu.matmul %197, %199, %cst_212 {dimension_numbers = #tpu.dot_dimension_numbers<[1], [0], [0], [1], [0, 0, 1, 1], [], []>} : vector<256x4xf32>, vector<4x48xf32>, vector<256x48xf32> -> vector<256x48xf32>
    %201 = arith.addf %194, %200 : vector<256x48xf32>
    %c0_213 = arith.constant 0 : index
    %c2_214 = arith.constant 2 : index
    %c2_215 = arith.constant 2 : index
    %c0_216 = arith.constant 0 : index
    %202 = vector.load %arg1[%c0_213, %c2_214, %c2_215, %c0_216] : memref<1x18x18x4xf32, #tpu.memory_space<vmem>>, vector<1x16x16x4xf32>
    %203 = vector.shape_cast %202 : vector<1x16x16x4xf32> to vector<16x16x4xf32>
    %204 = vector.shape_cast %203 : vector<16x16x4xf32> to vector<256x4xf32>
    %c8_217 = arith.constant 8 : index
    %c0_218 = arith.constant 0 : index
    %c0_219 = arith.constant 0 : index
    %205 = vector.load %arg9[%c8_217, %c0_218, %c0_219] : memref<9x4x48xf32, #tpu.memory_space<vmem>>, vector<1x4x48xf32>
    %206 = vector.shape_cast %205 : vector<1x4x48xf32> to vector<4x48xf32>
    %cst_220 = arith.constant dense<0.000000e+00> : vector<256x48xf32>
    %207 = tpu.matmul %204, %206, %cst_220 {dimension_numbers = #tpu.dot_dimension_numbers<[1], [0], [0], [1], [0, 0, 1, 1], [], []>} : vector<256x4xf32>, vector<4x48xf32>, vector<256x48xf32> -> vector<256x48xf32>
    %208 = arith.addf %201, %207 : vector<256x48xf32>
    %c0_221 = arith.constant 0 : index
    %c0_222 = arith.constant 0 : index
    %209 = vector.load %arg10[%c0_221, %c0_222] : memref<1x48xf32, #tpu.memory_space<vmem>>, vector<1x48xf32>
    %210 = vector.broadcast %209 : vector<1x48xf32> to vector<256x48xf32>
    %211 = arith.addf %208, %210 : vector<256x48xf32>
    %cst_223 = arith.constant 0.000000e+00 : f32
    %212 = vector.broadcast %cst_223 : f32 to vector<256x48xf32>
    %213 = arith.cmpf ogt, %211, %212 : vector<256x48xf32>
    %214 = vector.broadcast %146 : f32 to vector<256x48xf32>
    %215 = arith.mulf %214, %211 : vector<256x48xf32>
    %216 = arith.select %213, %211, %215 : vector<256x48xi1>, vector<256x48xf32>
    %c0_224 = arith.constant 0 : index
    %c1_225 = arith.constant 1 : index
    %c1_226 = arith.constant 1 : index
    %c0_227 = arith.constant 0 : index
    %217 = vector.load %arg2[%c0_224, %c1_225, %c1_226, %c0_227] : memref<1x18x18x4xf32, #tpu.memory_space<vmem>>, vector<1x16x16x4xf32>
    %218 = vector.shape_cast %217 : vector<1x16x16x4xf32> to vector<16x16x4xf32>
    %c0_228 = arith.constant 0 : index
    %c0_229 = arith.constant 0 : index
    %c0_230 = arith.constant 0 : index
    %c0_231 = arith.constant 0 : index
    %219 = vector.load %arg2[%c0_228, %c0_229, %c0_230, %c0_231] : memref<1x18x18x4xf32, #tpu.memory_space<vmem>>, vector<1x16x16x4xf32>
    %220 = vector.shape_cast %219 : vector<1x16x16x4xf32> to vector<16x16x4xf32>
    %221 = arith.maximumf %218, %220 : vector<16x16x4xf32>
    %c0_232 = arith.constant 0 : index
    %c0_233 = arith.constant 0 : index
    %c1_234 = arith.constant 1 : index
    %c0_235 = arith.constant 0 : index
    %222 = vector.load %arg2[%c0_232, %c0_233, %c1_234, %c0_235] : memref<1x18x18x4xf32, #tpu.memory_space<vmem>>, vector<1x16x16x4xf32>
    %223 = vector.shape_cast %222 : vector<1x16x16x4xf32> to vector<16x16x4xf32>
    %224 = arith.maximumf %221, %223 : vector<16x16x4xf32>
    %c0_236 = arith.constant 0 : index
    %c0_237 = arith.constant 0 : index
    %c2_238 = arith.constant 2 : index
    %c0_239 = arith.constant 0 : index
    %225 = vector.load %arg2[%c0_236, %c0_237, %c2_238, %c0_239] : memref<1x18x18x4xf32, #tpu.memory_space<vmem>>, vector<1x16x16x4xf32>
    %226 = vector.shape_cast %225 : vector<1x16x16x4xf32> to vector<16x16x4xf32>
    %227 = arith.maximumf %224, %226 : vector<16x16x4xf32>
    %c0_240 = arith.constant 0 : index
    %c1_241 = arith.constant 1 : index
    %c0_242 = arith.constant 0 : index
    %c0_243 = arith.constant 0 : index
    %228 = vector.load %arg2[%c0_240, %c1_241, %c0_242, %c0_243] : memref<1x18x18x4xf32, #tpu.memory_space<vmem>>, vector<1x16x16x4xf32>
    %229 = vector.shape_cast %228 : vector<1x16x16x4xf32> to vector<16x16x4xf32>
    %230 = arith.maximumf %227, %229 : vector<16x16x4xf32>
    %c0_244 = arith.constant 0 : index
    %c1_245 = arith.constant 1 : index
    %c2_246 = arith.constant 2 : index
    %c0_247 = arith.constant 0 : index
    %231 = vector.load %arg2[%c0_244, %c1_245, %c2_246, %c0_247] : memref<1x18x18x4xf32, #tpu.memory_space<vmem>>, vector<1x16x16x4xf32>
    %232 = vector.shape_cast %231 : vector<1x16x16x4xf32> to vector<16x16x4xf32>
    %233 = arith.maximumf %230, %232 : vector<16x16x4xf32>
    %c0_248 = arith.constant 0 : index
    %c2_249 = arith.constant 2 : index
    %c0_250 = arith.constant 0 : index
    %c0_251 = arith.constant 0 : index
    %234 = vector.load %arg2[%c0_248, %c2_249, %c0_250, %c0_251] : memref<1x18x18x4xf32, #tpu.memory_space<vmem>>, vector<1x16x16x4xf32>
    %235 = vector.shape_cast %234 : vector<1x16x16x4xf32> to vector<16x16x4xf32>
    %236 = arith.maximumf %233, %235 : vector<16x16x4xf32>
    %c0_252 = arith.constant 0 : index
    %c2_253 = arith.constant 2 : index
    %c1_254 = arith.constant 1 : index
    %c0_255 = arith.constant 0 : index
    %237 = vector.load %arg2[%c0_252, %c2_253, %c1_254, %c0_255] : memref<1x18x18x4xf32, #tpu.memory_space<vmem>>, vector<1x16x16x4xf32>
    %238 = vector.shape_cast %237 : vector<1x16x16x4xf32> to vector<16x16x4xf32>
    %239 = arith.maximumf %236, %238 : vector<16x16x4xf32>
    %c0_256 = arith.constant 0 : index
    %c2_257 = arith.constant 2 : index
    %c2_258 = arith.constant 2 : index
    %c0_259 = arith.constant 0 : index
    %240 = vector.load %arg2[%c0_256, %c2_257, %c2_258, %c0_259] : memref<1x18x18x4xf32, #tpu.memory_space<vmem>>, vector<1x16x16x4xf32>
    %241 = vector.shape_cast %240 : vector<1x16x16x4xf32> to vector<16x16x4xf32>
    %242 = arith.maximumf %239, %241 : vector<16x16x4xf32>
    %243 = vector.shape_cast %145 : vector<256x32xf32> to vector<16x16x32xf32>
    %244 = vector.shape_cast %216 : vector<256x48xf32> to vector<16x16x48xf32>
    %245 = tpu.concatenate %243, %244, %242 in 2 : vector<16x16x32xf32>, vector<16x16x48xf32>, vector<16x16x4xf32> -> vector<16x16x84xf32>
    %c0_260 = arith.constant 0 : index
    %c0_261 = arith.constant 0 : index
    %c0_262 = arith.constant 0 : index
    %c0_263 = arith.constant 0 : index
    %246 = vector.load %arg12[%c0_260, %c0_261, %c0_262, %c0_263] : memref<1x16x16x84xf32, #tpu.memory_space<vmem>>, vector<1x16x16x84xf32>
    %247 = vector.shape_cast %246 : vector<1x16x16x84xf32> to vector<16x16x84xf32>
    %248 = vector.shape_cast %245 : vector<16x16x84xf32> to vector<1x16x16x84xf32>
    tpu.vector_store %arg12[%c0_260, %c0_261, %c0_262, %c0_263], %248 {strides = array<i32>} : memref<1x16x16x84xf32, #tpu.memory_space<vmem>>, vector<1x16x16x84xf32>,
    return
  }
  func.func @transform_0(%arg0: i32) -> (i32, i32, i32, i32) {
    %c0_i32 = arith.constant 0 : i32
    %c0_i32_0 = arith.constant 0 : i32
    %c0_i32_1 = arith.constant 0 : i32
    %c0_i32_2 = arith.constant 0 : i32
    return %arg0, %c0_i32, %c0_i32_0, %c0_i32_1 : i32, i32, i32, i32
  }
  func.func @transform_1(%arg0: i32) -> (i32, i32, i32, i32) {
    %c0_i32 = arith.constant 0 : i32
    %c0_i32_0 = arith.constant 0 : i32
    %c0_i32_1 = arith.constant 0 : i32
    %c0_i32_2 = arith.constant 0 : i32
    return %arg0, %c0_i32, %c0_i32_0, %c0_i32_1 : i32, i32, i32, i32
  }
  func.func @transform_2(%arg0: i32) -> (i32, i32) {
    %c0_i32 = arith.constant 0 : i32
    %c0_i32_0 = arith.constant 0 : i32
    %c0_i32_1 = arith.constant 0 : i32
    return %c0_i32, %c0_i32_0 : i32, i32
  }
  func.func @transform_3(%arg0: i32) -> (i32, i32) {
    %c0_i32 = arith.constant 0 : i32
    %c0_i32_0 = arith.constant 0 : i32
    %c0_i32_1 = arith.constant 0 : i32
    return %c0_i32, %c0_i32_0 : i32, i32
  }
  func.func @transform_4(%arg0: i32) -> (i32, i32, i32) {
    %c0_i32 = arith.constant 0 : i32
    %c0_i32_0 = arith.constant 0 : i32
    %c0_i32_1 = arith.constant 0 : i32
    %c0_i32_2 = arith.constant 0 : i32
    return %c0_i32, %c0_i32_0, %c0_i32_1 : i32, i32, i32
  }
  func.func @transform_5(%arg0: i32) -> (i32, i32) {
    %c0_i32 = arith.constant 0 : i32
    %c0_i32_0 = arith.constant 0 : i32
    %c0_i32_1 = arith.constant 0 : i32
    return %c0_i32, %c0_i32_0 : i32, i32
  }
  func.func @transform_6(%arg0: i32) -> (i32, i32, i32) {
    %c0_i32 = arith.constant 0 : i32
    %c0_i32_0 = arith.constant 0 : i32
    %c0_i32_1 = arith.constant 0 : i32
    %c0_i32_2 = arith.constant 0 : i32
    return %c0_i32, %c0_i32_0, %c0_i32_1 : i32, i32, i32
  }
  func.func @transform_7(%arg0: i32) -> (i32, i32) {
    %c0_i32 = arith.constant 0 : i32
    %c0_i32_0 = arith.constant 0 : i32
    %c0_i32_1 = arith.constant 0 : i32
    return %c0_i32, %c0_i32_0 : i32, i32
  }
  func.func @transform_8(%arg0: i32) -> (i32, i32, i32) {
    %c0_i32 = arith.constant 0 : i32
    %c0_i32_0 = arith.constant 0 : i32
    %c0_i32_1 = arith.constant 0 : i32
    %c0_i32_2 = arith.constant 0 : i32
    return %c0_i32, %c0_i32_0, %c0_i32_1 : i32, i32, i32
  }
  func.func @transform_9(%arg0: i32) -> (i32, i32) {
    %c0_i32 = arith.constant 0 : i32
    %c0_i32_0 = arith.constant 0 : i32
    %c0_i32_1 = arith.constant 0 : i32
    return %c0_i32, %c0_i32_0 : i32, i32
  }
  func.func @transform_10(%arg0: i32) -> i32 {
    %c0_i32 = arith.constant 0 : i32
    %c0_i32_0 = arith.constant 0 : i32
    return %c0_i32 : i32
  }
  func.func @transform_11(%arg0: i32) -> (i32, i32, i32, i32) {
    %c0_i32 = arith.constant 0 : i32
    %c0_i32_0 = arith.constant 0 : i32
    %c0_i32_1 = arith.constant 0 : i32
    %c0_i32_2 = arith.constant 0 : i32
    return %arg0, %c0_i32, %c0_i32_0, %c0_i32_1 : i32, i32, i32, i32
  }
}

</mosaic_0001>

<bundles_post_ra>
// kernel: reduction_block_a_forward.1
= control target key start
LH: loop header
LB: loop body
LE: loop exit
PB: predicated region body
PF: predicated region fallthrough
CT: control target
= control target key end

     0   :  { %s21900_s0 = inlined_call_operand.vmem [shape: f32[2,18,18,4], index: 0, kind: input, shape index: {}]   ;;  %s21901_s1 = inlined_call_operand.vmem [shape: f32[2,18,18,4], index: 1, kind: input, shape index: {}]   ;;  %s21902_s2 = inlined_call_operand.vmem [shape: f32[4,24], index: 2, kind: input, shape index: {}]   ;;  %s21903_s3 = inlined_call_operand.vmem [shape: f32[1,24], index: 3, kind: input, shape index: {}]   ;;  %s21904_s4 = inlined_call_operand.vmem [shape: f32[9,24,28], index: 4, kind: input, shape index: {}]   ;;  %s21905_s5 = inlined_call_operand.vmem [shape: f32[1,28], index: 5, kind: input, shape index: {}]   ;;  %s21906_s6 = inlined_call_operand.vmem [shape: f32[9,28,32], index: 6, kind: input, shape index: {}]   ;;  %s21907_s7 = inlined_call_operand.vmem [shape: f32[1,32], index: 7, kind: input, shape index: {}]   ;;  %s21908_s8 = inlined_call_operand.vmem [shape: f32[9,4,48], index: 8, kind: input, shape index: {}]   ;;  %s21909_s9 = inlined_call_operand.vmem [shape: f32[1,48], index: 9, kind: input, shape index: {}]   ;;  %s21910_s10 = inlined_call_operand.vmem [shape: f32[4], index: 10, kind: input, shape index: {}]   ;;  %s21911_s11 = inlined_call_operand.hbm [shape: f32[2,16,16,84], index: 11, kind: output, shape index: {}]  }
   0x1   :  { %22023 = sst [smem:[#allocation89_spill]] %s21900_s0 }
   0x2   :  { %22024 = sst [smem:[#allocation90_spill]] %s21902_s2 }
   0x3   :  { %16 = vsyncpa [#allocation6], 0 }
   0x4   :  { %17 = vsyncpa [#allocation5], 0 }
   0x5   :  { %19 = vsyncpa [#allocation5 + $0x1], 0  ;;  %s17875_s17 = smov 0   ;;  %s17877_s18 = smov 0  }
   0x6   :  { %s17879_s19 = smov 0   ;;  %s17881_s20 = smov 0  }
   0x7 LB: > { %s17896_s21 = sadd.s32 4294967295, %s17805_s20   ;;  %s12864_s22 = sadd.s32 4294967294, %s17805_s20   ;;  %s17805_s20 = sphi %s17881_s20, %s22252_s20   ;;  %s17801_s19 = sphi %s17879_s19, %s22251_s19   ;;  %s17797_s18 = sphi %s17877_s18, %s22250_s18   ;;  %s17793_s17 = sphi %s17875_s17, %s22249_s17  }
   0x8   : > { %s17900_s23 = sadd.s32 1, %s17805_s20   ;;  %s273_s24 = sadd.s32 1, %s17801_s19 }
   0x9   : > { %s270_s25 = ssub.s32 %s17805_s20, %s17900_s23  ;;  %p283_p0 = scmp.ne.s32.totalorder %s17801_s19, %s17797_s18 }
   0xa   : > { %p271_p1 = scmp.eq.s32.totalorder %s270_s25, 0  ;;  %p284_p2 = scmp.eq.s32.totalorder %s17896_s21, 1 }
   0xb   : > { %p289_p3 = scmp.ne.s32.totalorder %s17797_s18, %s17793_s17  ;;  %p290_p4 = scmp.eq.s32.totalorder %s12864_s22, 1 }
   0xc   : > { %s17911_s26 = scalar_select %p271_p1, %s17801_s19, %s273_s24  }
   0xd   : > { %p17913_p5 = por %p284_p2, %p283_p0  ;;  %p17917_p6 = por %p290_p4, %p289_p3 }
   0xe   : > { %p12865_p7 = scmp.ge.s32.totalorder %s17805_s20, 1  ;;  %p297_p8 = scmp.lt.s32.totalorder %s17805_s20, 3 }
   0xf   : > { %p17649_p9 = scmp.eq.s32.totalorder %s17896_s21, 0  ;;  %s334_s13 = sshll.u32 %s21910_s10, 4  ;;  %s335_s13 = int_to_ptr.vmem [resolvable:$true] %s334_s13 }
  0x10   : > { %p17924_p10 = pnand %p12865_p7, %p297_p8  ;;  %s17724_s14 = scalar_lea.vmem %s335_s13, 16 }
  0x11   : > { %p17725_p13 = scmp.ne.s32.totalorder %s335_s13, %s17724_s14  ;;  %p17732_p3 = scmp.lt.s32.totalorder %s335_s13, %s335_s13 }
  0x12   : > { %p17641_p11 = pneg %p17924_p10  ;;  %p17733_p4 = scmp.lt.s32.totalorder %s17724_s14, %s17724_s14 }
  0x14   : > { %p17642_p12 = pnand %p17649_p9, %p17641_p11  ;;  %p17734_p7 = por %p17733_p4, %p17732_p3 }
  0x16   : > { %p17726_p0 = pneg %p17642_p12 }
  0x18   : > { %p17727_p1 = pnand %p17726_p0, %p17725_p13 }
  0x1a   : > { %p17728_p2 = pneg %p17727_p1 }
  0x1c   : > { %p17735_p8 = pnand %p17734_p7, %p17728_p2 }
  0x1e   : > { %17738 = shalt.err (!%p17735_p8)
}
  0x1f   : > { %s17807_s15 = smov [#allocation4]   ;;  %363 = sbr.rel (%p17924_p10) target bundleno = 1567 (0x61f), region = 64 }
  0x20   : > { %17644 = dma.vmem_to_smem (!%p17642_p12), %s335_s13, 16, %s17807_s15, [#allocation6]  }
  0x26   : > { %17784 = dma.done.wait (%p17649_p9), [#allocation6], 16  }
  0x27   : > { %17786 = vsyncadd (%p17649_p9), [#allocation6], 4294967280 }
  0x28   : > { %369 = sfence }
  0x29   : > { %s22028_s2 = sld [smem:[#allocation90_spill]]  ;;  %vm557_vm0 = vcmask 1043456   ;;  %p409_p11 = scmp.lt.s32.totalorder %s17896_s21, 1  ;;  %vm460_vm1 = vcmask 31744   ;;  %vm884_vm2 = vcmask 195584   ;;  %v21913_v33 = vmov 0.0  }
  0x2a   : > { %s22029_s0 = sld [smem:[#allocation89_spill]]  ;;  %891 = vst.msk [vmem:[#allocation2 + $0x30] sm:$0xff] %vm884_vm2, %v21913_v33  ;;  %885 = vst.msk [vmem:[#allocation2] sm:$0xff] %vm884_vm2, %v21913_v33  ;;  %v12940_v34 = vld [vmem:[%s21904_s4 + $0x18] sm:$0xff]  ;;  %v12941_v35 = vld [vmem:[%s21904_s4 + $0x20] sm:$0xff]  ;;  %s12939_s22 = sld [smem:[#allocation4 + $0x1]] }
  0x2b   : > { %s17948_s24 = scalar_select %p409_p11, %s17896_s21, 1  ;;  %886 = vst.msk [vmem:[#allocation2 + $0x8] sm:$0xff] %vm884_vm2, %v21913_v33  ;;  %887 = vst.msk [vmem:[#allocation2 + $0x10] sm:$0xff] %vm884_vm2, %v21913_v33  ;;  %v16740_v36 = vpack.c.bf16 %v12941_v35, %v12940_v34  ;;  %v13077_v37 = vld [vmem:[%s21904_s4 + $0x60] sm:$0xff]  ;;  %v13078_v38 = vld [vmem:[%s21904_s4 + $0x68] sm:$0xff] }
  0x2c   : > { %888 = vst.msk [vmem:[#allocation2 + $0x18] sm:$0xff] %vm884_vm2, %v21913_v33  ;;  %889 = vst.msk [vmem:[#allocation2 + $0x20] sm:$0xff] %vm884_vm2, %v21913_v33  ;;  %v16756_v39 = vpack.c.bf16 %v13078_v38, %v13077_v37  ;;  %v12942_v40 = vld [vmem:[%s21904_s4 + $0x28] sm:$0xff]  ;;  %v13079_v43 = vld [vmem:[%s21904_s4 + $0x70] sm:$0xff]  ;;  %s17810_s30 = smov 80   ;;  %s13584_s15 = sld [smem:[#allocation4 + $0x3]] }
  0x2d   : > { %s21912_s25 = smul.u32 432, %s17948_s24  ;;  %890 = vst.msk [vmem:[#allocation2 + $0x28] sm:$0xff] %vm884_vm2, %v21913_v33  ;;  %892 = vst.msk [vmem:[#allocation2 + $0x38] sm:$0xff] %vm884_vm2, %v21913_v33  ;;  %v13112_v44 = vld [vmem:[%s21904_s4 + $0x78] sm:$0xff]  ;;  %v13113_v45 = vld [vmem:[%s21904_s4 + $0x80] sm:$0xff]  ;;  %s17811_s16 = smov 32  }
  0x2e   : > { %893 = vst.msk [vmem:[#allocation2 + $0x40] sm:$0xff] %vm884_vm2, %v21913_v33  ;;  %894 = vst.msk [vmem:[#allocation2 + $0x48] sm:$0xff] %vm884_vm2, %v21913_v33  ;;  %16757 = vmatprep.subr.bf16.mxu1 %v16756_v39  ;;  %v18192_v46 = vpack.c.bf16 %v13113_v45, %v13112_v44  ;;  %v1023_v47 = vld [vmem:[%s21904_s4] sm:$0xff]  ;;  %v1024_v48 = vld [vmem:[%s21904_s4 + $0x8] sm:$0xff]  ;;  %s22244_s29 = smul.u32 432, %s17948_s24  ;;  %s14280_s24 = sshll.u32 %s17896_s21, 12 }
  0x2f   : > { %v452_v0 = vld [vmem:[%s22028_s2] sm:$0xf]  ;;  %895 = vst.msk [vmem:[#allocation2 + $0x50] sm:$0xff] %vm884_vm2, %v21913_v33  ;;  %896 = vst.msk [vmem:[#allocation2 + $0x58] sm:$0xff] %vm884_vm2, %v21913_v33  ;;  %16759 = vmatpush3.bf16.msra.mxu1 %v16756_v39  ;;  %v16744_v49 = vpack.c.bf16 %v1024_v48, %v1023_v47  ;;  %v1025_v50 = vld [vmem:[%s21904_s4 + $0x10] sm:$0xff]  ;;  %s21846_s2 = scalar_lea.hbm %s21911_s11, %s14280_s24 }
  0x30   : > { %15250 = vmatprep.subr.msk.mxu0 %vm557_vm0, %v452_v0  ;;  %s17956_s12 = scalar_lea.vmem %s22029_s0, %s21912_s25  ;;  %897 = vst.msk [vmem:[#allocation2 + $0x60] sm:$0xff] %vm884_vm2, %v21913_v33  ;;  %898 = vst.msk [vmem:[#allocation2 + $0x68] sm:$0xff] %vm884_vm2, %v21913_v33  ;;  %15520 = vmatprep.subr.mxu1 %v13079_v43  ;;  %s786_s25 = sld [smem:[#allocation4]]  ;;  %v18207_v51 = vld [vmem:[%s21903_s3] ss:$0 sm:$0xff]  ;;  %v13007_v60 = vld [vmem:[%s21904_s4 + $0x30] sm:$0xff] }
  0x31   : > { %15251 = vmatpush3.msk.msra.mxu0 %vm557_vm0, %v452_v0  ;;  %v12873_v1 = vld [vmem:[%s17956_s12 + $0x19] sm:$0xff]  ;;  %v12874_v2 = vld [vmem:[%s17956_s12 + $0x21] sm:$0xff]  ;;  %v12875_v3 = vld [vmem:[%s17956_s12 + $0x31] sm:$0xff]  ;;  %899 = vst.msk [vmem:[#allocation2 + $0x70] sm:$0xff] %vm884_vm2, %v21913_v33  ;;  %s20893_s14 = scalar_lea.vmem %s21901_s1, %s22244_s29 }
  0x32   : > { %15252 = vmatprep.mubr.msk.f32.mxu0 %vm460_vm1, %v12873_v1  ;;  %v12876_v4 = vld [vmem:[%s17956_s12 + $0x39] sm:$0xff]  ;;  %v12877_v5 = vld [vmem:[%s17956_s12 + $0x49] sm:$0xff]  ;;  %v12878_v6 = vld [vmem:[%s17956_s12 + $0x51] sm:$0xff]  ;;  %900 = vst.msk [vmem:[#allocation2 + $0x78] sm:$0xff] %vm884_vm2, %v21913_v33  ;;  %16741 = vmatprep.subr.bf16.mxu0 %v16740_v36 }
  0x33   : > { %15253 = vmatmul.mubr.msk.f32.vlgmr.msra.gmra.mrb[0].mxu0 %vm460_vm1, %v12874_v2  ;;  %v12879_v7 = vld [vmem:[%s17956_s12 + $0x61] sm:$0xff]  ;;  %v12880_v8 = vld [vmem:[%s17956_s12 + $0x69] sm:$0xff]  ;;  %v12881_v9 = vld [vmem:[%s17956_s12 + $0x79] sm:$0xff]  ;;  %901 = vst.msk [vmem:[#allocation2 + $0x80] sm:$0xff] %vm884_vm2, %v21913_v33  ;;  %15521 = vmatpush3.msra.mxu1 %v13079_v43 }
  0x34   : > { %15255 = vmatprep.mubr.msk.f32.mxu0 %vm460_vm1, %v12875_v3  ;;  %v12882_v10 = vld [vmem:[%s17956_s12 + $0x81] sm:$0xff]  ;;  %v12883_v11 = vld [vmem:[%s17956_s12 + $0x91] sm:$0xff]  ;;  %v12884_v12 = vld [vmem:[%s17956_s12 + $0x99] sm:$0xff]  ;;  %902 = vst.msk [vmem:[#allocation2 + $0x88] sm:$0xff] %vm884_vm2, %v21913_v33  ;;  %16743 = vmatpush3.bf16.msra.mxu0 %v16740_v36 }
  0x35   : > { %v12885_v13 = vld [vmem:[%s17956_s12 + $0xa9] sm:$0xff]  ;;  %v12886_v14 = vld [vmem:[%s17956_s12 + $0xb1] sm:$0xff]  ;;  %v12887_v15 = vld [vmem:[%s17956_s12 + $0xc1] sm:$0xff]  ;;  %903 = vst.msk [vmem:[#allocation2 + $0x90] sm:$0xff] %vm884_vm2, %v21913_v33  ;;  %15304 = vmatprep.subr.mxu0 %v12942_v40  ;;  %16761 = vmatprep.subr.bf16.mxu1 %v18192_v46 }
  0x36   : > { %v12888_v16 = vld [vmem:[%s17956_s12 + $0xc9] sm:$0xff]  ;;  %v12889_v17 = vld [vmem:[%s17956_s12 + $0xd9] sm:$0xff]  ;;  %v12890_v18 = vld [vmem:[%s17956_s12 + $0xe1] sm:$0xff]  ;;  %904 = vst.msk [vmem:[#allocation2 + $0x98] sm:$0xff] %vm884_vm2, %v21913_v33  ;;  %v18209_v53 = vstv %s786_s25 }
  0x37   : > { %15256 = vmatmul.mubr.msk.f32.gmra.mrb[2].mxu0 %vm460_vm1, %v12876_v4  ;;  %v12891_v19 = vld [vmem:[%s17956_s12 + $0xf1] sm:$0xff]  ;;  %v12892_v20 = vld [vmem:[%s17956_s12 + $0xf9] sm:$0xff]  ;;  %v12893_v21 = vld [vmem:[%s17956_s12 + $0x109] sm:$0xff]  ;;  %905 = vst.msk [vmem:[#allocation2 + $0xa0] sm:$0xff] %vm884_vm2, %v21913_v33 }
  0x38   : > { %15258 = vmatprep.mubr.msk.f32.mxu0 %vm460_vm1, %v12877_v5  ;;  %v12894_v22 = vld [vmem:[%s17956_s12 + $0x111] sm:$0xff]  ;;  %v12895_v23 = vld [vmem:[%s17956_s12 + $0x121] sm:$0xff]  ;;  %v12896_v24 = vld [vmem:[%s17956_s12 + $0x129] sm:$0xff]  ;;  %906 = vst.msk [vmem:[#allocation2 + $0xa8] sm:$0xff] %vm884_vm2, %v21913_v33  ;;  %15305 = vmatpush3.msra.mxu0 %v12942_v40 }
  0x39   : > { %v12897_v25 = vld [vmem:[%s17956_s12 + $0x139] sm:$0xff]  ;;  %v12898_v26 = vld [vmem:[%s17956_s12 + $0x141] sm:$0xff]  ;;  %v12899_v27 = vld [vmem:[%s17956_s12 + $0x151] sm:$0xff]  ;;  %907 = vst.msk [vmem:[#allocation2 + $0xb0] sm:$0xff] %vm884_vm2, %v21913_v33  ;;  %16745 = vmatprep.subr.bf16.mxu0 %v16744_v49 }
  0x3a   : > { %v12900_v28 = vld [vmem:[%s17956_s12 + $0x159] sm:$0xff]  ;;  %v12901_v29 = vld [vmem:[%s17956_s12 + $0x169] sm:$0xff]  ;;  %v12902_v30 = vld [vmem:[%s17956_s12 + $0x171] sm:$0xff]  ;;  %908 = vst.msk [vmem:[#allocation2 + $0xb8] sm:$0xff] %vm884_vm2, %v21913_v33 }
  0x3b   : > { %15259 = vmatmul.mubr.msk.f32.gmra.mrb[4].mxu0 %vm460_vm1, %v12878_v6  ;;  %v12903_v31 = vld [vmem:[%s17956_s12 + $0x181] sm:$0xff]  ;;  %v12904_v32 = vld [vmem:[%s17956_s12 + $0x189] sm:$0xff]  ;;  %909 = vst.msk [vmem:[#allocation2 + $0xc0] sm:$0xff] %vm884_vm2, %v21913_v33  ;;  %910 = vst.msk [vmem:[#allocation2 + $0xc8] sm:$0xff] %vm884_vm2, %v21913_v33 }
  0x3c   : > { %15261 = vmatprep.mubr.msk.f32.mxu0 %vm460_vm1, %v12879_v7  ;;  %911 = vst.msk [vmem:[#allocation2 + $0xd0] sm:$0xff] %vm884_vm2, %v21913_v33  ;;  %912 = vst.msk [vmem:[#allocation2 + $0xd8] sm:$0xff] %vm884_vm2, %v21913_v33  ;;  %v1026_v41 = vld [vmem:[#allocation2 + $0x8] sm:$0xff]  ;;  %v1027_v42 = vld [vmem:[#allocation2 + $0x10] sm:$0xff] }
  0x3d   : > { %913 = vst.msk [vmem:[#allocation2 + $0xe0] sm:$0xff] %vm884_vm2, %v21913_v33  ;;  %914 = vst.msk [vmem:[#allocation2 + $0xe8] sm:$0xff] %vm884_vm2, %v21913_v33  ;;  %v13008_v61 = vld [vmem:[%s21904_s4 + $0x38] sm:$0xff] }
  0x3e   : > { %915 = vst.msk [vmem:[#allocation2 + $0xf0] sm:$0xff] %vm884_vm2, %v21913_v33  ;;  %916 = vst.msk [vmem:[#allocation2 + $0xf8] sm:$0xff] %vm884_vm2, %v21913_v33  ;;  %v18222_v1 = vpack.c.bf16 %v13008_v61, %v13007_v60 }
  0x3f   : > { %15262 = vmatmul.mubr.msk.f32.gmra.mrb[6].mxu0 %vm460_vm1, %v12880_v8  ;;  %917 = vst.msk [vmem:[#allocation2 + $0x100] sm:$0xff] %vm884_vm2, %v21913_v33  ;;  %918 = vst.msk [vmem:[#allocation2 + $0x108] sm:$0xff] %vm884_vm2, %v21913_v33 }
  0x40   : > { %15264 = vmatprep.mubr.msk.f32.mxu0 %vm460_vm1, %v12881_v9  ;;  %919 = vst.msk [vmem:[#allocation2 + $0x110] sm:$0xff] %vm884_vm2, %v21913_v33  ;;  %920 = vst.msk [vmem:[#allocation2 + $0x118] sm:$0xff] %vm884_vm2, %v21913_v33 }
  0x41   : > { %921 = vst.msk [vmem:[#allocation2 + $0x120] sm:$0xff] %vm884_vm2, %v21913_v33  ;;  %922 = vst.msk [vmem:[#allocation2 + $0x128] sm:$0xff] %vm884_vm2, %v21913_v33 }
  0x42   : > { %923 = vst.msk [vmem:[#allocation2 + $0x130] sm:$0xff] %vm884_vm2, %v21913_v33  ;;  %924 = vst.msk [vmem:[#allocation2 + $0x138] sm:$0xff] %vm884_vm2, %v21913_v33 }
  0x43   : > { %15265 = vmatmul.mubr.msk.f32.gmra.mrb[8].mxu0 %vm460_vm1, %v12882_v10  ;;  %925 = vst.msk [vmem:[#allocation2 + $0x140] sm:$0xff] %vm884_vm2, %v21913_v33  ;;  %926 = vst.msk [vmem:[#allocation2 + $0x148] sm:$0xff] %vm884_vm2, %v21913_v33 }
  0x44   : > { %15267 = vmatprep.mubr.msk.f32.mxu0 %vm460_vm1, %v12883_v11  ;;  %927 = vst.msk [vmem:[#allocation2 + $0x150] sm:$0xff] %vm884_vm2, %v21913_v33  ;;  %928 = vst.msk [vmem:[#allocation2 + $0x158] sm:$0xff] %vm884_vm2, %v21913_v33 }
  0x45   : > { %929 = vst.msk [vmem:[#allocation2 + $0x160] sm:$0xff] %vm884_vm2, %v21913_v33  ;;  %930 = vst.msk [vmem:[#allocation2 + $0x168] sm:$0xff] %vm884_vm2, %v21913_v33 }
  0x46   : > { %931 = vst.msk [vmem:[#allocation2 + $0x170] sm:$0xff] %vm884_vm2, %v21913_v33  ;;  %932 = vst.msk [vmem:[#allocation2 + $0x178] sm:$0xff] %vm884_vm2, %v21913_v33 }
  0x47   : > { %15268 = vmatmul.mubr.msk.f32.gmra.mrb[10].mxu0 %vm460_vm1, %v12884_v12  ;;  %933 = vst.msk [vmem:[#allocation2 + $0x180] sm:$0xff] %vm884_vm2, %v21913_v33  ;;  %934 = vst.msk [vmem:[#allocation2 + $0x188] sm:$0xff] %vm884_vm2, %v21913_v33 }
  0x48   : > { %15270 = vmatprep.mubr.msk.f32.mxu0 %vm460_vm1, %v12885_v13  ;;  %935 = vst.msk [vmem:[#allocation2 + $0x190] sm:$0xff] %vm884_vm2, %v21913_v33  ;;  %936 = vst.msk [vmem:[#allocation2 + $0x198] sm:$0xff] %vm884_vm2, %v21913_v33 }
  0x49   : > { %937 = vst.msk [vmem:[#allocation2 + $0x1a0] sm:$0xff] %vm884_vm2, %v21913_v33  ;;  %938 = vst.msk [vmem:[#allocation2 + $0x1a8] sm:$0xff] %vm884_vm2, %v21913_v33 }
  0x4a   : > { %939 = vst.msk [vmem:[#allocation2 + $0x1b0] sm:$0xff] %vm884_vm2, %v21913_v33  ;;  %940 = vst.msk [vmem:[#allocation2 + $0x1b8] sm:$0xff] %vm884_vm2, %v21913_v33 }
  0x4b   : > { %15271 = vmatmul.mubr.msk.f32.gmra.mrb[12].mxu0 %vm460_vm1, %v12886_v14  ;;  %941 = vst.msk [vmem:[#allocation2 + $0x1c0] sm:$0xff] %vm884_vm2, %v21913_v33  ;;  %942 = vst.msk [vmem:[#allocation2 + $0x1c8] sm:$0xff] %vm884_vm2, %v21913_v33 }
  0x4c   : > { %15273 = vmatprep.mubr.msk.f32.mxu0 %vm460_vm1, %v12887_v15  ;;  %943 = vst.msk [vmem:[#allocation2 + $0x1d0] sm:$0xff] %vm884_vm2, %v21913_v33  ;;  %944 = vst.msk [vmem:[#allocation2 + $0x1d8] sm:$0xff] %vm884_vm2, %v21913_v33 }
  0x4d   : > { %945 = vst.msk [vmem:[#allocation2 + $0x1e0] sm:$0xff] %vm884_vm2, %v21913_v33  ;;  %946 = vst.msk [vmem:[#allocation2 + $0x1e8] sm:$0xff] %vm884_vm2, %v21913_v33 }
  0x4e   : > { %947 = vst.msk [vmem:[#allocation2 + $0x1f0] sm:$0xff] %vm884_vm2, %v21913_v33  ;;  %948 = vst.msk [vmem:[#allocation2 + $0x1f8] sm:$0xff] %vm884_vm2, %v21913_v33 }
  0x4f   : > { %15274 = vmatmul.mubr.msk.f32.gmra.mrb[14].mxu0 %vm460_vm1, %v12888_v16  ;;  %949 = vst.msk [vmem:[#allocation2 + $0x200] sm:$0xff] %vm884_vm2, %v21913_v33  ;;  %950 = vst.msk [vmem:[#allocation2 + $0x208] sm:$0xff] %vm884_vm2, %v21913_v33 }
  0x50   : > { %15276 = vmatprep.mubr.msk.f32.mxu0 %vm460_vm1, %v12889_v17  ;;  %951 = vst.msk [vmem:[#allocation2 + $0x210] sm:$0xff] %vm884_vm2, %v21913_v33  ;;  %952 = vst.msk [vmem:[#allocation2 + $0x218] sm:$0xff] %vm884_vm2, %v21913_v33 }
  0x51   : > { %953 = vst.msk [vmem:[#allocation2 + $0x220] sm:$0xff] %vm884_vm2, %v21913_v33  ;;  %954 = vst.msk [vmem:[#allocation2 + $0x228] sm:$0xff] %vm884_vm2, %v21913_v33 }
  0x52   : > { %955 = vst.msk [vmem:[#allocation2 + $0x230] sm:$0xff] %vm884_vm2, %v21913_v33  ;;  %956 = vst.msk [vmem:[#allocation2 + $0x238] sm:$0xff] %vm884_vm2, %v21913_v33 }
  0x53   : > { %15277 = vmatmul.mubr.msk.f32.gmra.mrb[16].mxu0 %vm460_vm1, %v12890_v18 }
  0x54   : > { %15279 = vmatprep.mubr.msk.f32.mxu0 %vm460_vm1, %v12891_v19 }
  0x57   : > { %15280 = vmatmul.mubr.msk.f32.gmra.mrb[18].mxu0 %vm460_vm1, %v12892_v20 }
  0x58   : > { %15282 = vmatprep.mubr.msk.f32.mxu0 %vm460_vm1, %v12893_v21  ;;  %v13114_v21 = vld [vmem:[%s21904_s4 + $0x88] sm:$0xff] }
  0x5b   : > { %15283 = vmatmul.mubr.msk.f32.gmra.mrb[20].mxu0 %vm460_vm1, %v12894_v22 }
  0x5c   : > { %15285 = vmatprep.mubr.msk.f32.mxu0 %vm460_vm1, %v12895_v23 }
  0x5f   : > { %15286 = vmatmul.mubr.msk.f32.gmra.mrb[22].mxu0 %vm460_vm1, %v12896_v24  ;;  %v13147_v24 = vld [vmem:[%s21904_s4 + $0x90] sm:$0xff] }
  0x60   : > { %15288 = vmatprep.mubr.msk.f32.mxu0 %vm460_vm1, %v12897_v25  ;;  %v13148_v25 = vld [vmem:[%s21904_s4 + $0x98] sm:$0xff] }
  0x61   : > { %v18259_v35 = vpack.c.bf16 %v13148_v25, %v13147_v24 }
  0x63   : > { %15289 = vmatmul.mubr.msk.f32.gmra.mrb[24].mxu0 %vm460_vm1, %v12898_v26 }
  0x64   : > { %15291 = vmatprep.mubr.msk.f32.mxu0 %vm460_vm1, %v12899_v27 }
  0x67   : > { %15292 = vmatmul.mubr.msk.f32.gmra.mrb[26].mxu0 %vm460_vm1, %v12900_v28 }
  0x68   : > { %15294 = vmatprep.mubr.msk.f32.mxu0 %vm460_vm1, %v12901_v29 }
  0x6b   : > { %15295 = vmatmul.mubr.msk.f32.gmra.mrb[28].mxu0 %vm460_vm1, %v12902_v30 }
  0x6c   : > { %15297 = vmatprep.mubr.msk.f32.mxu0 %vm460_vm1, %v12903_v31 }
  0x6f   : > { %15298 = vmatmul.mubr.msk.f32.gmra.mrb[30].mxu0 %vm460_vm1, %v12904_v32 }
  0x70   : > { %15306 = vmatprep.mubr.msk.f32.mxu0 %vm884_vm2, %v1026_v41 }
  0x73   : > { %15307 = vmatmul.mubr.msk.f32.vlgmr.msra.gmra.mrb[32].mxu0 %vm884_vm2, %v1027_v42 }
  0x74   : > { %16747 = vmatpush3.bf16.msra.mxu0 %v16744_v49 }
  0x75   : > { %15358 = vmatprep.subr.mxu0 %v1025_v50 }
  0x78   : > { %15359 = vmatpush3.msra.mxu0 %v1025_v50 }
  0x79   : > { %16749 = vmatprep.subr.bf16.mxu0 %v18222_v1 }
 0x106   : > { %v15254_v52 = vpop.f32.mrb[0].mxu0 }
 0x107   : > { %v633_v54 = vadd.f32 %v15254_v52, %v18207_v51  ;;  %v627_v55 = vpop.f32.mrb[1].mxu0 }
 0x108   : > { %v628_v56 = vadd.f32 %v18207_v51, %v627_v55 }
 0x109   : > { %vm788_vm3 = vcmp.gt.f32.partialorder %v633_v54, 0.0  ;;  %v821_v57 = vmul.f32 %v18209_v53, %v633_v54 }
 0x10a   : > { %vm787_vm4 = vcmp.gt.f32.partialorder %v628_v56, 0.0  ;;  %v820_v58 = vmul.f32 %v18209_v53, %v628_v56  ;;  %v15257_v59 = vpop.f32.mrb[2].mxu0 }
 0x10b   : > { %v853_v62 = vsel %vm788_vm3, %v633_v54, %v821_v57  ;;  %v643_v63 = vadd.f32 %v15257_v59, %v18207_v51  ;;  %v637_v0 = vpop.f32.mrb[3].mxu0 }
 0x10c   : > { %959 = vst.msk [vmem:[#allocation2 + $0x30] sm:$0xff] %vm884_vm2, %v853_v62  ;;  %v852_v2 = vsel %vm787_vm4, %v628_v56, %v820_v58  ;;  %v638_v3 = vadd.f32 %v18207_v51, %v637_v0 }
 0x10d   : > { %958 = vst.msk [vmem:[#allocation2 + $0x28] sm:$0xff] %vm884_vm2, %v852_v2  ;;  %vm790_vm5 = vcmp.gt.f32.partialorder %v643_v63, 0.0  ;;  %v823_v4 = vmul.f32 %v18209_v53, %v643_v63 }
 0x10e   : > { %vm789_vm6 = vcmp.gt.f32.partialorder %v638_v3, 0.0  ;;  %v822_v5 = vmul.f32 %v18209_v53, %v638_v3  ;;  %v15260_v6 = vpop.f32.mrb[4].mxu0 }
 0x10f   : > { %v855_v7 = vsel %vm790_vm5, %v643_v63, %v823_v4  ;;  %v653_v8 = vadd.f32 %v15260_v6, %v18207_v51  ;;  %v647_v9 = vpop.f32.mrb[5].mxu0 }
 0x110   : > { %961 = vst.msk [vmem:[#allocation2 + $0x50] sm:$0xff] %vm884_vm2, %v855_v7  ;;  %v854_v10 = vsel %vm789_vm6, %v638_v3, %v822_v5  ;;  %v648_v11 = vadd.f32 %v18207_v51, %v647_v9 }
 0x111   : > { %960 = vst.msk [vmem:[#allocation2 + $0x48] sm:$0xff] %vm884_vm2, %v854_v10  ;;  %vm792_vm7 = vcmp.gt.f32.partialorder %v653_v8, 0.0  ;;  %v825_v12 = vmul.f32 %v18209_v53, %v653_v8 }
 0x112   : > { %vm791_vm8 = vcmp.gt.f32.partialorder %v648_v11, 0.0  ;;  %v824_v13 = vmul.f32 %v18209_v53, %v648_v11  ;;  %v15263_v14 = vpop.f32.mrb[6].mxu0 }
 0x113   : > { %v857_v15 = vsel %vm792_vm7, %v653_v8, %v825_v12  ;;  %v663_v16 = vadd.f32 %v15263_v14, %v18207_v51  ;;  %v657_v17 = vpop.f32.mrb[7].mxu0  ;;  %v1029_v23 = vld [vmem:[#allocation2 + $0x30] sm:$0xff] }
 0x114   : > { %963 = vst.msk [vmem:[#allocation2 + $0x70] sm:$0xff] %vm884_vm2, %v857_v15  ;;  %v856_v18 = vsel %vm791_vm8, %v648_v11, %v824_v13  ;;  %v658_v19 = vadd.f32 %v18207_v51, %v657_v17  ;;  %v1028_v20 = vld [vmem:[#allocation2 + $0x28] sm:$0xff] }
 0x115   : > { %962 = vst.msk [vmem:[#allocation2 + $0x68] sm:$0xff] %vm884_vm2, %v856_v18  ;;  %vm794_vm9 = vcmp.gt.f32.partialorder %v663_v16, 0.0  ;;  %v827_v22 = vmul.f32 %v18209_v53, %v663_v16  ;;  %15309 = vmatprep.mubr.msk.f32.mxu0 %vm884_vm2, %v1028_v20  ;;  %15522 = vmatprep.mubr.msk.f32.mxu1 %vm884_vm2, %v1028_v20 }
 0x116   : > { %vm793_vm10 = vcmp.gt.f32.partialorder %v658_v19, 0.0  ;;  %v826_v26 = vmul.f32 %v18209_v53, %v658_v19  ;;  %v15266_v27 = vpop.f32.mrb[8].mxu0  ;;  %15310 = vmatmul.mubr.msk.f32.gmra.mrb[34].mxu0 %vm884_vm2, %v1029_v23  ;;  %15523 = vmatmul.mubr.msk.f32.vlgmr.msra.gmra.mrb[0].mxu1 %vm884_vm2, %v1029_v23 }
 0x117   : > { %v859_v28 = vsel %vm794_vm9, %v663_v16, %v827_v22  ;;  %v673_v29 = vadd.f32 %v15266_v27, %v18207_v51  ;;  %16763 = vmatpush3.bf16.msra.mxu1 %v18192_v46  ;;  %v667_v30 = vpop.f32.mrb[9].mxu0  ;;  %v1031_v37 = vld [vmem:[#allocation2 + $0x50] sm:$0xff] }
 0x118   : > { %965 = vst.msk [vmem:[#allocation2 + $0x90] sm:$0xff] %vm884_vm2, %v859_v28  ;;  %v858_v31 = vsel %vm793_vm10, %v658_v19, %v826_v26  ;;  %v668_v32 = vadd.f32 %v18207_v51, %v667_v30  ;;  %v1030_v34 = vld [vmem:[#allocation2 + $0x48] sm:$0xff]  ;;  %15574 = vmatprep.subr.mxu1 %v13114_v21 }
 0x119   : > { %964 = vst.msk [vmem:[#allocation2 + $0x88] sm:$0xff] %vm884_vm2, %v858_v31  ;;  %vm796_vm11 = vcmp.gt.f32.partialorder %v673_v29, 0.0  ;;  %v829_v36 = vmul.f32 %v18209_v53, %v673_v29  ;;  %15312 = vmatprep.mubr.msk.f32.mxu0 %vm884_vm2, %v1030_v34  ;;  %15525 = vmatprep.mubr.msk.f32.mxu1 %vm884_vm2, %v1030_v34 }
 0x11a   : > { %vm795_vm12 = vcmp.gt.f32.partialorder %v668_v32, 0.0  ;;  %v828_v38 = vmul.f32 %v18209_v53, %v668_v32  ;;  %v15269_v39 = vpop.f32.mrb[10].mxu0  ;;  %15313 = vmatmul.mubr.msk.f32.gmra.mrb[36].mxu0 %vm884_vm2, %v1031_v37  ;;  %15526 = vmatmul.mubr.msk.f32.gmra.mrb[2].mxu1 %vm884_vm2, %v1031_v37 }
 0x11b   : > { %v861_v40 = vsel %vm796_vm11, %v673_v29, %v829_v36  ;;  %v683_v41 = vadd.f32 %v15269_v39, %v18207_v51  ;;  %v677_v42 = vpop.f32.mrb[11].mxu0  ;;  %15575 = vmatpush3.msra.mxu1 %v13114_v21  ;;  %v1033_v47 = vld [vmem:[#allocation2 + $0x70] sm:$0xff] }
 0x11c   : > { %967 = vst.msk [vmem:[#allocation2 + $0xb0] sm:$0xff] %vm884_vm2, %v861_v40  ;;  %v860_v43 = vsel %vm795_vm12, %v668_v32, %v828_v38  ;;  %v678_v44 = vadd.f32 %v18207_v51, %v677_v42  ;;  %v1032_v45 = vld [vmem:[#allocation2 + $0x68] sm:$0xff]  ;;  %16765 = vmatprep.subr.bf16.mxu1 %v18259_v35 }
 0x11d   : > { %966 = vst.msk [vmem:[#allocation2 + $0xa8] sm:$0xff] %vm884_vm2, %v860_v43  ;;  %vm798_vm13 = vcmp.gt.f32.partialorder %v683_v41, 0.0  ;;  %v831_v46 = vmul.f32 %v18209_v53, %v683_v41  ;;  %15315 = vmatprep.mubr.msk.f32.mxu0 %vm884_vm2, %v1032_v45  ;;  %15528 = vmatprep.mubr.msk.f32.mxu1 %vm884_vm2, %v1032_v45 }
 0x11e   : > { %vm797_vm14 = vcmp.gt.f32.partialorder %v678_v44, 0.0  ;;  %v830_v48 = vmul.f32 %v18209_v53, %v678_v44  ;;  %v15272_v49 = vpop.f32.mrb[12].mxu0  ;;  %15316 = vmatmul.mubr.msk.f32.gmra.mrb[38].mxu0 %vm884_vm2, %v1033_v47  ;;  %15529 = vmatmul.mubr.msk.f32.gmra.mrb[4].mxu1 %vm884_vm2, %v1033_v47 }
 0x11f   : > { %v863_v50 = vsel %vm798_vm13, %v683_v41, %v831_v46  ;;  %v693_v52 = vadd.f32 %v15272_v49, %v18207_v51  ;;  %v687_v54 = vpop.f32.mrb[13].mxu0  ;;  %v1035_v59 = vld [vmem:[#allocation2 + $0x90] sm:$0xff] }
 0x120   : > { %969 = vst.msk [vmem:[#allocation2 + $0xd0] sm:$0xff] %vm884_vm2, %v863_v50  ;;  %v862_v55 = vsel %vm797_vm14, %v678_v44, %v830_v48  ;;  %v688_v56 = vadd.f32 %v18207_v51, %v687_v54  ;;  %v1034_v57 = vld [vmem:[#allocation2 + $0x88] sm:$0xff] }
 0x121   : > { %968 = vst.msk [vmem:[#allocation2 + $0xc8] sm:$0xff] %vm884_vm2, %v862_v55  ;;  %vm800_vm15 = vcmp.gt.f32.partialorder %v693_v52, 0.0  ;;  %v833_v58 = vmul.f32 %v18209_v53, %v693_v52  ;;  %15318 = vmatprep.mubr.msk.f32.mxu0 %vm884_vm2, %v1034_v57  ;;  %15531 = vmatprep.mubr.msk.f32.mxu1 %vm884_vm2, %v1034_v57 }
 0x122   : > { %vm799_vm3 = vcmp.gt.f32.partialorder %v688_v56, 0.0  ;;  %v832_v60 = vmul.f32 %v18209_v53, %v688_v56  ;;  %v15275_v61 = vpop.f32.mrb[14].mxu0  ;;  %15319 = vmatmul.mubr.msk.f32.gmra.mrb[40].mxu0 %vm884_vm2, %v1035_v59  ;;  %15532 = vmatmul.mubr.msk.f32.gmra.mrb[6].mxu1 %vm884_vm2, %v1035_v59 }
 0x123   : > { %v865_v62 = vsel %vm800_vm15, %v693_v52, %v833_v58  ;;  %v703_v63 = vadd.f32 %v15275_v61, %v18207_v51  ;;  %v697_v0 = vpop.f32.mrb[15].mxu0  ;;  %v1037_v6 = vld [vmem:[#allocation2 + $0xb0] sm:$0xff] }
 0x124   : > { %971 = vst.msk [vmem:[#allocation2 + $0xf0] sm:$0xff] %vm884_vm2, %v865_v62  ;;  %v864_v2 = vsel %vm799_vm3, %v688_v56, %v832_v60  ;;  %v698_v3 = vadd.f32 %v18207_v51, %v697_v0  ;;  %v1036_v4 = vld [vmem:[#allocation2 + $0xa8] sm:$0xff] }
 0x125   : > { %970 = vst.msk [vmem:[#allocation2 + $0xe8] sm:$0xff] %vm884_vm2, %v864_v2  ;;  %vm802_vm4 = vcmp.gt.f32.partialorder %v703_v63, 0.0  ;;  %v835_v5 = vmul.f32 %v18209_v53, %v703_v63  ;;  %15321 = vmatprep.mubr.msk.f32.mxu0 %vm884_vm2, %v1036_v4  ;;  %15534 = vmatprep.mubr.msk.f32.mxu1 %vm884_vm2, %v1036_v4 }
 0x126   : > { %vm801_vm5 = vcmp.gt.f32.partialorder %v698_v3, 0.0  ;;  %v834_v7 = vmul.f32 %v18209_v53, %v698_v3  ;;  %v15278_v8 = vpop.f32.mrb[16].mxu0  ;;  %15322 = vmatmul.mubr.msk.f32.gmra.mrb[42].mxu0 %vm884_vm2, %v1037_v6  ;;  %15535 = vmatmul.mubr.msk.f32.gmra.mrb[8].mxu1 %vm884_vm2, %v1037_v6 }
 0x127   : > { %v867_v9 = vsel %vm802_vm4, %v703_v63, %v835_v5  ;;  %v713_v10 = vadd.f32 %v15278_v8, %v18207_v51  ;;  %v707_v11 = vpop.f32.mrb[17].mxu0  ;;  %v18310_v16 = vld [vmem:[#allocation2 + $0xd0] sm:$0xff] }
 0x128   : > { %973 = vst.msk [vmem:[#allocation2 + $0x110] sm:$0xff] %vm884_vm2, %v867_v9  ;;  %v866_v12 = vsel %vm801_vm5, %v698_v3, %v834_v7  ;;  %v708_v13 = vadd.f32 %v18207_v51, %v707_v11  ;;  %v18302_v14 = vld [vmem:[#allocation2 + $0xc8] sm:$0xff]  ;;  %22031 = vst [vmem:[#allocation11_spill] sm:$0xff] %v18310_v16 }
 0x129   : > { %22030 = vst [vmem:[#allocation10_spill] sm:$0xff] %v18302_v14  ;;  %972 = vst.msk [vmem:[#allocation2 + $0x108] sm:$0xff] %vm884_vm2, %v866_v12  ;;  %vm804_vm6 = vcmp.gt.f32.partialorder %v713_v10, 0.0  ;;  %v837_v15 = vmul.f32 %v18209_v53, %v713_v10  ;;  %15324 = vmatprep.mubr.msk.f32.mxu0 %vm884_vm2, %v18302_v14  ;;  %15537 = vmatprep.mubr.msk.f32.mxu1 %vm884_vm2, %v18302_v14 }
 0x12a   : > { %vm803_vm7 = vcmp.gt.f32.partialorder %v708_v13, 0.0  ;;  %v836_v17 = vmul.f32 %v18209_v53, %v708_v13  ;;  %v15281_v18 = vpop.f32.mrb[18].mxu0  ;;  %15325 = vmatmul.mubr.msk.f32.gmra.mrb[44].mxu0 %vm884_vm2, %v18310_v16  ;;  %15538 = vmatmul.mubr.msk.f32.gmra.mrb[10].mxu1 %vm884_vm2, %v18310_v16 }
 0x12b   : > { %v869_v19 = vsel %vm804_vm6, %v713_v10, %v837_v15  ;;  %v723_v20 = vadd.f32 %v15281_v18, %v18207_v51  ;;  %v717_v21 = vpop.f32.mrb[19].mxu0  ;;  %v18328_v26 = vld [vmem:[#allocation2 + $0xf0] sm:$0xff] }
 0x12c   : > { %975 = vst.msk [vmem:[#allocation2 + $0x130] sm:$0xff] %vm884_vm2, %v869_v19  ;;  %v868_v22 = vsel %vm803_vm7, %v708_v13, %v836_v17  ;;  %v718_v23 = vadd.f32 %v18207_v51, %v717_v21  ;;  %v18320_v24 = vld [vmem:[#allocation2 + $0xe8] sm:$0xff]  ;;  %22033 = vst [vmem:[#allocation13_spill] sm:$0xff] %v18328_v26 }
 0x12d   : > { %22032 = vst [vmem:[#allocation12_spill] sm:$0xff] %v18320_v24  ;;  %974 = vst.msk [vmem:[#allocation2 + $0x128] sm:$0xff] %vm884_vm2, %v868_v22  ;;  %vm806_vm8 = vcmp.gt.f32.partialorder %v723_v20, 0.0  ;;  %v839_v25 = vmul.f32 %v18209_v53, %v723_v20  ;;  %15327 = vmatprep.mubr.msk.f32.mxu0 %vm884_vm2, %v18320_v24  ;;  %15540 = vmatprep.mubr.msk.f32.mxu1 %vm884_vm2, %v18320_v24 }
 0x12e   : > { %vm805_vm9 = vcmp.gt.f32.partialorder %v718_v23, 0.0  ;;  %v838_v27 = vmul.f32 %v18209_v53, %v718_v23  ;;  %v15284_v28 = vpop.f32.mrb[20].mxu0  ;;  %15328 = vmatmul.mubr.msk.f32.gmra.mrb[46].mxu0 %vm884_vm2, %v18328_v26  ;;  %15541 = vmatmul.mubr.msk.f32.gmra.mrb[12].mxu1 %vm884_vm2, %v18328_v26  ;;  %v1704_v26 = vld [vmem:[#allocation2 + $0x9] sm:$0xff] }
 0x12f   : > { %v871_v29 = vsel %vm806_vm8, %v723_v20, %v839_v25  ;;  %v733_v30 = vadd.f32 %v15284_v28, %v18207_v51  ;;  %v727_v31 = vpop.f32.mrb[21].mxu0  ;;  %v18346_v38 = vld [vmem:[#allocation2 + $0x110] sm:$0xff] }
 0x130   : > { %977 = vst.msk [vmem:[#allocation2 + $0x150] sm:$0xff] %vm884_vm2, %v871_v29  ;;  %v870_v32 = vsel %vm805_vm9, %v718_v23, %v838_v27  ;;  %v728_v34 = vadd.f32 %v18207_v51, %v727_v31  ;;  %v18338_v36 = vld [vmem:[#allocation2 + $0x108] sm:$0xff]  ;;  %22035 = vst [vmem:[#allocation15_spill] sm:$0xff] %v18346_v38 }
 0x131   : > { %22034 = vst [vmem:[#allocation14_spill] sm:$0xff] %v18338_v36  ;;  %976 = vst.msk [vmem:[#allocation2 + $0x148] sm:$0xff] %vm884_vm2, %v870_v32  ;;  %vm808_vm10 = vcmp.gt.f32.partialorder %v733_v30, 0.0  ;;  %v841_v37 = vmul.f32 %v18209_v53, %v733_v30  ;;  %15330 = vmatprep.mubr.msk.f32.mxu0 %vm884_vm2, %v18338_v36  ;;  %15543 = vmatprep.mubr.msk.f32.mxu1 %vm884_vm2, %v18338_v36 }
 0x132   : > { %vm807_vm11 = vcmp.gt.f32.partialorder %v728_v34, 0.0  ;;  %v840_v39 = vmul.f32 %v18209_v53, %v728_v34  ;;  %v15287_v40 = vpop.f32.mrb[22].mxu0  ;;  %15331 = vmatmul.mubr.msk.f32.gmra.mrb[48].mxu0 %vm884_vm2, %v18346_v38  ;;  %15544 = vmatmul.mubr.msk.f32.gmra.mrb[14].mxu1 %vm884_vm2, %v18346_v38 }
 0x133   : > { %v873_v41 = vsel %vm808_vm10, %v733_v30, %v841_v37  ;;  %v743_v42 = vadd.f32 %v15287_v40, %v18207_v51  ;;  %v737_v43 = vpop.f32.mrb[23].mxu0  ;;  %v18364_v48 = vld [vmem:[#allocation2 + $0x130] sm:$0xff]  ;;  %v991_v40 = vld [vmem:[#allocation2 + $0x7] sm:$0xff]  ;;  %vm4564_vm10 = vcmask 228352  }
 0x134   : > { %979 = vst.msk [vmem:[#allocation2 + $0x170] sm:$0xff] %vm884_vm2, %v873_v41  ;;  %v872_v44 = vsel %vm807_vm11, %v728_v34, %v840_v39  ;;  %v738_v45 = vadd.f32 %v18207_v51, %v737_v43  ;;  %v18356_v46 = vld [vmem:[#allocation2 + $0x128] sm:$0xff]  ;;  %22037 = vst [vmem:[#allocation17_spill] sm:$0xff] %v18364_v48 }
 0x135   : > { %22036 = vst [vmem:[#allocation16_spill] sm:$0xff] %v18356_v46  ;;  %978 = vst.msk [vmem:[#allocation2 + $0x168] sm:$0xff] %vm884_vm2, %v872_v44  ;;  %vm810_vm12 = vcmp.gt.f32.partialorder %v743_v42, 0.0  ;;  %v843_v47 = vmul.f32 %v18209_v53, %v743_v42  ;;  %15333 = vmatprep.mubr.msk.f32.mxu0 %vm884_vm2, %v18356_v46  ;;  %15546 = vmatprep.mubr.msk.f32.mxu1 %vm884_vm2, %v18356_v46 }
 0x136   : > { %vm809_vm13 = vcmp.gt.f32.partialorder %v738_v45, 0.0  ;;  %v842_v49 = vmul.f32 %v18209_v53, %v738_v45  ;;  %v15290_v50 = vpop.f32.mrb[24].mxu0  ;;  %15334 = vmatmul.mubr.msk.f32.gmra.mrb[50].mxu0 %vm884_vm2, %v18364_v48  ;;  %15547 = vmatmul.mubr.msk.f32.gmra.mrb[16].mxu1 %vm884_vm2, %v18364_v48 }
 0x137   : > { %v875_v52 = vsel %vm810_vm12, %v743_v42, %v843_v47  ;;  %v753_v54 = vadd.f32 %v15290_v50, %v18207_v51  ;;  %v747_v55 = vpop.f32.mrb[25].mxu0  ;;  %v18382_v60 = vld [vmem:[#allocation2 + $0x150] sm:$0xff] }
 0x138   : > { %981 = vst.msk [vmem:[#allocation2 + $0x190] sm:$0xff] %vm884_vm2, %v875_v52  ;;  %v874_v56 = vsel %vm809_vm13, %v738_v45, %v842_v49  ;;  %v748_v57 = vadd.f32 %v18207_v51, %v747_v55  ;;  %v18374_v58 = vld [vmem:[#allocation2 + $0x148] sm:$0xff]  ;;  %22039 = vst [vmem:[#allocation19_spill] sm:$0xff] %v18382_v60  ;;  %v13009_v49 = vld [vmem:[%s21904_s4 + $0x40] sm:$0xff] }
 0x139   : > { %22038 = vst [vmem:[#allocation18_spill] sm:$0xff] %v18374_v58  ;;  %980 = vst.msk [vmem:[#allocation2 + $0x188] sm:$0xff] %vm884_vm2, %v874_v56  ;;  %vm812_vm14 = vcmp.gt.f32.partialorder %v753_v54, 0.0  ;;  %v845_v59 = vmul.f32 %v18209_v53, %v753_v54  ;;  %15336 = vmatprep.mubr.msk.f32.mxu0 %vm884_vm2, %v18374_v58  ;;  %15549 = vmatprep.mubr.msk.f32.mxu1 %vm884_vm2, %v18374_v58  ;;  %v992_v42 = vld [vmem:[#allocation2 + $0xf] sm:$0xff]  ;;  %v18479_v45 = vld [vmem:[#allocation2 + $0x27] sm:$0xff] }
 0x13a   : > { %vm811_vm15 = vcmp.gt.f32.partialorder %v748_v57, 0.0  ;;  %v844_v61 = vmul.f32 %v18209_v53, %v748_v57  ;;  %v15293_v62 = vpop.f32.mrb[26].mxu0  ;;  %15337 = vmatmul.mubr.msk.f32.gmra.mrb[52].mxu0 %vm884_vm2, %v18382_v60  ;;  %15550 = vmatmul.mubr.msk.f32.gmra.mrb[18].mxu1 %vm884_vm2, %v18382_v60  ;;  %22052 = vst [vmem:[#allocation32_spill] sm:$0xff] %v18479_v45  ;;  %v18481_v47 = vld [vmem:[#allocation2 + $0x29] sm:$0xff]  ;;  %v18490_v50 = vld [vmem:[#allocation2 + $0x31] sm:$0xff]  ;;  %v13149_v52 = vld [vmem:[%s21904_s4 + $0xa0] sm:$0xff] }
 0x13b   : > { %v877_v63 = vsel %vm812_vm14, %v753_v54, %v845_v59  ;;  %v763_v0 = vadd.f32 %v15293_v62, %v18207_v51  ;;  %v757_v2 = vpop.f32.mrb[27].mxu0  ;;  %v18400_v7 = vld [vmem:[#allocation2 + $0x170] sm:$0xff]  ;;  %v13042_v55 = vld [vmem:[%s21904_s4 + $0x48] sm:$0xff] }
 0x13c   : > { %983 = vst.msk [vmem:[#allocation2 + $0x1b0] sm:$0xff] %vm884_vm2, %v877_v63  ;;  %v876_v3 = vsel %vm811_vm15, %v748_v57, %v844_v61  ;;  %v758_v4 = vadd.f32 %v18207_v51, %v757_v2  ;;  %v18392_v5 = vld [vmem:[#allocation2 + $0x168] sm:$0xff]  ;;  %22041 = vst [vmem:[#allocation21_spill] sm:$0xff] %v18400_v7  ;;  %v13043_v56 = vld [vmem:[%s21904_s4 + $0x50] sm:$0xff] }
 0x13d   : > { %22040 = vst [vmem:[#allocation20_spill] sm:$0xff] %v18392_v5  ;;  %982 = vst.msk [vmem:[#allocation2 + $0x1a8] sm:$0xff] %vm884_vm2, %v876_v3  ;;  %vm814_vm3 = vcmp.gt.f32.partialorder %v763_v0, 0.0  ;;  %v847_v6 = vmul.f32 %v18209_v53, %v763_v0  ;;  %15339 = vmatprep.mubr.msk.f32.mxu0 %vm884_vm2, %v18392_v5  ;;  %15552 = vmatprep.mubr.msk.f32.mxu1 %vm884_vm2, %v18392_v5  ;;  %v18496_v54 = vld [vmem:[#allocation2 + $0x2f] sm:$0xff]  ;;  %v18508_v57 = vld [vmem:[#allocation2 + $0x47] sm:$0xff]  ;;  %v18523_v62 = vpack.c.bf16 %v13043_v56, %v13042_v55 }
 0x13e   : > { %vm813_vm4 = vcmp.gt.f32.partialorder %v758_v4, 0.0  ;;  %v846_v8 = vmul.f32 %v18209_v53, %v758_v4  ;;  %v15296_v9 = vpop.f32.mrb[28].mxu0  ;;  %15340 = vmatmul.mubr.msk.f32.gmra.mrb[54].mxu0 %vm884_vm2, %v18400_v7  ;;  %15553 = vmatmul.mubr.msk.f32.gmra.mrb[20].mxu1 %vm884_vm2, %v18400_v7  ;;  %22053 = vst [vmem:[#allocation33_spill] sm:$0xff] %v18496_v54  ;;  %v13183_v59 = vld [vmem:[%s21904_s4 + $0xb0] sm:$0xff]  ;;  %v18649_v56 = vld [vmem:[#allocation2 + $0x147] sm:$0xff] }
 0x13f   : > { %v879_v10 = vsel %vm814_vm3, %v763_v0, %v847_v6  ;;  %v773_v11 = vadd.f32 %v15296_v9, %v18207_v51  ;;  %v767_v12 = vpop.f32.mrb[29].mxu0  ;;  %v18418_v19 = vld [vmem:[#allocation2 + $0x190] sm:$0xff] }
 0x140   : > { %985 = vst.msk [vmem:[#allocation2 + $0x1d0] sm:$0xff] %vm884_vm2, %v879_v10  ;;  %v878_v13 = vsel %vm813_vm4, %v758_v4, %v846_v8  ;;  %v768_v15 = vadd.f32 %v18207_v51, %v767_v12  ;;  %v18410_v17 = vld [vmem:[#allocation2 + $0x188] sm:$0xff]  ;;  %22043 = vst [vmem:[#allocation23_spill] sm:$0xff] %v18418_v19  ;;  %v18527_v0 = vld [vmem:[#allocation2 + $0x51] sm:$0xff] }
 0x141   : > { %22042 = vst [vmem:[#allocation22_spill] sm:$0xff] %v18410_v17  ;;  %984 = vst.msk [vmem:[#allocation2 + $0x1c8] sm:$0xff] %vm884_vm2, %v878_v13  ;;  %vm816_vm5 = vcmp.gt.f32.partialorder %v773_v11, 0.0  ;;  %v849_v18 = vmul.f32 %v18209_v53, %v773_v11  ;;  %15342 = vmatprep.mubr.msk.f32.mxu0 %vm884_vm2, %v18410_v17  ;;  %15555 = vmatprep.mubr.msk.f32.mxu1 %vm884_vm2, %v18410_v17  ;;  %v18519_v61 = vld [vmem:[#allocation2 + $0x49] sm:$0xff]  ;;  %v18546_v6 = vld [vmem:[#allocation2 + $0x71] sm:$0xff] }
 0x142   : > { %vm815_vm6 = vcmp.gt.f32.partialorder %v768_v15, 0.0  ;;  %v848_v20 = vmul.f32 %v18209_v53, %v768_v15  ;;  %v15299_v21 = vpop.f32.mrb[30].mxu0  ;;  %15343 = vmatmul.mubr.msk.f32.gmra.mrb[56].mxu0 %vm884_vm2, %v18418_v19  ;;  %15556 = vmatmul.mubr.msk.f32.gmra.mrb[22].mxu1 %vm884_vm2, %v18418_v19  ;;  %v18525_v63 = vld [vmem:[#allocation2 + $0x4f] sm:$0xff]  ;;  %v18553_v8 = vld [vmem:[#allocation2 + $0x87] sm:$0xff] }
 0x143   : > { %v881_v22 = vsel %vm816_vm5, %v773_v11, %v849_v18  ;;  %v783_v23 = vadd.f32 %v15299_v21, %v18207_v51  ;;  %v777_v25 = vpop.f32.mrb[31].mxu0  ;;  %v18436_v31 = vld [vmem:[#allocation2 + $0x1b0] sm:$0xff]  ;;  %v18569_v12 = vld [vmem:[#allocation2 + $0xa7] sm:$0xff] }
 0x144   : > { %987 = vst.msk [vmem:[#allocation2 + $0x1f0] sm:$0xff] %vm884_vm2, %v881_v22  ;;  %v880_v27 = vsel %vm815_vm6, %v768_v15, %v848_v20  ;;  %v778_v28 = vadd.f32 %v18207_v51, %v777_v25  ;;  %v18428_v29 = vld [vmem:[#allocation2 + $0x1a8] sm:$0xff]  ;;  %22045 = vst [vmem:[#allocation25_spill] sm:$0xff] %v18436_v31  ;;  %v18563_v11 = vld [vmem:[#allocation2 + $0x91] sm:$0xff] }
 0x145   : > { %22044 = vst [vmem:[#allocation24_spill] sm:$0xff] %v18428_v29  ;;  %986 = vst.msk [vmem:[#allocation2 + $0x1e8] sm:$0xff] %vm884_vm2, %v880_v27  ;;  %vm818_vm7 = vcmp.gt.f32.partialorder %v783_v23, 0.0  ;;  %v851_v30 = vmul.f32 %v18209_v53, %v783_v23  ;;  %15345 = vmatprep.mubr.msk.f32.mxu0 %vm884_vm2, %v18428_v29  ;;  %15558 = vmatprep.mubr.msk.f32.mxu1 %vm884_vm2, %v18428_v29  ;;  %v18537_v3 = vld [vmem:[#allocation2 + $0x69] sm:$0xff]  ;;  %v18579_v18 = vld [vmem:[#allocation2 + $0xb1] sm:$0xff] }
 0x146   : > { %vm817_vm8 = vcmp.gt.f32.partialorder %v778_v28, 0.0  ;;  %v850_v32 = vmul.f32 %v18209_v53, %v778_v28  ;;  %15346 = vmatmul.mubr.msk.f32.gmra.mrb[58].mxu0 %vm884_vm2, %v18436_v31  ;;  %15559 = vmatmul.mubr.msk.f32.gmra.mrb[24].mxu1 %vm884_vm2, %v18436_v31  ;;  %v18544_v4 = vld [vmem:[#allocation2 + $0x6f] sm:$0xff]  ;;  %v18585_v20 = vld [vmem:[#allocation2 + $0xc7] sm:$0xff] }
 0x147   : > { %v883_v51 = vsel %vm818_vm7, %v783_v23, %v851_v30  ;;  %v18451_v53 = vld [vmem:[#allocation2 + $0x1d0] sm:$0xff]  ;;  %v18601_v25 = vld [vmem:[#allocation2 + $0xe7] sm:$0xff] }
 0x148   : > { %989 = vst.msk [vmem:[#allocation2 + $0x210] sm:$0xff] %vm884_vm2, %v883_v51  ;;  %v882_v34 = vsel %vm817_vm8, %v778_v28, %v850_v32  ;;  %v18444_v37 = vld [vmem:[#allocation2 + $0x1c8] sm:$0xff]  ;;  %22047 = vst [vmem:[#allocation27_spill] sm:$0xff] %v18451_v53  ;;  %v18595_v23 = vld [vmem:[#allocation2 + $0xd1] sm:$0xff] }
 0x149   : > { %22046 = vst [vmem:[#allocation26_spill] sm:$0xff] %v18444_v37  ;;  %988 = vst.msk [vmem:[#allocation2 + $0x208] sm:$0xff] %vm884_vm2, %v882_v34  ;;  %15348 = vmatprep.mubr.msk.f32.mxu0 %vm884_vm2, %v18444_v37  ;;  %15561 = vmatprep.mubr.msk.f32.mxu1 %vm884_vm2, %v18444_v37  ;;  %v18555_v9 = vld [vmem:[#allocation2 + $0x89] sm:$0xff]  ;;  %v18611_v30 = vld [vmem:[#allocation2 + $0xf1] sm:$0xff] }
 0x14a   : > { %15349 = vmatmul.mubr.msk.f32.gmra.mrb[60].mxu0 %vm884_vm2, %v18451_v53  ;;  %15562 = vmatmul.mubr.msk.f32.gmra.mrb[26].mxu1 %vm884_vm2, %v18451_v53  ;;  %v18561_v10 = vld [vmem:[#allocation2 + $0x8f] sm:$0xff]  ;;  %v18617_v32 = vld [vmem:[#allocation2 + $0x107] sm:$0xff] }
 0x14b   : > { %v18463_v41 = vld [vmem:[#allocation2 + $0x1f0] sm:$0xff]  ;;  %v18681_v53 = vld [vmem:[#allocation2 + $0x187] sm:$0xff] }
 0x14c   : > { %v18457_v39 = vld [vmem:[#allocation2 + $0x1e8] sm:$0xff]  ;;  %22049 = vst [vmem:[#allocation29_spill] sm:$0xff] %v18463_v41  ;;  %v18643_v55 = vld [vmem:[#allocation2 + $0x131] sm:$0xff] }
 0x14d   : > { %22048 = vst [vmem:[#allocation28_spill] sm:$0xff] %v18457_v39  ;;  %15351 = vmatprep.mubr.msk.f32.mxu0 %vm884_vm2, %v18457_v39  ;;  %15564 = vmatprep.mubr.msk.f32.mxu1 %vm884_vm2, %v18457_v39  ;;  %v18571_v13 = vld [vmem:[#allocation2 + $0xa9] sm:$0xff]  ;;  %v18659_v33 = vld [vmem:[#allocation2 + $0x151] sm:$0xff] }
 0x14e   : > { %15352 = vmatmul.mubr.msk.f32.gmra.mrb[62].mxu0 %vm884_vm2, %v18463_v41  ;;  %15565 = vmatmul.mubr.msk.f32.gmra.mrb[28].mxu1 %vm884_vm2, %v18463_v41  ;;  %v18577_v15 = vld [vmem:[#allocation2 + $0xaf] sm:$0xff]  ;;  %v18697_v19 = vld [vmem:[#allocation2 + $0x1a7] sm:$0xff] }
 0x14f   : > { %15360 = vmatprep.mubr.msk.f32.mxu0 %vm884_vm2, %v991_v40  ;;  %v18474_v44 = vld [vmem:[#allocation2 + $0x210] sm:$0xff]  ;;  %v18713_v60 = vld [vmem:[#allocation2 + $0x1c7] sm:$0xff] }
 0x150   : > { %v18470_v43 = vld [vmem:[#allocation2 + $0x208] sm:$0xff]  ;;  %22051 = vst [vmem:[#allocation31_spill] sm:$0xff] %v18474_v44  ;;  %v18627_v40 = vld [vmem:[#allocation2 + $0x111] sm:$0xff] }
 0x151   : > { %22050 = vst [vmem:[#allocation30_spill] sm:$0xff] %v18470_v43  ;;  %15567 = vmatprep.mubr.msk.f32.mxu1 %vm884_vm2, %v18470_v43  ;;  %v18587_v21 = vld [vmem:[#allocation2 + $0xc9] sm:$0xff]  ;;  %v18675_v39 = vld [vmem:[#allocation2 + $0x171] sm:$0xff] }
 0x152   : > { %15361 = vmatmul.mubr.msk.f32.vlgmr.msra.gmra.mrb[32].mxu0 %vm884_vm2, %v992_v42  ;;  %15568 = vmatmul.mubr.msk.f32.gmra.mrb[30].mxu1 %vm884_vm2, %v18474_v44  ;;  %v18593_v22 = vld [vmem:[#allocation2 + $0xcf] sm:$0xff]  ;;  %v18633_v42 = vld [vmem:[#allocation2 + $0x127] sm:$0xff] }
 0x153   : > { %15363 = vmatprep.mubr.msk.f32.mxu0 %vm884_vm2, %v18479_v45  ;;  %15576 = vmatprep.mubr.msk.f32.mxu1 %vm884_vm2, %v18481_v47  ;;  %v18603_v27 = vld [vmem:[#allocation2 + $0xe9] sm:$0xff]  ;;  %v18691_v29 = vld [vmem:[#allocation2 + $0x191] sm:$0xff] }
 0x154   : > { %16751 = vmatpush3.bf16.msra.mxu0 %v18222_v1  ;;  %v13182_v1 = vld [vmem:[%s21904_s4 + $0xa8] sm:$0xff]  ;;  %v18707_v5 = vld [vmem:[#allocation2 + $0x1b1] sm:$0xff] }
 0x155   : > { %15412 = vmatprep.subr.mxu0 %v13009_v49  ;;  %v18529_v2 = vpack.c.bf16 %v13183_v59, %v13182_v1  ;;  %v18609_v28 = vld [vmem:[#allocation2 + $0xef] sm:$0xff]  ;;  %v18665_v44 = vld [vmem:[#allocation2 + $0x167] sm:$0xff] }
 0x156   : > { %15364 = vmatmul.mubr.msk.f32.gmra.mrb[34].mxu0 %vm884_vm2, %v18496_v54  ;;  %15577 = vmatmul.mubr.msk.f32.vlgmr.msra.gmra.mrb[0].mxu1 %vm884_vm2, %v18490_v50  ;;  %v18619_v51 = vld [vmem:[#allocation2 + $0x109] sm:$0xff]  ;;  %v18723_v46 = vld [vmem:[#allocation2 + $0x1d1] sm:$0xff] }
 0x157   : > { %16767 = vmatpush3.bf16.msra.mxu1 %v18259_v35  ;;  %15366 = vmatprep.mubr.msk.f32.mxu0 %vm884_vm2, %v18508_v57  ;;  %v18535_v35 = vld [vmem:[#allocation2 + $0x67] sm:$0xff]  ;;  %v18625_v34 = vld [vmem:[#allocation2 + $0x10f] sm:$0xff] }
 0x158   : > { %15579 = vmatprep.mubr.msk.f32.mxu1 %vm884_vm2, %v18519_v61  ;;  %15628 = vmatprep.subr.mxu1 %v13149_v52  ;;  %v18651_v1 = vld [vmem:[#allocation2 + $0x149] sm:$0xff]  ;;  %v18739_v16 = vld [vmem:[#allocation2 + $0x1f1] sm:$0xff] }
 0x159   : > { %15413 = vmatpush3.msra.mxu0 %v13009_v49  ;;  %v18635_v49 = vld [vmem:[#allocation2 + $0x129] sm:$0xff]  ;;  %22055 = vst [vmem:[#allocation35_spill] sm:$0xff] %v18739_v16  ;;  %v1705_v54 = vld [vmem:[#allocation2 + $0x11] sm:$0xff] }
 0x15a   : > { %15367 = vmatmul.mubr.msk.f32.gmra.mrb[36].mxu0 %vm884_vm2, %v18525_v63  ;;  %15580 = vmatmul.mubr.msk.f32.gmra.mrb[2].mxu1 %vm884_vm2, %v18527_v0  ;;  %v18657_v59 = vld [vmem:[#allocation2 + $0x14f] sm:$0xff]  ;;  %v18729_v38 = vld [vmem:[#allocation2 + $0x1e7] sm:$0xff] }
 0x15b   : > { %15369 = vmatprep.mubr.msk.f32.mxu0 %vm884_vm2, %v18535_v35  ;;  %15582 = vmatprep.mubr.msk.f32.mxu1 %vm884_vm2, %v18537_v3  ;;  %v18667_v43 = vld [vmem:[#allocation2 + $0x169] sm:$0xff]  ;;  %v18750_v45 = vld [vmem:[#allocation2 + $0x211] sm:$0xff] }
 0x15c   : > { %15629 = vmatpush3.msra.mxu1 %v13149_v52  ;;  %16753 = vmatprep.subr.bf16.mxu0 %v18523_v62  ;;  %v18641_v52 = vld [vmem:[#allocation2 + $0x12f] sm:$0xff]  ;;  %22057 = vst [vmem:[#allocation37_spill] sm:$0xff] %v18750_v45 }
 0x15d   : > { %16769 = vmatprep.subr.bf16.mxu1 %v18529_v2  ;;  %v18673_v41 = vld [vmem:[#allocation2 + $0x16f] sm:$0xff] }
 0x15e   : > { %15370 = vmatmul.mubr.msk.f32.gmra.mrb[38].mxu0 %vm884_vm2, %v18544_v4  ;;  %15583 = vmatmul.mubr.msk.f32.gmra.mrb[4].mxu1 %vm884_vm2, %v18546_v6  ;;  %v18683_v37 = vld [vmem:[#allocation2 + $0x189] sm:$0xff] }
 0x15f   : > { %15372 = vmatprep.mubr.msk.f32.mxu0 %vm884_vm2, %v18553_v8  ;;  %15585 = vmatprep.mubr.msk.f32.mxu1 %vm884_vm2, %v18555_v9  ;;  %v18689_v31 = vld [vmem:[#allocation2 + $0x18f] sm:$0xff] }
 0x160   : > { %v18699_v17 = vld [vmem:[#allocation2 + $0x1a9] sm:$0xff] }
 0x161   : > { %v18705_v7 = vld [vmem:[#allocation2 + $0x1af] sm:$0xff] }
 0x162   : > { %15373 = vmatmul.mubr.msk.f32.gmra.mrb[40].mxu0 %vm884_vm2, %v18561_v10  ;;  %15586 = vmatmul.mubr.msk.f32.gmra.mrb[6].mxu1 %vm884_vm2, %v18563_v11  ;;  %v18715_v58 = vld [vmem:[#allocation2 + $0x1c9] sm:$0xff] }
 0x163   : > { %15375 = vmatprep.mubr.msk.f32.mxu0 %vm884_vm2, %v18569_v12  ;;  %15588 = vmatprep.mubr.msk.f32.mxu1 %vm884_vm2, %v18571_v13  ;;  %v18721_v48 = vld [vmem:[#allocation2 + $0x1cf] sm:$0xff] }
 0x164   : > { %v18731_v36 = vld [vmem:[#allocation2 + $0x1e9] sm:$0xff] }
 0x165   : > { %22054 = vst [vmem:[#allocation34_spill] sm:$0xff] %v18731_v36  ;;  %v18737_v24 = vld [vmem:[#allocation2 + $0x1ef] sm:$0xff] }
 0x166   : > { %15376 = vmatmul.mubr.msk.f32.gmra.mrb[42].mxu0 %vm884_vm2, %v18577_v15  ;;  %15589 = vmatmul.mubr.msk.f32.gmra.mrb[8].mxu1 %vm884_vm2, %v18579_v18  ;;  %v18745_v14 = vld [vmem:[#allocation2 + $0x209] sm:$0xff] }
 0x167   : > { %15378 = vmatprep.mubr.msk.f32.mxu0 %vm884_vm2, %v18585_v20  ;;  %15591 = vmatprep.mubr.msk.f32.mxu1 %vm884_vm2, %v18587_v21  ;;  %22056 = vst [vmem:[#allocation36_spill] sm:$0xff] %v18745_v14 }
 0x16a   : > { %15379 = vmatmul.mubr.msk.f32.gmra.mrb[44].mxu0 %vm884_vm2, %v18593_v22  ;;  %15592 = vmatmul.mubr.msk.f32.gmra.mrb[10].mxu1 %vm884_vm2, %v18595_v23 }
 0x16b   : > { %15381 = vmatprep.mubr.msk.f32.mxu0 %vm884_vm2, %v18601_v25  ;;  %15594 = vmatprep.mubr.msk.f32.mxu1 %vm884_vm2, %v18603_v27 }
 0x16e   : > { %15382 = vmatmul.mubr.msk.f32.gmra.mrb[46].mxu0 %vm884_vm2, %v18609_v28  ;;  %15595 = vmatmul.mubr.msk.f32.gmra.mrb[12].mxu1 %vm884_vm2, %v18611_v30 }
 0x16f   : > { %15384 = vmatprep.mubr.msk.f32.mxu0 %vm884_vm2, %v18617_v32  ;;  %15597 = vmatprep.mubr.msk.f32.mxu1 %vm884_vm2, %v18619_v51 }
 0x172   : > { %15385 = vmatmul.mubr.msk.f32.gmra.mrb[48].mxu0 %vm884_vm2, %v18625_v34  ;;  %15598 = vmatmul.mubr.msk.f32.gmra.mrb[14].mxu1 %vm884_vm2, %v18627_v40 }
 0x173   : > { %15387 = vmatprep.mubr.msk.f32.mxu0 %vm884_vm2, %v18633_v42  ;;  %15600 = vmatprep.mubr.msk.f32.mxu1 %vm884_vm2, %v18635_v49 }
 0x176   : > { %15388 = vmatmul.mubr.msk.f32.gmra.mrb[50].mxu0 %vm884_vm2, %v18641_v52  ;;  %15601 = vmatmul.mubr.msk.f32.gmra.mrb[16].mxu1 %vm884_vm2, %v18643_v55 }
 0x177   : > { %15390 = vmatprep.mubr.msk.f32.mxu0 %vm884_vm2, %v18649_v56  ;;  %15603 = vmatprep.mubr.msk.f32.mxu1 %vm884_vm2, %v18651_v1 }
 0x17a   : > { %15391 = vmatmul.mubr.msk.f32.gmra.mrb[52].mxu0 %vm884_vm2, %v18657_v59  ;;  %15604 = vmatmul.mubr.msk.f32.gmra.mrb[18].mxu1 %vm884_vm2, %v18659_v33 }
 0x17b   : > { %15393 = vmatprep.mubr.msk.f32.mxu0 %vm884_vm2, %v18665_v44  ;;  %15606 = vmatprep.mubr.msk.f32.mxu1 %vm884_vm2, %v18667_v43 }
 0x17e   : > { %15394 = vmatmul.mubr.msk.f32.gmra.mrb[54].mxu0 %vm884_vm2, %v18673_v41  ;;  %15607 = vmatmul.mubr.msk.f32.gmra.mrb[20].mxu1 %vm884_vm2, %v18675_v39 }
 0x17f   : > { %15396 = vmatprep.mubr.msk.f32.mxu0 %vm884_vm2, %v18681_v53  ;;  %15609 = vmatprep.mubr.msk.f32.mxu1 %vm884_vm2, %v18683_v37 }
 0x182   : > { %15397 = vmatmul.mubr.msk.f32.gmra.mrb[56].mxu0 %vm884_vm2, %v18689_v31  ;;  %15610 = vmatmul.mubr.msk.f32.gmra.mrb[22].mxu1 %vm884_vm2, %v18691_v29 }
 0x183   : > { %15399 = vmatprep.mubr.msk.f32.mxu0 %vm884_vm2, %v18697_v19  ;;  %15612 = vmatprep.mubr.msk.f32.mxu1 %vm884_vm2, %v18699_v17 }
 0x186   : > { %15400 = vmatmul.mubr.msk.f32.gmra.mrb[58].mxu0 %vm884_vm2, %v18705_v7  ;;  %15613 = vmatmul.mubr.msk.f32.gmra.mrb[24].mxu1 %vm884_vm2, %v18707_v5 }
 0x187   : > { %15402 = vmatprep.mubr.msk.f32.mxu0 %vm884_vm2, %v18713_v60  ;;  %15615 = vmatprep.mubr.msk.f32.mxu1 %vm884_vm2, %v18715_v58 }
 0x18a   : > { %15403 = vmatmul.mubr.msk.f32.gmra.mrb[60].mxu0 %vm884_vm2, %v18721_v48  ;;  %15616 = vmatmul.mubr.msk.f32.gmra.mrb[26].mxu1 %vm884_vm2, %v18723_v46 }
 0x18b   : > { %15405 = vmatprep.mubr.msk.f32.mxu0 %vm884_vm2, %v18729_v38  ;;  %15618 = vmatprep.mubr.msk.f32.mxu1 %vm884_vm2, %v18731_v36  ;;  %v13044_v36 = vld [vmem:[%s21904_s4 + $0x58] sm:$0xff] }
 0x18e   : > { %15406 = vmatmul.mubr.msk.f32.gmra.mrb[62].mxu0 %vm884_vm2, %v18737_v24  ;;  %15619 = vmatmul.mubr.msk.f32.gmra.mrb[28].mxu1 %vm884_vm2, %v18739_v16 }
 0x18f   : > { %15621 = vmatprep.mubr.msk.f32.mxu1 %vm884_vm2, %v18745_v14  ;;  %15414 = vmatprep.mubr.msk.f32.mxu0 %vm884_vm2, %v1704_v26  ;;  %v13184_v26 = vld [vmem:[%s21904_s4 + $0xb8] sm:$0xff]  ;;  %v3650_v14 = vld [vmem:[#allocation2 + $0x48] sm:$0xff] }
 0x192   : > { %15415 = vmatmul.mubr.msk.f32.vlgmr.msra.gmra.mrb[32].mxu0 %vm884_vm2, %v1705_v54  ;;  %15622 = vmatmul.mubr.msk.f32.gmra.mrb[30].mxu1 %vm884_vm2, %v18750_v45  ;;  %v13218_v54 = vld [vmem:[%s21904_s4 + $0xc8] sm:$0xff]  ;;  %v22060_v45 = vld [vmem:[#allocation33_spill] sm:$0xff] }
 0x193   : > { %15417 = vmatprep.mubr.msk.f32.mxu0 %vm884_vm2, %v18481_v47  ;;  %15630 = vmatprep.mubr.msk.f32.mxu1 %vm884_vm2, %v18508_v57  ;;  %v13217_v47 = vld [vmem:[%s21904_s4 + $0xc0] sm:$0xff] }
 0x194   : > { %16755 = vmatpush3.bf16.msra.mxu0 %v18523_v62  ;;  %v22058_v62 = vld [vmem:[#allocation34_spill] sm:$0xff] }
 0x195   : > { %15466 = vmatprep.subr.mxu0 %v13044_v36 }
 0x196   : > { %15418 = vmatmul.mubr.msk.f32.gmra.mrb[34].mxu0 %vm884_vm2, %v18490_v50  ;;  %15631 = vmatmul.mubr.msk.f32.vlgmr.msra.gmra.mrb[0].mxu1 %vm884_vm2, %v18525_v63  ;;  %v18781_v50 = vpack.c.bf16 %v13218_v54, %v13217_v47  ;;  %v22059_v47 = vld [vmem:[#allocation32_spill] sm:$0xff] }
 0x197   : > { %16771 = vmatpush3.bf16.msra.mxu1 %v18529_v2  ;;  %15420 = vmatprep.mubr.msk.f32.mxu0 %vm884_vm2, %v18519_v61  ;;  %v3291_v2 = vld [vmem:[#allocation2 + $0x227] sm:$0xff]  ;;  %v3292_v54 = vld [vmem:[#allocation2 + $0x22f] sm:$0xff] }
 0x198   : > { %15633 = vmatprep.mubr.msk.f32.mxu1 %vm884_vm2, %v18535_v35  ;;  %15682 = vmatprep.subr.mxu1 %v13184_v26 }
 0x199   : > { %15467 = vmatpush3.msra.mxu0 %v13044_v36  ;;  %v18884_v36 = vld [vmem:[#allocation2 + $0x207] sm:$0xff] }
 0x19a   : > { %15421 = vmatmul.mubr.msk.f32.gmra.mrb[36].mxu0 %vm884_vm2, %v18527_v0  ;;  %15634 = vmatmul.mubr.msk.f32.gmra.mrb[2].mxu1 %vm884_vm2, %v18544_v4 }
 0x19b   : > { %15423 = vmatprep.mubr.msk.f32.mxu0 %vm884_vm2, %v18537_v3  ;;  %15636 = vmatprep.mubr.msk.f32.mxu1 %vm884_vm2, %v18553_v8 }
 0x19c   : > { %15683 = vmatpush3.msra.mxu1 %v13184_v26  ;;  %v18890_v26 = vld [vmem:[#allocation2 + $0x20f] sm:$0xff] }
 0x19d   : > { %16773 = vmatprep.subr.bf16.mxu1 %v18781_v50 }
 0x19e   : > { %15424 = vmatmul.mubr.msk.f32.gmra.mrb[38].mxu0 %vm884_vm2, %v18546_v6  ;;  %15637 = vmatmul.mubr.msk.f32.gmra.mrb[4].mxu1 %vm884_vm2, %v18561_v10 }
 0x19f   : > { %15426 = vmatprep.mubr.msk.f32.mxu0 %vm884_vm2, %v18555_v9  ;;  %15639 = vmatprep.mubr.msk.f32.mxu1 %vm884_vm2, %v18569_v12 }
 0x1a2   : > { %15427 = vmatmul.mubr.msk.f32.gmra.mrb[40].mxu0 %vm884_vm2, %v18563_v11  ;;  %15640 = vmatmul.mubr.msk.f32.gmra.mrb[6].mxu1 %vm884_vm2, %v18577_v15 }
 0x1a3   : > { %15429 = vmatprep.mubr.msk.f32.mxu0 %vm884_vm2, %v18571_v13  ;;  %15642 = vmatprep.mubr.msk.f32.mxu1 %vm884_vm2, %v18585_v20 }
 0x1a6   : > { %15430 = vmatmul.mubr.msk.f32.gmra.mrb[42].mxu0 %vm884_vm2, %v18579_v18  ;;  %15643 = vmatmul.mubr.msk.f32.gmra.mrb[8].mxu1 %vm884_vm2, %v18593_v22 }
 0x1a7   : > { %15432 = vmatprep.mubr.msk.f32.mxu0 %vm884_vm2, %v18587_v21  ;;  %15645 = vmatprep.mubr.msk.f32.mxu1 %vm884_vm2, %v18601_v25 }
 0x1aa   : > { %15433 = vmatmul.mubr.msk.f32.gmra.mrb[44].mxu0 %vm884_vm2, %v18595_v23  ;;  %15646 = vmatmul.mubr.msk.f32.gmra.mrb[10].mxu1 %vm884_vm2, %v18609_v28 }
 0x1ab   : > { %15435 = vmatprep.mubr.msk.f32.mxu0 %vm884_vm2, %v18603_v27  ;;  %15648 = vmatprep.mubr.msk.f32.mxu1 %vm884_vm2, %v18617_v32 }
 0x1ae   : > { %15436 = vmatmul.mubr.msk.f32.gmra.mrb[46].mxu0 %vm884_vm2, %v18611_v30  ;;  %15649 = vmatmul.mubr.msk.f32.gmra.mrb[12].mxu1 %vm884_vm2, %v18625_v34 }
 0x1af   : > { %15438 = vmatprep.mubr.msk.f32.mxu0 %vm884_vm2, %v18619_v51  ;;  %15651 = vmatprep.mubr.msk.f32.mxu1 %vm884_vm2, %v18633_v42 }
 0x1b2   : > { %15439 = vmatmul.mubr.msk.f32.gmra.mrb[48].mxu0 %vm884_vm2, %v18627_v40  ;;  %15652 = vmatmul.mubr.msk.f32.gmra.mrb[14].mxu1 %vm884_vm2, %v18641_v52 }
 0x1b3   : > { %15441 = vmatprep.mubr.msk.f32.mxu0 %vm884_vm2, %v18635_v49  ;;  %15654 = vmatprep.mubr.msk.f32.mxu1 %vm884_vm2, %v18649_v56 }
 0x1b6   : > { %15442 = vmatmul.mubr.msk.f32.gmra.mrb[50].mxu0 %vm884_vm2, %v18643_v55  ;;  %15655 = vmatmul.mubr.msk.f32.gmra.mrb[16].mxu1 %vm884_vm2, %v18657_v59 }
 0x1b7   : > { %15444 = vmatprep.mubr.msk.f32.mxu0 %vm884_vm2, %v18651_v1  ;;  %15657 = vmatprep.mubr.msk.f32.mxu1 %vm884_vm2, %v18665_v44 }
 0x1ba   : > { %15445 = vmatmul.mubr.msk.f32.gmra.mrb[52].mxu0 %vm884_vm2, %v18659_v33  ;;  %15658 = vmatmul.mubr.msk.f32.gmra.mrb[18].mxu1 %vm884_vm2, %v18673_v41 }
 0x1bb   : > { %15447 = vmatprep.mubr.msk.f32.mxu0 %vm884_vm2, %v18667_v43  ;;  %15660 = vmatprep.mubr.msk.f32.mxu1 %vm884_vm2, %v18681_v53 }
 0x1be   : > { %15448 = vmatmul.mubr.msk.f32.gmra.mrb[54].mxu0 %vm884_vm2, %v18675_v39  ;;  %15661 = vmatmul.mubr.msk.f32.gmra.mrb[20].mxu1 %vm884_vm2, %v18689_v31 }
 0x1bf   : > { %15450 = vmatprep.mubr.msk.f32.mxu0 %vm884_vm2, %v18683_v37  ;;  %15663 = vmatprep.mubr.msk.f32.mxu1 %vm884_vm2, %v18697_v19 }
 0x1c2   : > { %15451 = vmatmul.mubr.msk.f32.gmra.mrb[56].mxu0 %vm884_vm2, %v18691_v29  ;;  %15664 = vmatmul.mubr.msk.f32.gmra.mrb[22].mxu1 %vm884_vm2, %v18705_v7 }
 0x1c3   : > { %15453 = vmatprep.mubr.msk.f32.mxu0 %vm884_vm2, %v18699_v17  ;;  %15666 = vmatprep.mubr.msk.f32.mxu1 %vm884_vm2, %v18713_v60 }
 0x1c6   : > { %15454 = vmatmul.mubr.msk.f32.gmra.mrb[58].mxu0 %vm884_vm2, %v18707_v5  ;;  %15667 = vmatmul.mubr.msk.f32.gmra.mrb[24].mxu1 %vm884_vm2, %v18721_v48 }
 0x1c7   : > { %15456 = vmatprep.mubr.msk.f32.mxu0 %vm884_vm2, %v18715_v58  ;;  %15669 = vmatprep.mubr.msk.f32.mxu1 %vm884_vm2, %v18729_v38 }
 0x1ca   : > { %15457 = vmatmul.mubr.msk.f32.gmra.mrb[60].mxu0 %vm884_vm2, %v18723_v46  ;;  %15670 = vmatmul.mubr.msk.f32.gmra.mrb[26].mxu1 %vm884_vm2, %v18737_v24 }
 0x1cb   : > { %15459 = vmatprep.mubr.msk.f32.mxu0 %vm884_vm2, %v22058_v62  ;;  %15672 = vmatprep.mubr.msk.f32.mxu1 %vm884_vm2, %v18884_v36  ;;  %v13219_v62 = vld [vmem:[%s21904_s4 + $0xd0] sm:$0xff] }
 0x1ce   : > { %15460 = vmatmul.mubr.msk.f32.gmra.mrb[62].mxu0 %vm884_vm2, %v18739_v16  ;;  %15673 = vmatmul.mubr.msk.f32.gmra.mrb[28].mxu1 %vm884_vm2, %v18890_v26  ;;  %v3651_v16 = vld [vmem:[#allocation2 + $0x50] sm:$0xff] }
 0x1cf   : > { %15468 = vmatprep.mubr.msk.f32.mxu0 %vm884_vm2, %v22059_v47  ;;  %15675 = vmatprep.mubr.msk.f32.mxu1 %vm884_vm2, %v3291_v2  ;;  %v8328_v2 = vld [vmem:[%s17956_s12 + $0xa9] sm:$0xff]  ;;  %v22089_v47 = vmov 0.0  }
 0x1d0   : > { %4571 = vst.msk [vmem:[#allocation3 + $0x30] sm:$0xff] %vm4564_vm10, %v22089_v47  ;;  %4565 = vst.msk [vmem:[#allocation3] sm:$0xff] %vm4564_vm10, %v22089_v47 }
 0x1d1   : > { %4566 = vst.msk [vmem:[#allocation3 + $0x8] sm:$0xff] %vm4564_vm10, %v22089_v47  ;;  %4567 = vst.msk [vmem:[#allocation3 + $0x10] sm:$0xff] %vm4564_vm10, %v22089_v47 }
 0x1d2   : > { %15469 = vmatmul.mubr.msk.f32.vlgmr.msra.gmra.mrb[32].mxu0 %vm884_vm2, %v22060_v45  ;;  %15676 = vmatmul.mubr.msk.f32.gmra.mrb[30].mxu1 %vm884_vm2, %v3292_v54  ;;  %v3652_v45 = vld [vmem:[#allocation2 + $0x68] sm:$0xff]  ;;  %4568 = vst.msk [vmem:[#allocation3 + $0x18] sm:$0xff] %vm4564_vm10, %v22089_v47  ;;  %4569 = vst.msk [vmem:[#allocation3 + $0x20] sm:$0xff] %vm4564_vm10, %v22089_v47 }
 0x1d3   : > { %15471 = vmatprep.mubr.msk.f32.mxu0 %vm884_vm2, %v18508_v57  ;;  %15684 = vmatprep.mubr.msk.f32.mxu1 %vm884_vm2, %v3650_v14  ;;  %v3653_v14 = vld [vmem:[#allocation2 + $0x70] sm:$0xff]  ;;  %v3654_v57 = vld [vmem:[#allocation2 + $0x88] sm:$0xff]  ;;  %4570 = vst.msk [vmem:[#allocation3 + $0x28] sm:$0xff] %vm4564_vm10, %v22089_v47  ;;  %4572 = vst.msk [vmem:[#allocation3 + $0x38] sm:$0xff] %vm4564_vm10, %v22089_v47 }
 0x1d4   : > { %4573 = vst.msk [vmem:[#allocation3 + $0x40] sm:$0xff] %vm4564_vm10, %v22089_v47  ;;  %4574 = vst.msk [vmem:[#allocation3 + $0x48] sm:$0xff] %vm4564_vm10, %v22089_v47  ;;  %v8330_v54 = vld [vmem:[%s17956_s12 + $0xc1] sm:$0xff] }
 0x1d5   : > { %4575 = vst.msk [vmem:[#allocation3 + $0x50] sm:$0xff] %vm4564_vm10, %v22089_v47  ;;  %4576 = vst.msk [vmem:[#allocation3 + $0x58] sm:$0xff] %vm4564_vm10, %v22089_v47 }
 0x1d6   : > { %15472 = vmatmul.mubr.msk.f32.gmra.mrb[34].mxu0 %vm884_vm2, %v18525_v63  ;;  %15685 = vmatmul.mubr.msk.f32.vlgmr.msra.gmra.mrb[0].mxu1 %vm884_vm2, %v3651_v16  ;;  %v18921_v16 = vld [vmem:[%s21908_s8 + $0x4] sm:$0xf]  ;;  %v3655_v63 = vld [vmem:[#allocation2 + $0x90] sm:$0xff]  ;;  %4577 = vst.msk [vmem:[#allocation3 + $0x60] sm:$0xff] %vm4564_vm10, %v22089_v47  ;;  %4578 = vst.msk [vmem:[#allocation3 + $0x68] sm:$0xff] %vm4564_vm10, %v22089_v47 }
 0x1d7   : > { %16775 = vmatpush3.bf16.msra.mxu1 %v18781_v50  ;;  %15474 = vmatprep.mubr.msk.f32.mxu0 %vm884_vm2, %v18535_v35  ;;  %v3656_v35 = vld [vmem:[#allocation2 + $0xa8] sm:$0xff]  ;;  %v3681_v50 = vld [vmem:[#allocation2 + $0x230] sm:$0xff]  ;;  %4579 = vst.msk [vmem:[#allocation3 + $0x70] sm:$0xff] %vm4564_vm10, %v22089_v47  ;;  %4580 = vst.msk [vmem:[#allocation3 + $0x78] sm:$0xff] %vm4564_vm10, %v22089_v47 }
 0x1d8   : > { %15687 = vmatprep.mubr.msk.f32.mxu1 %vm884_vm2, %v3652_v45  ;;  %15736 = vmatprep.subr.mxu1 %v13219_v62  ;;  %4581 = vst.msk [vmem:[#allocation3 + $0x80] sm:$0xff] %vm4564_vm10, %v22089_v47  ;;  %4582 = vst.msk [vmem:[#allocation3 + $0x88] sm:$0xff] %vm4564_vm10, %v22089_v47  ;;  %v8331_v45 = vld [vmem:[%s17956_s12 + $0xc9] sm:$0xff] }
 0x1d9   : > { %4583 = vst.msk [vmem:[#allocation3 + $0x90] sm:$0xff] %vm4564_vm10, %v22089_v47  ;;  %4584 = vst.msk [vmem:[#allocation3 + $0x98] sm:$0xff] %vm4564_vm10, %v22089_v47 }
 0x1da   : > { %15475 = vmatmul.mubr.msk.f32.gmra.mrb[36].mxu0 %vm884_vm2, %v18544_v4  ;;  %15688 = vmatmul.mubr.msk.f32.gmra.mrb[2].mxu1 %vm884_vm2, %v3653_v14  ;;  %v3657_v4 = vld [vmem:[#allocation2 + $0xb0] sm:$0xff]  ;;  %4585 = vst.msk [vmem:[#allocation3 + $0xa0] sm:$0xff] %vm4564_vm10, %v22089_v47  ;;  %4586 = vst.msk [vmem:[#allocation3 + $0xa8] sm:$0xff] %vm4564_vm10, %v22089_v47  ;;  %v8332_v14 = vld [vmem:[%s17956_s12 + $0xd9] sm:$0xff] }
 0x1db   : > { %15477 = vmatprep.mubr.msk.f32.mxu0 %vm884_vm2, %v18553_v8  ;;  %15690 = vmatprep.mubr.msk.f32.mxu1 %vm884_vm2, %v3654_v57  ;;  %v22061_v8 = vld [vmem:[#allocation10_spill] sm:$0xff]  ;;  %4587 = vst.msk [vmem:[#allocation3 + $0xb0] sm:$0xff] %vm4564_vm10, %v22089_v47  ;;  %4588 = vst.msk [vmem:[#allocation3 + $0xb8] sm:$0xff] %vm4564_vm10, %v22089_v47  ;;  %v4707_v57 = vld [vmem:[#allocation3 + $0x8] sm:$0xff] }
 0x1dc   : > { %15737 = vmatpush3.msra.mxu1 %v13219_v62  ;;  %v8327_v62 = vld [vmem:[%s17956_s12 + $0x99] sm:$0xff]  ;;  %4589 = vst.msk [vmem:[#allocation3 + $0xc0] sm:$0xff] %vm4564_vm10, %v22089_v47  ;;  %4590 = vst.msk [vmem:[#allocation3 + $0xc8] sm:$0xff] %vm4564_vm10, %v22089_v47 }
 0x1dd   : > { %16290 = vmatprep.subr.msk.mxu1 %vm557_vm0, %v18921_v16  ;;  %4591 = vst.msk [vmem:[#allocation3 + $0xd0] sm:$0xff] %vm4564_vm10, %v22089_v47  ;;  %4592 = vst.msk [vmem:[#allocation3 + $0xd8] sm:$0xff] %vm4564_vm10, %v22089_v47 }
 0x1de   : > { %15478 = vmatmul.mubr.msk.f32.gmra.mrb[38].mxu0 %vm884_vm2, %v18561_v10  ;;  %15691 = vmatmul.mubr.msk.f32.gmra.mrb[4].mxu1 %vm884_vm2, %v3655_v63  ;;  %v22062_v10 = vld [vmem:[#allocation11_spill] sm:$0xff]  ;;  %4593 = vst.msk [vmem:[#allocation3 + $0xe0] sm:$0xff] %vm4564_vm10, %v22089_v47  ;;  %4594 = vst.msk [vmem:[#allocation3 + $0xe8] sm:$0xff] %vm4564_vm10, %v22089_v47  ;;  %v4708_v63 = vld [vmem:[#allocation3 + $0x10] sm:$0xff] }
 0x1df   : > { %15480 = vmatprep.mubr.msk.f32.mxu0 %vm884_vm2, %v18569_v12  ;;  %15693 = vmatprep.mubr.msk.f32.mxu1 %vm884_vm2, %v3656_v35  ;;  %v22063_v12 = vld [vmem:[#allocation12_spill] sm:$0xff]  ;;  %4595 = vst.msk [vmem:[#allocation3 + $0xf0] sm:$0xff] %vm4564_vm10, %v22089_v47  ;;  %4596 = vst.msk [vmem:[#allocation3 + $0xf8] sm:$0xff] %vm4564_vm10, %v22089_v47 }
 0x1e0   : > { %4597 = vst.msk [vmem:[#allocation3 + $0x100] sm:$0xff] %vm4564_vm10, %v22089_v47  ;;  %4598 = vst.msk [vmem:[#allocation3 + $0x108] sm:$0xff] %vm4564_vm10, %v22089_v47  ;;  %v8334_v35 = vld [vmem:[%s17956_s12 + $0xf1] sm:$0xff] }
 0x1e1   : > { %4599 = vst.msk [vmem:[#allocation3 + $0x110] sm:$0xff] %vm4564_vm10, %v22089_v47  ;;  %4600 = vst.msk [vmem:[#allocation3 + $0x118] sm:$0xff] %vm4564_vm10, %v22089_v47 }
 0x1e2   : > { %15481 = vmatmul.mubr.msk.f32.gmra.mrb[40].mxu0 %vm884_vm2, %v18577_v15  ;;  %15694 = vmatmul.mubr.msk.f32.gmra.mrb[6].mxu1 %vm884_vm2, %v3657_v4  ;;  %v22064_v15 = vld [vmem:[#allocation13_spill] sm:$0xff]  ;;  %4601 = vst.msk [vmem:[#allocation3 + $0x120] sm:$0xff] %vm4564_vm10, %v22089_v47  ;;  %4602 = vst.msk [vmem:[#allocation3 + $0x128] sm:$0xff] %vm4564_vm10, %v22089_v47 }
 0x1e3   : > { %15483 = vmatprep.mubr.msk.f32.mxu0 %vm884_vm2, %v18585_v20  ;;  %15696 = vmatprep.mubr.msk.f32.mxu1 %vm884_vm2, %v22061_v8  ;;  %v22065_v20 = vld [vmem:[#allocation14_spill] sm:$0xff]  ;;  %4603 = vst.msk [vmem:[#allocation3 + $0x130] sm:$0xff] %vm4564_vm10, %v22089_v47  ;;  %4604 = vst.msk [vmem:[#allocation3 + $0x138] sm:$0xff] %vm4564_vm10, %v22089_v47  ;;  %v8336_v8 = vld [vmem:[%s17956_s12 + $0x109] sm:$0xff] }
 0x1e4   : > { %4605 = vst.msk [vmem:[#allocation3 + $0x140] sm:$0xff] %vm4564_vm10, %v22089_v47  ;;  %4606 = vst.msk [vmem:[#allocation3 + $0x148] sm:$0xff] %vm4564_vm10, %v22089_v47  ;;  %v8335_v4 = vld [vmem:[%s17956_s12 + $0xf9] sm:$0xff] }
 0x1e5   : > { %4607 = vst.msk [vmem:[#allocation3 + $0x150] sm:$0xff] %vm4564_vm10, %v22089_v47  ;;  %4608 = vst.msk [vmem:[#allocation3 + $0x158] sm:$0xff] %vm4564_vm10, %v22089_v47 }
 0x1e6   : > { %15484 = vmatmul.mubr.msk.f32.gmra.mrb[42].mxu0 %vm884_vm2, %v18593_v22  ;;  %15697 = vmatmul.mubr.msk.f32.gmra.mrb[8].mxu1 %vm884_vm2, %v22062_v10  ;;  %v22066_v22 = vld [vmem:[#allocation15_spill] sm:$0xff]  ;;  %4609 = vst.msk [vmem:[#allocation3 + $0x160] sm:$0xff] %vm4564_vm10, %v22089_v47  ;;  %4610 = vst.msk [vmem:[#allocation3 + $0x168] sm:$0xff] %vm4564_vm10, %v22089_v47  ;;  %v4703_v10 = vld [vmem:[%s21906_s6] sm:$0xff] }
 0x1e7   : > { %15486 = vmatprep.mubr.msk.f32.mxu0 %vm884_vm2, %v18601_v25  ;;  %15699 = vmatprep.mubr.msk.f32.mxu1 %vm884_vm2, %v22063_v12  ;;  %v22067_v25 = vld [vmem:[#allocation16_spill] sm:$0xff]  ;;  %4611 = vst.msk [vmem:[#allocation3 + $0x170] sm:$0xff] %vm4564_vm10, %v22089_v47  ;;  %4612 = vst.msk [vmem:[#allocation3 + $0x178] sm:$0xff] %vm4564_vm10, %v22089_v47  ;;  %v4704_v12 = vld [vmem:[%s21906_s6 + $0x8] sm:$0xff] }
 0x1e8   : > { %4613 = vst.msk [vmem:[#allocation3 + $0x180] sm:$0xff] %vm4564_vm10, %v22089_v47  ;;  %4614 = vst.msk [vmem:[#allocation3 + $0x188] sm:$0xff] %vm4564_vm10, %v22089_v47 }
 0x1e9   : > { %4615 = vst.msk [vmem:[#allocation3 + $0x190] sm:$0xff] %vm4564_vm10, %v22089_v47  ;;  %4616 = vst.msk [vmem:[#allocation3 + $0x198] sm:$0xff] %vm4564_vm10, %v22089_v47 }
 0x1ea   : > { %15487 = vmatmul.mubr.msk.f32.gmra.mrb[44].mxu0 %vm884_vm2, %v18609_v28  ;;  %15700 = vmatmul.mubr.msk.f32.gmra.mrb[10].mxu1 %vm884_vm2, %v22064_v15  ;;  %v22068_v28 = vld [vmem:[#allocation17_spill] sm:$0xff]  ;;  %4617 = vst.msk [vmem:[#allocation3 + $0x1a0] sm:$0xff] %vm4564_vm10, %v22089_v47  ;;  %4618 = vst.msk [vmem:[#allocation3 + $0x1a8] sm:$0xff] %vm4564_vm10, %v22089_v47 }
 0x1eb   : > { %15489 = vmatprep.mubr.msk.f32.mxu0 %vm884_vm2, %v18617_v32  ;;  %15702 = vmatprep.mubr.msk.f32.mxu1 %vm884_vm2, %v22065_v20  ;;  %v22069_v32 = vld [vmem:[#allocation18_spill] sm:$0xff]  ;;  %4619 = vst.msk [vmem:[#allocation3 + $0x1b0] sm:$0xff] %vm4564_vm10, %v22089_v47  ;;  %4620 = vst.msk [vmem:[#allocation3 + $0x1b8] sm:$0xff] %vm4564_vm10, %v22089_v47  ;;  %v8337_v15 = vld [vmem:[%s17956_s12 + $0x111] sm:$0xff]  ;;  %v16786_v20 = vpack.c.bf16 %v4704_v12, %v4703_v10 }
 0x1ec   : > { %4621 = vst.msk [vmem:[#allocation3 + $0x1c0] sm:$0xff] %vm4564_vm10, %v22089_v47  ;;  %4622 = vst.msk [vmem:[#allocation3 + $0x1c8] sm:$0xff] %vm4564_vm10, %v22089_v47  ;;  %v8308_v12 = vld [vmem:[%s17956_s12 + $0x140] sm:$0xff] }
 0x1ed   : > { %4623 = vst.msk [vmem:[#allocation3 + $0x1d0] sm:$0xff] %vm4564_vm10, %v22089_v47  ;;  %4624 = vst.msk [vmem:[#allocation3 + $0x1d8] sm:$0xff] %vm4564_vm10, %v22089_v47 }
 0x1ee   : > { %15490 = vmatmul.mubr.msk.f32.gmra.mrb[46].mxu0 %vm884_vm2, %v18625_v34  ;;  %15703 = vmatmul.mubr.msk.f32.gmra.mrb[12].mxu1 %vm884_vm2, %v22066_v22  ;;  %v22070_v34 = vld [vmem:[#allocation19_spill] sm:$0xff]  ;;  %4625 = vst.msk [vmem:[#allocation3 + $0x1e0] sm:$0xff] %vm4564_vm10, %v22089_v47  ;;  %4626 = vst.msk [vmem:[#allocation3 + $0x1e8] sm:$0xff] %vm4564_vm10, %v22089_v47 }
 0x1ef   : > { %15492 = vmatprep.mubr.msk.f32.mxu0 %vm884_vm2, %v18633_v42  ;;  %15705 = vmatprep.mubr.msk.f32.mxu1 %vm884_vm2, %v22067_v25  ;;  %v22071_v42 = vld [vmem:[#allocation20_spill] sm:$0xff]  ;;  %4627 = vst.msk [vmem:[#allocation3 + $0x1f0] sm:$0xff] %vm4564_vm10, %v22089_v47  ;;  %4628 = vst.msk [vmem:[#allocation3 + $0x1f8] sm:$0xff] %vm4564_vm10, %v22089_v47  ;;  %v8338_v22 = vld [vmem:[%s17956_s12 + $0x121] sm:$0xff] }
 0x1f0   : > { %4629 = vst.msk [vmem:[#allocation3 + $0x200] sm:$0xff] %vm4564_vm10, %v22089_v47  ;;  %4630 = vst.msk [vmem:[#allocation3 + $0x208] sm:$0xff] %vm4564_vm10, %v22089_v47  ;;  %v8339_v25 = vld [vmem:[%s17956_s12 + $0x129] sm:$0xff] }
 0x1f1   : > { %4631 = vst.msk [vmem:[#allocation3 + $0x210] sm:$0xff] %vm4564_vm10, %v22089_v47  ;;  %4632 = vst.msk [vmem:[#allocation3 + $0x218] sm:$0xff] %vm4564_vm10, %v22089_v47 }
 0x1f2   : > { %15493 = vmatmul.mubr.msk.f32.gmra.mrb[48].mxu0 %vm884_vm2, %v18641_v52  ;;  %15706 = vmatmul.mubr.msk.f32.gmra.mrb[14].mxu1 %vm884_vm2, %v22068_v28  ;;  %v22072_v52 = vld [vmem:[#allocation21_spill] sm:$0xff]  ;;  %4633 = vst.msk [vmem:[#allocation3 + $0x220] sm:$0xff] %vm4564_vm10, %v22089_v47  ;;  %4634 = vst.msk [vmem:[#allocation3 + $0x228] sm:$0xff] %vm4564_vm10, %v22089_v47 }
 0x1f3   : > { %15495 = vmatprep.mubr.msk.f32.mxu0 %vm884_vm2, %v18649_v56  ;;  %15708 = vmatprep.mubr.msk.f32.mxu1 %vm884_vm2, %v22069_v32  ;;  %v22073_v56 = vld [vmem:[#allocation22_spill] sm:$0xff]  ;;  %4635 = vst.msk [vmem:[#allocation3 + $0x230] sm:$0xff] %vm4564_vm10, %v22089_v47  ;;  %4636 = vst.msk [vmem:[#allocation3 + $0x238] sm:$0xff] %vm4564_vm10, %v22089_v47  ;;  %v8303_v47 = vld [vmem:[%s17956_s12 + $0x108] sm:$0xff] }
 0x1f4   : > { %v8340_v28 = vld [vmem:[%s17956_s12 + $0x139] sm:$0xff]  ;;  %v8341_v32 = vld [vmem:[%s17956_s12 + $0x141] sm:$0xff] }
 0x1f6   : > { %15496 = vmatmul.mubr.msk.f32.gmra.mrb[50].mxu0 %vm884_vm2, %v18657_v59  ;;  %15709 = vmatmul.mubr.msk.f32.gmra.mrb[16].mxu1 %vm884_vm2, %v22070_v34  ;;  %v22074_v59 = vld [vmem:[#allocation23_spill] sm:$0xff]  ;;  %v8342_v34 = vld [vmem:[%s17956_s12 + $0x151] sm:$0xff] }
 0x1f7   : > { %15498 = vmatprep.mubr.msk.f32.mxu0 %vm884_vm2, %v18665_v44  ;;  %15711 = vmatprep.mubr.msk.f32.mxu1 %vm884_vm2, %v22071_v42  ;;  %v22075_v44 = vld [vmem:[#allocation24_spill] sm:$0xff]  ;;  %v8343_v42 = vld [vmem:[%s17956_s12 + $0x159] sm:$0xff] }
 0x1fa   : > { %15499 = vmatmul.mubr.msk.f32.gmra.mrb[52].mxu0 %vm884_vm2, %v18673_v41  ;;  %15712 = vmatmul.mubr.msk.f32.gmra.mrb[18].mxu1 %vm884_vm2, %v22072_v52  ;;  %v22076_v41 = vld [vmem:[#allocation25_spill] sm:$0xff]  ;;  %v8344_v52 = vld [vmem:[%s17956_s12 + $0x169] sm:$0xff] }
 0x1fb   : > { %15501 = vmatprep.mubr.msk.f32.mxu0 %vm884_vm2, %v18681_v53  ;;  %15714 = vmatprep.mubr.msk.f32.mxu1 %vm884_vm2, %v22073_v56  ;;  %v22077_v53 = vld [vmem:[#allocation26_spill] sm:$0xff]  ;;  %v8345_v56 = vld [vmem:[%s17956_s12 + $0x171] sm:$0xff] }
 0x1fe   : > { %15502 = vmatmul.mubr.msk.f32.gmra.mrb[54].mxu0 %vm884_vm2, %v18689_v31  ;;  %15715 = vmatmul.mubr.msk.f32.gmra.mrb[20].mxu1 %vm884_vm2, %v22074_v59  ;;  %v22078_v31 = vld [vmem:[#allocation27_spill] sm:$0xff]  ;;  %v8281_v59 = vld [vmem:[%s17956_s12] sm:$0xff] }
 0x1ff   : > { %15504 = vmatprep.mubr.msk.f32.mxu0 %vm884_vm2, %v18697_v19  ;;  %15717 = vmatprep.mubr.msk.f32.mxu1 %vm884_vm2, %v22075_v44  ;;  %v22079_v19 = vld [vmem:[#allocation28_spill] sm:$0xff]  ;;  %v8282_v44 = vld [vmem:[%s17956_s12 + $0x8] sm:$0xff] }
 0x202   : > { %15505 = vmatmul.mubr.msk.f32.gmra.mrb[56].mxu0 %vm884_vm2, %v18705_v7  ;;  %15718 = vmatmul.mubr.msk.f32.gmra.mrb[22].mxu1 %vm884_vm2, %v22076_v41  ;;  %v22080_v7 = vld [vmem:[#allocation29_spill] sm:$0xff] }
 0x203   : > { %15507 = vmatprep.mubr.msk.f32.mxu0 %vm884_vm2, %v18713_v60  ;;  %15720 = vmatprep.mubr.msk.f32.mxu1 %vm884_vm2, %v22077_v53  ;;  %v22081_v60 = vld [vmem:[#allocation30_spill] sm:$0xff]  ;;  %v19347_v41 = vld [vmem:[%s17956_s12 + $0x18] sm:$0xff]  ;;  %v19352_v53 = vld [vmem:[%s21908_s8 + $0xc] sm:$0xf] }
 0x206   : > { %15508 = vmatmul.mubr.msk.f32.gmra.mrb[58].mxu0 %vm884_vm2, %v18721_v48  ;;  %15721 = vmatmul.mubr.msk.f32.gmra.mrb[24].mxu1 %vm884_vm2, %v22078_v31  ;;  %v3680_v48 = vld [vmem:[#allocation2 + $0x228] sm:$0xff]  ;;  %v19358_v31 = vld [vmem:[%s17956_s12 + $0x20] sm:$0xff] }
 0x207   : > { %15510 = vmatprep.mubr.msk.f32.mxu0 %vm884_vm2, %v18729_v38  ;;  %15723 = vmatprep.mubr.msk.f32.mxu1 %vm884_vm2, %v22079_v19  ;;  %v22082_v38 = vld [vmem:[#allocation31_spill] sm:$0xff]  ;;  %v19363_v19 = vld [vmem:[%s17956_s12 + $0x30] sm:$0xff] }
 0x20a   : > { %15511 = vmatmul.mubr.msk.f32.gmra.mrb[60].mxu0 %vm884_vm2, %v18737_v24  ;;  %15724 = vmatmul.mubr.msk.f32.gmra.mrb[26].mxu1 %vm884_vm2, %v22080_v7  ;;  %v8313_v24 = vld [vmem:[%s21908_s8] sm:$0xf]  ;;  %v19372_v7 = vld [vmem:[%s17956_s12 + $0x38] sm:$0xff] }
 0x20b   : > { %15513 = vmatprep.mubr.msk.f32.mxu0 %vm884_vm2, %v18884_v36  ;;  %15726 = vmatprep.mubr.msk.f32.mxu1 %vm884_vm2, %v22081_v60  ;;  %v8326_v36 = vld [vmem:[%s17956_s12 + $0x91] sm:$0xff]  ;;  %v19375_v60 = vld [vmem:[%s17956_s12 + $0x48] sm:$0xff] }
 0x20e   : > { %15514 = vmatmul.mubr.msk.f32.gmra.mrb[62].mxu0 %vm884_vm2, %v18890_v26  ;;  %15727 = vmatmul.mubr.msk.f32.gmra.mrb[28].mxu1 %vm884_vm2, %v22082_v38  ;;  %v19155_v26 = vld [vmem:[%s17956_s12 + $0xb1] sm:$0xff] }
 0x20f   : > { %15729 = vmatprep.mubr.msk.f32.mxu1 %vm884_vm2, %v3680_v48  ;;  %15794 = vmatprep.mubr.msk.f32.mxu0 %vm4564_vm10, %v4707_v57  ;;  %v4705_v48 = vld [vmem:[%s21906_s6 + $0x10] sm:$0xff]  ;;  %v4706_v38 = vld [vmem:[%s21906_s6 + $0x18] sm:$0xf]  ;;  %v8305_v57 = vld [vmem:[%s17956_s12 + $0x120] sm:$0xff] }
 0x212   : > { %15730 = vmatmul.mubr.msk.f32.gmra.mrb[30].mxu1 %vm884_vm2, %v3681_v50  ;;  %v19388_v50 = vld [vmem:[%s17956_s12 + $0x50] sm:$0xff] }
 0x213   : > { %15738 = vmatprep.mubr.msk.f32.mxu1 %vm884_vm2, %v18519_v61  ;;  %v13254_v61 = vld [vmem:[%s21906_s6 + $0x20] sm:$0xff] }
 0x216   : > { %15739 = vmatmul.mubr.msk.f32.vlgmr.msra.gmra.mrb[0].mxu1 %vm884_vm2, %v18527_v0  ;;  %v13255_v0 = vld [vmem:[%s21906_s6 + $0x28] sm:$0xff] }
 0x217   : > { %15741 = vmatprep.mubr.msk.f32.mxu1 %vm884_vm2, %v18537_v3  ;;  %16291 = vmatpush3.msk.msra.mxu1 %vm557_vm0, %v18921_v16  ;;  %v16776_v3 = vpack.c.bf16 %v13255_v0, %v13254_v61  ;;  %v8333_v16 = vld [vmem:[%s17956_s12 + $0xe1] sm:$0xff] }
 0x218   : > { %16340 = vmatprep.subr.msk.mxu1 %vm557_vm0, %v8313_v24  ;;  %v19391_v61 = vld [vmem:[%s17956_s12 + $0x60] sm:$0xff]  ;;  %v8290_v0 = vld [vmem:[%s17956_s12 + $0x68] sm:$0xff] }
 0x219   : > { %16777 = vmatprep.subr.bf16.mxu0 %v16776_v3 }
 0x21a   : > { %15742 = vmatmul.mubr.msk.f32.gmra.mrb[2].mxu1 %vm884_vm2, %v18546_v6  ;;  %16779 = vmatpush3.bf16.msra.mxu0 %v16776_v3  ;;  %v19108_v6 = vld [vmem:[%s21908_s8 + $0x8] sm:$0xf]  ;;  %v8291_v3 = vld [vmem:[%s17956_s12 + $0x78] sm:$0xff] }
 0x21b   : > { %15744 = vmatprep.mubr.msk.f32.mxu1 %vm884_vm2, %v18555_v9  ;;  %v13256_v9 = vld [vmem:[%s21906_s6 + $0x30] sm:$0xff] }
 0x21e   : > { %15745 = vmatmul.mubr.msk.f32.gmra.mrb[4].mxu1 %vm884_vm2, %v18563_v11  ;;  %v13257_v11 = vld [vmem:[%s21906_s6 + $0x38] sm:$0xf] }
 0x21f   : > { %15747 = vmatprep.mubr.msk.f32.mxu1 %vm884_vm2, %v18571_v13  ;;  %v8317_v13 = vld [vmem:[%s17956_s12 + $0x21] sm:$0xff] }
 0x222   : > { %15748 = vmatmul.mubr.msk.f32.gmra.mrb[6].mxu1 %vm884_vm2, %v18579_v18  ;;  %v16780_v18 = vpack.c.bf16 %v13257_v11, %v13256_v9  ;;  %v8296_v9 = vld [vmem:[%s17956_s12 + $0xb0] sm:$0xff]  ;;  %v8297_v11 = vld [vmem:[%s17956_s12 + $0xc0] sm:$0xff] }
 0x223   : > { %15750 = vmatprep.mubr.msk.f32.mxu1 %vm884_vm2, %v18587_v21 }
 0x226   : > { %15751 = vmatmul.mubr.msk.f32.gmra.mrb[8].mxu1 %vm884_vm2, %v18595_v23  ;;  %v8318_v23 = vld [vmem:[%s17956_s12 + $0x31] sm:$0xff] }
 0x227   : > { %15753 = vmatprep.mubr.msk.f32.mxu1 %vm884_vm2, %v18603_v27  ;;  %v8319_v27 = vld [vmem:[%s17956_s12 + $0x39] sm:$0xff] }
 0x22a   : > { %15754 = vmatmul.mubr.msk.f32.gmra.mrb[10].mxu1 %vm884_vm2, %v18611_v30  ;;  %v8320_v30 = vld [vmem:[%s17956_s12 + $0x49] sm:$0xff] }
 0x22b   : > { %15756 = vmatprep.mubr.msk.f32.mxu1 %vm884_vm2, %v18619_v51  ;;  %v8321_v51 = vld [vmem:[%s17956_s12 + $0x51] sm:$0xff] }
 0x22e   : > { %15757 = vmatmul.mubr.msk.f32.gmra.mrb[12].mxu1 %vm884_vm2, %v18627_v40  ;;  %v8322_v40 = vld [vmem:[%s17956_s12 + $0x61] sm:$0xff] }
 0x22f   : > { %15759 = vmatprep.mubr.msk.f32.mxu1 %vm884_vm2, %v18635_v49  ;;  %v8323_v49 = vld [vmem:[%s17956_s12 + $0x69] sm:$0xff] }
 0x232   : > { %15760 = vmatmul.mubr.msk.f32.gmra.mrb[14].mxu1 %vm884_vm2, %v18643_v55  ;;  %v8324_v55 = vld [vmem:[%s17956_s12 + $0x79] sm:$0xff] }
 0x233   : > { %15762 = vmatprep.mubr.msk.f32.mxu1 %vm884_vm2, %v18651_v1  ;;  %v8325_v1 = vld [vmem:[%s17956_s12 + $0x81] sm:$0xff] }
 0x236   : > { %15763 = vmatmul.mubr.msk.f32.gmra.mrb[16].mxu1 %vm884_vm2, %v18659_v33  ;;  %v22083_v33 = vld [vmem:[#allocation34_spill] sm:$0xff] }
 0x237   : > { %15765 = vmatprep.mubr.msk.f32.mxu1 %vm884_vm2, %v18667_v43  ;;  %v8316_v43 = vld [vmem:[%s17956_s12 + $0x19] sm:$0xff] }
 0x23a   : > { %15766 = vmatmul.mubr.msk.f32.gmra.mrb[18].mxu1 %vm884_vm2, %v18675_v39  ;;  %v22086_v39 = vld [vmem:[#allocation37_spill] sm:$0xff] }
 0x23b   : > { %15768 = vmatprep.mubr.msk.f32.mxu1 %vm884_vm2, %v18683_v37  ;;  %v22084_v37 = vld [vmem:[#allocation35_spill] sm:$0xff] }
 0x23e   : > { %15769 = vmatmul.mubr.msk.f32.gmra.mrb[20].mxu1 %vm884_vm2, %v18691_v29  ;;  %v22085_v29 = vld [vmem:[#allocation36_spill] sm:$0xff] }
 0x23f   : > { %15771 = vmatprep.mubr.msk.f32.mxu1 %vm884_vm2, %v18699_v17  ;;  %v4069_v17 = vld [vmem:[#allocation2 + $0x229] sm:$0xff] }
 0x242   : > { %15772 = vmatmul.mubr.msk.f32.gmra.mrb[22].mxu1 %vm884_vm2, %v18707_v5  ;;  %v8314_v5 = vld [vmem:[%s17956_s12 + $0x1] sm:$0xff] }
 0x243   : > { %15774 = vmatprep.mubr.msk.f32.mxu1 %vm884_vm2, %v18715_v58  ;;  %v4070_v58 = vld [vmem:[#allocation2 + $0x231] sm:$0xff] }
 0x246   : > { %15775 = vmatmul.mubr.msk.f32.gmra.mrb[24].mxu1 %vm884_vm2, %v18723_v46  ;;  %v8315_v46 = vld [vmem:[%s17956_s12 + $0x9] sm:$0xff] }
 0x247   : > { %15777 = vmatprep.mubr.msk.f32.mxu1 %vm884_vm2, %v22083_v33 }
 0x24a   : > { %15778 = vmatmul.mubr.msk.f32.gmra.mrb[26].mxu1 %vm884_vm2, %v22084_v37 }
 0x24b   : > { %15780 = vmatprep.mubr.msk.f32.mxu1 %vm884_vm2, %v22085_v29  ;;  %v8292_v29 = vld [vmem:[%s17956_s12 + $0x80] sm:$0xff] }
 0x24e   : > { %15781 = vmatmul.mubr.msk.f32.gmra.mrb[28].mxu1 %vm884_vm2, %v22086_v39 }
 0x24f   : > { %15783 = vmatprep.mubr.msk.f32.mxu1 %vm884_vm2, %v4069_v17  ;;  %v8293_v17 = vld [vmem:[%s17956_s12 + $0x90] sm:$0xff] }
 0x252   : > { %15784 = vmatmul.mubr.msk.f32.gmra.mrb[30].mxu1 %vm884_vm2, %v4070_v58  ;;  %vm17809_vm2 = vmmov 1  }
 0x253   : > { %16292 = vmatprep.mubr.msk.f32.mxu1 %vm460_vm1, %v8314_v5  ;;  %vm19121_vm9 = vmpackc.low %vm557_vm0, %vm17809_vm2  ;;  %v8294_v5 = vld [vmem:[%s17956_s12 + $0x98] sm:$0xff] }
 0x254   : > { %16782 = vmatprep.subr.msk.bf16.mxu0 %vm19121_vm9, %v16780_v18 }
 0x255   : > { %16785 = vmatpush3.bf16.msk.msra.mxu0 %vm19121_vm9, %v16780_v18 }
 0x256   : > { %16293 = vmatmul.mubr.msk.f32.vlgmr.msra.gmra.mrb[32].mxu1 %vm460_vm1, %v8315_v46  ;;  %16787 = vmatprep.subr.bf16.mxu0 %v16786_v20  ;;  %v8295_v46 = vld [vmem:[%s17956_s12 + $0xa8] sm:$0xff] }
 0x257   : > { %16295 = vmatprep.mubr.msk.f32.mxu1 %vm460_vm1, %v8316_v43  ;;  %16341 = vmatpush3.msk.msra.mxu1 %vm557_vm0, %v8313_v24  ;;  %v16790_v24 = vpack.c.bf16 %v4706_v38, %v4705_v48  ;;  %v8998_v48 = vld [vmem:[%s17956_s12 + $0x1a] sm:$0xff] }
 0x258   : > { %16390 = vmatprep.subr.msk.mxu1 %vm557_vm0, %v19108_v6  ;;  %15795 = vmatmul.mubr.msk.f32.vlgmr.msra.gmra.mrb[64].mxu0 %vm4564_vm10, %v4708_v63 }
 0x259   : > { %16789 = vmatpush3.bf16.msra.mxu0 %v16786_v20 }
 0x25a   : > { %16296 = vmatmul.mubr.msk.f32.gmra.mrb[34].mxu1 %vm460_vm1, %v8317_v13  ;;  %16792 = vmatprep.subr.msk.bf16.mxu0 %vm19121_vm9, %v16790_v24 }
 0x25b   : > { %16298 = vmatprep.mubr.msk.f32.mxu1 %vm460_vm1, %v8318_v23  ;;  %v8298_v23 = vld [vmem:[%s17956_s12 + $0xc8] sm:$0xff] }
 0x25d   : > { %16795 = vmatpush3.bf16.msk.msra.mxu0 %vm19121_vm9, %v16790_v24  ;;  %v19513_v24 = vld [vmem:[%s21908_s8 + $0x10] sm:$0xf] }
 0x25e   : > { %16299 = vmatmul.mubr.msk.f32.gmra.mrb[36].mxu1 %vm460_vm1, %v8319_v27  ;;  %v8299_v27 = vld [vmem:[%s17956_s12 + $0xd8] sm:$0xff] }
 0x25f   : > { %16301 = vmatprep.mubr.msk.f32.mxu1 %vm460_vm1, %v8320_v30  ;;  %v13324_v30 = vld [vmem:[%s21906_s6 + $0x40] sm:$0xff] }
 0x262   : > { %16302 = vmatmul.mubr.msk.f32.gmra.mrb[38].mxu1 %vm460_vm1, %v8321_v51  ;;  %v13325_v51 = vld [vmem:[%s21906_s6 + $0x48] sm:$0xff] }
 0x263   : > { %16304 = vmatprep.mubr.msk.f32.mxu1 %vm460_vm1, %v8322_v40 }
 0x266   : > { %16305 = vmatmul.mubr.msk.f32.gmra.mrb[40].mxu1 %vm460_vm1, %v8323_v49  ;;  %v19443_v49 = vpack.c.bf16 %v13325_v51, %v13324_v30 }
 0x267   : > { %16307 = vmatprep.mubr.msk.f32.mxu1 %vm460_vm1, %v8324_v55 }
 0x268   : > { %16797 = vmatprep.subr.bf16.mxu0 %v19443_v49 }
 0x26a   : > { %16308 = vmatmul.mubr.msk.f32.gmra.mrb[42].mxu1 %vm460_vm1, %v8325_v1  ;;  %v8300_v1 = vld [vmem:[%s17956_s12 + $0xe0] sm:$0xff] }
 0x26b   : > { %16310 = vmatprep.mubr.msk.f32.mxu1 %vm460_vm1, %v8326_v36  ;;  %v8301_v36 = vld [vmem:[%s17956_s12 + $0xf0] sm:$0xff] }
 0x26e   : > { %16311 = vmatmul.mubr.msk.f32.gmra.mrb[44].mxu1 %vm460_vm1, %v8327_v62 }
 0x26f   : > { %16313 = vmatprep.mubr.msk.f32.mxu1 %vm460_vm1, %v8328_v2 }
 0x272   : > { %16314 = vmatmul.mubr.msk.f32.gmra.mrb[46].mxu1 %vm460_vm1, %v19155_v26  ;;  %v8302_v26 = vld [vmem:[%s17956_s12 + $0xf8] sm:$0xff] }
 0x273   : > { %16316 = vmatprep.mubr.msk.f32.mxu1 %vm460_vm1, %v8330_v54 }
 0x276   : > { %16317 = vmatmul.mubr.msk.f32.gmra.mrb[48].mxu1 %vm460_vm1, %v8331_v45 }
 0x277   : > { %16319 = vmatprep.mubr.msk.f32.mxu1 %vm460_vm1, %v8332_v14  ;;  %v8304_v14 = vld [vmem:[%s17956_s12 + $0x110] sm:$0xff] }
 0x27a   : > { %16320 = vmatmul.mubr.msk.f32.gmra.mrb[50].mxu1 %vm460_vm1, %v8333_v16 }
 0x27b   : > { %16322 = vmatprep.mubr.msk.f32.mxu1 %vm460_vm1, %v8334_v35  ;;  %v8306_v35 = vld [vmem:[%s17956_s12 + $0x128] sm:$0xff] }
 0x27e   : > { %16323 = vmatmul.mubr.msk.f32.gmra.mrb[52].mxu1 %vm460_vm1, %v8335_v4  ;;  %v8307_v4 = vld [vmem:[%s17956_s12 + $0x138] sm:$0xff] }
 0x27f   : > { %16325 = vmatprep.mubr.msk.f32.mxu1 %vm460_vm1, %v8336_v8 }
 0x282   : > { %16326 = vmatmul.mubr.msk.f32.gmra.mrb[54].mxu1 %vm460_vm1, %v8337_v15  ;;  %v8309_v15 = vld [vmem:[%s17956_s12 + $0x150] sm:$0xff] }
 0x283   : > { %16328 = vmatprep.mubr.msk.f32.mxu1 %vm460_vm1, %v8338_v22 }
 0x286   : > { %16329 = vmatmul.mubr.msk.f32.gmra.mrb[56].mxu1 %vm460_vm1, %v8339_v25  ;;  %v8310_v25 = vld [vmem:[%s17956_s12 + $0x158] sm:$0xff] }
 0x287   : > { %16331 = vmatprep.mubr.msk.f32.mxu1 %vm460_vm1, %v8340_v28  ;;  %v8311_v28 = vld [vmem:[%s17956_s12 + $0x168] sm:$0xff] }
 0x28a   : > { %16332 = vmatmul.mubr.msk.f32.gmra.mrb[58].mxu1 %vm460_vm1, %v8341_v32 }
 0x28b   : > { %16334 = vmatprep.mubr.msk.f32.mxu1 %vm460_vm1, %v8342_v34 }
 0x28e   : > { %16335 = vmatmul.mubr.msk.f32.gmra.mrb[60].mxu1 %vm460_vm1, %v8343_v42  ;;  %v8312_v42 = vld [vmem:[%s17956_s12 + $0x170] sm:$0xff] }
 0x28f   : > { %16337 = vmatprep.mubr.msk.f32.mxu1 %vm460_vm1, %v8344_v52  ;;  %v8996_v52 = vld [vmem:[%s17956_s12 + $0x2] sm:$0xff] }
 0x292   : > { %16338 = vmatmul.mubr.msk.f32.gmra.mrb[62].mxu1 %vm460_vm1, %v8345_v56 }
 0x293   : > { %16342 = vmatprep.mubr.msk.f32.mxu1 %vm460_vm1, %v8281_v59 }
 0x296   : > { %16343 = vmatmul.mubr.msk.f32.vlgmr.msra.gmra.mrb[32].mxu1 %vm460_vm1, %v8282_v44  ;;  %v8997_v44 = vld [vmem:[%s17956_s12 + $0xa] sm:$0xff] }
 0x297   : > { %16345 = vmatprep.mubr.msk.f32.mxu1 %vm460_vm1, %v19347_v41  ;;  %16391 = vmatpush3.msk.msra.mxu1 %vm557_vm0, %v19108_v6 }
 0x298   : > { %16440 = vmatprep.subr.msk.mxu1 %vm557_vm0, %v19352_v53 }
 0x29a   : > { %16346 = vmatmul.mubr.msk.f32.gmra.mrb[34].mxu1 %vm460_vm1, %v19358_v31 }
 0x29b   : > { %16348 = vmatprep.mubr.msk.f32.mxu1 %vm460_vm1, %v19363_v19 }
 0x29e   : > { %16349 = vmatmul.mubr.msk.f32.gmra.mrb[36].mxu1 %vm460_vm1, %v19372_v7 }
 0x29f   : > { %16351 = vmatprep.mubr.msk.f32.mxu1 %vm460_vm1, %v19375_v60 }
 0x2a2   : > { %16352 = vmatmul.mubr.msk.f32.gmra.mrb[38].mxu1 %vm460_vm1, %v19388_v50 }
 0x2a3   : > { %16354 = vmatprep.mubr.msk.f32.mxu1 %vm460_vm1, %v19391_v61 }
 0x2a5   : > { %v19403_v33 = vpop.f32.mrb[32].mxu0 }
 0x2a6   : > { %v19405_v37 = vpop.f32.mrb[33].mxu0  ;;  %16355 = vmatmul.mubr.msk.f32.gmra.mrb[40].mxu1 %vm460_vm1, %v8290_v0 }
 0x2a7   : > { %16357 = vmatprep.mubr.msk.f32.mxu1 %vm460_vm1, %v8291_v3  ;;  %v8999_v3 = vld [vmem:[%s17956_s12 + $0x22] sm:$0xff] }
 0x2a9   : > { %v19411_v39 = vpop.f32.mrb[34].mxu0 }
 0x2aa   : > { %v19413_v58 = vpop.f32.mrb[35].mxu0  ;;  %16358 = vmatmul.mubr.msk.f32.gmra.mrb[42].mxu1 %vm460_vm1, %v8292_v29  ;;  %v9000_v29 = vld [vmem:[%s17956_s12 + $0x32] sm:$0xff] }
 0x2ab   : > { %16360 = vmatprep.mubr.msk.f32.mxu1 %vm460_vm1, %v8293_v17 }
 0x2ad   : > { %v19419_v43 = vpop.f32.mrb[36].mxu0 }
 0x2ae   : > { %v19421_v6 = vpop.f32.mrb[37].mxu0  ;;  %16361 = vmatmul.mubr.msk.f32.gmra.mrb[44].mxu1 %vm460_vm1, %v8294_v5 }
 0x2af   : > { %16363 = vmatprep.mubr.msk.f32.mxu1 %vm460_vm1, %v8295_v46  ;;  %v9001_v46 = vld [vmem:[%s17956_s12 + $0x3a] sm:$0xff] }
 0x2b1   : > { %v19427_v13 = vpop.f32.mrb[38].mxu0 }
 0x2b2   : > { %v19429_v18 = vpop.f32.mrb[39].mxu0  ;;  %16364 = vmatmul.mubr.msk.f32.gmra.mrb[46].mxu1 %vm460_vm1, %v8296_v9  ;;  %v9002_v9 = vld [vmem:[%s17956_s12 + $0x4a] sm:$0xff] }
 0x2b3   : > { %16366 = vmatprep.mubr.msk.f32.mxu1 %vm460_vm1, %v8297_v11 }
 0x2b5   : > { %v19441_v40 = vpop.f32.mrb[40].mxu0 }
 0x2b6   : > { %v19445_v55 = vpop.f32.mrb[41].mxu0  ;;  %16367 = vmatmul.mubr.msk.f32.gmra.mrb[48].mxu1 %vm460_vm1, %v8298_v23  ;;  %v9003_v23 = vld [vmem:[%s17956_s12 + $0x52] sm:$0xff] }
 0x2b7   : > { %16369 = vmatprep.mubr.msk.f32.mxu1 %vm460_vm1, %v8299_v27  ;;  %v9004_v27 = vld [vmem:[%s17956_s12 + $0x62] sm:$0xff] }
 0x2b9   : > { %v19452_v62 = vpop.f32.mrb[42].mxu0 }
 0x2ba   : > { %v19454_v2 = vpop.f32.mrb[43].mxu0  ;;  %16370 = vmatmul.mubr.msk.f32.gmra.mrb[50].mxu1 %vm460_vm1, %v8300_v1  ;;  %v9005_v1 = vld [vmem:[%s17956_s12 + $0x6a] sm:$0xff] }
 0x2bb   : > { %16372 = vmatprep.mubr.msk.f32.mxu1 %vm460_vm1, %v8301_v36  ;;  %v9006_v36 = vld [vmem:[%s17956_s12 + $0x7a] sm:$0xff] }
 0x2bd   : > { %v19460_v54 = vpop.f32.mrb[44].mxu0 }
 0x2be   : > { %v19462_v45 = vpop.f32.mrb[45].mxu0  ;;  %16373 = vmatmul.mubr.msk.f32.gmra.mrb[52].mxu1 %vm460_vm1, %v8302_v26  ;;  %v9007_v26 = vld [vmem:[%s17956_s12 + $0x82] sm:$0xff] }
 0x2bf   : > { %16375 = vmatprep.mubr.msk.f32.mxu1 %vm460_vm1, %v8303_v47  ;;  %v9008_v47 = vld [vmem:[%s17956_s12 + $0x92] sm:$0xff] }
 0x2c1   : > { %v19468_v16 = vpop.f32.mrb[46].mxu0 }
 0x2c2   : > { %v19470_v63 = vpop.f32.mrb[47].mxu0  ;;  %16376 = vmatmul.mubr.msk.f32.gmra.mrb[54].mxu1 %vm460_vm1, %v8304_v14 }
 0x2c3   : > { %16378 = vmatprep.mubr.msk.f32.mxu1 %vm460_vm1, %v8305_v57  ;;  %v19556_v57 = vld [vmem:[%s21905_s5] ss:$0 sm:$0xff] }
 0x2c5   : > { %v19476_v8 = vpop.f32.mrb[48].mxu0 }
 0x2c6   : > { %v19478_v10 = vpop.f32.mrb[49].mxu0  ;;  %16379 = vmatmul.mubr.msk.f32.gmra.mrb[56].mxu1 %vm460_vm1, %v8306_v35 }
 0x2c7   : > { %16381 = vmatprep.mubr.msk.f32.mxu1 %vm460_vm1, %v8307_v4 }
 0x2c9   : > { %v19484_v20 = vpop.f32.mrb[50].mxu0 }
 0x2ca   : > { %v19486_v22 = vpop.f32.mrb[51].mxu0  ;;  %16382 = vmatmul.mubr.msk.f32.gmra.mrb[58].mxu1 %vm460_vm1, %v8308_v12  ;;  %v19560_v12 = vstv %s12939_s22 }
 0x2cb   : > { %16384 = vmatprep.mubr.msk.f32.mxu1 %vm460_vm1, %v8309_v15 }
 0x2cd   : > { %v19492_v32 = vpop.f32.mrb[52].mxu0 }
 0x2ce   : > { %v19494_v34 = vpop.f32.mrb[53].mxu0  ;;  %16385 = vmatmul.mubr.msk.f32.gmra.mrb[60].mxu1 %vm460_vm1, %v8310_v25  ;;  %v9009_v25 = vld [vmem:[%s17956_s12 + $0x9a] sm:$0xff] }
 0x2cf   : > { %16387 = vmatprep.mubr.msk.f32.mxu1 %vm460_vm1, %v8311_v28 }
 0x2d1   : > { %v19500_v56 = vpop.f32.mrb[54].mxu0 }
 0x2d2   : > { %v19502_v59 = vpop.f32.mrb[55].mxu0  ;;  %16388 = vmatmul.mubr.msk.f32.gmra.mrb[62].mxu1 %vm460_vm1, %v8312_v42  ;;  %v9010_v42 = vld [vmem:[%s17956_s12 + $0xaa] sm:$0xff] }
 0x2d3   : > { %16392 = vmatprep.mubr.msk.f32.mxu1 %vm460_vm1, %v8996_v52 }
 0x2d5   : > { %v19508_v38 = vpop.f32.mrb[56].mxu0 }
 0x2d6   : > { %v19515_v0 = vpop.f32.mrb[57].mxu0  ;;  %16393 = vmatmul.mubr.msk.f32.vlgmr.msra.gmra.mrb[32].mxu1 %vm460_vm1, %v8997_v44 }
 0x2d7   : > { %16395 = vmatprep.mubr.msk.f32.mxu1 %vm460_vm1, %v8998_v48  ;;  %16441 = vmatpush3.msk.msra.mxu1 %vm557_vm0, %v19352_v53 }
 0x2d8   : > { %16490 = vmatprep.subr.msk.mxu1 %vm557_vm0, %v19513_v24 }
 0x2d9   : > { %v19525_v17 = vpop.f32.mrb[58].mxu0 }
 0x2da   : > { %v19527_v5 = vpop.f32.mrb[59].mxu0  ;;  %16396 = vmatmul.mubr.msk.f32.gmra.mrb[34].mxu1 %vm460_vm1, %v8999_v3 }
 0x2db   : > { %16398 = vmatprep.mubr.msk.f32.mxu1 %vm460_vm1, %v9000_v29 }
 0x2dd   : > { %v19533_v11 = vpop.f32.mrb[60].mxu0 }
 0x2de   : > { %v19535_v53 = vpop.f32.mrb[61].mxu0  ;;  %16399 = vmatmul.mubr.msk.f32.gmra.mrb[36].mxu1 %vm460_vm1, %v9001_v46  ;;  %v9011_v46 = vld [vmem:[%s17956_s12 + $0xb2] sm:$0xff] }
 0x2df   : > { %16401 = vmatprep.mubr.msk.f32.mxu1 %vm460_vm1, %v9002_v9 }
 0x2e1   : > { %v19541_v30 = vpop.f32.mrb[62].mxu0 }
 0x2e2   : > { %v19543_v51 = vpop.f32.mrb[63].mxu0  ;;  %16402 = vmatmul.mubr.msk.f32.gmra.mrb[38].mxu1 %vm460_vm1, %v9003_v23 }
 0x2e3   : > { %16404 = vmatprep.mubr.msk.f32.mxu1 %vm460_vm1, %v9004_v27  ;;  %v9012_v27 = vld [vmem:[%s17956_s12 + $0xc2] sm:$0xff] }
 0x2e6   : > { %16405 = vmatmul.mubr.msk.f32.gmra.mrb[40].mxu1 %vm460_vm1, %v9005_v1 }
 0x2e7   : > { %16407 = vmatprep.mubr.msk.f32.mxu1 %vm460_vm1, %v9006_v36 }
 0x2e9   : > { %v15740_v14 = vpop.f32.mrb[0].mxu1 }
 0x2ea   : > { %v16866_v35 = vadd.f32 %v15740_v14, %v19403_v33  ;;  %v4237_v4 = vpop.f32.mrb[1].mxu1  ;;  %16408 = vmatmul.mubr.msk.f32.gmra.mrb[42].mxu1 %vm460_vm1, %v9007_v26 }
 0x2eb   : > { %v16867_v15 = vadd.f32 %v4237_v4, %v19405_v37  ;;  %16410 = vmatprep.mubr.msk.f32.mxu1 %vm460_vm1, %v9008_v47  ;;  %v9013_v4 = vld [vmem:[%s17956_s12 + $0xca] sm:$0xff] }
 0x2ec   : > { %v4436_v28 = vadd.f32 %v16866_v35, %v19556_v57 }
 0x2ed   : > { %v4435_v52 = vadd.f32 %v16867_v15, %v19556_v57  ;;  %v15743_v44 = vpop.f32.mrb[2].mxu1 }
 0x2ee   : > { %vm4468_vm11 = vcmp.gt.f32.partialorder %v4436_v28, 0.0  ;;  %v4501_v33 = vmul.f32 %v19560_v12, %v4436_v28  ;;  %v16868_v48 = vadd.f32 %v15743_v44, %v19411_v39  ;;  %v4247_v3 = vpop.f32.mrb[3].mxu1  ;;  %16411 = vmatmul.mubr.msk.f32.gmra.mrb[44].mxu1 %vm460_vm1, %v9009_v25 }
 0x2ef   : > { %vm4467_vm12 = vcmp.gt.f32.partialorder %v4435_v52, 0.0  ;;  %v4500_v37 = vmul.f32 %v19560_v12, %v4435_v52  ;;  %v16869_v29 = vadd.f32 %v4247_v3, %v19413_v58  ;;  %16413 = vmatprep.mubr.msk.f32.mxu1 %vm460_vm1, %v9010_v42 }
 0x2f0   : > { %v4533_v9 = vsel %vm4468_vm11, %v4436_v28, %v4501_v33  ;;  %v4438_v23 = vadd.f32 %v16868_v48, %v19556_v57  ;;  %v9014_v28 = vld [vmem:[%s17956_s12 + $0xda] sm:$0xff] }
 0x2f1   : > { %4639 = vst.msk [vmem:[#allocation3 + $0x30] sm:$0xff] %vm4564_vm10, %v4533_v9  ;;  %v4532_v1 = vsel %vm4467_vm12, %v4435_v52, %v4500_v37  ;;  %v4437_v39 = vadd.f32 %v16869_v29, %v19556_v57  ;;  %v15746_v36 = vpop.f32.mrb[4].mxu1  ;;  %v9015_v37 = vld [vmem:[%s17956_s12 + $0xe2] sm:$0xff]  ;;  %v9016_v9 = vld [vmem:[%s17956_s12 + $0xf2] sm:$0xff] }
 0x2f2   : > { %4638 = vst.msk [vmem:[#allocation3 + $0x28] sm:$0xff] %vm4564_vm10, %v4532_v1  ;;  %vm4470_vm13 = vcmp.gt.f32.partialorder %v4438_v23, 0.0  ;;  %v4503_v58 = vmul.f32 %v19560_v12, %v4438_v23  ;;  %v16870_v26 = vadd.f32 %v15746_v36, %v19419_v43  ;;  %v4257_v47 = vpop.f32.mrb[5].mxu1  ;;  %16414 = vmatmul.mubr.msk.f32.gmra.mrb[46].mxu1 %vm460_vm1, %v9011_v46 }
 0x2f3   : > { %vm4469_vm14 = vcmp.gt.f32.partialorder %v4437_v39, 0.0  ;;  %v4502_v14 = vmul.f32 %v19560_v12, %v4437_v39  ;;  %v16871_v35 = vadd.f32 %v4257_v47, %v19421_v6  ;;  %16416 = vmatprep.mubr.msk.f32.mxu1 %vm460_vm1, %v9012_v27 }
 0x2f4   : > { %v4535_v15 = vsel %vm4470_vm13, %v4438_v23, %v4503_v58  ;;  %v4440_v25 = vadd.f32 %v16870_v26, %v19556_v57 }
 0x2f5   : > { %4641 = vst.msk [vmem:[#allocation3 + $0x50] sm:$0xff] %vm4564_vm10, %v4535_v15  ;;  %v4534_v42 = vsel %vm4469_vm14, %v4437_v39, %v4502_v14  ;;  %v4439_v43 = vadd.f32 %v16871_v35, %v19556_v57  ;;  %v15749_v52 = vpop.f32.mrb[6].mxu1  ;;  %v9017_v14 = vld [vmem:[%s17956_s12 + $0xfa] sm:$0xff] }
 0x2f6   : > { %4640 = vst.msk [vmem:[#allocation3 + $0x48] sm:$0xff] %vm4564_vm10, %v4534_v42  ;;  %vm4472_vm15 = vcmp.gt.f32.partialorder %v4440_v25, 0.0  ;;  %v4505_v6 = vmul.f32 %v19560_v12, %v4440_v25  ;;  %v16872_v44 = vadd.f32 %v15749_v52, %v19427_v13  ;;  %v4267_v33 = vpop.f32.mrb[7].mxu1  ;;  %16417 = vmatmul.mubr.msk.f32.gmra.mrb[48].mxu1 %vm460_vm1, %v9013_v4 }
 0x2f7   : > { %vm4471_vm3 = vcmp.gt.f32.partialorder %v4439_v43, 0.0  ;;  %v4504_v48 = vmul.f32 %v19560_v12, %v4439_v43  ;;  %v16873_v3 = vadd.f32 %v4267_v33, %v19429_v18  ;;  %16419 = vmatprep.mubr.msk.f32.mxu1 %vm460_vm1, %v9014_v28 }
 0x2f8   : > { %v4537_v29 = vsel %vm4472_vm15, %v4440_v25, %v4505_v6  ;;  %v4442_v46 = vadd.f32 %v16872_v44, %v19556_v57  ;;  %v4710_v58 = vld [vmem:[#allocation3 + $0x30] sm:$0xff] }
 0x2f9   : > { %4643 = vst.msk [vmem:[#allocation3 + $0x70] sm:$0xff] %vm4564_vm10, %v4537_v29  ;;  %v4536_v23 = vsel %vm4471_vm3, %v4439_v43, %v4504_v48  ;;  %v4441_v13 = vadd.f32 %v16873_v3, %v19556_v57  ;;  %v15752_v27 = vpop.f32.mrb[8].mxu1  ;;  %v4709_v1 = vld [vmem:[#allocation3 + $0x28] sm:$0xff]  ;;  %v9019_v48 = vld [vmem:[%s17956_s12 + $0x112] sm:$0xff] }
 0x2fa   : > { %4642 = vst.msk [vmem:[#allocation3 + $0x68] sm:$0xff] %vm4564_vm10, %v4536_v23  ;;  %vm4474_vm4 = vcmp.gt.f32.partialorder %v4442_v46, 0.0  ;;  %v4507_v18 = vmul.f32 %v19560_v12, %v4442_v46  ;;  %v16874_v39 = vadd.f32 %v15752_v27, %v19441_v40  ;;  %v4277_v36 = vpop.f32.mrb[9].mxu1  ;;  %15797 = vmatprep.mubr.msk.f32.mxu0 %vm4564_vm10, %v4709_v1  ;;  %16420 = vmatmul.mubr.msk.f32.gmra.mrb[50].mxu1 %vm460_vm1, %v9015_v37  ;;  %v9018_v40 = vld [vmem:[%s17956_s12 + $0x10a] sm:$0xff] }
 0x2fb   : > { %vm4473_vm5 = vcmp.gt.f32.partialorder %v4441_v13, 0.0  ;;  %v4506_v26 = vmul.f32 %v19560_v12, %v4441_v13  ;;  %v16875_v47 = vadd.f32 %v4277_v36, %v19445_v55  ;;  %15798 = vmatmul.mubr.msk.f32.gmra.mrb[66].mxu0 %vm4564_vm10, %v4710_v58  ;;  %16422 = vmatprep.mubr.msk.f32.mxu1 %vm460_vm1, %v9016_v9  ;;  %v9021_v36 = vld [vmem:[%s17956_s12 + $0x12a] sm:$0xff] }
 0x2fc   : > { %v4539_v35 = vsel %vm4474_vm4, %v4442_v46, %v4507_v18  ;;  %v4444_v4 = vadd.f32 %v16874_v39, %v19556_v57  ;;  %v4712_v6 = vld [vmem:[#allocation3 + $0x50] sm:$0xff] }
 0x2fd   : > { %4645 = vst.msk [vmem:[#allocation3 + $0x90] sm:$0xff] %vm4564_vm10, %v4539_v35  ;;  %v4538_v15 = vsel %vm4473_vm5, %v4441_v13, %v4506_v26  ;;  %v4443_v25 = vadd.f32 %v16875_v47, %v19556_v57  ;;  %v15755_v28 = vpop.f32.mrb[10].mxu1  ;;  %v4711_v42 = vld [vmem:[#allocation3 + $0x48] sm:$0xff] }
 0x2fe   : > { %4644 = vst.msk [vmem:[#allocation3 + $0x88] sm:$0xff] %vm4564_vm10, %v4538_v15  ;;  %vm4476_vm6 = vcmp.gt.f32.partialorder %v4444_v4, 0.0  ;;  %v4509_v55 = vmul.f32 %v19560_v12, %v4444_v4  ;;  %v16876_v43 = vadd.f32 %v15755_v28, %v19452_v62  ;;  %v4287_v52 = vpop.f32.mrb[11].mxu1  ;;  %15800 = vmatprep.mubr.msk.f32.mxu0 %vm4564_vm10, %v4711_v42  ;;  %16423 = vmatmul.mubr.msk.f32.gmra.mrb[52].mxu1 %vm460_vm1, %v9017_v14  ;;  %v9020_v62 = vld [vmem:[%s17956_s12 + $0x122] sm:$0xff] }
 0x2ff   : > { %vm4475_vm7 = vcmp.gt.f32.partialorder %v4443_v25, 0.0  ;;  %v4508_v44 = vmul.f32 %v19560_v12, %v4443_v25  ;;  %v16877_v33 = vadd.f32 %v4287_v52, %v19454_v2  ;;  %15801 = vmatmul.mubr.msk.f32.gmra.mrb[68].mxu0 %vm4564_vm10, %v4712_v6  ;;  %16425 = vmatprep.mubr.msk.f32.mxu1 %vm460_vm1, %v9018_v40 }
 0x300   : > { %v4541_v3 = vsel %vm4476_vm6, %v4444_v4, %v4509_v55  ;;  %v4446_v37 = vadd.f32 %v16876_v43, %v19556_v57  ;;  %v4714_v1 = vld [vmem:[#allocation3 + $0x70] sm:$0xff]  ;;  %v9023_v55 = vld [vmem:[%s17956_s12 + $0x142] sm:$0xff] }
 0x301   : > { %4647 = vst.msk [vmem:[#allocation3 + $0xb0] sm:$0xff] %vm4564_vm10, %v4541_v3  ;;  %v4540_v29 = vsel %vm4475_vm7, %v4443_v25, %v4508_v44  ;;  %v4445_v46 = vadd.f32 %v16877_v33, %v19556_v57  ;;  %v15758_v9 = vpop.f32.mrb[12].mxu1  ;;  %v4713_v23 = vld [vmem:[#allocation3 + $0x68] sm:$0xff] }
 0x302   : > { %4646 = vst.msk [vmem:[#allocation3 + $0xa8] sm:$0xff] %vm4564_vm10, %v4540_v29  ;;  %vm4478_vm8 = vcmp.gt.f32.partialorder %v4446_v37, 0.0  ;;  %v4511_v2 = vmul.f32 %v19560_v12, %v4446_v37  ;;  %v16878_v13 = vadd.f32 %v15758_v9, %v19460_v54  ;;  %v4297_v27 = vpop.f32.mrb[13].mxu1  ;;  %15803 = vmatprep.mubr.msk.f32.mxu0 %vm4564_vm10, %v4713_v23  ;;  %16426 = vmatmul.mubr.msk.f32.gmra.mrb[54].mxu1 %vm460_vm1, %v9019_v48  ;;  %v9022_v54 = vld [vmem:[%s17956_s12 + $0x13a] sm:$0xff] }
 0x303   : > { %vm4477_vm2 = vcmp.gt.f32.partialorder %v4445_v46, 0.0  ;;  %v4510_v18 = vmul.f32 %v19560_v12, %v4445_v46  ;;  %v16879_v39 = vadd.f32 %v4297_v27, %v19462_v45  ;;  %15804 = vmatmul.mubr.msk.f32.gmra.mrb[70].mxu0 %vm4564_vm10, %v4714_v1  ;;  %16428 = vmatprep.mubr.msk.f32.mxu1 %vm460_vm1, %v9020_v62  ;;  %v19669_v9 = vld [vmem:[%s17956_s12 + $0x15a] sm:$0xff] }
 0x304   : > { %v4543_v58 = vsel %vm4478_vm8, %v4446_v37, %v4511_v2  ;;  %v4448_v26 = vadd.f32 %v16878_v13, %v19556_v57  ;;  %v4716_v25 = vld [vmem:[#allocation3 + $0x90] sm:$0xff] }
 0x305   : > { %4649 = vst.msk [vmem:[#allocation3 + $0xd0] sm:$0xff] %vm4564_vm10, %v4543_v58  ;;  %v4542_v47 = vsel %vm4477_vm2, %v4445_v46, %v4510_v18  ;;  %v4447_v14 = vadd.f32 %v16879_v39, %v19556_v57  ;;  %v15761_v35 = vpop.f32.mrb[14].mxu1  ;;  %v4715_v4 = vld [vmem:[#allocation3 + $0x88] sm:$0xff] }
 0x306   : > { %4648 = vst.msk [vmem:[#allocation3 + $0xc8] sm:$0xff] %vm4564_vm10, %v4542_v47  ;;  %vm4480_vm11 = vcmp.gt.f32.partialorder %v4448_v26, 0.0  ;;  %v4513_v45 = vmul.f32 %v19560_v12, %v4448_v26  ;;  %v16880_v40 = vadd.f32 %v15761_v35, %v19468_v16  ;;  %v4307_v15 = vpop.f32.mrb[15].mxu1  ;;  %15806 = vmatprep.mubr.msk.f32.mxu0 %vm4564_vm10, %v4715_v4  ;;  %16429 = vmatmul.mubr.msk.f32.gmra.mrb[56].mxu1 %vm460_vm1, %v9021_v36  ;;  %v9024_v16 = vld [vmem:[%s17956_s12 + $0x152] sm:$0xff]  ;;  %v19673_v2 = vld [vmem:[%s17956_s12 + $0x16a] sm:$0xff] }
 0x307   : > { %vm4479_vm12 = vcmp.gt.f32.partialorder %v4447_v14, 0.0  ;;  %v4512_v28 = vmul.f32 %v19560_v12, %v4447_v14  ;;  %v16881_v42 = vadd.f32 %v4307_v15, %v19470_v63  ;;  %15807 = vmatmul.mubr.msk.f32.gmra.mrb[72].mxu0 %vm4564_vm10, %v4716_v25  ;;  %16431 = vmatprep.mubr.msk.f32.mxu1 %vm460_vm1, %v9022_v54  ;;  %v19689_v47 = vld [vmem:[%s17956_s12 + $0x172] sm:$0xff] }
 0x308   : > { %v4545_v43 = vsel %vm4480_vm11, %v4448_v26, %v4513_v45  ;;  %v4450_v52 = vadd.f32 %v16880_v40, %v19556_v57  ;;  %v4718_v62 = vld [vmem:[#allocation3 + $0xb0] sm:$0xff] }
 0x309   : > { %4651 = vst.msk [vmem:[#allocation3 + $0xf0] sm:$0xff] %vm4564_vm10, %v4545_v43  ;;  %v4544_v6 = vsel %vm4479_vm12, %v4447_v14, %v4512_v28  ;;  %v4449_v44 = vadd.f32 %v16881_v42, %v19556_v57  ;;  %v15764_v33 = vpop.f32.mrb[16].mxu1  ;;  %v4717_v48 = vld [vmem:[#allocation3 + $0xa8] sm:$0xff]  ;;  %v17701_v21 = vld [vmem:[#allocation3 + $0xb0] sm:$0xff] }
 0x30a   : > { %4650 = vst.msk [vmem:[#allocation3 + $0xe8] sm:$0xff] %vm4564_vm10, %v4544_v6  ;;  %vm4482_vm13 = vcmp.gt.f32.partialorder %v4450_v52, 0.0  ;;  %v4515_v63 = vmul.f32 %v19560_v12, %v4450_v52  ;;  %v16882_v3 = vadd.f32 %v15764_v33, %v19476_v8  ;;  %v4317_v37 = vpop.f32.mrb[17].mxu1  ;;  %15809 = vmatprep.mubr.msk.f32.mxu0 %vm4564_vm10, %v4717_v48  ;;  %16432 = vmatmul.mubr.msk.f32.gmra.mrb[58].mxu1 %vm460_vm1, %v9023_v55 }
 0x30b   : > { %vm4481_vm14 = vcmp.gt.f32.partialorder %v4449_v44, 0.0  ;;  %v4514_v29 = vmul.f32 %v19560_v12, %v4449_v44  ;;  %v16883_v46 = vadd.f32 %v4317_v37, %v19478_v10  ;;  %15810 = vmatmul.mubr.msk.f32.gmra.mrb[74].mxu0 %vm4564_vm10, %v4718_v62  ;;  %16434 = vmatprep.mubr.msk.f32.mxu1 %vm460_vm1, %v9024_v16 }
 0x30c   : > { %v4547_v23 = vsel %vm4482_vm13, %v4450_v52, %v4515_v63  ;;  %v4452_v8 = vadd.f32 %v16882_v3, %v19556_v57  ;;  %v4720_v58 = vld [vmem:[#allocation3 + $0xd0] sm:$0xff] }
 0x30d   : > { %4653 = vst.msk [vmem:[#allocation3 + $0x110] sm:$0xff] %vm4564_vm10, %v4547_v23  ;;  %v4546_v13 = vsel %vm4481_vm14, %v4449_v44, %v4514_v29  ;;  %v4451_v27 = vadd.f32 %v16883_v46, %v19556_v57  ;;  %v15767_v1 = vpop.f32.mrb[18].mxu1  ;;  %v4719_v18 = vld [vmem:[#allocation3 + $0xc8] sm:$0xff]  ;;  %v19717_v63 = vld [vmem:[%s21908_s8 + $0x14] sm:$0xf] }
 0x30e   : > { %4652 = vst.msk [vmem:[#allocation3 + $0x108] sm:$0xff] %vm4564_vm10, %v4546_v13  ;;  %vm4484_vm15 = vcmp.gt.f32.partialorder %v4452_v8, 0.0  ;;  %v4517_v10 = vmul.f32 %v19560_v12, %v4452_v8  ;;  %v16884_v39 = vadd.f32 %v15767_v1, %v19484_v20  ;;  %v4327_v36 = vpop.f32.mrb[19].mxu1  ;;  %15812 = vmatprep.mubr.msk.f32.mxu0 %vm4564_vm10, %v4719_v18  ;;  %16435 = vmatmul.mubr.msk.f32.gmra.mrb[60].mxu1 %vm460_vm1, %v19669_v9 }
 0x30f   : > { %vm4483_vm3 = vcmp.gt.f32.partialorder %v4451_v27, 0.0  ;;  %v4516_v26 = vmul.f32 %v19560_v12, %v4451_v27  ;;  %v16885_v54 = vadd.f32 %v4327_v36, %v19486_v22  ;;  %15813 = vmatmul.mubr.msk.f32.gmra.mrb[76].mxu0 %vm4564_vm10, %v4720_v58  ;;  %16437 = vmatprep.mubr.msk.f32.mxu1 %vm460_vm1, %v19673_v2 }
 0x310   : > { %v4549_v20 = vsel %vm4484_vm15, %v4452_v8, %v4517_v10  ;;  %v4454_v14 = vadd.f32 %v16884_v39, %v19556_v57  ;;  %v4722_v28 = vld [vmem:[#allocation3 + $0xf0] sm:$0xff] }
 0x311   : > { %4655 = vst.msk [vmem:[#allocation3 + $0x130] sm:$0xff] %vm4564_vm10, %v4549_v20  ;;  %v4548_v35 = vsel %vm4483_vm3, %v4451_v27, %v4516_v26  ;;  %v4453_v4 = vadd.f32 %v16885_v54, %v19556_v57  ;;  %v15770_v45 = vpop.f32.mrb[20].mxu1  ;;  %v4721_v40 = vld [vmem:[#allocation3 + $0xe8] sm:$0xff] }
 0x312   : > { %4654 = vst.msk [vmem:[#allocation3 + $0x128] sm:$0xff] %vm4564_vm10, %v4548_v35  ;;  %vm4486_vm4 = vcmp.gt.f32.partialorder %v4454_v14, 0.0  ;;  %v4519_v22 = vmul.f32 %v19560_v12, %v4454_v14  ;;  %v16886_v15 = vadd.f32 %v15770_v45, %v19492_v32  ;;  %v4337_v25 = vpop.f32.mrb[21].mxu1  ;;  %15815 = vmatprep.mubr.msk.f32.mxu0 %vm4564_vm10, %v4721_v40  ;;  %16438 = vmatmul.mubr.msk.f32.gmra.mrb[62].mxu1 %vm460_vm1, %v19689_v47  ;;  %v19757_v20 = vld [vmem:[%s17956_s12 + $0x68] sm:$0xff]  ;;  %v19761_v35 = vld [vmem:[%s17956_s12 + $0x78] sm:$0xff] }
 0x313   : > { %vm4485_vm5 = vcmp.gt.f32.partialorder %v4453_v4, 0.0  ;;  %v4518_v42 = vmul.f32 %v19560_v12, %v4453_v4  ;;  %v16887_v55 = vadd.f32 %v4337_v25, %v19494_v34  ;;  %15816 = vmatmul.mubr.msk.f32.gmra.mrb[78].mxu0 %vm4564_vm10, %v4722_v28  ;;  %16442 = vmatprep.mubr.msk.f32.mxu1 %vm460_vm1, %v19347_v41 }
 0x314   : > { %v4551_v43 = vsel %vm4486_vm4, %v4454_v14, %v4519_v22  ;;  %v4456_v32 = vadd.f32 %v16886_v15, %v19556_v57  ;;  %v4724_v41 = vld [vmem:[#allocation3 + $0x110] sm:$0xff] }
 0x315   : > { %4657 = vst.msk [vmem:[#allocation3 + $0x150] sm:$0xff] %vm4564_vm10, %v4551_v43  ;;  %v4550_v52 = vsel %vm4485_vm5, %v4453_v4, %v4518_v42  ;;  %v4455_v16 = vadd.f32 %v16887_v55, %v19556_v57  ;;  %v15773_v6 = vpop.f32.mrb[22].mxu1  ;;  %v4723_v44 = vld [vmem:[#allocation3 + $0x108] sm:$0xff]  ;;  %v19777_v42 = vld [vmem:[%s17956_s12 + $0x80] sm:$0xff]  ;;  %v19781_v43 = vld [vmem:[%s17956_s12 + $0x90] sm:$0xff] }
 0x316   : > { %4656 = vst.msk [vmem:[#allocation3 + $0x148] sm:$0xff] %vm4564_vm10, %v4550_v52  ;;  %vm4488_vm6 = vcmp.gt.f32.partialorder %v4456_v32, 0.0  ;;  %v4521_v34 = vmul.f32 %v19560_v12, %v4456_v32  ;;  %v16888_v33 = vadd.f32 %v15773_v6, %v19500_v56  ;;  %v4347_v48 = vpop.f32.mrb[23].mxu1  ;;  %15818 = vmatprep.mubr.msk.f32.mxu0 %vm4564_vm10, %v4723_v44  ;;  %16443 = vmatmul.mubr.msk.f32.vlgmr.msra.gmra.mrb[32].mxu1 %vm460_vm1, %v19358_v31 }
 0x317   : > { %vm4487_vm7 = vcmp.gt.f32.partialorder %v4455_v16, 0.0  ;;  %v4520_v3 = vmul.f32 %v19560_v12, %v4455_v16  ;;  %v16889_v37 = vadd.f32 %v4347_v48, %v19502_v59  ;;  %15819 = vmatmul.mubr.msk.f32.gmra.mrb[80].mxu0 %vm4564_vm10, %v4724_v41  ;;  %16445 = vmatprep.mubr.msk.f32.mxu1 %vm460_vm1, %v19363_v19 }
 0x318   : > { %v4553_v56 = vsel %vm4488_vm6, %v4456_v32, %v4521_v34  ;;  %v4458_v62 = vadd.f32 %v16888_v33, %v19556_v57  ;;  %16491 = vmatpush3.msk.msra.mxu1 %vm557_vm0, %v19513_v24  ;;  %v4726_v24 = vld [vmem:[#allocation3 + $0x130] sm:$0xff] }
 0x319   : > { %4659 = vst.msk [vmem:[#allocation3 + $0x170] sm:$0xff] %vm4564_vm10, %v4553_v56  ;;  %v4552_v31 = vsel %vm4487_vm7, %v4455_v16, %v4520_v3  ;;  %v4457_v29 = vadd.f32 %v16889_v37, %v19556_v57  ;;  %v15776_v46 = vpop.f32.mrb[24].mxu1  ;;  %v4725_v23 = vld [vmem:[#allocation3 + $0x128] sm:$0xff]  ;;  %16540 = vmatprep.subr.msk.mxu1 %vm557_vm0, %v19717_v63  ;;  %v19797_v3 = vld [vmem:[%s17956_s12 + $0x98] sm:$0xff] }
 0x31a   : > { %4658 = vst.msk [vmem:[#allocation3 + $0x168] sm:$0xff] %vm4564_vm10, %v4552_v31  ;;  %vm4490_vm8 = vcmp.gt.f32.partialorder %v4458_v62, 0.0  ;;  %v4523_v19 = vmul.f32 %v19560_v12, %v4458_v62  ;;  %v16890_v59 = vadd.f32 %v15776_v46, %v19508_v38  ;;  %v4357_v8 = vpop.f32.mrb[25].mxu1  ;;  %15821 = vmatprep.mubr.msk.f32.mxu0 %vm4564_vm10, %v4725_v23  ;;  %16446 = vmatmul.mubr.msk.f32.gmra.mrb[34].mxu1 %vm460_vm1, %v19372_v7  ;;  %v19801_v56 = vld [vmem:[%s17956_s12 + $0xa8] sm:$0xff] }
 0x31b   : > { %vm4489_vm2 = vcmp.gt.f32.partialorder %v4457_v29, 0.0  ;;  %v4522_v13 = vmul.f32 %v19560_v12, %v4457_v29  ;;  %v16891_v27 = vadd.f32 %v4357_v8, %v19515_v0  ;;  %15822 = vmatmul.mubr.msk.f32.gmra.mrb[82].mxu0 %vm4564_vm10, %v4726_v24  ;;  %16448 = vmatprep.mubr.msk.f32.mxu1 %vm460_vm1, %v19375_v60 }
 0x31c   : > { %v4555_v1 = vsel %vm4490_vm8, %v4458_v62, %v4523_v19  ;;  %v4460_v38 = vadd.f32 %v16890_v59, %v19556_v57  ;;  %v4728_v58 = vld [vmem:[#allocation3 + $0x150] sm:$0xff]  ;;  %v19818_v59 = vld [vmem:[%s17956_s12 + $0xc0] sm:$0xff] }
 0x31d   : > { %4661 = vst.msk [vmem:[#allocation3 + $0x190] sm:$0xff] %vm4564_vm10, %v4555_v1  ;;  %v4554_v18 = vsel %vm4489_vm2, %v4457_v29, %v4522_v13  ;;  %v4459_v10 = vadd.f32 %v16891_v27, %v19556_v57  ;;  %v15779_v7 = vpop.f32.mrb[26].mxu1  ;;  %v4727_v39 = vld [vmem:[#allocation3 + $0x148] sm:$0xff]  ;;  %v19832_v27 = vld [vmem:[%s17956_s12 + $0xd8] sm:$0xff] }
 0x31e   : > { %4660 = vst.msk [vmem:[#allocation3 + $0x188] sm:$0xff] %vm4564_vm10, %v4554_v18  ;;  %vm4492_vm11 = vcmp.gt.f32.partialorder %v4460_v38, 0.0  ;;  %v4525_v0 = vmul.f32 %v19560_v12, %v4460_v38  ;;  %v16892_v36 = vadd.f32 %v15779_v7, %v19525_v17  ;;  %v4367_v60 = vpop.f32.mrb[27].mxu1  ;;  %15824 = vmatprep.mubr.msk.f32.mxu0 %vm4564_vm10, %v4727_v39  ;;  %16449 = vmatmul.mubr.msk.f32.gmra.mrb[36].mxu1 %vm460_vm1, %v19388_v50  ;;  %v19829_v13 = vld [vmem:[%s17956_s12 + $0xc8] sm:$0xff]  ;;  %v13327_v7 = vld [vmem:[%s21906_s6 + $0x58] sm:$0xf] }
 0x31f   : > { %vm4491_vm12 = vcmp.gt.f32.partialorder %v4459_v10, 0.0  ;;  %v4524_v26 = vmul.f32 %v19560_v12, %v4459_v10  ;;  %v16893_v54 = vadd.f32 %v4367_v60, %v19527_v5  ;;  %15825 = vmatmul.mubr.msk.f32.gmra.mrb[84].mxu0 %vm4564_vm10, %v4728_v58  ;;  %16451 = vmatprep.mubr.msk.f32.mxu1 %vm460_vm1, %v19391_v61  ;;  %v19847_v39 = vld [vmem:[%s17956_s12 + $0xe0] sm:$0xff] }
 0x320   : > { %v4557_v17 = vsel %vm4492_vm11, %v4460_v38, %v4525_v0  ;;  %v4462_v14 = vadd.f32 %v16892_v36, %v19556_v57  ;;  %v4730_v15 = vld [vmem:[#allocation3 + $0x170] sm:$0xff]  ;;  %v4671_v38 = vld [vmem:[#allocation3 + $0x7] sm:$0xff] }
 0x321   : > { %4663 = vst.msk [vmem:[#allocation3 + $0x1b0] sm:$0xff] %vm4564_vm10, %v4557_v17  ;;  %v4556_v50 = vsel %vm4491_vm12, %v4459_v10, %v4524_v26  ;;  %v4461_v4 = vadd.f32 %v16893_v54, %v19556_v57  ;;  %v15782_v45 = vpop.f32.mrb[28].mxu1  ;;  %v4729_v5 = vld [vmem:[#allocation3 + $0x168] sm:$0xff]  ;;  %v13326_v10 = vld [vmem:[%s21906_s6 + $0x50] sm:$0xff]  ;;  %v13361_v58 = vld [vmem:[%s21906_s6 + $0x60] sm:$0xff] }
 0x322   : > { %4662 = vst.msk [vmem:[#allocation3 + $0x1a8] sm:$0xff] %vm4564_vm10, %v4556_v50  ;;  %vm4494_vm13 = vcmp.gt.f32.partialorder %v4462_v14, 0.0  ;;  %v4527_v61 = vmul.f32 %v19560_v12, %v4462_v14  ;;  %v16894_v40 = vadd.f32 %v15782_v45, %v19533_v11  ;;  %v4377_v22 = vpop.f32.mrb[29].mxu1  ;;  %15827 = vmatprep.mubr.msk.f32.mxu0 %vm4564_vm10, %v4729_v5  ;;  %16452 = vmatmul.mubr.msk.f32.gmra.mrb[38].mxu1 %vm460_vm1, %v19757_v20  ;;  %v4672_v0 = vld [vmem:[#allocation3 + $0xf] sm:$0xff]  ;;  %v19862_v54 = vld [vmem:[#allocation3 + $0x27] sm:$0xff]  ;;  %v19867_v17 = vld [vmem:[%s17956_s12 + $0xf8] sm:$0xff] }
 0x323   : > { %vm4493_vm14 = vcmp.gt.f32.partialorder %v4461_v4, 0.0  ;;  %v4526_v25 = vmul.f32 %v19560_v12, %v4461_v4  ;;  %v16895_v28 = vadd.f32 %v4377_v22, %v19535_v53  ;;  %15828 = vmatmul.mubr.msk.f32.gmra.mrb[86].mxu0 %vm4564_vm10, %v4730_v15  ;;  %16454 = vmatprep.mubr.msk.f32.mxu1 %vm460_vm1, %v19761_v35  ;;  %v19851_v36 = vld [vmem:[%s17956_s12 + $0xf0] sm:$0xff]  ;;  %v16800_v60 = vpack.c.bf16 %v13327_v7, %v13326_v10  ;;  %v13362_v26 = vld [vmem:[%s21906_s6 + $0x68] sm:$0xff]  ;;  %v19895_v5 = vld [vmem:[%s17956_s12 + $0x120] sm:$0xff] }
 0x324   : > { %v4559_v11 = vsel %vm4494_vm13, %v4462_v14, %v4527_v61  ;;  %v4464_v55 = vadd.f32 %v16894_v40, %v19556_v57  ;;  %v4732_v33 = vld [vmem:[#allocation3 + $0x190] sm:$0xff]  ;;  %v19873_v14 = vld [vmem:[%s17956_s12 + $0x108] sm:$0xff]  ;;  %v19877_v50 = vpack.c.bf16 %v13362_v26, %v13361_v58  ;;  %v19916_v15 = vld [vmem:[%s17956_s12 + $0x138] sm:$0xff] }
 0x325   : > { %4665 = vst.msk [vmem:[#allocation3 + $0x1d0] sm:$0xff] %vm4564_vm10, %v4559_v11  ;;  %v4558_v32 = vsel %vm4493_vm14, %v4461_v4, %v4526_v25  ;;  %v4463_v52 = vadd.f32 %v16895_v28, %v19556_v57  ;;  %v15785_v16 = vpop.f32.mrb[30].mxu1  ;;  %v4731_v53 = vld [vmem:[#allocation3 + $0x188] sm:$0xff]  ;;  %v19890_v45 = vld [vmem:[%s17956_s12 + $0x110] sm:$0xff]  ;;  %v19929_v11 = vld [vmem:[%s17956_s12 + $0x140] sm:$0xff] }
 0x326   : > { %4664 = vst.msk [vmem:[#allocation3 + $0x1c8] sm:$0xff] %vm4564_vm10, %v4558_v32  ;;  %vm4496_vm15 = vcmp.gt.f32.partialorder %v4464_v55, 0.0  ;;  %v4529_v6 = vmul.f32 %v19560_v12, %v4464_v55  ;;  %v16896_v44 = vadd.f32 %v15785_v16, %v19541_v30  ;;  %v4387_v34 = vpop.f32.mrb[31].mxu1  ;;  %15830 = vmatprep.mubr.msk.f32.mxu0 %vm4564_vm10, %v4731_v53  ;;  %16455 = vmatmul.mubr.msk.f32.gmra.mrb[40].mxu1 %vm460_vm1, %v19777_v42  ;;  %v19881_v4 = vld [vmem:[#allocation3 + $0x2f] sm:$0xff]  ;;  %v19906_v40 = vld [vmem:[#allocation3 + $0x67] sm:$0xff]  ;;  %v19947_v16 = vld [vmem:[%s17956_s12 + $0x158] sm:$0xff] }
 0x327   : > { %vm4495_vm3 = vcmp.gt.f32.partialorder %v4463_v52, 0.0  ;;  %v4528_v48 = vmul.f32 %v19560_v12, %v4463_v52  ;;  %v16897_v41 = vadd.f32 %v4387_v34, %v19543_v51  ;;  %15831 = vmatmul.mubr.msk.f32.gmra.mrb[88].mxu0 %vm4564_vm10, %v4732_v33  ;;  %16457 = vmatprep.mubr.msk.f32.mxu1 %vm460_vm1, %v19781_v43  ;;  %v19902_v61 = vld [vmem:[#allocation3 + $0x4f] sm:$0xff]  ;;  %v19924_v28 = vld [vmem:[#allocation3 + $0x87] sm:$0xff]  ;;  %22091 = vst [vmem:[#allocation33_spill] sm:$0xff] %v19947_v16 }
 0x328   : > { %v4561_v30 = vsel %vm4496_vm15, %v4464_v55, %v4529_v6  ;;  %v4466_v37 = vadd.f32 %v16896_v44, %v19556_v57  ;;  %v4734_v46 = vld [vmem:[#allocation3 + $0x1b0] sm:$0xff]  ;;  %v19911_v22 = vld [vmem:[%s17956_s12 + $0x128] sm:$0xff]  ;;  %v19970_v33 = vld [vmem:[%s17956_s12 + $0x180] sm:$0xff] }
 0x329   : > { %4667 = vst.msk [vmem:[#allocation3 + $0x1f0] sm:$0xff] %vm4564_vm10, %v4561_v30  ;;  %v4560_v62 = vsel %vm4495_vm3, %v4463_v52, %v4528_v48  ;;  %v4465_v31 = vadd.f32 %v16897_v41, %v19556_v57  ;;  %v4733_v51 = vld [vmem:[#allocation3 + $0x1a8] sm:$0xff]  ;;  %v19815_v57 = vld [vmem:[%s17956_s12 + $0xb0] sm:$0xff]  ;;  %22094 = vst [vmem:[#allocation12_spill] sm:$0xff] %v19970_v33 }
 0x32a   : > { %4666 = vst.msk [vmem:[#allocation3 + $0x1e8] sm:$0xff] %vm4564_vm10, %v4560_v62  ;;  %vm4498_vm4 = vcmp.gt.f32.partialorder %v4466_v37, 0.0  ;;  %v4531_v29 = vmul.f32 %v19560_v12, %v4466_v37  ;;  %15833 = vmatprep.mubr.msk.f32.mxu0 %vm4564_vm10, %v4733_v51  ;;  %16458 = vmatmul.mubr.msk.f32.gmra.mrb[42].mxu1 %vm460_vm1, %v19797_v3  ;;  %v19920_v25 = vld [vmem:[#allocation3 + $0x6f] sm:$0xff]  ;;  %v19942_v52 = vld [vmem:[#allocation3 + $0xa7] sm:$0xff] }
 0x32b   : > { %vm4497_vm5 = vcmp.gt.f32.partialorder %v4465_v31, 0.0  ;;  %v4530_v23 = vmul.f32 %v19560_v12, %v4465_v31  ;;  %15834 = vmatmul.mubr.msk.f32.gmra.mrb[90].mxu0 %vm4564_vm10, %v4734_v46  ;;  %16460 = vmatprep.mubr.msk.f32.mxu1 %vm460_vm1, %v19801_v56  ;;  %v19934_v55 = vld [vmem:[%s17956_s12 + $0x150] sm:$0xff]  ;;  %v19952_v53 = vld [vmem:[%s17956_s12 + $0x168] sm:$0xff] }
 0x32c   : > { %v4563_v19 = vsel %vm4498_vm4, %v4466_v37, %v4531_v29  ;;  %v4736_v12 = vld [vmem:[#allocation3 + $0x1d0] sm:$0xff]  ;;  %22090 = vst [vmem:[#allocation32_spill] sm:$0xff] %v19934_v55  ;;  %22092 = vst [vmem:[#allocation10_spill] sm:$0xff] %v19952_v53  ;;  %v19960_v44 = vld [vmem:[#allocation3 + $0xc7] sm:$0xff] }
 0x32d   : > { %4669 = vst.msk [vmem:[#allocation3 + $0x210] sm:$0xff] %vm4564_vm10, %v4563_v19  ;;  %v4562_v8 = vsel %vm4497_vm5, %v4465_v31, %v4530_v23  ;;  %v4735_v24 = vld [vmem:[#allocation3 + $0x1c8] sm:$0xff]  ;;  %v19965_v34 = vld [vmem:[%s17956_s12 + $0x170] sm:$0xff]  ;;  %v13752_v37 = vld [vmem:[%s17956_s12 + $0x19] sm:$0xff] }
 0x32e   : > { %4668 = vst.msk [vmem:[#allocation3 + $0x208] sm:$0xff] %vm4564_vm10, %v4562_v8  ;;  %15836 = vmatprep.mubr.msk.f32.mxu0 %vm4564_vm10, %v4735_v24  ;;  %16461 = vmatmul.mubr.msk.f32.gmra.mrb[44].mxu1 %vm460_vm1, %v19815_v57  ;;  %v19938_v32 = vld [vmem:[#allocation3 + $0x8f] sm:$0xff]  ;;  %22093 = vst [vmem:[#allocation11_spill] sm:$0xff] %v19965_v34  ;;  %v19978_v41 = vld [vmem:[#allocation3 + $0xe7] sm:$0xff] }
 0x32f   : > { %15837 = vmatmul.mubr.msk.f32.gmra.mrb[92].mxu0 %vm4564_vm10, %v4736_v12  ;;  %16463 = vmatprep.mubr.msk.f32.mxu1 %vm460_vm1, %v19818_v59  ;;  %v19956_v6 = vld [vmem:[#allocation3 + $0xaf] sm:$0xff]  ;;  %v19994_v31 = vld [vmem:[#allocation3 + $0x107] sm:$0xff]  ;;  %v20009_v23 = vld [vmem:[%s21908_s8 + $0x18] sm:$0xf] }
 0x330   : > { %v4738_v18 = vld [vmem:[#allocation3 + $0x1f0] sm:$0xff]  ;;  %v19983_v30 = vld [vmem:[%s17956_s12 + $0x188] sm:$0xff]  ;;  %v20018_v8 = vld [vmem:[%s17956_s12 + $0x39] sm:$0xff] }
 0x331   : > { %v4737_v1 = vld [vmem:[#allocation3 + $0x1e8] sm:$0xff]  ;;  %22095 = vst [vmem:[#allocation13_spill] sm:$0xff] %v19983_v30  ;;  %v20001_v29 = vld [vmem:[%s17956_s12 + $0x31] sm:$0xff]  ;;  %22097 = vst [vmem:[#allocation15_spill] sm:$0xff] %v20018_v8 }
 0x332   : > { %15839 = vmatprep.mubr.msk.f32.mxu0 %vm4564_vm10, %v4737_v1  ;;  %16464 = vmatmul.mubr.msk.f32.gmra.mrb[46].mxu1 %vm460_vm1, %v19829_v13  ;;  %v19974_v48 = vld [vmem:[#allocation3 + $0xcf] sm:$0xff]  ;;  %v13753_v51 = vld [vmem:[%s17956_s12 + $0x21] sm:$0xff]  ;;  %22096 = vst [vmem:[#allocation14_spill] sm:$0xff] %v20001_v29 }
 0x333   : > { %15840 = vmatmul.mubr.msk.f32.gmra.mrb[94].mxu0 %vm4564_vm10, %v4738_v18  ;;  %16466 = vmatprep.mubr.msk.f32.mxu1 %vm460_vm1, %v19832_v27  ;;  %v19990_v62 = vld [vmem:[#allocation3 + $0xef] sm:$0xff]  ;;  %v20013_v19 = vld [vmem:[#allocation3 + $0x127] sm:$0xff] }
 0x334   : > { %15850 = vmatprep.mubr.msk.f32.mxu0 %vm4564_vm10, %v4671_v38  ;;  %v20004_v46 = vld [vmem:[#allocation3 + $0x10f] sm:$0xff]  ;;  %v20035_v1 = vld [vmem:[#allocation3 + $0x147] sm:$0xff] }
 0x335   : > { %v20023_v24 = vld [vmem:[%s17956_s12 + $0x49] sm:$0xff]  ;;  %v20040_v38 = vld [vmem:[%s17956_s12 + $0x51] sm:$0xff]  ;;  %v20076_v26 = vld [vmem:[%s17956_s12 + $0x81] sm:$0xff] }
 0x336   : > { %16467 = vmatmul.mubr.msk.f32.gmra.mrb[48].mxu1 %vm460_vm1, %v19847_v39  ;;  %22098 = vst [vmem:[#allocation16_spill] sm:$0xff] %v20023_v24  ;;  %v20031_v12 = vld [vmem:[#allocation3 + $0x12f] sm:$0xff]  ;;  %22099 = vst [vmem:[#allocation17_spill] sm:$0xff] %v20040_v38  ;;  %v20053_v10 = vld [vmem:[#allocation3 + $0x167] sm:$0xff] }
 0x337   : > { %15851 = vmatmul.mubr.msk.f32.vlgmr.msra.gmra.mrb[64].mxu0 %vm4564_vm10, %v4672_v0  ;;  %16469 = vmatprep.mubr.msk.f32.mxu1 %vm460_vm1, %v19851_v36  ;;  %v20049_v18 = vld [vmem:[#allocation3 + $0x14f] sm:$0xff]  ;;  %v20063_v0 = vld [vmem:[%s17956_s12 + $0x79] sm:$0xff]  ;;  %v20071_v58 = vld [vmem:[#allocation3 + $0x187] sm:$0xff]  ;;  %22103 = vst [vmem:[#allocation21_spill] sm:$0xff] %v20076_v26 }
 0x338   : > { %16799 = vmatpush3.bf16.msra.mxu0 %v19443_v49  ;;  %15853 = vmatprep.mubr.msk.f32.mxu0 %vm4564_vm10, %v19862_v54  ;;  %v19885_v49 = vld [vmem:[#allocation3 + $0x47] sm:$0xff]  ;;  %22102 = vst [vmem:[#allocation20_spill] sm:$0xff] %v20063_v0 }
 0x339   : > { %16802 = vmatprep.subr.msk.bf16.mxu0 %vm19121_vm9, %v16800_v60  ;;  %v20058_v7 = vld [vmem:[%s17956_s12 + $0x69] sm:$0xff] }
 0x33a   : > { %16470 = vmatmul.mubr.msk.f32.gmra.mrb[50].mxu1 %vm460_vm1, %v19867_v17  ;;  %22101 = vst [vmem:[#allocation19_spill] sm:$0xff] %v20058_v7 }
 0x33b   : > { %15854 = vmatmul.mubr.msk.f32.gmra.mrb[66].mxu0 %vm4564_vm10, %v19881_v4  ;;  %16472 = vmatprep.mubr.msk.f32.mxu1 %vm460_vm1, %v19873_v14 }
 0x33c   : > { %15856 = vmatprep.mubr.msk.f32.mxu0 %vm4564_vm10, %v19885_v49  ;;  %16805 = vmatpush3.bf16.msk.msra.mxu0 %vm19121_vm9, %v16800_v60  ;;  %v20067_v60 = vld [vmem:[#allocation3 + $0x16f] sm:$0xff] }
 0x33d   : > { %16807 = vmatprep.subr.bf16.mxu0 %v19877_v50 }
 0x33e   : > { %16473 = vmatmul.mubr.msk.f32.gmra.mrb[52].mxu1 %vm460_vm1, %v19890_v45 }
 0x33f   : > { %15857 = vmatmul.mubr.msk.f32.gmra.mrb[68].mxu0 %vm4564_vm10, %v19902_v61  ;;  %16475 = vmatprep.mubr.msk.f32.mxu1 %vm460_vm1, %v19895_v5 }
 0x340   : > { %15859 = vmatprep.mubr.msk.f32.mxu0 %vm4564_vm10, %v19906_v40 }
 0x342   : > { %16476 = vmatmul.mubr.msk.f32.gmra.mrb[54].mxu1 %vm460_vm1, %v19911_v22 }
 0x343   : > { %15860 = vmatmul.mubr.msk.f32.gmra.mrb[70].mxu0 %vm4564_vm10, %v19920_v25  ;;  %16478 = vmatprep.mubr.msk.f32.mxu1 %vm460_vm1, %v19916_v15 }
 0x344   : > { %15862 = vmatprep.mubr.msk.f32.mxu0 %vm4564_vm10, %v19924_v28 }
 0x346   : > { %16479 = vmatmul.mubr.msk.f32.gmra.mrb[56].mxu1 %vm460_vm1, %v19929_v11 }
 0x347   : > { %15863 = vmatmul.mubr.msk.f32.gmra.mrb[72].mxu0 %vm4564_vm10, %v19938_v32  ;;  %16481 = vmatprep.mubr.msk.f32.mxu1 %vm460_vm1, %v19934_v55  ;;  %v13398_v55 = vld [vmem:[%s21906_s6 + $0x80] sm:$0xff] }
 0x348   : > { %15865 = vmatprep.mubr.msk.f32.mxu0 %vm4564_vm10, %v19942_v52 }
 0x34a   : > { %16482 = vmatmul.mubr.msk.f32.gmra.mrb[58].mxu1 %vm460_vm1, %v19947_v16 }
 0x34b   : > { %15866 = vmatmul.mubr.msk.f32.gmra.mrb[74].mxu0 %vm4564_vm10, %v19956_v6  ;;  %16484 = vmatprep.mubr.msk.f32.mxu1 %vm460_vm1, %v19952_v53  ;;  %v20156_v53 = vld [vmem:[%s17956_s12 + $0xf1] sm:$0xff] }
 0x34c   : > { %15868 = vmatprep.mubr.msk.f32.mxu0 %vm4564_vm10, %v19960_v44 }
 0x34e   : > { %16485 = vmatmul.mubr.msk.f32.gmra.mrb[60].mxu1 %vm460_vm1, %v19965_v34  ;;  %v20152_v34 = vld [vmem:[%s17956_s12 + $0xe1] sm:$0xff] }
 0x34f   : > { %15869 = vmatmul.mubr.msk.f32.gmra.mrb[76].mxu0 %vm4564_vm10, %v19974_v48  ;;  %16487 = vmatprep.mubr.msk.f32.mxu1 %vm460_vm1, %v19970_v33  ;;  %v13363_v33 = vld [vmem:[%s21906_s6 + $0x70] sm:$0xff]  ;;  %22111 = vst [vmem:[#allocation29_spill] sm:$0xff] %v20152_v34 }
 0x350   : > { %15871 = vmatprep.mubr.msk.f32.mxu0 %vm4564_vm10, %v19978_v41 }
 0x352   : > { %16488 = vmatmul.mubr.msk.f32.gmra.mrb[62].mxu1 %vm460_vm1, %v19983_v30  ;;  %v5392_v30 = vld [vmem:[#allocation3 + $0x9] sm:$0xff] }
 0x353   : > { %15872 = vmatmul.mubr.msk.f32.gmra.mrb[78].mxu0 %vm4564_vm10, %v19990_v62  ;;  %16492 = vmatprep.mubr.msk.f32.mxu1 %vm460_vm1, %v13752_v37  ;;  %v20081_v37 = vld [vmem:[%s17956_s12 + $0x91] sm:$0xff] }
 0x354   : > { %15874 = vmatprep.mubr.msk.f32.mxu0 %vm4564_vm10, %v19994_v31  ;;  %22104 = vst [vmem:[#allocation22_spill] sm:$0xff] %v20081_v37 }
 0x356   : > { %16493 = vmatmul.mubr.msk.f32.vlgmr.msra.gmra.mrb[32].mxu1 %vm460_vm1, %v13753_v51  ;;  %v20085_v51 = vld [vmem:[#allocation3 + $0x18f] sm:$0xff] }
 0x357   : > { %15875 = vmatmul.mubr.msk.f32.gmra.mrb[80].mxu0 %vm4564_vm10, %v20004_v46  ;;  %16495 = vmatprep.mubr.msk.f32.mxu1 %vm460_vm1, %v20001_v29  ;;  %v20135_v29 = vld [vmem:[%s17956_s12 + $0xd9] sm:$0xff] }
 0x358   : > { %15877 = vmatprep.mubr.msk.f32.mxu0 %vm4564_vm10, %v20013_v19  ;;  %16541 = vmatpush3.msk.msra.mxu1 %vm557_vm0, %v19717_v63  ;;  %v20045_v63 = vld [vmem:[%s17956_s12 + $0x61] sm:$0xff]  ;;  %22110 = vst [vmem:[#allocation28_spill] sm:$0xff] %v20135_v29 }
 0x359   : > { %16590 = vmatprep.subr.msk.mxu1 %vm557_vm0, %v20009_v23  ;;  %22100 = vst [vmem:[#allocation18_spill] sm:$0xff] %v20045_v63 }
 0x35a   : > { %16496 = vmatmul.mubr.msk.f32.gmra.mrb[34].mxu1 %vm460_vm1, %v20018_v8  ;;  %v20125_v8 = vld [vmem:[#allocation3 + $0x1e7] sm:$0xff] }
 0x35b   : > { %15878 = vmatmul.mubr.msk.f32.gmra.mrb[82].mxu0 %vm4564_vm10, %v20031_v12  ;;  %16498 = vmatprep.mubr.msk.f32.mxu1 %vm460_vm1, %v20023_v24  ;;  %v20117_v24 = vld [vmem:[%s17956_s12 + $0xc1] sm:$0xff] }
 0x35c   : > { %15880 = vmatprep.mubr.msk.f32.mxu0 %vm4564_vm10, %v20035_v1  ;;  %22108 = vst [vmem:[#allocation26_spill] sm:$0xff] %v20117_v24 }
 0x35e   : > { %16499 = vmatmul.mubr.msk.f32.gmra.mrb[36].mxu1 %vm460_vm1, %v20040_v38  ;;  %v20107_v38 = vld [vmem:[#allocation3 + $0x1c7] sm:$0xff] }
 0x35f   : > { %15881 = vmatmul.mubr.msk.f32.gmra.mrb[84].mxu0 %vm4564_vm10, %v20049_v18  ;;  %16501 = vmatprep.mubr.msk.f32.mxu1 %vm460_vm1, %v20045_v63  ;;  %v20099_v63 = vld [vmem:[%s17956_s12 + $0xa9] sm:$0xff] }
 0x360   : > { %15883 = vmatprep.mubr.msk.f32.mxu0 %vm4564_vm10, %v20053_v10  ;;  %22106 = vst [vmem:[#allocation24_spill] sm:$0xff] %v20099_v63 }
 0x362   : > { %16502 = vmatmul.mubr.msk.f32.gmra.mrb[38].mxu1 %vm460_vm1, %v20058_v7  ;;  %v20089_v7 = vld [vmem:[#allocation3 + $0x1a7] sm:$0xff] }
 0x363   : > { %15884 = vmatmul.mubr.msk.f32.gmra.mrb[86].mxu0 %vm4564_vm10, %v20067_v60  ;;  %16504 = vmatprep.mubr.msk.f32.mxu1 %vm460_vm1, %v20063_v0  ;;  %v20094_v0 = vld [vmem:[%s17956_s12 + $0x99] sm:$0xff] }
 0x364   : > { %15886 = vmatprep.mubr.msk.f32.mxu0 %vm4564_vm10, %v20071_v58  ;;  %22105 = vst [vmem:[#allocation23_spill] sm:$0xff] %v20094_v0 }
 0x366   : > { %16505 = vmatmul.mubr.msk.f32.gmra.mrb[40].mxu1 %vm460_vm1, %v20076_v26  ;;  %v20103_v26 = vld [vmem:[#allocation3 + $0x1af] sm:$0xff] }
 0x367   : > { %15887 = vmatmul.mubr.msk.f32.gmra.mrb[88].mxu0 %vm4564_vm10, %v20085_v51  ;;  %16507 = vmatprep.mubr.msk.f32.mxu1 %vm460_vm1, %v20081_v37  ;;  %v20112_v37 = vld [vmem:[%s17956_s12 + $0xb1] sm:$0xff] }
 0x368   : > { %15889 = vmatprep.mubr.msk.f32.mxu0 %vm4564_vm10, %v20089_v7  ;;  %22107 = vst [vmem:[#allocation25_spill] sm:$0xff] %v20112_v37 }
 0x36a   : > { %16508 = vmatmul.mubr.msk.f32.gmra.mrb[42].mxu1 %vm460_vm1, %v20094_v0  ;;  %v20121_v0 = vld [vmem:[#allocation3 + $0x1cf] sm:$0xff] }
 0x36b   : > { %15890 = vmatmul.mubr.msk.f32.gmra.mrb[90].mxu0 %vm4564_vm10, %v20103_v26  ;;  %16510 = vmatprep.mubr.msk.f32.mxu1 %vm460_vm1, %v20099_v63  ;;  %v20130_v63 = vld [vmem:[%s17956_s12 + $0xc9] sm:$0xff] }
 0x36c   : > { %15892 = vmatprep.mubr.msk.f32.mxu0 %vm4564_vm10, %v20107_v38  ;;  %22109 = vst [vmem:[#allocation27_spill] sm:$0xff] %v20130_v63 }
 0x36e   : > { %16511 = vmatmul.mubr.msk.f32.gmra.mrb[44].mxu1 %vm460_vm1, %v20112_v37  ;;  %v20139_v37 = vld [vmem:[#allocation3 + $0x1ef] sm:$0xff] }
 0x36f   : > { %15893 = vmatmul.mubr.msk.f32.gmra.mrb[92].mxu0 %vm4564_vm10, %v20121_v0  ;;  %16513 = vmatprep.mubr.msk.f32.mxu1 %vm460_vm1, %v20117_v24  ;;  %v13364_v24 = vld [vmem:[%s21906_s6 + $0x78] sm:$0xf] }
 0x370   : > { %15895 = vmatprep.mubr.msk.f32.mxu0 %vm4564_vm10, %v20125_v8  ;;  %v16810_v16 = vpack.c.bf16 %v13364_v24, %v13363_v33  ;;  %v20172_v33 = vld [vmem:[%s17956_s12 + $0xf9] sm:$0xff]  ;;  %v20178_v24 = vld [vmem:[%s17956_s12 + $0x109] sm:$0xff] }
 0x371   : > { %22113 = vst [vmem:[#allocation31_spill] sm:$0xff] %v20178_v24 }
 0x372   : > { %16514 = vmatmul.mubr.msk.f32.gmra.mrb[46].mxu1 %vm460_vm1, %v20130_v63  ;;  %v5393_v63 = vld [vmem:[#allocation3 + $0x11] sm:$0xff] }
 0x373   : > { %15896 = vmatmul.mubr.msk.f32.gmra.mrb[94].mxu0 %vm4564_vm10, %v20139_v37  ;;  %16516 = vmatprep.mubr.msk.f32.mxu1 %vm460_vm1, %v20135_v29  ;;  %v13399_v29 = vld [vmem:[%s21906_s6 + $0x88] sm:$0xff] }
 0x374   : > { %15906 = vmatprep.mubr.msk.f32.mxu0 %vm4564_vm10, %v5392_v30  ;;  %v20167_v30 = vld [vmem:[#allocation3 + $0x29] sm:$0xff] }
 0x375   : > { %22112 = vst [vmem:[#allocation30_spill] sm:$0xff] %v20167_v30 }
 0x376   : > { %16517 = vmatmul.mubr.msk.f32.gmra.mrb[48].mxu1 %vm460_vm1, %v20152_v34  ;;  %v20182_v34 = vpack.c.bf16 %v13399_v29, %v13398_v55  ;;  %v20200_v55 = vld [vmem:[%s17956_s12 + $0x121] sm:$0xff]  ;;  %v20207_v29 = vld [vmem:[#allocation3 + $0x51] sm:$0xff] }
 0x377   : > { %15907 = vmatmul.mubr.msk.f32.vlgmr.msra.gmra.mrb[64].mxu0 %vm4564_vm10, %v5393_v63  ;;  %16519 = vmatprep.mubr.msk.f32.mxu1 %vm460_vm1, %v20156_v53  ;;  %v20186_v63 = vld [vmem:[#allocation3 + $0x31] sm:$0xff]  ;;  %22117 = vst [vmem:[#allocation37_spill] sm:$0xff] %v20200_v55  ;;  %22118 = vst [vmem:[#allocation38_spill] sm:$0xff] %v20207_v29 }
 0x378   : > { %16809 = vmatpush3.bf16.msra.mxu0 %v19877_v50  ;;  %15909 = vmatprep.mubr.msk.f32.mxu0 %vm4564_vm10, %v20167_v30  ;;  %22114 = vst [vmem:[#allocation34_spill] sm:$0xff] %v20186_v63  ;;  %v20190_v50 = vld [vmem:[#allocation3 + $0x49] sm:$0xff]  ;;  %v20195_v30 = vld [vmem:[%s17956_s12 + $0x111] sm:$0xff] }
 0x379   : > { %16812 = vmatprep.subr.msk.bf16.mxu0 %vm19121_vm9, %v16810_v16  ;;  %22115 = vst [vmem:[#allocation35_spill] sm:$0xff] %v20190_v50  ;;  %22116 = vst [vmem:[#allocation36_spill] sm:$0xff] %v20195_v30 }
 0x37a   : > { %16520 = vmatmul.mubr.msk.f32.gmra.mrb[50].mxu1 %vm460_vm1, %v20172_v33 }
 0x37b   : > { %15910 = vmatmul.mubr.msk.f32.gmra.mrb[66].mxu0 %vm4564_vm10, %v20186_v63  ;;  %16522 = vmatprep.mubr.msk.f32.mxu1 %vm460_vm1, %v20178_v24  ;;  %v20211_v24 = vld [vmem:[#allocation3 + $0x69] sm:$0xff]  ;;  %v20314_v63 = vld [vmem:[%s21908_s8 + $0x1c] sm:$0xf] }
 0x37c   : > { %15912 = vmatprep.mubr.msk.f32.mxu0 %vm4564_vm10, %v20190_v50  ;;  %16815 = vmatpush3.bf16.msk.msra.mxu0 %vm19121_vm9, %v16810_v16  ;;  %22119 = vst [vmem:[#allocation39_spill] sm:$0xff] %v20211_v24  ;;  %v20216_v50 = vld [vmem:[%s17956_s12 + $0x129] sm:$0xff]  ;;  %v20221_v16 = vld [vmem:[%s17956_s12 + $0x139] sm:$0xff] }
 0x37d   : > { %16817 = vmatprep.subr.bf16.mxu0 %v20182_v34  ;;  %22120 = vst [vmem:[#allocation40_spill] sm:$0xff] %v20216_v50  ;;  %22121 = vst [vmem:[#allocation41_spill] sm:$0xff] %v20221_v16 }
 0x37e   : > { %16523 = vmatmul.mubr.msk.f32.gmra.mrb[52].mxu1 %vm460_vm1, %v20195_v30  ;;  %v20225_v30 = vld [vmem:[#allocation3 + $0x71] sm:$0xff] }
 0x37f   : > { %15913 = vmatmul.mubr.msk.f32.gmra.mrb[68].mxu0 %vm4564_vm10, %v20207_v29  ;;  %16525 = vmatprep.mubr.msk.f32.mxu1 %vm460_vm1, %v20200_v55  ;;  %22122 = vst [vmem:[#allocation42_spill] sm:$0xff] %v20225_v30  ;;  %v20229_v29 = vld [vmem:[#allocation3 + $0x89] sm:$0xff]  ;;  %v20234_v55 = vld [vmem:[%s17956_s12 + $0x141] sm:$0xff] }
 0x380   : > { %15915 = vmatprep.mubr.msk.f32.mxu0 %vm4564_vm10, %v20211_v24  ;;  %22123 = vst [vmem:[#allocation43_spill] sm:$0xff] %v20229_v29  ;;  %22124 = vst [vmem:[#allocation44_spill] sm:$0xff] %v20234_v55  ;;  %v20239_v24 = vld [vmem:[%s17956_s12 + $0x151] sm:$0xff] }
 0x381   : > { %22125 = vst [vmem:[#allocation45_spill] sm:$0xff] %v20239_v24 }
 0x382   : > { %16526 = vmatmul.mubr.msk.f32.gmra.mrb[54].mxu1 %vm460_vm1, %v20216_v50  ;;  %v20243_v50 = vld [vmem:[#allocation3 + $0x91] sm:$0xff] }
 0x383   : > { %15916 = vmatmul.mubr.msk.f32.gmra.mrb[70].mxu0 %vm4564_vm10, %v20225_v30  ;;  %16528 = vmatprep.mubr.msk.f32.mxu1 %vm460_vm1, %v20221_v16  ;;  %22126 = vst [vmem:[#allocation46_spill] sm:$0xff] %v20243_v50  ;;  %v20247_v30 = vld [vmem:[#allocation3 + $0xa9] sm:$0xff]  ;;  %v20252_v16 = vld [vmem:[%s17956_s12 + $0x159] sm:$0xff] }
 0x384   : > { %15918 = vmatprep.mubr.msk.f32.mxu0 %vm4564_vm10, %v20229_v29  ;;  %22127 = vst [vmem:[#allocation47_spill] sm:$0xff] %v20247_v30  ;;  %22128 = vst [vmem:[#allocation48_spill] sm:$0xff] %v20252_v16  ;;  %v20257_v29 = vld [vmem:[%s17956_s12 + $0x169] sm:$0xff] }
 0x385   : > { %22129 = vst [vmem:[#allocation49_spill] sm:$0xff] %v20257_v29 }
 0x386   : > { %16529 = vmatmul.mubr.msk.f32.gmra.mrb[56].mxu1 %vm460_vm1, %v20234_v55  ;;  %v20261_v55 = vld [vmem:[#allocation3 + $0xb1] sm:$0xff] }
 0x387   : > { %15919 = vmatmul.mubr.msk.f32.gmra.mrb[72].mxu0 %vm4564_vm10, %v20243_v50  ;;  %16531 = vmatprep.mubr.msk.f32.mxu1 %vm460_vm1, %v20239_v24  ;;  %22130 = vst [vmem:[#allocation50_spill] sm:$0xff] %v20261_v55  ;;  %v20265_v50 = vld [vmem:[#allocation3 + $0xc9] sm:$0xff]  ;;  %v20270_v24 = vld [vmem:[%s17956_s12 + $0x171] sm:$0xff] }
 0x388   : > { %15921 = vmatprep.mubr.msk.f32.mxu0 %vm4564_vm10, %v20247_v30  ;;  %22131 = vst [vmem:[#allocation51_spill] sm:$0xff] %v20265_v50  ;;  %22132 = vst [vmem:[#allocation52_spill] sm:$0xff] %v20270_v24  ;;  %v20275_v30 = vld [vmem:[%s17956_s12 + $0x181] sm:$0xff] }
 0x389   : > { %22133 = vst [vmem:[#allocation53_spill] sm:$0xff] %v20275_v30 }
 0x38a   : > { %16532 = vmatmul.mubr.msk.f32.gmra.mrb[58].mxu1 %vm460_vm1, %v20252_v16  ;;  %v20279_v16 = vld [vmem:[#allocation3 + $0xd1] sm:$0xff] }
 0x38b   : > { %15922 = vmatmul.mubr.msk.f32.gmra.mrb[74].mxu0 %vm4564_vm10, %v20261_v55  ;;  %16534 = vmatprep.mubr.msk.f32.mxu1 %vm460_vm1, %v20257_v29  ;;  %22134 = vst [vmem:[#allocation54_spill] sm:$0xff] %v20279_v16  ;;  %v20283_v55 = vld [vmem:[#allocation3 + $0xe9] sm:$0xff] }
 0x38c   : > { %15924 = vmatprep.mubr.msk.f32.mxu0 %vm4564_vm10, %v20265_v50  ;;  %22135 = vst [vmem:[#allocation55_spill] sm:$0xff] %v20283_v55  ;;  %v20288_v29 = vld [vmem:[%s17956_s12 + $0x189] sm:$0xff]  ;;  %v13818_v50 = vld [vmem:[%s17956_s12 + $0x1a] sm:$0xff] }
 0x38d   : > { %22136 = vst [vmem:[#allocation56_spill] sm:$0xff] %v20288_v29 }
 0x38e   : > { %16535 = vmatmul.mubr.msk.f32.gmra.mrb[60].mxu1 %vm460_vm1, %v20270_v24  ;;  %v20295_v24 = vld [vmem:[#allocation3 + $0xf1] sm:$0xff] }
 0x38f   : > { %15925 = vmatmul.mubr.msk.f32.gmra.mrb[76].mxu0 %vm4564_vm10, %v20279_v16  ;;  %16537 = vmatprep.mubr.msk.f32.mxu1 %vm460_vm1, %v20275_v30  ;;  %22137 = vst [vmem:[#allocation57_spill] sm:$0xff] %v20295_v24  ;;  %v20299_v16 = vld [vmem:[#allocation3 + $0x109] sm:$0xff] }
 0x390   : > { %15927 = vmatprep.mubr.msk.f32.mxu0 %vm4564_vm10, %v20283_v55  ;;  %22138 = vst [vmem:[#allocation58_spill] sm:$0xff] %v20299_v16  ;;  %v13819_v30 = vld [vmem:[%s17956_s12 + $0x22] sm:$0xff]  ;;  %v20306_v55 = vld [vmem:[%s17956_s12 + $0x32] sm:$0xff] }
 0x391   : > { %22139 = vst [vmem:[#allocation59_spill] sm:$0xff] %v20306_v55 }
 0x392   : > { %16538 = vmatmul.mubr.msk.f32.gmra.mrb[62].mxu1 %vm460_vm1, %v20288_v29  ;;  %v20309_v29 = vld [vmem:[#allocation3 + $0x111] sm:$0xff] }
 0x393   : > { %15928 = vmatmul.mubr.msk.f32.gmra.mrb[78].mxu0 %vm4564_vm10, %v20295_v24  ;;  %16542 = vmatprep.mubr.msk.f32.mxu1 %vm460_vm1, %v13818_v50  ;;  %22140 = vst [vmem:[#allocation60_spill] sm:$0xff] %v20309_v29  ;;  %v20318_v50 = vld [vmem:[#allocation3 + $0x129] sm:$0xff] }
 0x394   : > { %15930 = vmatprep.mubr.msk.f32.mxu0 %vm4564_vm10, %v20299_v16  ;;  %22141 = vst [vmem:[#allocation61_spill] sm:$0xff] %v20318_v50  ;;  %v20323_v16 = vld [vmem:[%s17956_s12 + $0x3a] sm:$0xff] }
 0x395   : > { %22142 = vst [vmem:[#allocation62_spill] sm:$0xff] %v20323_v16 }
 0x396   : > { %16543 = vmatmul.mubr.msk.f32.vlgmr.msra.gmra.mrb[32].mxu1 %vm460_vm1, %v13819_v30  ;;  %v20328_v30 = vld [vmem:[%s17956_s12 + $0x4a] sm:$0xff] }
 0x397   : > { %15931 = vmatmul.mubr.msk.f32.gmra.mrb[80].mxu0 %vm4564_vm10, %v20309_v29  ;;  %16545 = vmatprep.mubr.msk.f32.mxu1 %vm460_vm1, %v20306_v55  ;;  %22143 = vst [vmem:[#allocation63_spill] sm:$0xff] %v20328_v30  ;;  %v20336_v29 = vld [vmem:[#allocation3 + $0x131] sm:$0xff]  ;;  %v20340_v55 = vld [vmem:[#allocation3 + $0x149] sm:$0xff] }
 0x398   : > { %15933 = vmatprep.mubr.msk.f32.mxu0 %vm4564_vm10, %v20318_v50  ;;  %16591 = vmatpush3.msk.msra.mxu1 %vm557_vm0, %v20009_v23  ;;  %22144 = vst [vmem:[#allocation64_spill] sm:$0xff] %v20336_v29  ;;  %22145 = vst [vmem:[#allocation65_spill] sm:$0xff] %v20340_v55  ;;  %v20345_v50 = vld [vmem:[%s17956_s12 + $0x52] sm:$0xff]  ;;  %v20350_v23 = vld [vmem:[%s17956_s12 + $0x62] sm:$0xff] }
 0x399   : > { %16640 = vmatprep.subr.msk.mxu1 %vm557_vm0, %v20314_v63  ;;  %22146 = vst [vmem:[#allocation66_spill] sm:$0xff] %v20345_v50  ;;  %22147 = vst [vmem:[#allocation67_spill] sm:$0xff] %v20350_v23 }
 0x39a   : > { %16546 = vmatmul.mubr.msk.f32.gmra.mrb[34].mxu1 %vm460_vm1, %v20323_v16  ;;  %v20354_v16 = vld [vmem:[#allocation3 + $0x151] sm:$0xff] }
 0x39b   : > { %15934 = vmatmul.mubr.msk.f32.gmra.mrb[82].mxu0 %vm4564_vm10, %v20336_v29  ;;  %16548 = vmatprep.mubr.msk.f32.mxu1 %vm460_vm1, %v20328_v30  ;;  %22148 = vst [vmem:[#allocation68_spill] sm:$0xff] %v20354_v16  ;;  %v20358_v29 = vld [vmem:[#allocation3 + $0x169] sm:$0xff] }
 0x39c   : > { %15936 = vmatprep.mubr.msk.f32.mxu0 %vm4564_vm10, %v20340_v55  ;;  %22149 = vst [vmem:[#allocation69_spill] sm:$0xff] %v20358_v29  ;;  %v20363_v30 = vld [vmem:[%s17956_s12 + $0x6a] sm:$0xff]  ;;  %v20368_v55 = vld [vmem:[%s17956_s12 + $0x7a] sm:$0xff] }
 0x39d   : > { %22150 = vst [vmem:[#allocation70_spill] sm:$0xff] %v20363_v30  ;;  %22151 = vst [vmem:[#allocation71_spill] sm:$0xff] %v20368_v55 }
 0x39e   : > { %16549 = vmatmul.mubr.msk.f32.gmra.mrb[36].mxu1 %vm460_vm1, %v20345_v50  ;;  %v20372_v50 = vld [vmem:[#allocation3 + $0x171] sm:$0xff] }
 0x39f   : > { %15937 = vmatmul.mubr.msk.f32.gmra.mrb[84].mxu0 %vm4564_vm10, %v20354_v16  ;;  %16551 = vmatprep.mubr.msk.f32.mxu1 %vm460_vm1, %v20350_v23  ;;  %22152 = vst [vmem:[#allocation72_spill] sm:$0xff] %v20372_v50  ;;  %v20376_v16 = vld [vmem:[#allocation3 + $0x189] sm:$0xff] }
 0x3a0   : > { %15939 = vmatprep.mubr.msk.f32.mxu0 %vm4564_vm10, %v20358_v29  ;;  %22153 = vst [vmem:[#allocation73_spill] sm:$0xff] %v20376_v16  ;;  %v20381_v23 = vld [vmem:[%s17956_s12 + $0x82] sm:$0xff]  ;;  %v20386_v29 = vld [vmem:[%s17956_s12 + $0x92] sm:$0xff] }
 0x3a1   : > { %22154 = vst [vmem:[#allocation74_spill] sm:$0xff] %v20381_v23  ;;  %22155 = vst [vmem:[#allocation75_spill] sm:$0xff] %v20386_v29 }
 0x3a2   : > { %16552 = vmatmul.mubr.msk.f32.gmra.mrb[38].mxu1 %vm460_vm1, %v20363_v30  ;;  %v20390_v30 = vld [vmem:[#allocation3 + $0x191] sm:$0xff] }
 0x3a3   : > { %15940 = vmatmul.mubr.msk.f32.gmra.mrb[86].mxu0 %vm4564_vm10, %v20372_v50  ;;  %16554 = vmatprep.mubr.msk.f32.mxu1 %vm460_vm1, %v20368_v55  ;;  %22156 = vst [vmem:[#allocation76_spill] sm:$0xff] %v20390_v30  ;;  %v20394_v50 = vld [vmem:[#allocation3 + $0x1a9] sm:$0xff]  ;;  %v20399_v55 = vld [vmem:[%s17956_s12 + $0x9a] sm:$0xff] }
 0x3a4   : > { %15942 = vmatprep.mubr.msk.f32.mxu0 %vm4564_vm10, %v20376_v16  ;;  %22157 = vst [vmem:[#allocation77_spill] sm:$0xff] %v20394_v50  ;;  %22158 = vst [vmem:[#allocation78_spill] sm:$0xff] %v20399_v55  ;;  %v20404_v16 = vld [vmem:[%s17956_s12 + $0xaa] sm:$0xff] }
 0x3a5   : > { %22159 = vst [vmem:[#allocation79_spill] sm:$0xff] %v20404_v16 }
 0x3a6   : > { %16555 = vmatmul.mubr.msk.f32.gmra.mrb[40].mxu1 %vm460_vm1, %v20381_v23  ;;  %v20408_v23 = vld [vmem:[#allocation3 + $0x1b1] sm:$0xff] }
 0x3a7   : > { %15943 = vmatmul.mubr.msk.f32.gmra.mrb[88].mxu0 %vm4564_vm10, %v20390_v30  ;;  %16557 = vmatprep.mubr.msk.f32.mxu1 %vm460_vm1, %v20386_v29  ;;  %22160 = vst [vmem:[#allocation80_spill] sm:$0xff] %v20408_v23  ;;  %v20412_v30 = vld [vmem:[#allocation3 + $0x1c9] sm:$0xff]  ;;  %v20417_v29 = vld [vmem:[%s17956_s12 + $0xb2] sm:$0xff] }
 0x3a8   : > { %15945 = vmatprep.mubr.msk.f32.mxu0 %vm4564_vm10, %v20394_v50  ;;  %22161 = vst [vmem:[#allocation81_spill] sm:$0xff] %v20412_v30  ;;  %22162 = vst [vmem:[#allocation82_spill] sm:$0xff] %v20417_v29  ;;  %v20422_v50 = vld [vmem:[%s17956_s12 + $0xc2] sm:$0xff] }
 0x3a9   : > { %22163 = vst [vmem:[#allocation83_spill] sm:$0xff] %v20422_v50 }
 0x3aa   : > { %16558 = vmatmul.mubr.msk.f32.gmra.mrb[42].mxu1 %vm460_vm1, %v20399_v55  ;;  %v20426_v55 = vld [vmem:[#allocation3 + $0x1d1] sm:$0xff] }
 0x3ab   : > { %15946 = vmatmul.mubr.msk.f32.gmra.mrb[90].mxu0 %vm4564_vm10, %v20408_v23  ;;  %16560 = vmatprep.mubr.msk.f32.mxu1 %vm460_vm1, %v20404_v16  ;;  %22164 = vst [vmem:[#allocation84_spill] sm:$0xff] %v20426_v55  ;;  %v20430_v23 = vld [vmem:[#allocation3 + $0x1e9] sm:$0xff] }
 0x3ac   : > { %15948 = vmatprep.mubr.msk.f32.mxu0 %vm4564_vm10, %v20412_v30  ;;  %22165 = vst [vmem:[#allocation85_spill] sm:$0xff] %v20430_v23  ;;  %v20435_v16 = vld [vmem:[%s17956_s12 + $0xca] sm:$0xff]  ;;  %v20440_v30 = vld [vmem:[%s17956_s12 + $0xda] sm:$0xff] }
 0x3ad   : > { %22166 = vst [vmem:[#allocation86_spill] sm:$0xff] %v20435_v16  ;;  %22167 = vst [vmem:[#allocation87_spill] sm:$0xff] %v20440_v30 }
 0x3ae   : > { %16561 = vmatmul.mubr.msk.f32.gmra.mrb[44].mxu1 %vm460_vm1, %v20417_v29  ;;  %v20444_v29 = vld [vmem:[#allocation3 + $0x1f1] sm:$0xff] }
 0x3af   : > { %15949 = vmatmul.mubr.msk.f32.gmra.mrb[92].mxu0 %vm4564_vm10, %v20426_v55  ;;  %16563 = vmatprep.mubr.msk.f32.mxu1 %vm460_vm1, %v20422_v50  ;;  %22168 = vst [vmem:[#allocation88_spill] sm:$0xff] %v20444_v29  ;;  %v13400_v55 = vld [vmem:[%s21906_s6 + $0x90] sm:$0xff]  ;;  %v13401_v50 = vld [vmem:[%s21906_s6 + $0x98] sm:$0xf] }
 0x3b0   : > { %15951 = vmatprep.mubr.msk.f32.mxu0 %vm4564_vm10, %v20430_v23  ;;  %v20457_v23 = vld [vmem:[%s17956_s12 + $0xe2] sm:$0xff]  ;;  %v16820_v24 = vpack.c.bf16 %v13401_v50, %v13400_v55  ;;  %v20483_v55 = vld [vmem:[%s17956_s12 + $0x10a] sm:$0xff] }
 0x3b2   : > { %16564 = vmatmul.mubr.msk.f32.gmra.mrb[46].mxu1 %vm460_vm1, %v20435_v16  ;;  %v20462_v16 = vld [vmem:[%s17956_s12 + $0xf2] sm:$0xff] }
 0x3b3   : > { %15952 = vmatmul.mubr.msk.f32.gmra.mrb[94].mxu0 %vm4564_vm10, %v20444_v29  ;;  %16566 = vmatprep.mubr.msk.f32.mxu1 %vm460_vm1, %v20440_v30  ;;  %v13435_v29 = vld [vmem:[%s21906_s6 + $0xa0] sm:$0xff]  ;;  %v13436_v30 = vld [vmem:[%s21906_s6 + $0xa8] sm:$0xff] }
 0x3b4   : > { %15962 = vmatprep.mubr.msk.f32.mxu0 %vm4564_vm10, %v19862_v54  ;;  %v20477_v54 = vld [vmem:[%s17956_s12 + $0xfa] sm:$0xff]  ;;  %v20487_v50 = vpack.c.bf16 %v13436_v30, %v13435_v29  ;;  %v6198_v29 = vld [vmem:[#allocation3 + $0x168] sm:$0xff] }
 0x3b5   : > { %v22179_v30 = vld [vmem:[#allocation18_spill] sm:$0xff] }
 0x3b6   : > { %16567 = vmatmul.mubr.msk.f32.gmra.mrb[48].mxu1 %vm460_vm1, %v20457_v23 }
 0x3b7   : > { %15963 = vmatmul.mubr.msk.f32.vlgmr.msra.gmra.mrb[64].mxu0 %vm4564_vm10, %v19881_v4  ;;  %16569 = vmatprep.mubr.msk.f32.mxu1 %vm460_vm1, %v20462_v16  ;;  %v20496_v4 = vld [vmem:[%s17956_s12 + $0x112] sm:$0xff] }
 0x3b8   : > { %16819 = vmatpush3.bf16.msra.mxu0 %v20182_v34  ;;  %15965 = vmatprep.mubr.msk.f32.mxu0 %vm4564_vm10, %v19885_v49  ;;  %v20501_v49 = vld [vmem:[%s17956_s12 + $0x122] sm:$0xff] }
 0x3b9   : > { %16822 = vmatprep.subr.msk.bf16.mxu0 %vm19121_vm9, %v16820_v24  ;;  %v13888_v34 = vld [vmem:[%s17956_s12 + $0x60] sm:$0xff] }
 0x3ba   : > { %16570 = vmatmul.mubr.msk.f32.gmra.mrb[50].mxu1 %vm460_vm1, %v20477_v54 }
 0x3bb   : > { %15966 = vmatmul.mubr.msk.f32.gmra.mrb[66].mxu0 %vm4564_vm10, %v19902_v61  ;;  %16572 = vmatprep.mubr.msk.f32.mxu1 %vm460_vm1, %v20483_v55  ;;  %v20513_v61 = vld [vmem:[%s17956_s12 + $0x12a] sm:$0xff] }
 0x3bc   : > { %15968 = vmatprep.mubr.msk.f32.mxu0 %vm4564_vm10, %v19906_v40  ;;  %16825 = vmatpush3.bf16.msk.msra.mxu0 %vm19121_vm9, %v16820_v24  ;;  %v20518_v40 = vld [vmem:[%s17956_s12 + $0x13a] sm:$0xff] }
 0x3bd   : > { %16827 = vmatprep.subr.bf16.mxu0 %v20487_v50  ;;  %v22178_v24 = vld [vmem:[#allocation17_spill] sm:$0xff] }
 0x3be   : > { %16573 = vmatmul.mubr.msk.f32.gmra.mrb[52].mxu1 %vm460_vm1, %v20496_v4 }
 0x3bf   : > { %15969 = vmatmul.mubr.msk.f32.gmra.mrb[68].mxu0 %vm4564_vm10, %v19920_v25  ;;  %16575 = vmatprep.mubr.msk.f32.mxu1 %vm460_vm1, %v20501_v49  ;;  %v20527_v25 = vld [vmem:[%s17956_s12 + $0x142] sm:$0xff] }
 0x3c0   : > { %15971 = vmatprep.mubr.msk.f32.mxu0 %vm4564_vm10, %v19924_v28  ;;  %v17691_v28 = vld [vmem:[%s17956_s12 + $0x152] sm:$0xff] }
 0x3c2   : > { %16576 = vmatmul.mubr.msk.f32.gmra.mrb[54].mxu1 %vm460_vm1, %v20513_v61 }
 0x3c3   : > { %15972 = vmatmul.mubr.msk.f32.gmra.mrb[70].mxu0 %vm4564_vm10, %v19938_v32  ;;  %16578 = vmatprep.mubr.msk.f32.mxu1 %vm460_vm1, %v20518_v40  ;;  %v20548_v32 = vld [vmem:[%s17956_s12 + $0x182] sm:$0xff] }
 0x3c4   : > { %15974 = vmatprep.mubr.msk.f32.mxu0 %vm4564_vm10, %v19942_v52  ;;  %v13886_v52 = vld [vmem:[%s17956_s12 + $0x48] sm:$0xff] }
 0x3c6   : > { %16579 = vmatmul.mubr.msk.f32.gmra.mrb[56].mxu1 %vm460_vm1, %v20527_v25 }
 0x3c7   : > { %15975 = vmatmul.mubr.msk.f32.gmra.mrb[72].mxu0 %vm4564_vm10, %v19956_v6  ;;  %16581 = vmatprep.mubr.msk.f32.mxu1 %vm460_vm1, %v17691_v28  ;;  %v20575_v6 = vld [vmem:[%s21908_s8 + $0x20] sm:$0xf]  ;;  %v6199_v28 = vld [vmem:[#allocation3 + $0x170] sm:$0xff] }
 0x3c8   : > { %15977 = vmatprep.mubr.msk.f32.mxu0 %vm4564_vm10, %v19960_v44  ;;  %v13887_v44 = vld [vmem:[%s17956_s12 + $0x50] sm:$0xff] }
 0x3ca   : > { %16582 = vmatmul.mubr.msk.f32.gmra.mrb[58].mxu1 %vm460_vm1, %v19669_v9  ;;  %v20557_v9 = vld [vmem:[%s17956_s12 + $0x18a] sm:$0xff] }
 0x3cb   : > { %15978 = vmatmul.mubr.msk.f32.gmra.mrb[74].mxu0 %vm4564_vm10, %v19974_v48  ;;  %16584 = vmatprep.mubr.msk.f32.mxu1 %vm460_vm1, %v19673_v2  ;;  %v13884_v2 = vld [vmem:[%s17956_s12 + $0x30] sm:$0xff]  ;;  %v6186_v48 = vld [vmem:[#allocation3 + $0xa8] sm:$0xff] }
 0x3cc   : > { %15980 = vmatprep.mubr.msk.f32.mxu0 %vm4564_vm10, %v19978_v41  ;;  %v22169_v41 = vld [vmem:[#allocation32_spill] sm:$0xff] }
 0x3ce   : > { %16585 = vmatmul.mubr.msk.f32.gmra.mrb[60].mxu1 %vm460_vm1, %v19689_v47  ;;  %v13885_v47 = vld [vmem:[%s17956_s12 + $0x38] sm:$0xff] }
 0x3cf   : > { %15981 = vmatmul.mubr.msk.f32.gmra.mrb[76].mxu0 %vm4564_vm10, %v19990_v62  ;;  %16587 = vmatprep.mubr.msk.f32.mxu1 %vm460_vm1, %v20548_v32  ;;  %v6187_v62 = vld [vmem:[#allocation3 + $0xb0] sm:$0xff] }
 0x3d0   : > { %15983 = vmatprep.mubr.msk.f32.mxu0 %vm4564_vm10, %v19994_v31  ;;  %v22171_v31 = vld [vmem:[#allocation10_spill] sm:$0xff] }
 0x3d2   : > { %16588 = vmatmul.mubr.msk.f32.gmra.mrb[62].mxu1 %vm460_vm1, %v20557_v9 }
 0x3d3   : > { %15984 = vmatmul.mubr.msk.f32.gmra.mrb[78].mxu0 %vm4564_vm10, %v20004_v46  ;;  %16592 = vmatprep.mubr.msk.f32.mxu1 %vm460_vm1, %v13884_v2  ;;  %v6189_v46 = vld [vmem:[#allocation3 + $0xd0] sm:$0xff]  ;;  %v6200_v2 = vld [vmem:[#allocation3 + $0x188] sm:$0xff] }
 0x3d4   : > { %15986 = vmatprep.mubr.msk.f32.mxu0 %vm4564_vm10, %v20013_v19  ;;  %v6190_v19 = vld [vmem:[#allocation3 + $0xe8] sm:$0xff] }
 0x3d6   : > { %16593 = vmatmul.mubr.msk.f32.vlgmr.msra.gmra.mrb[32].mxu1 %vm460_vm1, %v13885_v47  ;;  %v22181_v47 = vld [vmem:[#allocation20_spill] sm:$0xff] }
 0x3d7   : > { %15987 = vmatmul.mubr.msk.f32.gmra.mrb[80].mxu0 %vm4564_vm10, %v20031_v12  ;;  %16595 = vmatprep.mubr.msk.f32.mxu1 %vm460_vm1, %v13886_v52  ;;  %v13914_v12 = vld [vmem:[%s17956_s12 + $0x198] sm:$0xff] }
 0x3d8   : > { %15989 = vmatprep.mubr.msk.f32.mxu0 %vm4564_vm10, %v20035_v1  ;;  %16641 = vmatpush3.msk.msra.mxu1 %vm557_vm0, %v20314_v63  ;;  %v22174_v1 = vld [vmem:[#allocation13_spill] sm:$0xff]  ;;  %v6197_v63 = vld [vmem:[#allocation3 + $0x150] sm:$0xff] }
 0x3d9   : > { %16690 = vmatprep.subr.msk.mxu1 %vm557_vm0, %v20575_v6  ;;  %v22182_v52 = vld [vmem:[#allocation21_spill] sm:$0xff] }
 0x3da   : > { %16596 = vmatmul.mubr.msk.f32.gmra.mrb[34].mxu1 %vm460_vm1, %v13887_v44  ;;  %v6202_v44 = vld [vmem:[#allocation3 + $0x1a8] sm:$0xff] }
 0x3db   : > { %15990 = vmatmul.mubr.msk.f32.gmra.mrb[82].mxu0 %vm4564_vm10, %v20049_v18  ;;  %16598 = vmatprep.mubr.msk.f32.mxu1 %vm460_vm1, %v13888_v34  ;;  %v6192_v18 = vld [vmem:[#allocation3 + $0x108] sm:$0xff]  ;;  %v22183_v34 = vld [vmem:[#allocation22_spill] sm:$0xff] }
 0x3dc   : > { %15992 = vmatprep.mubr.msk.f32.mxu0 %vm4564_vm10, %v20053_v10  ;;  %v13915_v10 = vld [vmem:[%s17956_s12 + $0x1a0] sm:$0xff] }
 0x3de   : > { %16599 = vmatmul.mubr.msk.f32.gmra.mrb[36].mxu1 %vm460_vm1, %v19757_v20  ;;  %v5815_v20 = vld [vmem:[#allocation3 + $0x207] sm:$0xff] }
 0x3df   : > { %15993 = vmatmul.mubr.msk.f32.gmra.mrb[84].mxu0 %vm4564_vm10, %v20067_v60  ;;  %16601 = vmatprep.mubr.msk.f32.mxu1 %vm460_vm1, %v19761_v35  ;;  %v5816_v35 = vld [vmem:[#allocation3 + $0x20f] sm:$0xff]  ;;  %v22175_v60 = vld [vmem:[#allocation14_spill] sm:$0xff] }
 0x3e0   : > { %15995 = vmatprep.mubr.msk.f32.mxu0 %vm4564_vm10, %v20071_v58  ;;  %v22176_v58 = vld [vmem:[#allocation15_spill] sm:$0xff] }
 0x3e2   : > { %16602 = vmatmul.mubr.msk.f32.gmra.mrb[38].mxu1 %vm460_vm1, %v19777_v42  ;;  %v13437_v42 = vld [vmem:[%s21906_s6 + $0xb0] sm:$0xff] }
 0x3e3   : > { %15996 = vmatmul.mubr.msk.f32.gmra.mrb[86].mxu0 %vm4564_vm10, %v20085_v51  ;;  %16604 = vmatprep.mubr.msk.f32.mxu1 %vm460_vm1, %v19781_v43  ;;  %v13438_v43 = vld [vmem:[%s21906_s6 + $0xb8] sm:$0xf]  ;;  %v22177_v51 = vld [vmem:[#allocation16_spill] sm:$0xff] }
 0x3e4   : > { %15998 = vmatprep.mubr.msk.f32.mxu0 %vm4564_vm10, %v20089_v7  ;;  %v6193_v7 = vld [vmem:[#allocation3 + $0x110] sm:$0xff] }
 0x3e6   : > { %16605 = vmatmul.mubr.msk.f32.gmra.mrb[40].mxu1 %vm460_vm1, %v19797_v3  ;;  %v6178_v3 = vld [vmem:[#allocation3 + $0x28] sm:$0xff] }
 0x3e7   : > { %15999 = vmatmul.mubr.msk.f32.gmra.mrb[88].mxu0 %vm4564_vm10, %v20103_v26  ;;  %16607 = vmatprep.mubr.msk.f32.mxu1 %vm460_vm1, %v19801_v56  ;;  %v16830_v56 = vpack.c.bf16 %v13438_v43, %v13437_v42  ;;  %v6195_v26 = vld [vmem:[#allocation3 + $0x130] sm:$0xff]  ;;  %v6204_v42 = vld [vmem:[#allocation3 + $0x1c8] sm:$0xff] }
 0x3e8   : > { %16001 = vmatprep.mubr.msk.f32.mxu0 %vm4564_vm10, %v20107_v38  ;;  %v6191_v38 = vld [vmem:[#allocation3 + $0xf0] sm:$0xff] }
 0x3e9   : > { %v22185_v43 = vld [vmem:[#allocation24_spill] sm:$0xff] }
 0x3ea   : > { %16608 = vmatmul.mubr.msk.f32.gmra.mrb[42].mxu1 %vm460_vm1, %v19815_v57  ;;  %v6179_v57 = vld [vmem:[#allocation3 + $0x30] sm:$0xff] }
 0x3eb   : > { %16002 = vmatmul.mubr.msk.f32.gmra.mrb[90].mxu0 %vm4564_vm10, %v20121_v0  ;;  %16610 = vmatprep.mubr.msk.f32.mxu1 %vm460_vm1, %v19818_v59  ;;  %v13472_v59 = vld [vmem:[%s21906_s6 + $0xc0] sm:$0xff]  ;;  %v6194_v0 = vld [vmem:[#allocation3 + $0x128] sm:$0xff] }
 0x3ec   : > { %16004 = vmatprep.mubr.msk.f32.mxu0 %vm4564_vm10, %v20125_v8  ;;  %v22173_v8 = vld [vmem:[#allocation12_spill] sm:$0xff] }
 0x3ee   : > { %16611 = vmatmul.mubr.msk.f32.gmra.mrb[44].mxu1 %vm460_vm1, %v19829_v13  ;;  %v13473_v13 = vld [vmem:[%s21906_s6 + $0xc8] sm:$0xff] }
 0x3ef   : > { %16005 = vmatmul.mubr.msk.f32.gmra.mrb[92].mxu0 %vm4564_vm10, %v20139_v37  ;;  %16613 = vmatprep.mubr.msk.f32.mxu1 %vm460_vm1, %v19832_v27  ;;  %v6180_v27 = vld [vmem:[#allocation3 + $0x48] sm:$0xff] }
 0x3f0   : > { %16007 = vmatprep.mubr.msk.f32.mxu0 %vm4564_vm10, %v5815_v20  ;;  %v6196_v37 = vld [vmem:[#allocation3 + $0x148] sm:$0xff] }
 0x3f1   : > { %v22184_v20 = vld [vmem:[#allocation23_spill] sm:$0xff] }
 0x3f2   : > { %16614 = vmatmul.mubr.msk.f32.gmra.mrb[46].mxu1 %vm460_vm1, %v19847_v39  ;;  %v20660_v39 = vpack.c.bf16 %v13473_v13, %v13472_v59  ;;  %v22187_v59 = vld [vmem:[#allocation26_spill] sm:$0xff]  ;;  %v22188_v13 = vld [vmem:[#allocation27_spill] sm:$0xff] }
 0x3f3   : > { %16008 = vmatmul.mubr.msk.f32.gmra.mrb[94].mxu0 %vm4564_vm10, %v5816_v35  ;;  %16616 = vmatprep.mubr.msk.f32.mxu1 %vm460_vm1, %v19851_v36  ;;  %v6181_v36 = vld [vmem:[#allocation3 + $0x50] sm:$0xff] }
 0x3f4   : > { %16018 = vmatprep.mubr.msk.f32.mxu0 %vm4564_vm10, %v6178_v3  ;;  %v6203_v35 = vld [vmem:[#allocation3 + $0x1b0] sm:$0xff]  ;;  %v22186_v3 = vld [vmem:[#allocation25_spill] sm:$0xff] }
 0x3f6   : > { %16617 = vmatmul.mubr.msk.f32.gmra.mrb[48].mxu1 %vm460_vm1, %v19867_v17  ;;  %v6182_v17 = vld [vmem:[#allocation3 + $0x68] sm:$0xff] }
 0x3f7   : > { %16019 = vmatmul.mubr.msk.f32.vlgmr.msra.gmra.mrb[64].mxu0 %vm4564_vm10, %v6179_v57  ;;  %16619 = vmatprep.mubr.msk.f32.mxu1 %vm460_vm1, %v19873_v14  ;;  %v6183_v14 = vld [vmem:[#allocation3 + $0x70] sm:$0xff]  ;;  %v6206_v57 = vld [vmem:[#allocation3 + $0x1e8] sm:$0xff] }
 0x3f8   : > { %16829 = vmatpush3.bf16.msra.mxu0 %v20487_v50  ;;  %16021 = vmatprep.mubr.msk.f32.mxu0 %vm4564_vm10, %v6180_v27  ;;  %v22180_v50 = vld [vmem:[#allocation19_spill] sm:$0xff]  ;;  %v6207_v27 = vld [vmem:[#allocation3 + $0x1f0] sm:$0xff] }
 0x3f9   : > { %16832 = vmatprep.subr.msk.bf16.mxu0 %vm19121_vm9, %v16830_v56 }
 0x3fa   : > { %16620 = vmatmul.mubr.msk.f32.gmra.mrb[50].mxu1 %vm460_vm1, %v19890_v45  ;;  %v6184_v45 = vld [vmem:[#allocation3 + $0x88] sm:$0xff] }
 0x3fb   : > { %16022 = vmatmul.mubr.msk.f32.gmra.mrb[66].mxu0 %vm4564_vm10, %v6181_v36  ;;  %16622 = vmatprep.mubr.msk.f32.mxu1 %vm460_vm1, %v19895_v5  ;;  %v6185_v5 = vld [vmem:[#allocation3 + $0x90] sm:$0xff]  ;;  %v6208_v36 = vld [vmem:[#allocation3 + $0x208] sm:$0xff] }
 0x3fc   : > { %16024 = vmatprep.mubr.msk.f32.mxu0 %vm4564_vm10, %v6182_v17  ;;  %16835 = vmatpush3.bf16.msk.msra.mxu0 %vm19121_vm9, %v16830_v56  ;;  %v6205_v56 = vld [vmem:[#allocation3 + $0x1d0] sm:$0xff] }
 0x3fd   : > { %16837 = vmatprep.subr.bf16.mxu0 %v20660_v39  ;;  %v22189_v17 = vld [vmem:[#allocation28_spill] sm:$0xff] }
 0x3fe   : > { %16623 = vmatmul.mubr.msk.f32.gmra.mrb[52].mxu1 %vm460_vm1, %v19911_v22  ;;  %v22170_v22 = vld [vmem:[#allocation33_spill] sm:$0xff] }
 0x3ff   : > { %16025 = vmatmul.mubr.msk.f32.gmra.mrb[68].mxu0 %vm4564_vm10, %v6183_v14  ;;  %16625 = vmatprep.mubr.msk.f32.mxu1 %vm460_vm1, %v19916_v15  ;;  %v6188_v15 = vld [vmem:[#allocation3 + $0xc8] sm:$0xff]  ;;  %v22190_v14 = vld [vmem:[#allocation29_spill] sm:$0xff] }
 0x400   : > { %16027 = vmatprep.mubr.msk.f32.mxu0 %vm4564_vm10, %v6184_v45  ;;  %v6209_v45 = vld [vmem:[#allocation3 + $0x210] sm:$0xff] }
 0x402   : > { %16626 = vmatmul.mubr.msk.f32.gmra.mrb[54].mxu1 %vm460_vm1, %v19929_v11  ;;  %v22172_v11 = vld [vmem:[#allocation11_spill] sm:$0xff] }
 0x403   : > { %16028 = vmatmul.mubr.msk.f32.gmra.mrb[70].mxu0 %vm4564_vm10, %v6185_v5  ;;  %16628 = vmatprep.mubr.msk.f32.mxu1 %vm460_vm1, %v22169_v41  ;;  %v13474_v5 = vld [vmem:[%s21906_s6 + $0xd0] sm:$0xff]  ;;  %v22191_v41 = vld [vmem:[#allocation30_spill] sm:$0xff] }
 0x404   : > { %16030 = vmatprep.mubr.msk.f32.mxu0 %vm4564_vm10, %v6186_v48  ;;  %v13475_v48 = vld [vmem:[%s21906_s6 + $0xd8] sm:$0xf] }
 0x406   : > { %16629 = vmatmul.mubr.msk.f32.gmra.mrb[56].mxu1 %vm460_vm1, %v22170_v22  ;;  %v16840_v22 = vpack.c.bf16 %v13475_v48, %v13474_v5  ;;  %v22235_v5 = vld [vmem:[#allocation75_spill] sm:$0xff]  ;;  %v22236_v48 = vld [vmem:[#allocation77_spill] sm:$0xff] }
 0x407   : > { %16031 = vmatmul.mubr.msk.f32.gmra.mrb[72].mxu0 %vm4564_vm10, %v6187_v62  ;;  %16631 = vmatprep.mubr.msk.f32.mxu1 %vm460_vm1, %v22171_v31  ;;  %v13509_v62 = vld [vmem:[%s21906_s6 + $0xe0] sm:$0xff] }
 0x408   : > { %16033 = vmatprep.mubr.msk.f32.mxu0 %vm4564_vm10, %v6188_v15  ;;  %v13510_v15 = vld [vmem:[%s21906_s6 + $0xe8] sm:$0xff]  ;;  %v22192_v31 = vld [vmem:[#allocation34_spill] sm:$0xff] }
 0x40a   : > { %16632 = vmatmul.mubr.msk.f32.gmra.mrb[58].mxu1 %vm460_vm1, %v22172_v11  ;;  %v22193_v11 = vld [vmem:[#allocation31_spill] sm:$0xff] }
 0x40b   : > { %16034 = vmatmul.mubr.msk.f32.gmra.mrb[74].mxu0 %vm4564_vm10, %v6189_v46  ;;  %16634 = vmatprep.mubr.msk.f32.mxu1 %vm460_vm1, %v22173_v8  ;;  %v22195_v46 = vld [vmem:[#allocation36_spill] sm:$0xff]  ;;  %v22197_v8 = vld [vmem:[#allocation37_spill] sm:$0xff] }
 0x40c   : > { %16036 = vmatprep.mubr.msk.f32.mxu0 %vm4564_vm10, %v6190_v19  ;;  %v22196_v19 = vld [vmem:[#allocation38_spill] sm:$0xff] }
 0x40e   : > { %16635 = vmatmul.mubr.msk.f32.gmra.mrb[60].mxu1 %vm460_vm1, %v22174_v1  ;;  %v22200_v1 = vld [vmem:[#allocation42_spill] sm:$0xff] }
 0x40f   : > { %16037 = vmatmul.mubr.msk.f32.gmra.mrb[76].mxu0 %vm4564_vm10, %v6191_v38  ;;  %16637 = vmatprep.mubr.msk.f32.mxu1 %vm460_vm1, %v13914_v12  ;;  %v22198_v12 = vld [vmem:[#allocation39_spill] sm:$0xff]  ;;  %v22201_v38 = vld [vmem:[#allocation41_spill] sm:$0xff] }
 0x410   : > { %16039 = vmatprep.mubr.msk.f32.mxu0 %vm4564_vm10, %v6192_v18  ;;  %v22202_v18 = vld [vmem:[#allocation43_spill] sm:$0xff] }
 0x412   : > { %16638 = vmatmul.mubr.msk.f32.gmra.mrb[62].mxu1 %vm460_vm1, %v13915_v10  ;;  %v22203_v10 = vld [vmem:[#allocation44_spill] sm:$0xff] }
 0x413   : > { %16040 = vmatmul.mubr.msk.f32.gmra.mrb[78].mxu0 %vm4564_vm10, %v6193_v7  ;;  %16642 = vmatprep.mubr.msk.f32.mxu1 %vm460_vm1, %v22175_v60  ;;  %v22204_v7 = vld [vmem:[#allocation46_spill] sm:$0xff]  ;;  %v22206_v60 = vld [vmem:[#allocation47_spill] sm:$0xff] }
 0x414   : > { %16042 = vmatprep.mubr.msk.f32.mxu0 %vm4564_vm10, %v6194_v0  ;;  %v22205_v0 = vld [vmem:[#allocation45_spill] sm:$0xff] }
 0x416   : > { %16643 = vmatmul.mubr.msk.f32.vlgmr.msra.gmra.mrb[32].mxu1 %vm460_vm1, %v22176_v58  ;;  %v22207_v58 = vld [vmem:[#allocation48_spill] sm:$0xff] }
 0x417   : > { %16043 = vmatmul.mubr.msk.f32.gmra.mrb[80].mxu0 %vm4564_vm10, %v6195_v26  ;;  %16645 = vmatprep.mubr.msk.f32.mxu1 %vm460_vm1, %v22177_v51  ;;  %v22208_v26 = vld [vmem:[#allocation50_spill] sm:$0xff]  ;;  %v22210_v51 = vld [vmem:[#allocation51_spill] sm:$0xff] }
 0x418   : > { %16045 = vmatprep.mubr.msk.f32.mxu0 %vm4564_vm10, %v6196_v37  ;;  %16691 = vmatpush3.msk.msra.mxu1 %vm557_vm0, %v20575_v6  ;;  %v6201_v6 = vld [vmem:[#allocation3 + $0x190] sm:$0xff]  ;;  %v22209_v37 = vld [vmem:[#allocation49_spill] sm:$0xff] }
 0x41a   : > { %16646 = vmatmul.mubr.msk.f32.gmra.mrb[34].mxu1 %vm460_vm1, %v22178_v24  ;;  %v22211_v24 = vld [vmem:[#allocation52_spill] sm:$0xff] }
 0x41b   : > { %16046 = vmatmul.mubr.msk.f32.gmra.mrb[82].mxu0 %vm4564_vm10, %v6197_v63  ;;  %16648 = vmatprep.mubr.msk.f32.mxu1 %vm460_vm1, %v22179_v30  ;;  %v22212_v63 = vld [vmem:[#allocation54_spill] sm:$0xff]  ;;  %v22214_v30 = vld [vmem:[#allocation55_spill] sm:$0xff] }
 0x41c   : > { %16048 = vmatprep.mubr.msk.f32.mxu0 %vm4564_vm10, %v6198_v29  ;;  %v22213_v29 = vld [vmem:[#allocation53_spill] sm:$0xff] }
 0x41e   : > { %16649 = vmatmul.mubr.msk.f32.gmra.mrb[36].mxu1 %vm460_vm1, %v22180_v50  ;;  %v13980_v50 = vld [vmem:[%s17956_s12 + $0x199] sm:$0xff] }
 0x41f   : > { %16049 = vmatmul.mubr.msk.f32.gmra.mrb[84].mxu0 %vm4564_vm10, %v6199_v28  ;;  %16651 = vmatprep.mubr.msk.f32.mxu1 %vm460_vm1, %v22181_v47  ;;  %v22215_v28 = vld [vmem:[#allocation56_spill] sm:$0xff]  ;;  %v13981_v47 = vld [vmem:[%s17956_s12 + $0x1a1] sm:$0xff] }
 0x420   : > { %16051 = vmatprep.mubr.msk.f32.mxu0 %vm4564_vm10, %v6200_v2  ;;  %v22216_v2 = vld [vmem:[#allocation57_spill] sm:$0xff] }
 0x422   : > { %16652 = vmatmul.mubr.msk.f32.gmra.mrb[38].mxu1 %vm460_vm1, %v22182_v52  ;;  %v22217_v52 = vld [vmem:[#allocation58_spill] sm:$0xff] }
 0x423   : > { %16052 = vmatmul.mubr.msk.f32.gmra.mrb[86].mxu0 %vm4564_vm10, %v6201_v6  ;;  %16654 = vmatprep.mubr.msk.f32.mxu1 %vm460_vm1, %v22183_v34  ;;  %v22218_v6 = vld [vmem:[#allocation60_spill] sm:$0xff]  ;;  %v22220_v34 = vld [vmem:[#allocation61_spill] sm:$0xff] }
 0x424   : > { %16054 = vmatprep.mubr.msk.f32.mxu0 %vm4564_vm10, %v6202_v44  ;;  %v22219_v44 = vld [vmem:[#allocation59_spill] sm:$0xff] }
 0x426   : > { %16655 = vmatmul.mubr.msk.f32.gmra.mrb[40].mxu1 %vm460_vm1, %v22184_v20  ;;  %v22221_v20 = vld [vmem:[#allocation62_spill] sm:$0xff] }
 0x427   : > { %16055 = vmatmul.mubr.msk.f32.gmra.mrb[88].mxu0 %vm4564_vm10, %v6203_v35  ;;  %16657 = vmatprep.mubr.msk.f32.mxu1 %vm460_vm1, %v22185_v43  ;;  %v22222_v35 = vld [vmem:[#allocation64_spill] sm:$0xff]  ;;  %v22224_v43 = vld [vmem:[#allocation65_spill] sm:$0xff] }
 0x428   : > { %16057 = vmatprep.mubr.msk.f32.mxu0 %vm4564_vm10, %v6204_v42  ;;  %v22223_v42 = vld [vmem:[#allocation63_spill] sm:$0xff] }
 0x42a   : > { %16658 = vmatmul.mubr.msk.f32.gmra.mrb[42].mxu1 %vm460_vm1, %v22186_v3  ;;  %v22225_v3 = vld [vmem:[#allocation66_spill] sm:$0xff] }
 0x42b   : > { %16058 = vmatmul.mubr.msk.f32.gmra.mrb[90].mxu0 %vm4564_vm10, %v6205_v56  ;;  %16660 = vmatprep.mubr.msk.f32.mxu1 %vm460_vm1, %v22187_v59  ;;  %v22226_v56 = vld [vmem:[#allocation68_spill] sm:$0xff]  ;;  %v22228_v59 = vld [vmem:[#allocation69_spill] sm:$0xff] }
 0x42c   : > { %16060 = vmatprep.mubr.msk.f32.mxu0 %vm4564_vm10, %v6206_v57  ;;  %v22227_v57 = vld [vmem:[#allocation67_spill] sm:$0xff] }
 0x42e   : > { %16661 = vmatmul.mubr.msk.f32.gmra.mrb[44].mxu1 %vm460_vm1, %v22188_v13  ;;  %v22229_v13 = vld [vmem:[#allocation70_spill] sm:$0xff] }
 0x42f   : > { %16061 = vmatmul.mubr.msk.f32.gmra.mrb[92].mxu0 %vm4564_vm10, %v6207_v27  ;;  %16663 = vmatprep.mubr.msk.f32.mxu1 %vm460_vm1, %v22189_v17  ;;  %v22230_v27 = vld [vmem:[#allocation72_spill] sm:$0xff]  ;;  %v22232_v17 = vld [vmem:[#allocation73_spill] sm:$0xff] }
 0x430   : > { %16063 = vmatprep.mubr.msk.f32.mxu0 %vm4564_vm10, %v6208_v36  ;;  %v22231_v36 = vld [vmem:[#allocation71_spill] sm:$0xff] }
 0x432   : > { %16664 = vmatmul.mubr.msk.f32.gmra.mrb[46].mxu1 %vm460_vm1, %v22190_v14  ;;  %v22233_v14 = vld [vmem:[#allocation74_spill] sm:$0xff] }
 0x433   : > { %16064 = vmatmul.mubr.msk.f32.gmra.mrb[94].mxu0 %vm4564_vm10, %v6209_v45  ;;  %16666 = vmatprep.mubr.msk.f32.mxu1 %vm460_vm1, %v20156_v53  ;;  %v22194_v53 = vld [vmem:[#allocation35_spill] sm:$0xff]  ;;  %v22234_v45 = vld [vmem:[#allocation76_spill] sm:$0xff] }
 0x434   : > { %16074 = vmatprep.mubr.msk.f32.mxu0 %vm4564_vm10, %v22191_v41  ;;  %v22237_v41 = vld [vmem:[#allocation78_spill] sm:$0xff] }
 0x436   : > { %16667 = vmatmul.mubr.msk.f32.gmra.mrb[48].mxu1 %vm460_vm1, %v20172_v33  ;;  %v20781_v33 = vpack.c.bf16 %v13510_v15, %v13509_v62  ;;  %v22239_v62 = vld [vmem:[#allocation79_spill] sm:$0xff]  ;;  %v22240_v15 = vld [vmem:[#allocation81_spill] sm:$0xff] }
 0x437   : > { %16075 = vmatmul.mubr.msk.f32.vlgmr.msra.gmra.mrb[64].mxu0 %vm4564_vm10, %v22192_v31  ;;  %16669 = vmatprep.mubr.msk.f32.mxu1 %vm460_vm1, %v22193_v11  ;;  %v22241_v31 = vld [vmem:[#allocation82_spill] sm:$0xff]  ;;  %v22242_v11 = vld [vmem:[#allocation84_spill] sm:$0xff] }
 0x438   : > { %16839 = vmatpush3.bf16.msra.mxu0 %v20660_v39  ;;  %16077 = vmatprep.mubr.msk.f32.mxu0 %vm4564_vm10, %v22194_v53  ;;  %v22199_v39 = vld [vmem:[#allocation40_spill] sm:$0xff]  ;;  %v22243_v53 = vld [vmem:[#allocation83_spill] sm:$0xff] }
 0x439   : > { %16842 = vmatprep.subr.msk.bf16.mxu0 %vm19121_vm9, %v16840_v22 }
 0x43a   : > { %16670 = vmatmul.mubr.msk.f32.gmra.mrb[50].mxu1 %vm460_vm1, %v22195_v46  ;;  %v22245_v46 = vld [vmem:[#allocation85_spill] sm:$0xff] }
 0x43b   : > { %16078 = vmatmul.mubr.msk.f32.gmra.mrb[66].mxu0 %vm4564_vm10, %v22196_v19  ;;  %16672 = vmatprep.mubr.msk.f32.mxu1 %vm460_vm1, %v22197_v8  ;;  %v14083_v19 = vld [vmem:[%s20893_s14 + $0x19] sm:$0xff] }
 0x43c   : > { %16080 = vmatprep.mubr.msk.f32.mxu0 %vm4564_vm10, %v22198_v12  ;;  %16845 = vmatpush3.bf16.msk.msra.mxu0 %vm19121_vm9, %v16840_v22  ;;  %v22238_v22 = vld [vmem:[#allocation80_spill] sm:$0xff]  ;;  %v11896_v8 = vld [vmem:[%s20893_s14] sm:$0xff] }
 0x43d   : > { %16847 = vmatprep.subr.bf16.mxu0 %v20781_v33  ;;  %v11928_v12 = vmax.f32 %v14083_v19, %v11896_v8 }
 0x43e   : > { %16673 = vmatmul.mubr.msk.f32.gmra.mrb[52].mxu1 %vm460_vm1, %v22199_v39  ;;  %v22246_v39 = vld [vmem:[#allocation86_spill] sm:$0xff] }
 0x43f   : > { %16081 = vmatmul.mubr.msk.f32.gmra.mrb[68].mxu0 %vm4564_vm10, %v22200_v1  ;;  %16675 = vmatprep.mubr.msk.f32.mxu1 %vm460_vm1, %v22201_v38  ;;  %v11960_v1 = vld [vmem:[%s20893_s14 + $0x1] sm:$0xff]  ;;  %v22247_v38 = vld [vmem:[#allocation88_spill] sm:$0xff] }
 0x440   : > { %16083 = vmatprep.mubr.msk.f32.mxu0 %vm4564_vm10, %v22202_v18  ;;  %v6601_v18 = vld [vmem:[#allocation3 + $0x209] sm:$0xff] }
 0x442   : > { %16676 = vmatmul.mubr.msk.f32.gmra.mrb[54].mxu1 %vm460_vm1, %v22203_v10  ;;  %v22248_v10 = vld [vmem:[#allocation87_spill] sm:$0xff] }
 0x443   : > { %16084 = vmatmul.mubr.msk.f32.gmra.mrb[70].mxu0 %vm4564_vm10, %v22204_v7  ;;  %16678 = vmatprep.mubr.msk.f32.mxu1 %vm460_vm1, %v22205_v0  ;;  %v11992_v7 = vmax.f32 %v11928_v12, %v11960_v1  ;;  %v12024_v0 = vld [vmem:[%s20893_s14 + $0x2] sm:$0xff]  ;;  %v14245_v1 = vld [vmem:[%s20893_s14 + $0x4a] sm:$0xff] }
 0x444   : > { %16086 = vmatprep.mubr.msk.f32.mxu0 %vm4564_vm10, %v22206_v60  ;;  %v6602_v60 = vld [vmem:[#allocation3 + $0x211] sm:$0xff] }
 0x446   : > { %16679 = vmatmul.mubr.msk.f32.gmra.mrb[56].mxu1 %vm460_vm1, %v22207_v58  ;;  %v12056_v58 = vmax.f32 %v11992_v7, %v12024_v0  ;;  %v6970_v0 = vld [vmem:[#allocation3 + $0x8f] sm:$0xff] }
 0x447   : > { %16087 = vmatmul.mubr.msk.f32.gmra.mrb[72].mxu0 %vm4564_vm10, %v22208_v26  ;;  %16681 = vmatprep.mubr.msk.f32.mxu1 %vm460_vm1, %v22209_v37  ;;  %v14115_v26 = vld [vmem:[%s20893_s14 + $0x18] sm:$0xff] }
 0x448   : > { %16089 = vmatprep.mubr.msk.f32.mxu0 %vm4564_vm10, %v22210_v51  ;;  %v14211_v37 = vld [vmem:[%s20893_s14 + $0x31] sm:$0xff] }
 0x449   : > { %v13511_v51 = vld [vmem:[%s21906_s6 + $0xf0] sm:$0xff] }
 0x44a   : > { %16682 = vmatmul.mubr.msk.f32.gmra.mrb[58].mxu1 %vm460_vm1, %v22211_v24  ;;  %v13512_v24 = vld [vmem:[%s21906_s6 + $0xf8] sm:$0xf] }
 0x44b   : > { %16090 = vmatmul.mubr.msk.f32.gmra.mrb[74].mxu0 %vm4564_vm10, %v22212_v63  ;;  %16684 = vmatprep.mubr.msk.f32.mxu1 %vm460_vm1, %v22213_v29  ;;  %v14147_v63 = vld [vmem:[%s20893_s14 + $0x1a] sm:$0xff]  ;;  %v6965_v29 = vld [vmem:[#allocation3 + $0x47] sm:$0xff] }
 0x44c   : > { %16092 = vmatprep.mubr.msk.f32.mxu0 %vm4564_vm10, %v22214_v30  ;;  %v12120_v30 = vmax.f32 %v12056_v58, %v14115_v26 }
 0x44e   : > { %16685 = vmatmul.mubr.msk.f32.gmra.mrb[60].mxu1 %vm460_vm1, %v22215_v28  ;;  %v11897_v28 = vld [vmem:[%s20893_s14 + $0x8] sm:$0xff] }
 0x44f   : > { %16093 = vmatmul.mubr.msk.f32.gmra.mrb[76].mxu0 %vm4564_vm10, %v22216_v2  ;;  %16687 = vmatprep.mubr.msk.f32.mxu1 %vm460_vm1, %v13980_v50  ;;  %v14084_v50 = vld [vmem:[%s20893_s14 + $0x21] sm:$0xff]  ;;  %v11961_v2 = vld [vmem:[%s20893_s14 + $0x9] sm:$0xff] }
 0x450   : > { %16095 = vmatprep.mubr.msk.f32.mxu0 %vm4564_vm10, %v22217_v52  ;;  %v16850_v52 = vpack.c.bf16 %v13512_v24, %v13511_v51  ;;  %v20986_v51 = vld [vmem:[%s20893_s14 + $0x79] sm:$0xff]  ;;  %v6971_v24 = vld [vmem:[#allocation3 + $0xa7] sm:$0xff] }
 0x452   : > { %16688 = vmatmul.mubr.msk.f32.gmra.mrb[62].mxu1 %vm460_vm1, %v13981_v47  ;;  %v11930_v47 = vmax.f32 %v14211_v37, %v14115_v26 }
 0x453   : > { %16096 = vmatmul.mubr.msk.f32.gmra.mrb[78].mxu0 %vm4564_vm10, %v22218_v6  ;;  %16692 = vmatprep.mubr.msk.f32.mxu1 %vm460_vm1, %v22219_v44  ;;  %v13546_v6 = vld [vmem:[%s21906_s6 + $0x100] sm:$0xff]  ;;  %v12184_v44 = vmax.f32 %v12120_v30, %v14147_v63 }
 0x454   : > { %16098 = vmatprep.mubr.msk.f32.mxu0 %vm4564_vm10, %v22220_v34  ;;  %v14179_v34 = vld [vmem:[%s20893_s14 + $0x30] sm:$0xff] }
 0x456   : > { %16693 = vmatmul.mubr.msk.f32.vlgmr.msra.gmra.mrb[32].mxu1 %vm460_vm1, %v22221_v20  ;;  %v11929_v20 = vmax.f32 %v14084_v50, %v11897_v28 }
 0x457   : > { %16099 = vmatmul.mubr.msk.f32.gmra.mrb[80].mxu0 %vm4564_vm10, %v22222_v35  ;;  %16695 = vmatprep.mubr.msk.f32.mxu1 %vm460_vm1, %v22223_v42  ;;  %v13547_v35 = vld [vmem:[%s21906_s6 + $0x108] sm:$0xff] }
 0x458   : > { %16101 = vmatprep.mubr.msk.f32.mxu0 %vm4564_vm10, %v22224_v43  ;;  %v12025_v42 = vld [vmem:[%s20893_s14 + $0xa] sm:$0xff]  ;;  %v20938_v43 = vld [vmem:[%s20893_s14 + $0x39] sm:$0xff] }
 0x45a   : > { %16696 = vmatmul.mubr.msk.f32.gmra.mrb[34].mxu1 %vm460_vm1, %v22225_v3  ;;  %v11994_v3 = vmax.f32 %v11930_v47, %v14083_v19  ;;  %v6972_v47 = vld [vmem:[#allocation3 + $0xaf] sm:$0xff] }
 0x45b   : > { %16102 = vmatmul.mubr.msk.f32.gmra.mrb[82].mxu0 %vm4564_vm10, %v22226_v56  ;;  %16698 = vmatprep.mubr.msk.f32.mxu1 %vm460_vm1, %v22227_v57  ;;  %v6967_v56 = vld [vmem:[#allocation3 + $0x67] sm:$0xff]  ;;  %v12249_v57 = vmax.f32 %v12184_v44, %v14179_v34 }
 0x45c   : > { %16104 = vmatprep.mubr.msk.f32.mxu0 %vm4564_vm10, %v22228_v59  ;;  %v11993_v59 = vmax.f32 %v11929_v20, %v11961_v2 }
 0x45e   : > { %16699 = vmatmul.mubr.msk.f32.gmra.mrb[36].mxu1 %vm460_vm1, %v22229_v13  ;;  %v6968_v13 = vld [vmem:[#allocation3 + $0x6f] sm:$0xff] }
 0x45f   : > { %16105 = vmatmul.mubr.msk.f32.gmra.mrb[84].mxu0 %vm4564_vm10, %v22230_v27  ;;  %16701 = vmatprep.mubr.msk.f32.mxu1 %vm460_vm1, %v22231_v36  ;;  %v12058_v27 = vmax.f32 %v11994_v3, %v14147_v63  ;;  %v14247_v3 = vld [vmem:[%s20893_s14 + $0x62] sm:$0xff] }
 0x460   : > { %16107 = vmatprep.mubr.msk.f32.mxu0 %vm4564_vm10, %v22232_v17 }
 0x462   : > { %16702 = vmatmul.mubr.msk.f32.gmra.mrb[38].mxu1 %vm460_vm1, %v22233_v14  ;;  %v12313_v14 = vmax.f32 %v12249_v57, %v14211_v37 }
 0x463   : > { %16108 = vmatmul.mubr.msk.f32.gmra.mrb[86].mxu0 %vm4564_vm10, %v22234_v45  ;;  %16704 = vmatprep.mubr.msk.f32.mxu1 %vm460_vm1, %v22235_v5  ;;  %v14243_v45 = vld [vmem:[%s20893_s14 + $0x32] sm:$0xff]  ;;  %v12057_v5 = vmax.f32 %v11993_v59, %v12025_v42  ;;  %v21006_v59 = vld [vmem:[%s20893_s14 + $0x81] sm:$0xff] }
 0x464   : > { %16110 = vmatprep.mubr.msk.f32.mxu0 %vm4564_vm10, %v22236_v48  ;;  %v14148_v48 = vld [vmem:[%s20893_s14 + $0x22] sm:$0xff] }
 0x466   : > { %16705 = vmatmul.mubr.msk.f32.gmra.mrb[40].mxu1 %vm460_vm1, %v22237_v41  ;;  %v12122_v41 = vmax.f32 %v12058_v27, %v14179_v34 }
 0x467   : > { %16111 = vmatmul.mubr.msk.f32.gmra.mrb[88].mxu0 %vm4564_vm10, %v22238_v22  ;;  %16707 = vmatprep.mubr.msk.f32.mxu1 %vm460_vm1, %v22239_v62  ;;  %v14181_v22 = vld [vmem:[%s20893_s14 + $0x48] sm:$0xff] }
 0x468   : > { %16113 = vmatprep.mubr.msk.f32.mxu0 %vm4564_vm10, %v22240_v15  ;;  %v20961_v15 = vld [vmem:[%s20893_s14 + $0x51] sm:$0xff]  ;;  %v12186_v8 = vmax.f32 %v12122_v41, %v14243_v45 }
 0x46a   : > { %16708 = vmatmul.mubr.msk.f32.gmra.mrb[42].mxu1 %vm460_vm1, %v22241_v31 }
 0x46b   : > { %16114 = vmatmul.mubr.msk.f32.gmra.mrb[90].mxu0 %vm4564_vm10, %v22242_v11  ;;  %16710 = vmatprep.mubr.msk.f32.mxu1 %vm460_vm1, %v22243_v53  ;;  %v20964_v11 = vld [vmem:[%s20893_s14 + $0x61] sm:$0xff] }
 0x46c   : > { %16116 = vmatprep.mubr.msk.f32.mxu0 %vm4564_vm10, %v22245_v46  ;;  %v6969_v53 = vld [vmem:[#allocation3 + $0x87] sm:$0xff]  ;;  %v12377_v46 = vmax.f32 %v12313_v14, %v14243_v45  ;;  %v11934_v7 = vmax.f32 %v20964_v11, %v14181_v22 }
 0x46e   : > { %16711 = vmatmul.mubr.msk.f32.gmra.mrb[44].mxu1 %vm460_vm1, %v22246_v39  ;;  %12569 = vrot.lane.b32.xlu0 %v12377_v46, %s17810_s30 }
 0x46f   : > { %16117 = vmatmul.mubr.msk.f32.gmra.mrb[92].mxu0 %vm4564_vm10, %v22247_v38  ;;  %16713 = vmatprep.mubr.msk.f32.mxu1 %vm460_vm1, %v22248_v10  ;;  %v14182_v38 = vld [vmem:[%s20893_s14 + $0x50] sm:$0xff] }
 0x470   : > { %16119 = vmatprep.mubr.msk.f32.mxu0 %vm4564_vm10, %v6601_v18  ;;  %v20979_v10 = vld [vmem:[%s20893_s14 + $0x69] sm:$0xff] }
 0x471   : > { %v11935_v2 = vmax.f32 %v20979_v10, %v14182_v38 }
 0x472   : > { %16714 = vmatmul.mubr.msk.f32.gmra.mrb[46].mxu1 %vm460_vm1, %v20457_v23  ;;  %v6966_v23 = vld [vmem:[#allocation3 + $0x4f] sm:$0xff] }
 0x473   : > { %16120 = vmatmul.mubr.msk.f32.gmra.mrb[94].mxu0 %vm4564_vm10, %v6602_v60  ;;  %16716 = vmatprep.mubr.msk.f32.mxu1 %vm460_vm1, %v20462_v16  ;;  %v14116_v16 = vld [vmem:[%s20893_s14 + $0x20] sm:$0xff]  ;;  %v12251_v60 = vmax.f32 %v12186_v8, %v14181_v22  ;;  %v11999_v57 = vmax.f32 %v11935_v2, %v20961_v15 }
 0x474   : > { %16130 = vmatprep.mubr.msk.f32.mxu0 %vm4564_vm10, %v6965_v29  ;;  %v11931_v36 = vmax.f32 %v20938_v43, %v14116_v16  ;;  %v12121_v19 = vmax.f32 %v12057_v5, %v14116_v16  ;;  %v14186_v8 = vld [vmem:[%s20893_s14 + $0x80] sm:$0xff] }
 0x476   : > { %16717 = vmatmul.mubr.msk.f32.gmra.mrb[48].mxu1 %vm460_vm1, %v20477_v54  ;;  %v20944_v54 = vld [vmem:[%s20893_s14 + $0x49] sm:$0xff]  ;;  %v11995_v62 = vmax.f32 %v11931_v36, %v14084_v50  ;;  %v21013_v36 = vld [vmem:[%s20893_s14 + $0x91] sm:$0xff] }
 0x477   : > { %16131 = vmatmul.mubr.msk.f32.vlgmr.msra.gmra.mrb[64].mxu0 %vm4564_vm10, %v6966_v23  ;;  %16719 = vmatprep.mubr.msk.f32.mxu1 %vm460_vm1, %v20483_v55  ;;  %v11932_v17 = vmax.f32 %v20944_v54, %v14179_v34  ;;  %v20952_v55 = vpack.c.bf16 %v13547_v35, %v13546_v6  ;;  %v11998_v30 = vmax.f32 %v11934_v7, %v20944_v54  ;;  %v14246_v6 = vld [vmem:[%s20893_s14 + $0x52] sm:$0xff]  ;;  %v21036_v7 = vld [vmem:[%s20893_s14 + $0xa9] sm:$0xff] }
 0x478   : > { %16849 = vmatpush3.bf16.msra.mxu0 %v20781_v33  ;;  %16133 = vmatprep.mubr.msk.f32.mxu0 %vm4564_vm10, %v6967_v56  ;;  %v14180_v33 = vld [vmem:[%s20893_s14 + $0x38] sm:$0xff]  ;;  %v12059_v12 = vmax.f32 %v11995_v62, %v14148_v48  ;;  %v12315_v23 = vmax.f32 %v12251_v60, %v20944_v54  ;;  %v14184_v56 = vld [vmem:[%s20893_s14 + $0x68] sm:$0xff]  ;;  %v12063_v5 = vmax.f32 %v11999_v57, %v14246_v6 }
 0x479   : > { %16852 = vmatprep.subr.msk.bf16.mxu0 %vm19121_vm9, %v16850_v52  ;;  %v11996_v31 = vmax.f32 %v11932_v17, %v14211_v37  ;;  %v11933_v18 = vmax.f32 %v20961_v15, %v14180_v33  ;;  %v14183_v37 = vld [vmem:[%s20893_s14 + $0x60] sm:$0xff]  ;;  %v12062_v34 = vmax.f32 %v11998_v30, %v14245_v1  ;;  %v14042_v17 = vld [vmem:[%s17956_s12 + $0x16a] sm:$0xff] }
 0x47a   : > { %16720 = vmatmul.mubr.msk.f32.gmra.mrb[50].mxu1 %vm460_vm1, %v20496_v4  ;;  %v14244_v4 = vld [vmem:[%s20893_s14 + $0x3a] sm:$0xff]  ;;  %v12123_v58 = vmax.f32 %v12059_v12, %v14180_v33  ;;  %v11936_v20 = vmax.f32 %v20986_v51, %v14183_v37  ;;  %v12379_v16 = vmax.f32 %v12315_v23, %v14245_v1 }
 0x47b   : > { %16134 = vmatmul.mubr.msk.f32.gmra.mrb[66].mxu0 %vm4564_vm10, %v6968_v13  ;;  %16722 = vmatprep.mubr.msk.f32.mxu1 %vm460_vm1, %v20501_v49  ;;  %v12060_v39 = vmax.f32 %v11996_v31, %v14243_v45  ;;  %v12185_v49 = vmax.f32 %v12121_v19, %v14148_v48  ;;  %v11997_v29 = vmax.f32 %v11933_v18, %v20938_v43  ;;  %v6974_v48 = vld [vmem:[#allocation3 + $0xcf] sm:$0xff]  ;;  %v21028_v12 = vld [vmem:[%s20893_s14 + $0x99] sm:$0xff]  ;;  %v21066_v57 = vld [vmem:[%s20893_s14 + $0xc1] sm:$0xff] }
 0x47c   : > { %16136 = vmatprep.mubr.msk.f32.mxu0 %vm4564_vm10, %v6969_v53  ;;  %16855 = vmatpush3.bf16.msk.msra.mxu0 %vm19121_vm9, %v16850_v52  ;;  %v12187_v50 = vmax.f32 %v12123_v58, %v14244_v4  ;;  %v6973_v52 = vld [vmem:[#allocation3 + $0xc7] sm:$0xff]  ;;  %v12126_v27 = vmax.f32 %v12062_v34, %v14183_v37  ;;  %v12000_v31 = vmax.f32 %v11936_v20, %v20964_v11  ;;  %v14187_v18 = vld [vmem:[%s20893_s14 + $0x90] sm:$0xff]  ;;  %v14188_v23 = vld [vmem:[%s20893_s14 + $0x98] sm:$0xff] }
 0x47d   : > { %16857 = vmatprep.subr.bf16.mxu0 %v20952_v55  ;;  %v12124_v26 = vmax.f32 %v12060_v39, %v14181_v22  ;;  %v12250_v63 = vmax.f32 %v12185_v49, %v14180_v33  ;;  %v12061_v44 = vmax.f32 %v11997_v29, %v14244_v4  ;;  %12573 = vrot.lane.b32.xlu0 %v12379_v16, %s17810_s30  ;;  %v6975_v33 = vld [vmem:[#allocation3 + $0xe7] sm:$0xff]  ;;  %v6976_v29 = vld [vmem:[#allocation3 + $0xef] sm:$0xff] }
 0x47e   : > { %16723 = vmatmul.mubr.msk.f32.gmra.mrb[52].mxu1 %vm460_vm1, %v20513_v61  ;;  %v14040_v61 = vld [vmem:[%s17956_s12 + $0x152] sm:$0xff]  ;;  %v12252_v35 = vmax.f32 %v12187_v50, %v14182_v38  ;;  %v14248_v22 = vld [vmem:[%s20893_s14 + $0x6a] sm:$0xff]  ;;  %v12190_v62 = vmax.f32 %v12126_v27, %v14247_v3  ;;  %v11937_v53 = vmax.f32 %v21006_v59, %v14184_v56  ;;  %v11940_v2 = vmax.f32 %v21036_v7, %v14187_v18 }
 0x47f   : > { %16137 = vmatmul.mubr.msk.f32.gmra.mrb[68].mxu0 %vm4564_vm10, %v6970_v0  ;;  %16725 = vmatprep.mubr.msk.f32.mxu1 %vm460_vm1, %v20518_v40  ;;  %v12188_v28 = vmax.f32 %v12124_v26, %v14245_v1  ;;  %v12314_v40 = vmax.f32 %v12250_v63, %v20938_v43  ;;  %v14041_v43 = vld [vmem:[%s17956_s12 + $0x15a] sm:$0xff]  ;;  %v12125_v13 = vmax.f32 %v12061_v44, %v14182_v38 }
 0x480   : > { %16139 = vmatprep.mubr.msk.f32.mxu0 %vm4564_vm10, %v6971_v24  ;;  %v12316_v14 = vmax.f32 %v12252_v35, %v20961_v15  ;;  %v14043_v15 = vld [vmem:[%s17956_s12 + $0x172] sm:$0xff]  ;;  %v14249_v1 = vld [vmem:[%s20893_s14 + $0x7a] sm:$0xff]  ;;  %v12064_v38 = vmax.f32 %v12000_v31, %v14247_v3  ;;  %v12001_v60 = vmax.f32 %v11937_v53, %v20979_v10  ;;  %v11939_v63 = vmax.f32 %v21028_v12, %v14186_v8 }
 0x481   : > { %v12253_v42 = vmax.f32 %v12188_v28, %v14183_v37  ;;  %v12378_v54 = vmax.f32 %v12314_v40, %v14244_v4  ;;  %v12189_v41 = vmax.f32 %v12125_v13, %v14246_v6  ;;  %v12127_v4 = vmax.f32 %v12063_v5, %v14184_v56  ;;  %v21049_v28 = vld [vmem:[%s20893_s14 + $0xb1] sm:$0xff]  ;;  %v14046_v44 = vld [vmem:[%s17956_s12 + $0x19a] sm:$0xff]  ;;  %v14047_v5 = vld [vmem:[%s17956_s12 + $0x1a2] sm:$0xff] }
 0x482   : > { %16726 = vmatmul.mubr.msk.f32.gmra.mrb[54].mxu1 %vm460_vm1, %v20527_v25  ;;  %v14185_v25 = vld [vmem:[%s20893_s14 + $0x78] sm:$0xff]  ;;  %v12380_v46 = vmax.f32 %v12316_v14, %v14246_v6  ;;  %v12003_v35 = vmax.f32 %v11939_v63, %v21006_v59  ;;  %v21074_v14 = vld [vmem:[%s20893_s14 + $0xc9] sm:$0xff] }
 0x483   : > { %16140 = vmatmul.mubr.msk.f32.gmra.mrb[70].mxu0 %vm4564_vm10, %v6972_v47  ;;  %16728 = vmatprep.mubr.msk.f32.mxu1 %vm460_vm1, %v14040_v61  ;;  %v12317_v45 = vmax.f32 %v12253_v42, %v20964_v11  ;;  %v11938_v39 = vmax.f32 %v21013_v36, %v14185_v25  ;;  %v12254_v11 = vmax.f32 %v12189_v41, %v14184_v56  ;;  %v14251_v6 = vld [vmem:[%s20893_s14 + $0x92] sm:$0xff]  ;;  %v14252_v13 = vld [vmem:[%s20893_s14 + $0x9a] sm:$0xff] }
 0x484   : > { %16142 = vmatprep.mubr.msk.f32.mxu0 %vm4564_vm10, %v6973_v52  ;;  %12571 = vrot.lane.b32.xlu1 %v12378_v54, %s17810_s30  ;;  %v12255_v49 = vmax.f32 %v12190_v62, %v14185_v25  ;;  %v12191_v0 = vmax.f32 %v12127_v4, %v14248_v22  ;;  %v12128_v24 = vmax.f32 %v12064_v38, %v14185_v25  ;;  %v14250_v52 = vld [vmem:[%s20893_s14 + $0x82] sm:$0xff]  ;;  %v14253_v62 = vld [vmem:[%s20893_s14 + $0xaa] sm:$0xff] }
 0x485   : > { %v12381_v19 = vmax.f32 %v12317_v45, %v14247_v3  ;;  %v12002_v58 = vmax.f32 %v11938_v39, %v20986_v51  ;;  %v12318_v26 = vmax.f32 %v12254_v11, %v20979_v10  ;;  %v12065_v61 = vmax.f32 %v12001_v60, %v14248_v22  ;;  %v6977_v10 = vld [vmem:[#allocation3 + $0x107] sm:$0xff]  ;;  %v21094_v60 = vld [vmem:[%s20893_s14 + $0xd9] sm:$0xff]  ;;  %v21104_v63 = vld [vmem:[%s20893_s14 + $0xf1] sm:$0xff] }
 0x486   : > { %16729 = vmatmul.mubr.msk.f32.gmra.mrb[56].mxu1 %vm460_vm1, %v14041_v43  ;;  %v12319_v37 = vmax.f32 %v12255_v49, %v20986_v51  ;;  %v12256_v30 = vmax.f32 %v12191_v0, %v14186_v8  ;;  %v12192_v40 = vmax.f32 %v12128_v24, %v14249_v1  ;;  %v14189_v3 = vld [vmem:[%s20893_s14 + $0xa8] sm:$0xff]  ;;  %v12004_v56 = vmax.f32 %v11940_v2, %v21013_v36  ;;  %v14191_v38 = vld [vmem:[%s20893_s14 + $0xc0] sm:$0xff] }
 0x487   : > { %16143 = vmatmul.mubr.msk.f32.gmra.mrb[72].mxu0 %vm4564_vm10, %v6974_v48  ;;  %16731 = vmatprep.mubr.msk.f32.mxu1 %vm460_vm1, %v14042_v17  ;;  %v12066_v50 = vmax.f32 %v12002_v58, %v14249_v1  ;;  %v12382_v51 = vmax.f32 %v12318_v26, %v14248_v22  ;;  %v12129_v20 = vmax.f32 %v12065_v61, %v14186_v8  ;;  %v14190_v17 = vld [vmem:[%s20893_s14 + $0xb0] sm:$0xff]  ;;  %v6979_v45 = vld [vmem:[#allocation3 + $0x127] sm:$0xff] }
 0x488   : > { %16145 = vmatprep.mubr.msk.f32.mxu0 %vm4564_vm10, %v6975_v33  ;;  %12577 = vrot.lane.b32.xlu0 %v12381_v19, %s17810_s30  ;;  %v12383_v47 = vmax.f32 %v12319_v37, %v14249_v1  ;;  %v12320_v34 = vmax.f32 %v12256_v30, %v21006_v59  ;;  %v12257_v42 = vmax.f32 %v12192_v40, %v14187_v18  ;;  %v14193_v37 = vld [vmem:[%s20893_s14 + $0xd8] sm:$0xff]  ;;  %v14256_v40 = vld [vmem:[%s20893_s14 + $0xca] sm:$0xff] }
 0x489   : > { %12575 = vrot.lane.b32.xlu1 %v12380_v46, %s17810_s30  ;;  %v12130_v16 = vmax.f32 %v12066_v50, %v14187_v18  ;;  %v11941_v43 = vmax.f32 %v21049_v28, %v14188_v23  ;;  %v12193_v59 = vmax.f32 %v12129_v20, %v14250_v52  ;;  %v12067_v25 = vmax.f32 %v12003_v35, %v14250_v52  ;;  %v6981_v46 = vld [vmem:[#allocation3 + $0x147] sm:$0xff] }
 0x48a   : > { %16732 = vmatmul.mubr.msk.f32.gmra.mrb[58].mxu1 %vm460_vm1, %v14043_v15  ;;  %v12384_v54 = vmax.f32 %v12320_v34, %v14250_v52  ;;  %v12321_v48 = vmax.f32 %v12257_v42, %v21013_v36  ;;  %v12068_v33 = vmax.f32 %v12004_v56, %v14251_v6  ;;  %v11942_v53 = vmax.f32 %v21066_v57, %v14189_v3  ;;  %v6980_v15 = vld [vmem:[#allocation3 + $0x12f] sm:$0xff]  ;;  %v14255_v50 = vld [vmem:[%s20893_s14 + $0xc2] sm:$0xff] }
 0x48b   : > { %16146 = vmatmul.mubr.msk.f32.gmra.mrb[74].mxu0 %vm4564_vm10, %v6976_v29  ;;  %16734 = vmatprep.mubr.msk.f32.mxu1 %vm460_vm1, %v20548_v32  ;;  %v6978_v32 = vld [vmem:[#allocation3 + $0x10f] sm:$0xff]  ;;  %v12194_v27 = vmax.f32 %v12130_v16, %v14251_v6  ;;  %v12258_v41 = vmax.f32 %v12193_v59, %v14188_v23  ;;  %v12131_v31 = vmax.f32 %v12067_v25, %v14188_v23  ;;  %v6983_v20 = vld [vmem:[#allocation3 + $0x167] sm:$0xff] }
 0x48c   : > { %16148 = vmatprep.mubr.msk.f32.mxu0 %vm4564_vm10, %v6977_v10  ;;  %12581 = vrot.lane.b32.xlu0 %v12383_v47, %s17810_s30  ;;  %v12385_v19 = vmax.f32 %v12321_v48, %v14251_v6  ;;  %v14254_v36 = vld [vmem:[%s20893_s14 + $0xb2] sm:$0xff]  ;;  %v12132_v4 = vmax.f32 %v12068_v33, %v14189_v3  ;;  %v11943_v39 = vmax.f32 %v21074_v14, %v14190_v17  ;;  %v14192_v18 = vld [vmem:[%s20893_s14 + $0xc8] sm:$0xff]  ;;  %v14194_v42 = vld [vmem:[%s20893_s14 + $0xe0] sm:$0xff] }
 0x48d   : > { %12579 = vrot.lane.b32.xlu1 %v12382_v51, %s17810_s30  ;;  %v12259_v22 = vmax.f32 %v12194_v27, %v14189_v3  ;;  %v12322_v11 = vmax.f32 %v12258_v41, %v21028_v12  ;;  %v12195_v1 = vmax.f32 %v12131_v31, %v14252_v13  ;;  %v12006_v0 = vmax.f32 %v11942_v53, %v21036_v7  ;;  %v6982_v47 = vld [vmem:[#allocation3 + $0x14f] sm:$0xff]  ;;  %v21119_v3 = vld [vmem:[%s20893_s14 + $0xf9] sm:$0xff] }
 0x48e   : > { %16735 = vmatmul.mubr.msk.f32.gmra.mrb[60].mxu1 %vm460_vm1, %v20557_v9  ;;  %v12005_v9 = vmax.f32 %v11941_v43, %v21028_v12  ;;  %v12196_v58 = vmax.f32 %v12132_v4, %v14253_v62  ;;  %v12007_v24 = vmax.f32 %v11943_v39, %v21049_v28  ;;  %v21101_v12 = vld [vmem:[%s20893_s14 + $0xe1] sm:$0xff]  ;;  %v11944_v51 = vmax.f32 %v21094_v60, %v14191_v38  ;;  %v14196_v41 = vld [vmem:[%s20893_s14 + $0xf8] sm:$0xff] }
 0x48f   : > { %16149 = vmatmul.mubr.msk.f32.gmra.mrb[76].mxu0 %vm4564_vm10, %v6978_v32  ;;  %16737 = vmatprep.mubr.msk.f32.mxu1 %vm460_vm1, %v14046_v44  ;;  %v12323_v49 = vmax.f32 %v12259_v22, %v21036_v7  ;;  %v12386_v7 = vmax.f32 %v12322_v11, %v14252_v13  ;;  %v12260_v30 = vmax.f32 %v12195_v1, %v14190_v17  ;;  %v14257_v43 = vld [vmem:[%s20893_s14 + $0xda] sm:$0xff]  ;;  %v21131_v22 = vld [vmem:[%s20893_s14 + $0x109] sm:$0xff]  ;;  %v14259_v4 = vld [vmem:[%s20893_s14 + $0xf2] sm:$0xff] }
 0x490   : > { %16151 = vmatprep.mubr.msk.f32.mxu0 %vm4564_vm10, %v6979_v45  ;;  %v12069_v8 = vmax.f32 %v12005_v9, %v14252_v13  ;;  %12585 = vrot.lane.b32.xlu0 %v12385_v19, %s17810_s30  ;;  %v12070_v61 = vmax.f32 %v12006_v0, %v14253_v62  ;;  %v12261_v23 = vmax.f32 %v12196_v58, %v14191_v38  ;;  %v6984_v13 = vld [vmem:[#allocation3 + $0x16f] sm:$0xff] }
 0x491   : > { %12583 = vrot.lane.b32.xlu1 %v12384_v54, %s17810_s30  ;;  %v12387_v29 = vmax.f32 %v12323_v49, %v14253_v62  ;;  %v12071_v10 = vmax.f32 %v12007_v24, %v14254_v36  ;;  %v12324_v52 = vmax.f32 %v12260_v30, %v21049_v28  ;;  %v11945_v44 = vmax.f32 %v21101_v12, %v14192_v18  ;;  %v14195_v45 = vld [vmem:[%s20893_s14 + $0xf0] sm:$0xff] }
 0x492   : > { %16738 = vmatmul.mubr.msk.f32.gmra.mrb[62].mxu1 %vm460_vm1, %v14047_v5  ;;  %v12133_v26 = vmax.f32 %v12069_v8, %v14190_v17  ;;  %v12134_v6 = vmax.f32 %v12070_v61, %v14191_v38  ;;  %v11946_v34 = vmax.f32 %v21104_v63, %v14193_v37  ;;  %v12325_v16 = vmax.f32 %v12261_v23, %v21066_v57  ;;  %v21135_v62 = vld [vmem:[%s20893_s14 + $0x111] sm:$0xff] }
 0x493   : > { %16152 = vmatmul.mubr.msk.f32.gmra.mrb[78].mxu0 %vm4564_vm10, %v6980_v15  ;;  %v12135_v32 = vmax.f32 %v12071_v10, %v14192_v18  ;;  %v12388_v28 = vmax.f32 %v12324_v52, %v14254_v36  ;;  %v12008_v54 = vmax.f32 %v11944_v51, %v21066_v57  ;;  %v12009_v59 = vmax.f32 %v11945_v44, %v21074_v14  ;;  %v14258_v15 = vld [vmem:[%s20893_s14 + $0xe2] sm:$0xff]  ;;  %v6986_v11 = vld [vmem:[#allocation3 + $0x18f] sm:$0xff] }
 0x494   : > { %16154 = vmatprep.mubr.msk.f32.mxu0 %vm4564_vm10, %v6981_v46  ;;  %v12197_v2 = vmax.f32 %v12133_v26, %v14254_v36  ;;  %12589 = vrot.lane.b32.xlu0 %v12387_v29, %s17810_s30  ;;  %v12198_v56 = vmax.f32 %v12134_v6, %v14255_v50  ;;  %v12389_v27 = vmax.f32 %v12325_v16, %v14255_v50  ;;  %v14260_v26 = vld [vmem:[%s20893_s14 + $0xfa] sm:$0xff]  ;;  %v14198_v61 = vld [vmem:[%s20893_s14 + $0x110] sm:$0xff] }
 0x495   : > { %12587 = vrot.lane.b32.xlu1 %v12386_v7, %s17810_s30  ;;  %v12199_v17 = vmax.f32 %v12135_v32, %v14256_v40  ;;  %v12010_v5 = vmax.f32 %v11946_v34, %v21094_v60  ;;  %v12072_v33 = vmax.f32 %v12008_v54, %v14255_v50  ;;  %v12073_v9 = vmax.f32 %v12009_v59, %v14256_v40  ;;  %v21151_v7 = vld [vmem:[%s20893_s14 + $0x121] sm:$0xff]  ;;  %v6988_v34 = vld [vmem:[#allocation3 + $0x1af] sm:$0xff] }
 0x496   : > { %v12262_v35 = vmax.f32 %v12197_v2, %v14192_v18  ;;  %v12263_v48 = vmax.f32 %v12198_v56, %v14193_v37  ;;  %v11947_v57 = vmax.f32 %v21119_v3, %v14194_v42  ;;  %v11948_v38 = vmax.f32 %v21131_v22, %v14195_v45  ;;  %v21158_v2 = vld [vmem:[%s20893_s14 + $0x129] sm:$0xff]  ;;  %v14199_v59 = vld [vmem:[%s20893_s14 + $0x120] sm:$0xff] }
 0x497   : > { %16155 = vmatmul.mubr.msk.f32.gmra.mrb[80].mxu0 %vm4564_vm10, %v6982_v47  ;;  %v12264_v53 = vmax.f32 %v12199_v17, %v14194_v42  ;;  %v12074_v46 = vmax.f32 %v12010_v5, %v14257_v43  ;;  %v12136_v36 = vmax.f32 %v12072_v33, %v14193_v37  ;;  %v12137_v8 = vmax.f32 %v12073_v9, %v14194_v42  ;;  %v14197_v37 = vld [vmem:[%s20893_s14 + $0x108] sm:$0xff]  ;;  %v14262_v42 = vld [vmem:[%s20893_s14 + $0x112] sm:$0xff] }
 0x498   : > { %16157 = vmatprep.mubr.msk.f32.mxu0 %vm4564_vm10, %v6983_v20  ;;  %v12326_v25 = vmax.f32 %v12262_v35, %v21074_v14  ;;  %v6985_v14 = vld [vmem:[#allocation3 + $0x187] sm:$0xff]  ;;  %12593 = vrot.lane.b32.xlu0 %v12389_v27, %s17810_s30  ;;  %v12327_v19 = vmax.f32 %v12263_v48, %v21094_v60  ;;  %v12011_v39 = vmax.f32 %v11947_v57, %v21101_v12 }
 0x499   : > { %12591 = vrot.lane.b32.xlu1 %v12388_v28, %s17810_s30  ;;  %v12328_v49 = vmax.f32 %v12264_v53, %v21101_v12  ;;  %v12138_v1 = vmax.f32 %v12074_v46, %v14195_v45  ;;  %v11949_v18 = vmax.f32 %v21135_v62, %v14196_v41  ;;  %v12200_v60 = vmax.f32 %v12136_v36, %v14257_v43  ;;  %v6987_v12 = vld [vmem:[#allocation3 + $0x1a7] sm:$0xff] }
 0x49a   : > { %v12390_v31 = vmax.f32 %v12326_v25, %v14256_v40  ;;  %v12391_v0 = vmax.f32 %v12327_v19, %v14257_v43  ;;  %v12201_v58 = vmax.f32 %v12137_v8, %v14258_v15  ;;  %v12075_v24 = vmax.f32 %v12011_v39, %v14258_v15  ;;  %v14261_v35 = vld [vmem:[%s20893_s14 + $0x10a] sm:$0xff]  ;;  %v21180_v48 = vld [vmem:[%s20893_s14 + $0x141] sm:$0xff] }
 0x49b   : > { %16158 = vmatmul.mubr.msk.f32.gmra.mrb[82].mxu0 %vm4564_vm10, %v6984_v13  ;;  %v12392_v29 = vmax.f32 %v12328_v49, %v14258_v15  ;;  %v12202_v30 = vmax.f32 %v12138_v1, %v14259_v4  ;;  %v12012_v23 = vmax.f32 %v11948_v38, %v21104_v63  ;;  %v12013_v50 = vmax.f32 %v11949_v18, %v21119_v3  ;;  %v6989_v56 = vld [vmem:[#allocation3 + $0x1c7] sm:$0xff] }
 0x49c   : > { %16160 = vmatprep.mubr.msk.f32.mxu0 %vm4564_vm10, %v6985_v14  ;;  %12597 = vrot.lane.b32.xlu0 %v12391_v0, %s17810_s30  ;;  %v12265_v10 = vmax.f32 %v12200_v60, %v14195_v45  ;;  %v12266_v51 = vmax.f32 %v12201_v58, %v14196_v41  ;;  %v12139_v47 = vmax.f32 %v12075_v24, %v14196_v41  ;;  %v14200_v45 = vld [vmem:[%s20893_s14 + $0x128] sm:$0xff]  ;;  %v14201_v14 = vld [vmem:[%s20893_s14 + $0x138] sm:$0xff]  ;;  %v14203_v24 = vld [vmem:[%s20893_s14 + $0x150] sm:$0xff] }
 0x49d   : > { %12595 = vrot.lane.b32.xlu1 %v12390_v31, %s17810_s30  ;;  %v12267_v52 = vmax.f32 %v12202_v30, %v14197_v37  ;;  %v12076_v40 = vmax.f32 %v12012_v23, %v14259_v4  ;;  %v12077_v6 = vmax.f32 %v12013_v50, %v14260_v26  ;;  %v11950_v44 = vmax.f32 %v21151_v7, %v14197_v37  ;;  %v6990_v31 = vld [vmem:[#allocation3 + $0x1cf] sm:$0xff]  ;;  %v14263_v15 = vld [vmem:[%s20893_s14 + $0x122] sm:$0xff]  ;;  %v21206_v23 = vld [vmem:[%s20893_s14 + $0x159] sm:$0xff] }
 0x49e   : > { %v12329_v20 = vmax.f32 %v12265_v10, %v21104_v63  ;;  %v12330_v16 = vmax.f32 %v12266_v51, %v21119_v3  ;;  %v12203_v32 = vmax.f32 %v12139_v47, %v14260_v26  ;;  %v11951_v28 = vmax.f32 %v21158_v2, %v14198_v61  ;;  %v21174_v3 = vld [vmem:[%s20893_s14 + $0x139] sm:$0xff]  ;;  %v6991_v36 = vld [vmem:[#allocation3 + $0x1e7] sm:$0xff] }
 0x49f   : > { %16161 = vmatmul.mubr.msk.f32.gmra.mrb[84].mxu0 %vm4564_vm10, %v6986_v11  ;;  %v12331_v43 = vmax.f32 %v12267_v52, %v21131_v22  ;;  %v12140_v54 = vmax.f32 %v12076_v40, %v14197_v37  ;;  %v12141_v13 = vmax.f32 %v12077_v6, %v14198_v61  ;;  %v12014_v63 = vmax.f32 %v11950_v44, %v21131_v22  ;;  %v21184_v22 = vld [vmem:[%s20893_s14 + $0x151] sm:$0xff]  ;;  %v14202_v37 = vld [vmem:[%s20893_s14 + $0x140] sm:$0xff]  ;;  %v21210_v50 = vld [vmem:[%s20893_s14 + $0x169] sm:$0xff] }
 0x4a0   : > { %16163 = vmatprep.mubr.msk.f32.mxu0 %vm4564_vm10, %v6987_v12  ;;  %v12393_v27 = vmax.f32 %v12329_v20, %v14259_v4  ;;  %v12394_v25 = vmax.f32 %v12330_v16, %v14260_v26  ;;  %v12268_v17 = vmax.f32 %v12203_v32, %v14198_v61  ;;  %v12015_v5 = vmax.f32 %v11951_v28, %v21135_v62  ;;  %v14264_v39 = vld [vmem:[%s20893_s14 + $0x12a] sm:$0xff]  ;;  %v14265_v26 = vld [vmem:[%s20893_s14 + $0x13a] sm:$0xff]  ;;  %v14266_v6 = vld [vmem:[%s20893_s14 + $0x142] sm:$0xff] }
 0x4a1   : > { %12599 = vrot.lane.b32.xlu1 %v12392_v29, %s17810_s30  ;;  %v12395_v33 = vmax.f32 %v12331_v43, %v14261_v35  ;;  %v12204_v9 = vmax.f32 %v12140_v54, %v14261_v35  ;;  %v12205_v41 = vmax.f32 %v12141_v13, %v14262_v42  ;;  %v12078_v57 = vmax.f32 %v12014_v63, %v14261_v35  ;;  %v6992_v29 = vld [vmem:[#allocation3 + $0x1ef] sm:$0xff]  ;;  %v17692_v52 = vld [vmem:[#allocation3 + $0x207] sm:$0xff]  ;;  %v14204_v54 = vld [vmem:[%s20893_s14 + $0x158] sm:$0xff] }
 0x4a2   : > { %12601 = vrot.lane.b32.xlu0 %v12393_v27, %s17810_s30  ;;  %v12332_v53 = vmax.f32 %v12268_v17, %v21135_v62  ;;  %v12079_v46 = vmax.f32 %v12015_v5, %v14262_v42  ;;  %v11952_v19 = vmax.f32 %v21174_v3, %v14199_v59  ;;  %v11953_v49 = vmax.f32 %v21180_v48, %v14200_v45  ;;  %v6995_v20 = vld [vmem:[#allocation3 + $0x227] sm:$0xff]  ;;  %v14267_v35 = vld [vmem:[%s20893_s14 + $0x152] sm:$0xff] }
 0x4a3   : > { %16164 = vmatmul.mubr.msk.f32.gmra.mrb[86].mxu0 %vm4564_vm10, %v6988_v34  ;;  %v12269_v4 = vmax.f32 %v12204_v9, %v14199_v59  ;;  %v12270_v8 = vmax.f32 %v12205_v41, %v14200_v45  ;;  %v12142_v11 = vmax.f32 %v12078_v57, %v14199_v59  ;;  %v11954_v18 = vmax.f32 %v21184_v22, %v14201_v14  ;;  %v21224_v13 = vld [vmem:[%s20893_s14 + $0x171] sm:$0xff] }
 0x4a4   : > { %16166 = vmatprep.mubr.msk.f32.mxu0 %vm4564_vm10, %v6989_v56  ;;  %v12396_v1 = vmax.f32 %v12332_v53, %v14262_v42  ;;  %v12143_v62 = vmax.f32 %v12079_v46, %v14200_v45  ;;  %v12016_v38 = vmax.f32 %v11952_v19, %v21151_v7  ;;  %v12017_v12 = vmax.f32 %v11953_v49, %v21158_v2  ;;  %v17693_v63 = vld [vmem:[#allocation3 + $0x20f] sm:$0xff]  ;;  %v14268_v19 = vld [vmem:[%s20893_s14 + $0x15a] sm:$0xff] }
 0x4a5   : > { %12603 = vrot.lane.b32.xlu1 %v12394_v25, %s17810_s30  ;;  %v12333_v0 = vmax.f32 %v12269_v4, %v21151_v7  ;;  %v12334_v60 = vmax.f32 %v12270_v8, %v21158_v2  ;;  %v12206_v58 = vmax.f32 %v12142_v11, %v14263_v15  ;;  %v12018_v7 = vmax.f32 %v11954_v18, %v21174_v3  ;;  %v21228_v25 = vld [vmem:[%s20893_s14 + $0x168] sm:$0xff]  ;;  %v13548_v57 = vld [vmem:[%s21906_s6 + $0x110] sm:$0xff] }
 0x4a6   : > { %12605 = vrot.lane.b32.xlu0 %v12395_v33, %s17810_s30  ;;  %v12207_v30 = vmax.f32 %v12143_v62, %v14264_v39  ;;  %v12080_v61 = vmax.f32 %v12016_v38, %v14263_v15  ;;  %v12081_v47 = vmax.f32 %v12017_v12, %v14264_v39  ;;  %v11955_v42 = vmax.f32 %v21206_v23, %v14202_v37  ;;  %v6996_v5 = vld [vmem:[#allocation3 + $0x22f] sm:$0xff] }
 0x4a7   : > { %16167 = vmatmul.mubr.msk.f32.gmra.mrb[88].mxu0 %vm4564_vm10, %v6990_v31  ;;  %v12397_v10 = vmax.f32 %v12333_v0, %v14263_v15  ;;  %v12398_v51 = vmax.f32 %v12334_v60, %v14264_v39  ;;  %v12271_v2 = vmax.f32 %v12206_v58, %v14201_v14  ;;  %v12082_v34 = vmax.f32 %v12018_v7, %v14265_v26  ;;  %v21246_v4 = vld [vmem:[%s20893_s14 + $0x16a] sm:$0xff]  ;;  %v21258_v0 = vld [vmem:[%s20893_s14 + $0x180] sm:$0xff]  ;;  %v21264_v12 = vld [vmem:[%s20893_s14 + $0x172] sm:$0xff] }
 0x4a8   : > { %16169 = vmatprep.mubr.msk.f32.mxu0 %vm4564_vm10, %v6991_v36  ;;  %v12272_v40 = vmax.f32 %v12207_v30, %v14202_v37  ;;  %v12144_v44 = vmax.f32 %v12080_v61, %v14201_v14  ;;  %v12145_v32 = vmax.f32 %v12081_v47, %v14202_v37  ;;  %v11956_v28 = vmax.f32 %v21210_v50, %v14203_v24  ;;  %v13549_v14 = vld [vmem:[%s21906_s6 + $0x118] sm:$0xf]  ;;  %v21255_v18 = vld [vmem:[%s20893_s14 + $0x170] sm:$0xff] }
 0x4a9   : > { %12607 = vrot.lane.b32.xlu1 %v12396_v1, %s17810_s30  ;;  %v12335_v16 = vmax.f32 %v12271_v2, %v21174_v3  ;;  %v12146_v59 = vmax.f32 %v12082_v34, %v14203_v24  ;;  %v12019_v17 = vmax.f32 %v11955_v42, %v21180_v48  ;;  %v11957_v15 = vmax.f32 %v21224_v13, %v14204_v54  ;;  %v17694_v1 = vld [vmem:[#allocation3 + $0x48] sm:$0xff]  ;;  %v17695_v30 = vld [vmem:[#allocation3 + $0x50] sm:$0xff] }
 0x4aa   : > { %12609 = vrot.lane.b32.xlu0 %v12397_v10, %s17810_s30  ;;  %v12336_v56 = vmax.f32 %v12272_v40, %v21180_v48  ;;  %v12208_v43 = vmax.f32 %v12144_v44, %v14265_v26  ;;  %v12209_v27 = vmax.f32 %v12145_v32, %v14266_v6  ;;  %v12020_v45 = vmax.f32 %v11956_v28, %v21184_v22  ;;  %v17696_v10 = vld [vmem:[#allocation3 + $0x68] sm:$0xff]  ;;  %v17699_v42 = vld [vmem:[#allocation3 + $0x90] sm:$0xff] }
 0x4ab   : > { %16170 = vmatmul.mubr.msk.f32.gmra.mrb[90].mxu0 %vm4564_vm10, %v6992_v29  ;;  %v12399_v3 = vmax.f32 %v12335_v16, %v14265_v26  ;;  %v12210_v41 = vmax.f32 %v12146_v59, %v14267_v35  ;;  %v12083_v48 = vmax.f32 %v12019_v17, %v14266_v6  ;;  %v12021_v49 = vmax.f32 %v11957_v15, %v21206_v23  ;;  %v21267_v29 = vld [vmem:[%s20893_s14 + $0x181] sm:$0xff]  ;;  %v17719_v15 = vld [vmem:[#allocation3 + $0x1d0] sm:$0xff] }
 0x4ac   : > { %16172 = vmatprep.mubr.msk.f32.mxu0 %vm4564_vm10, %v17692_v52  ;;  %v12400_v33 = vmax.f32 %v12336_v56, %v14266_v6  ;;  %v12273_v9 = vmax.f32 %v12208_v43, %v14203_v24  ;;  %v12274_v31 = vmax.f32 %v12209_v27, %v14204_v54  ;;  %v12084_v53 = vmax.f32 %v12020_v45, %v14267_v35  ;;  %v21280_v2 = vld [vmem:[%s20893_s14 + $0x188] sm:$0xff]  ;;  %v17697_v6 = vld [vmem:[#allocation3 + $0x70] sm:$0xff] }
 0x4ad   : > { %12611 = vrot.lane.b32.xlu1 %v12398_v51, %s17810_s30  ;;  %v12275_v36 = vmax.f32 %v12210_v41, %v21228_v25  ;;  %v12147_v39 = vmax.f32 %v12083_v48, %v14204_v54  ;;  %v12085_v37 = vmax.f32 %v12021_v49, %v14268_v19  ;;  %v21277_v51 = vld [vmem:[%s20893_s14 + $0x182] sm:$0xff]  ;;  %v17703_v54 = vld [vmem:[#allocation3 + $0xd0] sm:$0xff] }
 0x4ae   : > { %12613 = vrot.lane.b32.xlu0 %v12399_v3, %s17810_s30  ;;  %v12337_v46 = vmax.f32 %v12273_v9, %v21184_v22  ;;  %v12338_v8 = vmax.f32 %v12274_v31, %v21206_v23  ;;  %v12148_v11 = vmax.f32 %v12084_v53, %v21228_v25  ;;  %v16860_v22 = vpack.c.bf16 %v13549_v14, %v13548_v57  ;;  %v17698_v16 = vld [vmem:[#allocation3 + $0x88] sm:$0xff]  ;;  %v17707_v27 = vld [vmem:[#allocation3 + $0x110] sm:$0xff] }
 0x4af   : > { %16173 = vmatmul.mubr.msk.f32.gmra.mrb[92].mxu0 %vm4564_vm10, %v17693_v63  ;;  %v12339_v38 = vmax.f32 %v12275_v36, %v21210_v50  ;;  %v12211_v58 = vmax.f32 %v12147_v39, %v14268_v19  ;;  %v12149_v7 = vmax.f32 %v12085_v37, %v21255_v18  ;;  %v17700_v56 = vld [vmem:[#allocation3 + $0xa8] sm:$0xff]  ;;  %v17705_v63 = vld [vmem:[#allocation3 + $0xf0] sm:$0xff] }
 0x4b0   : > { %16175 = vmatprep.mubr.msk.f32.mxu0 %vm4564_vm10, %v6995_v20  ;;  %v12401_v62 = vmax.f32 %v12337_v46, %v14267_v35  ;;  %v12402_v60 = vmax.f32 %v12338_v8, %v14268_v19  ;;  %v12212_v26 = vmax.f32 %v12148_v11, %v21246_v4  ;;  %v21299_v35 = vld [vmem:[%s20893_s14 + $0x18a] sm:$0xff] }
 0x4b1   : > { %12615 = vrot.lane.b32.xlu1 %v12400_v33, %s17810_s30  ;;  %v12403_v24 = vmax.f32 %v12339_v38, %v21246_v4  ;;  %v12276_v61 = vmax.f32 %v12211_v58, %v21255_v18  ;;  %v12213_v40 = vmax.f32 %v12149_v7, %v21264_v12  ;;  %v17702_v43 = vld [vmem:[#allocation3 + $0xc8] sm:$0xff]  ;;  %v17709_v45 = vld [vmem:[#allocation3 + $0x130] sm:$0xff]  ;;  %v11958_v38 = vmax.f32 %v21267_v29, %v21228_v25 }
 0x4b2   : > { %12617 = vrot.lane.b32.xlu0 %v12401_v62, %s17810_s30  ;;  %v12277_v23 = vmax.f32 %v12212_v26, %v21258_v0  ;;  %v17704_v59 = vld [vmem:[#allocation3 + $0xe8] sm:$0xff]  ;;  %v17711_v33 = vld [vmem:[#allocation3 + $0x150] sm:$0xff] }
 0x4b3   : > { %16176 = vmatmul.mubr.msk.f32.gmra.mrb[94].mxu0 %vm4564_vm10, %v6996_v5  ;;  %v12340_v47 = vmax.f32 %v12276_v61, %v21224_v13  ;;  %v12278_v20 = vmax.f32 %v12213_v40, %v21280_v2  ;;  %v17706_v3 = vld [vmem:[#allocation3 + $0x108] sm:$0xff]  ;;  %v17713_v41 = vld [vmem:[#allocation3 + $0x170] sm:$0xff] }
 0x4b4   : > { %16186 = vmatprep.mubr.msk.f32.mxu0 %vm4564_vm10, %v17694_v1  ;;  %v12341_v52 = vmax.f32 %v12277_v23, %v21267_v29  ;;  %v17708_v17 = vld [vmem:[#allocation3 + $0x128] sm:$0xff]  ;;  %v17715_v14 = vld [vmem:[#allocation3 + $0x190] sm:$0xff] }
 0x4b5   : > { %12619 = vrot.lane.b32.xlu1 %v12402_v60, %s17810_s30  ;;  %v12404_v44 = vmax.f32 %v12340_v47, %v21264_v12  ;;  %v17710_v5 = vld [vmem:[#allocation3 + $0x148] sm:$0xff]  ;;  %v17717_v48 = vld [vmem:[#allocation3 + $0x1b0] sm:$0xff] }
 0x4b6   : > { %12621 = vrot.lane.b32.xlu0 %v12403_v24, %s17810_s30  ;;  %v12405_v34 = vmax.f32 %v12341_v52, %v21277_v51  ;;  %v17712_v9 = vld [vmem:[#allocation3 + $0x168] sm:$0xff]  ;;  %v17721_v19 = vld [vmem:[#allocation3 + $0x1f0] sm:$0xff] }
 0x4b7   : > { %16187 = vmatmul.mubr.msk.f32.vlgmr.msra.gmra.mrb[64].mxu0 %vm4564_vm10, %v17695_v30  ;;  %v17714_v57 = vld [vmem:[#allocation3 + $0x188] sm:$0xff]  ;;  %v17723_v39 = vld [vmem:[#allocation3 + $0x210] sm:$0xff] }
 0x4b8   : > { %16859 = vmatpush3.bf16.msra.mxu0 %v20952_v55  ;;  %16189 = vmatprep.mubr.msk.f32.mxu0 %vm4564_vm10, %v17696_v10  ;;  %v21289_v55 = vld [vmem:[%s20893_s14 + $0x189] sm:$0xff]  ;;  %v7752_v58 = vld [vmem:[#allocation3 + $0x51] sm:$0xff] }
 0x4b9   : > { %16862 = vmatprep.subr.msk.bf16.mxu0 %vm19121_vm9, %v16860_v22  ;;  %12623 = vrot.lane.b32.xlu1 %v12404_v44, %s17810_s30  ;;  %v12342_v32 = vmax.f32 %v12278_v20, %v21289_v55  ;;  %v17716_v31 = vld [vmem:[#allocation3 + $0x1a8] sm:$0xff]  ;;  %v11959_v11 = vmax.f32 %v21289_v55, %v21255_v18  ;;  %v7389_v49 = vld [vmem:[#allocation3 + $0x230] sm:$0xff]  ;;  %v12022_v18 = vmax.f32 %v11958_v38, %v21210_v50 }
 0x4ba   : > { %12625 = vrot.lane.b32.xlu0 %v12405_v34, %s17810_s30  ;;  %v17718_v53 = vld [vmem:[#allocation3 + $0x1c8] sm:$0xff]  ;;  %v7754_v24 = vld [vmem:[#allocation3 + $0x71] sm:$0xff] }
 0x4bb   : > { %16190 = vmatmul.mubr.msk.f32.gmra.mrb[66].mxu0 %vm4564_vm10, %v17697_v6  ;;  %v12406_v28 = vmax.f32 %v12342_v32, %v21299_v35  ;;  %v17720_v46 = vld [vmem:[#allocation3 + $0x1e8] sm:$0xff]  ;;  %v12023_v1 = vmax.f32 %v11959_v11, %v21224_v13  ;;  %v12086_v37 = vmax.f32 %v12022_v18, %v21246_v4  ;;  %v7756_v29 = vld [vmem:[#allocation3 + $0x91] sm:$0xff] }
 0x4bc   : > { %16192 = vmatprep.mubr.msk.f32.mxu0 %vm4564_vm10, %v17698_v16  ;;  %16865 = vmatpush3.bf16.msk.msra.mxu0 %vm19121_vm9, %v16860_v22  ;;  %v17722_v36 = vld [vmem:[#allocation3 + $0x208] sm:$0xff]  ;;  %v7758_v4 = vld [vmem:[#allocation3 + $0xb1] sm:$0xff] }
 0x4bd   : > { %12627 = vrot.lane.b32.xlu1 %v12406_v28, %s17810_s30  ;;  %v7388_v8 = vld [vmem:[#allocation3 + $0x228] sm:$0xff]  ;;  %v12087_v62 = vmax.f32 %v12023_v1, %v21264_v12  ;;  %v21350_v25 = vmax.f32 %v12086_v37, %v21258_v0  ;;  %v7760_v61 = vld [vmem:[#allocation3 + $0xd1] sm:$0xff] }
 0x4be   : > { %v7751_v22 = vld [vmem:[#allocation3 + $0x49] sm:$0xff]  ;;  %v7762_v7 = vld [vmem:[#allocation3 + $0xf1] sm:$0xff] }
 0x4bf   : > { %16193 = vmatmul.mubr.msk.f32.gmra.mrb[68].mxu0 %vm4564_vm10, %v17699_v42  ;;  %v21341_v60 = vmax.f32 %v12087_v62, %v21280_v2  ;;  %v7753_v26 = vld [vmem:[#allocation3 + $0x69] sm:$0xff]  ;;  %v12214_v50 = vmax.f32 %v21350_v25, %v21277_v51  ;;  %v7764_v2 = vld [vmem:[#allocation3 + $0x111] sm:$0xff] }
 0x4c0   : > { %16195 = vmatprep.mubr.msk.f32.mxu0 %vm4564_vm10, %v17700_v56  ;;  %v7755_v12 = vld [vmem:[#allocation3 + $0x89] sm:$0xff]  ;;  %v7766_v52 = vld [vmem:[#allocation3 + $0x131] sm:$0xff] }
 0x4c1   : > { %v12215_v13 = vmax.f32 %v21341_v60, %v21299_v35  ;;  %v7757_v30 = vld [vmem:[#allocation3 + $0xa9] sm:$0xff]  ;;  %v7768_v55 = vld [vmem:[#allocation3 + $0x151] sm:$0xff] }
 0x4c2   : > { %v7759_v0 = vld [vmem:[#allocation3 + $0xc9] sm:$0xff]  ;;  %v7770_v44 = vld [vmem:[#allocation3 + $0x171] sm:$0xff] }
 0x4c3   : > { %16196 = vmatmul.mubr.msk.f32.gmra.mrb[70].mxu0 %vm4564_vm10, %v17701_v21  ;;  %v7761_v23 = vld [vmem:[#allocation3 + $0xe9] sm:$0xff]  ;;  %v7772_v20 = vld [vmem:[#allocation3 + $0x191] sm:$0xff]  ;;  %v21380_v21 = vld [vmem:[%s21909_s9] ss:$0 sm:$0xff] }
 0x4c4   : > { %16198 = vmatprep.mubr.msk.f32.mxu0 %vm4564_vm10, %v17702_v43  ;;  %v7763_v10 = vld [vmem:[#allocation3 + $0x109] sm:$0xff]  ;;  %v7774_v32 = vld [vmem:[#allocation3 + $0x1b1] sm:$0xff] }
 0x4c5   : > { %v7765_v47 = vld [vmem:[#allocation3 + $0x129] sm:$0xff]  ;;  %v7776_v28 = vld [vmem:[#allocation3 + $0x1d1] sm:$0xff] }
 0x4c6   : > { %v7767_v40 = vld [vmem:[#allocation3 + $0x149] sm:$0xff] }
 0x4c7   : > { %16199 = vmatmul.mubr.msk.f32.gmra.mrb[72].mxu0 %vm4564_vm10, %v17703_v54  ;;  %v7769_v6 = vld [vmem:[#allocation3 + $0x169] sm:$0xff]  ;;  %v21383_v54 = vstv %s13584_s15 }
 0x4c8   : > { %16201 = vmatprep.mubr.msk.f32.mxu0 %vm4564_vm10, %v17704_v59  ;;  %v7771_v34 = vld [vmem:[#allocation3 + $0x189] sm:$0xff] }
 0x4c9   : > { %v7773_v16 = vld [vmem:[#allocation3 + $0x1a9] sm:$0xff] }
 0x4ca   : > { %v7775_v42 = vld [vmem:[#allocation3 + $0x1c9] sm:$0xff] }
 0x4cb   : > { %16202 = vmatmul.mubr.msk.f32.gmra.mrb[74].mxu0 %vm4564_vm10, %v17705_v63  ;;  %v7777_v56 = vld [vmem:[#allocation3 + $0x1e9] sm:$0xff] }
 0x4cc   : > { %16204 = vmatprep.mubr.msk.f32.mxu0 %vm4564_vm10, %v17706_v3  ;;  %v7778_v3 = vld [vmem:[#allocation3 + $0x1f1] sm:$0xff] }
 0x4cf   : > { %16205 = vmatmul.mubr.msk.f32.gmra.mrb[76].mxu0 %vm4564_vm10, %v17707_v27 }
 0x4d0   : > { %16207 = vmatprep.mubr.msk.f32.mxu0 %vm4564_vm10, %v17708_v17  ;;  %v7779_v17 = vld [vmem:[#allocation3 + $0x209] sm:$0xff] }
 0x4d3   : > { %16208 = vmatmul.mubr.msk.f32.gmra.mrb[78].mxu0 %vm4564_vm10, %v17709_v45 }
 0x4d4   : > { %16210 = vmatprep.mubr.msk.f32.mxu0 %vm4564_vm10, %v17710_v5 }
 0x4d7   : > { %16211 = vmatmul.mubr.msk.f32.gmra.mrb[80].mxu0 %vm4564_vm10, %v17711_v33  ;;  %v7781_v33 = vld [vmem:[#allocation3 + $0x229] sm:$0xff] }
 0x4d8   : > { %16213 = vmatprep.mubr.msk.f32.mxu0 %vm4564_vm10, %v17712_v9 }
 0x4db   : > { %16214 = vmatmul.mubr.msk.f32.gmra.mrb[82].mxu0 %vm4564_vm10, %v17713_v41 }
 0x4dc   : > { %16216 = vmatprep.mubr.msk.f32.mxu0 %vm4564_vm10, %v17714_v57 }
 0x4df   : > { %16217 = vmatmul.mubr.msk.f32.gmra.mrb[84].mxu0 %vm4564_vm10, %v17715_v14 }
 0x4e0   : > { %16219 = vmatprep.mubr.msk.f32.mxu0 %vm4564_vm10, %v17716_v31  ;;  %v7780_v31 = vld [vmem:[#allocation3 + $0x211] sm:$0xff] }
 0x4e3   : > { %16220 = vmatmul.mubr.msk.f32.gmra.mrb[86].mxu0 %vm4564_vm10, %v17717_v48 }
 0x4e4   : > { %16222 = vmatprep.mubr.msk.f32.mxu0 %vm4564_vm10, %v17718_v53 }
 0x4e7   : > { %16223 = vmatmul.mubr.msk.f32.gmra.mrb[88].mxu0 %vm4564_vm10, %v17719_v15 }
 0x4e8   : > { %16225 = vmatprep.mubr.msk.f32.mxu0 %vm4564_vm10, %v17720_v46  ;;  %v7782_v46 = vld [vmem:[#allocation3 + $0x231] sm:$0xff] }
 0x4eb   : > { %16226 = vmatmul.mubr.msk.f32.gmra.mrb[90].mxu0 %vm4564_vm10, %v17721_v19 }
 0x4ec   : > { %16228 = vmatprep.mubr.msk.f32.mxu0 %vm4564_vm10, %v17722_v36 }
 0x4ef   : > { %16229 = vmatmul.mubr.msk.f32.gmra.mrb[92].mxu0 %vm4564_vm10, %v17723_v39 }
 0x4f0   : > { %16231 = vmatprep.mubr.msk.f32.mxu0 %vm4564_vm10, %v7388_v8 }
 0x4f3   : > { %16232 = vmatmul.mubr.msk.f32.gmra.mrb[94].mxu0 %vm4564_vm10, %v7389_v49 }
 0x4f4   : > { %16242 = vmatprep.mubr.msk.f32.mxu0 %vm4564_vm10, %v7751_v22 }
 0x4f7   : > { %16243 = vmatmul.mubr.msk.f32.vlgmr.msra.gmra.mrb[64].mxu0 %vm4564_vm10, %v7752_v58 }
 0x4f8   : > { %16245 = vmatprep.mubr.msk.f32.mxu0 %vm4564_vm10, %v7753_v26 }
 0x4fb   : > { %16246 = vmatmul.mubr.msk.f32.gmra.mrb[66].mxu0 %vm4564_vm10, %v7754_v24 }
 0x4fc   : > { %16248 = vmatprep.mubr.msk.f32.mxu0 %vm4564_vm10, %v7755_v12 }
 0x4ff   : > { %16249 = vmatmul.mubr.msk.f32.gmra.mrb[68].mxu0 %vm4564_vm10, %v7756_v29 }
 0x500   : > { %16251 = vmatprep.mubr.msk.f32.mxu0 %vm4564_vm10, %v7757_v30 }
 0x503   : > { %16252 = vmatmul.mubr.msk.f32.gmra.mrb[70].mxu0 %vm4564_vm10, %v7758_v4 }
 0x504   : > { %16254 = vmatprep.mubr.msk.f32.mxu0 %vm4564_vm10, %v7759_v0 }
 0x507   : > { %16255 = vmatmul.mubr.msk.f32.gmra.mrb[72].mxu0 %vm4564_vm10, %v7760_v61 }
 0x508   : > { %16257 = vmatprep.mubr.msk.f32.mxu0 %vm4564_vm10, %v7761_v23 }
 0x50b   : > { %16258 = vmatmul.mubr.msk.f32.gmra.mrb[74].mxu0 %vm4564_vm10, %v7762_v7 }
 0x50c   : > { %16260 = vmatprep.mubr.msk.f32.mxu0 %vm4564_vm10, %v7763_v10 }
 0x50f   : > { %16261 = vmatmul.mubr.msk.f32.gmra.mrb[76].mxu0 %vm4564_vm10, %v7764_v2 }
 0x510   : > { %16263 = vmatprep.mubr.msk.f32.mxu0 %vm4564_vm10, %v7765_v47 }
 0x513   : > { %16264 = vmatmul.mubr.msk.f32.gmra.mrb[78].mxu0 %vm4564_vm10, %v7766_v52 }
 0x514   : > { %16266 = vmatprep.mubr.msk.f32.mxu0 %vm4564_vm10, %v7767_v40 }
 0x517   : > { %16267 = vmatmul.mubr.msk.f32.gmra.mrb[80].mxu0 %vm4564_vm10, %v7768_v55 }
 0x518   : > { %16269 = vmatprep.mubr.msk.f32.mxu0 %vm4564_vm10, %v7769_v6 }
 0x51b   : > { %16270 = vmatmul.mubr.msk.f32.gmra.mrb[82].mxu0 %vm4564_vm10, %v7770_v44 }
 0x51c   : > { %16272 = vmatprep.mubr.msk.f32.mxu0 %vm4564_vm10, %v7771_v34 }
 0x51f   : > { %16273 = vmatmul.mubr.msk.f32.gmra.mrb[84].mxu0 %vm4564_vm10, %v7772_v20 }
 0x520   : > { %16275 = vmatprep.mubr.msk.f32.mxu0 %vm4564_vm10, %v7773_v16 }
 0x523   : > { %16276 = vmatmul.mubr.msk.f32.gmra.mrb[86].mxu0 %vm4564_vm10, %v7774_v32 }
 0x524   : > { %16278 = vmatprep.mubr.msk.f32.mxu0 %vm4564_vm10, %v7775_v42 }
 0x527   : > { %16279 = vmatmul.mubr.msk.f32.gmra.mrb[88].mxu0 %vm4564_vm10, %v7776_v28 }
 0x528   : > { %16281 = vmatprep.mubr.msk.f32.mxu0 %vm4564_vm10, %v7777_v56 }
 0x529   : > { %v16694_v43 = vpop.f32.mrb[32].mxu1 }
 0x52a   : > { %v11735_v59 = vadd.f32 %v16694_v43, %v21380_v21  ;;  %v11536_v63 = vpop.f32.mrb[33].mxu1 }
 0x52b   : > { %v11734_v27 = vadd.f32 %v21380_v21, %v11536_v63  ;;  %16282 = vmatmul.mubr.msk.f32.gmra.mrb[90].mxu0 %vm4564_vm10, %v7778_v3 }
 0x52c   : > { %v11800_v45 = vmul.f32 %v21383_v54, %v11735_v59  ;;  %16284 = vmatprep.mubr.msk.f32.mxu0 %vm4564_vm10, %v7779_v17  ;;  %vm11767_vm0 = vcmp.gt.f32.partialorder %v11735_v59, 0.0 }
 0x52d   : > { %v16697_v5 = vpop.f32.mrb[34].mxu1  ;;  %v11799_v9 = vmul.f32 %v21383_v54, %v11734_v27  ;;  %vm11766_vm1 = vcmp.gt.f32.partialorder %v11734_v27, 0.0 }
 0x52e   : > { %v11737_v41 = vadd.f32 %v16697_v5, %v21380_v21  ;;  %v11546_v57 = vpop.f32.mrb[35].mxu1  ;;  %v11832_v14 = vsel %vm11767_vm0, %v11735_v59, %v11800_v45 }
 0x52f   : > { %v11736_v48 = vadd.f32 %v21380_v21, %v11546_v57  ;;  %12443 = vrot.lane.b32.xlu0 %v11832_v14, %s17811_s16  ;;  %16285 = vmatmul.mubr.msk.f32.gmra.mrb[92].mxu0 %vm4564_vm10, %v7780_v31  ;;  %v11831_v39 = vsel %vm11766_vm1, %v11734_v27, %v11799_v9 }
 0x530   : > { %v11802_v53 = vmul.f32 %v21383_v54, %v11737_v41  ;;  %16287 = vmatprep.mubr.msk.f32.mxu0 %vm4564_vm10, %v7781_v33  ;;  %vm11769_vm9 = vcmp.gt.f32.partialorder %v11737_v41, 0.0 }
 0x531   : > { %v16700_v15 = vpop.f32.mrb[36].mxu1  ;;  %v11801_v19 = vmul.f32 %v21383_v54, %v11736_v48  ;;  %vm11768_vm6 = vcmp.gt.f32.partialorder %v11736_v48, 0.0 }
 0x532   : > { %v11739_v36 = vadd.f32 %v16700_v15, %v21380_v21  ;;  %v11556_v8 = vpop.f32.mrb[37].mxu1  ;;  %v11834_v11 = vsel %vm11769_vm9, %v11737_v41, %v11802_v53 }
 0x533   : > { %v11738_v49 = vadd.f32 %v21380_v21, %v11556_v8  ;;  %12441 = vrot.lane.b32.xlu0 %v11831_v39, %s17811_s16  ;;  %12447 = vrot.lane.b32.xlu1 %v11834_v11, %s17811_s16  ;;  %v11833_v58 = vsel %vm11768_vm6, %v11736_v48, %v11801_v19 }
 0x534   : > { %16288 = vmatmul.mubr.msk.f32.gmra.mrb[94].mxu0 %vm4564_vm10, %v7782_v46  ;;  %v11804_v62 = vmul.f32 %v21383_v54, %v11739_v36  ;;  %vm11771_vm8 = vcmp.gt.f32.partialorder %v11739_v36, 0.0 }
 0x535   : > { %v11803_v1 = vmul.f32 %v21383_v54, %v11738_v49  ;;  %v16703_v22 = vpop.f32.mrb[38].mxu1  ;;  %vm11770_vm7 = vcmp.gt.f32.partialorder %v11738_v49, 0.0 }
 0x536   : > { %v11741_v38 = vadd.f32 %v16703_v22, %v21380_v21  ;;  %v11566_v18 = vpop.f32.mrb[39].mxu1  ;;  %v11836_v0 = vsel %vm11771_vm8, %v11739_v36, %v11804_v62 }
 0x537   : > { %v11740_v26 = vadd.f32 %v21380_v21, %v11566_v18  ;;  %12445 = vrot.lane.b32.xlu1 %v11833_v58, %s17811_s16  ;;  %v11835_v37 = vsel %vm11770_vm7, %v11738_v49, %v11803_v1 }
 0x538   : > { %12449 = vrot.lane.b32.xlu0 %v11835_v37, %s17811_s16  ;;  %v11806_v29 = vmul.f32 %v21383_v54, %v11741_v38  ;;  %vm11773_vm2 = vcmp.gt.f32.partialorder %v11741_v38, 0.0 }
 0x539   : > { %v11805_v24 = vmul.f32 %v21383_v54, %v11740_v26  ;;  %v16706_v12 = vpop.f32.mrb[40].mxu1  ;;  %vm11772_vm10 = vcmp.gt.f32.partialorder %v11740_v26, 0.0 }
 0x53a   : > { %v11743_v30 = vadd.f32 %v16706_v12, %v21380_v21  ;;  %v11576_v4 = vpop.f32.mrb[41].mxu1  ;;  %v11838_v40 = vsel %vm11773_vm2, %v11741_v38, %v11806_v29  ;;  %v21453_v12 = vpop.permute.xlu0 %12569 }
 0x53b   : > { %v11742_v61 = vadd.f32 %v21380_v21, %v11576_v4  ;;  %12451 = vrot.lane.b32.xlu1 %v11836_v0, %s17811_s16  ;;  %v11837_v23 = vsel %vm11772_vm10, %v11740_v26, %v11805_v24  ;;  %v21450_v24 = vpop.permute.xlu1 %12571 }
 0x53c   : > { %12453 = vrot.lane.b32.xlu0 %v11837_v23, %s17811_s16  ;;  %v11808_v2 = vmul.f32 %v21383_v54, %v11743_v30  ;;  %vm11775_vm12 = vcmp.gt.f32.partialorder %v11743_v30, 0.0 }
 0x53d   : > { %v11807_v7 = vmul.f32 %v21383_v54, %v11742_v61  ;;  %v16709_v10 = vpop.f32.mrb[42].mxu1  ;;  %vm11774_vm11 = vcmp.gt.f32.partialorder %v11742_v61, 0.0 }
 0x53e   : > { %v11745_v47 = vadd.f32 %v16709_v10, %v21380_v21  ;;  %v11586_v52 = vpop.f32.mrb[43].mxu1  ;;  %v11840_v42 = vsel %vm11775_vm12, %v11743_v30, %v11808_v2 }
 0x53f   : > { %v11744_v55 = vadd.f32 %v21380_v21, %v11586_v52  ;;  %12455 = vrot.lane.b32.xlu1 %v11838_v40, %s17811_s16  ;;  %v11839_v6 = vsel %vm11774_vm11, %v11742_v61, %v11807_v7  ;;  %v21462_v52 = vpop.permute.xlu1 %12575 }
 0x540   : > { %12457 = vrot.lane.b32.xlu0 %v11839_v6, %s17811_s16  ;;  %v11810_v20 = vmul.f32 %v21383_v54, %v11745_v47  ;;  %vm11777_vm14 = vcmp.gt.f32.partialorder %v11745_v47, 0.0 }
 0x541   : > { %v11809_v44 = vmul.f32 %v21383_v54, %v11744_v55  ;;  %v16712_v34 = vpop.f32.mrb[44].mxu1  ;;  %vm11776_vm13 = vcmp.gt.f32.partialorder %v11744_v55, 0.0 }
 0x542   : > { %v11747_v16 = vadd.f32 %v16712_v34, %v21380_v21  ;;  %v11596_v32 = vpop.f32.mrb[45].mxu1  ;;  %v11842_v17 = vsel %vm11777_vm14, %v11745_v47, %v11810_v20  ;;  %v21466_v34 = vpop.permute.xlu0 %12573 }
 0x543   : > { %v11746_v28 = vadd.f32 %v21380_v21, %v11596_v32  ;;  %12459 = vrot.lane.b32.xlu1 %v11840_v42, %s17811_s16  ;;  %v11841_v56 = vsel %vm11776_vm13, %v11744_v55, %v11809_v44 }
 0x544   : > { %12461 = vrot.lane.b32.xlu0 %v11841_v56, %s17811_s16  ;;  %v11812_v63 = vmul.f32 %v21383_v54, %v11747_v16  ;;  %vm11779_vm3 = vcmp.gt.f32.partialorder %v11747_v16, 0.0 }
 0x545   : > { %v11811_v43 = vmul.f32 %v21383_v54, %v11746_v28  ;;  %v16715_v59 = vpop.f32.mrb[46].mxu1  ;;  %vm11778_vm15 = vcmp.gt.f32.partialorder %v11746_v28, 0.0 }
 0x546   : > { %v11749_v3 = vadd.f32 %v16715_v59, %v21380_v21  ;;  %v11606_v27 = vpop.f32.mrb[47].mxu1  ;;  %v11844_v31 = vsel %vm11779_vm3, %v11747_v16, %v11812_v63 }
 0x547   : > { %v11748_v45 = vadd.f32 %v21380_v21, %v11606_v27  ;;  %12463 = vrot.lane.b32.xlu1 %v11842_v17, %s17811_s16  ;;  %v11843_v5 = vsel %vm11778_vm15, %v11746_v28, %v11811_v43  ;;  %v21476_v27 = vpop.permute.xlu1 %12579  ;;  %v21479_v17 = vpop.permute.xlu0 %12577 }
 0x548   : > { %12465 = vrot.lane.b32.xlu0 %v11843_v5, %s17811_s16  ;;  %v11814_v41 = vmul.f32 %v21383_v54, %v11749_v3  ;;  %vm11781_vm5 = vcmp.gt.f32.partialorder %v11749_v3, 0.0 }
 0x549   : > { %v11813_v33 = vmul.f32 %v21383_v54, %v11748_v45  ;;  %v16718_v9 = vpop.f32.mrb[48].mxu1  ;;  %vm11780_vm4 = vcmp.gt.f32.partialorder %v11748_v45, 0.0 }
 0x54a   : > { %v11751_v57 = vadd.f32 %v16718_v9, %v21380_v21  ;;  %v11616_v14 = vpop.f32.mrb[49].mxu1  ;;  %v11846_v39 = vsel %vm11781_vm5, %v11749_v3, %v11814_v41 }
 0x54b   : > { %v11750_v48 = vadd.f32 %v21380_v21, %v11616_v14  ;;  %12467 = vrot.lane.b32.xlu1 %v11844_v31, %s17811_s16  ;;  %v11845_v53 = vsel %vm11780_vm4, %v11748_v45, %v11813_v33  ;;  %v14209_v33 = vld [vmem:[%s20893_s14 + $0x198] sm:$0xff] }
 0x54c   : > { %12469 = vrot.lane.b32.xlu0 %v11845_v53, %s17811_s16  ;;  %v11816_v19 = vmul.f32 %v21383_v54, %v11751_v57  ;;  %vm11783_vm1 = vcmp.gt.f32.partialorder %v11751_v57, 0.0  ;;  %v14210_v53 = vld [vmem:[%s20893_s14 + $0x1a0] sm:$0xff] }
 0x54d   : > { %v11815_v15 = vmul.f32 %v21383_v54, %v11750_v48  ;;  %v16721_v46 = vpop.f32.mrb[50].mxu1  ;;  %vm11782_vm0 = vcmp.gt.f32.partialorder %v11750_v48, 0.0 }
 0x54e   : > { %v11753_v36 = vadd.f32 %v16721_v46, %v21380_v21  ;;  %v11626_v8 = vpop.f32.mrb[51].mxu1  ;;  %v11848_v58 = vsel %vm11783_vm1, %v11751_v57, %v11816_v19  ;;  %vm12665_vm1 = vcmask 261120  }
 0x54f   : > { %v11752_v11 = vadd.f32 %v21380_v21, %v11626_v8  ;;  %12471 = vrot.lane.b32.xlu1 %v11846_v39, %s17811_s16  ;;  %v11847_v49 = vsel %vm11782_vm0, %v11750_v48, %v11815_v15  ;;  %v12279_v15 = vmax.f32 %v12214_v50, %v14209_v33  ;;  %v14241_v8 = vld [vmem:[%s20893_s14 + $0x199] sm:$0xff]  ;;  %v12280_v50 = vmax.f32 %v12215_v13, %v14210_v53  ;;  %v14274_v13 = vld [vmem:[%s20893_s14 + $0x1a2] sm:$0xff] }
 0x550   : > { %12473 = vrot.lane.b32.xlu0 %v11847_v49, %s17811_s16  ;;  %v11818_v62 = vmul.f32 %v21383_v54, %v11753_v36  ;;  %vm11785_vm6 = vcmp.gt.f32.partialorder %v11753_v36, 0.0  ;;  %v21575_v53 = vld [vmem:[%s21907_s7] ss:$0 sm:$0xff] }
 0x551   : > { %v11817_v1 = vmul.f32 %v21383_v54, %v11752_v11  ;;  %v16724_v22 = vpop.f32.mrb[52].mxu1  ;;  %vm11784_vm9 = vcmp.gt.f32.partialorder %v11752_v11, 0.0 }
 0x552   : > { %v11755_v38 = vadd.f32 %v16724_v22, %v21380_v21  ;;  %v11636_v18 = vpop.f32.mrb[53].mxu1  ;;  %v11850_v23 = vsel %vm11785_vm6, %v11753_v36, %v11818_v62  ;;  %v21493_v36 = vpop.permute.xlu1 %12583 }
 0x553   : > { %v11754_v26 = vadd.f32 %v21380_v21, %v11636_v18  ;;  %12475 = vrot.lane.b32.xlu1 %v11848_v58, %s17811_s16  ;;  %v11849_v37 = vsel %vm11784_vm9, %v11752_v11, %v11817_v1  ;;  %v21498_v22 = vpop.permute.xlu0 %12581  ;;  %v12343_v18 = vmax.f32 %v12279_v15, %v14241_v8  ;;  %vm12698_vm9 = vcmask 654336  }
 0x554   : > { %12477 = vrot.lane.b32.xlu0 %v11849_v37, %s17811_s16  ;;  %v11820_v4 = vmul.f32 %v21383_v54, %v11755_v38  ;;  %vm11787_vm8 = vcmp.gt.f32.partialorder %v11755_v38, 0.0 }
 0x555   : > { %v11819_v29 = vmul.f32 %v21383_v54, %v11754_v26  ;;  %v16727_v30 = vpop.f32.mrb[54].mxu1  ;;  %vm11786_vm7 = vcmp.gt.f32.partialorder %v11754_v26, 0.0 }
 0x556   : > { %v11757_v0 = vadd.f32 %v16727_v30, %v21380_v21  ;;  %v11646_v61 = vpop.f32.mrb[55].mxu1  ;;  %v11852_v44 = vsel %vm11787_vm8, %v11755_v38, %v11820_v4  ;;  %v14242_v38 = vld [vmem:[%s20893_s14 + $0x1a1] sm:$0xff]  ;;  %v21511_v30 = vpop.permute.xlu1 %12587 }
 0x557   : > { %v11756_v7 = vadd.f32 %v21380_v21, %v11646_v61  ;;  %12479 = vrot.lane.b32.xlu1 %v11850_v23, %s17811_s16  ;;  %v11851_v10 = vsel %vm11786_vm7, %v11754_v26, %v11819_v29  ;;  %v12344_v35 = vmax.f32 %v12280_v50, %v14242_v38  ;;  %v21514_v60 = vpop.permute.xlu0 %12585  ;;  %vm12731_vm7 = vcmask 687104  }
 0x558   : > { %12481 = vrot.lane.b32.xlu0 %v11851_v10, %s17811_s16  ;;  %v11822_v40 = vmul.f32 %v21383_v54, %v11757_v0  ;;  %vm11789_vm2 = vcmp.gt.f32.partialorder %v11757_v0, 0.0 }
 0x559   : > { %v11821_v2 = vmul.f32 %v21383_v54, %v11756_v7  ;;  %v16730_v47 = vpop.f32.mrb[56].mxu1  ;;  %vm11788_vm10 = vcmp.gt.f32.partialorder %v11756_v7, 0.0 }
 0x55a   : > { %v11759_v55 = vadd.f32 %v16730_v47, %v21380_v21  ;;  %v11656_v6 = vpop.f32.mrb[57].mxu1  ;;  %v11854_v59 = vsel %vm11789_vm2, %v11757_v0, %v11822_v40  ;;  %v12408_v0 = vmax.f32 %v12344_v35, %v14274_v13 }
 0x55b   : > { %v11758_v20 = vadd.f32 %v21380_v21, %v11656_v6  ;;  %12483 = vrot.lane.b32.xlu1 %v11852_v44, %s17811_s16  ;;  %v11853_v16 = vsel %vm11788_vm10, %v11756_v7, %v11821_v2  ;;  %v21521_v61 = vpop.permute.xlu0 %12589 }
 0x55c   : > { %12485 = vrot.lane.b32.xlu0 %v11853_v16, %s17811_s16  ;;  %v11824_v28 = vmul.f32 %v21383_v54, %v11759_v55  ;;  %vm11791_vm12 = vcmp.gt.f32.partialorder %v11759_v55, 0.0 }
 0x55d   : > { %v11823_v32 = vmul.f32 %v21383_v54, %v11758_v20  ;;  %v16733_v42 = vpop.f32.mrb[58].mxu1  ;;  %vm11790_vm11 = vcmp.gt.f32.partialorder %v11758_v20, 0.0 }
 0x55e   : > { %v11761_v56 = vadd.f32 %v16733_v42, %v21380_v21  ;;  %v11666_v43 = vpop.f32.mrb[59].mxu1  ;;  %v11856_v14 = vsel %vm11791_vm12, %v11759_v55, %v11824_v28 }
 0x55f   : > { %v11760_v63 = vadd.f32 %v21380_v21, %v11666_v43  ;;  %12487 = vrot.lane.b32.xlu1 %v11854_v59, %s17811_s16  ;;  %v11855_v3 = vsel %vm11790_vm11, %v11758_v20, %v11823_v32  ;;  %v21526_v7 = vpop.permute.xlu0 %12593 }
 0x560   : > { %12489 = vrot.lane.b32.xlu0 %v11855_v3, %s17811_s16  ;;  %v11826_v9 = vmul.f32 %v21383_v54, %v11761_v56  ;;  %vm11793_vm14 = vcmp.gt.f32.partialorder %v11761_v56, 0.0 }
 0x561   : > { %v11825_v45 = vmul.f32 %v21383_v54, %v11760_v63  ;;  %v16736_v5 = vpop.f32.mrb[60].mxu1  ;;  %vm11792_vm13 = vcmp.gt.f32.partialorder %v11760_v63, 0.0 }
 0x562   : > { %v11763_v41 = vadd.f32 %v16736_v5, %v21380_v21  ;;  %v11676_v57 = vpop.f32.mrb[61].mxu1  ;;  %v11858_v1 = vsel %vm11793_vm14, %v11761_v56, %v11826_v9 }
 0x563   : > { %v11762_v31 = vadd.f32 %v21380_v21, %v11676_v57  ;;  %12491 = vrot.lane.b32.xlu1 %v11856_v14, %s17811_s16  ;;  %v11857_v48 = vsel %vm11792_vm13, %v11760_v63, %v11825_v45  ;;  %v21530_v2 = vpop.permute.xlu0 %12597 }
 0x564   : > { %12493 = vrot.lane.b32.xlu0 %v11857_v48, %s17811_s16  ;;  %v11828_v39 = vmul.f32 %v21383_v54, %v11763_v41  ;;  %vm11795_vm3 = vcmp.gt.f32.partialorder %v11763_v41, 0.0 }
 0x565   : > { %v11827_v46 = vmul.f32 %v21383_v54, %v11762_v31  ;;  %v16739_v19 = vpop.f32.mrb[62].mxu1  ;;  %vm11794_vm15 = vcmp.gt.f32.partialorder %v11762_v31, 0.0 }
 0x566   : > { %v11765_v11 = vadd.f32 %v16739_v19, %v21380_v21  ;;  %v11686_v49 = vpop.f32.mrb[63].mxu1  ;;  %v11860_v26 = vsel %vm11795_vm3, %v11763_v41, %v11828_v39 }
 0x567   : > { %v11764_v51 = vadd.f32 %v21380_v21, %v11686_v49  ;;  %12495 = vrot.lane.b32.xlu1 %v11858_v1, %s17811_s16  ;;  %v11859_v25 = vsel %vm11794_vm15, %v11762_v31, %v11827_v46  ;;  %v14273_v21 = vld [vmem:[%s20893_s14 + $0x19a] sm:$0xff]  ;;  %v21534_v40 = vpop.permute.xlu0 %12601  ;;  %s13253_s14 = sld [smem:[#allocation4 + $0x2]] }
 0x568   : > { %v11830_v62 = vmul.f32 %v21383_v54, %v11765_v11  ;;  %12497 = vrot.lane.b32.xlu0 %v11859_v25, %s17811_s16  ;;  %vm11797_vm4 = vcmp.gt.f32.partialorder %v11765_v11, 0.0  ;;  %v12407_v4 = vmax.f32 %v12343_v18, %v14273_v21 }
 0x569   : > { %v11829_v58 = vmul.f32 %v21383_v54, %v11764_v51  ;;  %vm11796_vm5 = vcmp.gt.f32.partialorder %v11764_v51, 0.0  ;;  %v21519_v54 = vpop.permute.xlu1 %12591 }
 0x56a   : > { %v11862_v37 = vsel %vm11797_vm4, %v11765_v11, %v11830_v62 }
 0x56b   : > { %12499 = vrot.lane.b32.xlu1 %v11860_v26, %s17811_s16  ;;  %v11861_v29 = vsel %vm11796_vm5, %v11764_v51, %v11829_v58  ;;  %v21538_v6 = vpop.permute.xlu0 %12605 }
 0x56c   : > { %12501 = vrot.lane.b32.xlu0 %v11861_v29, %s17811_s16 }
 0x56d   : > { %v21524_v23 = vpop.permute.xlu1 %12595  ;;  %v21578_v46 = vstv %s13253_s14  ;;  %s17812_s14 = smov [#allocation7]  }
 0x56e   : > { %s17743_s22 = sshll.u32 %s17812_s14, 4  ;;  %s17744_s22 = int_to_ptr.vmem [resolvable:$false] %s17743_s22 }
 0x56f   : > { %12503 = vrot.lane.b32.xlu1 %v11862_v37, %s17811_s16  ;;  %v21542_v20 = vpop.permute.xlu0 %12609  ;;  %s17745_s29 = scalar_lea.vmem %s17744_s22, 8192 }
 0x570   : > { %12629 = vrot.lane.b32.xlu0 %v12407_v4, %s17810_s30 }
 0x571   : > { %v21528_v10 = vpop.permute.xlu1 %12599 }
 0x573   : > { %12631 = vrot.lane.b32.xlu1 %v12408_v0, %s17810_s30  ;;  %v21546_v32 = vpop.permute.xlu0 %12613  ;;  %s406_s30 = sand.u32 1, %s17797_s18  }
 0x574   : > { %s12870_s12 = sshll.u32 %s406_s30, 8  ;;  %s21859_s21 = scalar_lea.sflag [#allocation5], %s406_s30 }
 0x575   : > { %v21532_v47 = vpop.permute.xlu1 %12603  ;;  %s21601_s13 = scalar_lea.vmem [#allocation7], %s12870_s12 }
 0x576   : > { %s12778_s25 = sshll.u32 %s21601_s13, 4  ;;  %s21848_s25 = int_to_ptr.vmem [resolvable:$true] %s12778_s25 }
 0x577   : > { %v21550_v28 = vpop.permute.xlu0 %12617  ;;  %s17739_s16 = scalar_lea.vmem %s21848_s25, 4096  ;;  %p17746_p13 = scmp.lt.s32.totalorder %s21848_s25, %s17744_s22 }
 0x578   : > { %p17740_p9 = scmp.ne.s32.totalorder %s21848_s25, %s17739_s16  ;;  %p17747_p0 = scmp.lt.s32.totalorder %s17745_s29, %s17739_s16 }
 0x579   : > { %v21536_v55 = vpop.permute.xlu1 %12607 }
 0x57a   : > { %p17741_p10 = pnand %p17740_p9, %p17913_p5  ;;  %p17748_p1 = por %p17747_p0, %p17746_p13 }
 0x57b   : > { %v21554_v43 = vpop.permute.xlu0 %12621 }
 0x57c   : > { %p17742_p12 = pneg %p17741_p10 }
 0x57d   : > { %v21540_v44 = vpop.permute.xlu1 %12611 }
 0x57e   : > { %p17749_p2 = pnand %p17748_p1, %p17742_p12 }
 0x57f   : > { %v21558_v63 = vpop.permute.xlu0 %12625 }
 0x581   : > { %v21544_v16 = vpop.permute.xlu1 %12615 }
 0x585   : > { %v21548_v42 = vpop.permute.xlu1 %12619 }
 0x589   : > { %v21552_v56 = vpop.permute.xlu1 %12623 }
 0x58d   : > { %v21556_v59 = vpop.permute.xlu1 %12627 }
 0x5a1   : > { %v12444_v45 = vpop.permute.xlu0 %12443 }
 0x5a5   : > { %v12448_v3 = vpop.permute.xlu1 %12447  ;;  %v12442_v33 = vpop.permute.xlu0 %12441 }
 0x5a9   : > { %v12446_v5 = vpop.permute.xlu1 %12445 }
 0x5aa   : > { %v21562_v41 = vpop.permute.xlu0 %12449 }
 0x5ad   : > { %v21560_v9 = vpop.permute.xlu1 %12451 }
 0x5ae   : > { %v21566_v14 = vpop.permute.xlu0 %12453 }
 0x5b1   : > { %v21564_v57 = vpop.permute.xlu1 %12455 }
 0x5b2   : > { %v21570_v48 = vpop.permute.xlu0 %12457 }
 0x5b5   : > { %v21568_v31 = vpop.permute.xlu1 %12459 }
 0x5b6   : > { %v21583_v11 = vpop.permute.xlu0 %12461 }
 0x5b9   : > { %v21580_v19 = vpop.permute.xlu1 %12463 }
 0x5ba   : > { %v21599_v13 = vpop.permute.xlu0 %12465 }
 0x5bd   : > { %v21593_v26 = vpop.permute.xlu1 %12467 }
 0x5ca   : > { %v16244_v15 = vpop.f32.mrb[64].mxu0 }
 0x5cb   : > { %v8152_v8 = vadd.f32 %v16244_v15, %v21575_v53  ;;  %v7953_v39 = vpop.f32.mrb[65].mxu0 }
 0x5cc   : > { %v8151_v49 = vadd.f32 %v21575_v53, %v7953_v39 }
 0x5cd   : > { %vm8184_vm0 = vcmp.gt.f32.partialorder %v8152_v8, 0.0  ;;  %v8217_v1 = vmul.f32 %v21578_v46, %v8152_v8 }
 0x5ce   : > { %vm8183_vm6 = vcmp.gt.f32.partialorder %v8151_v49, 0.0  ;;  %v8216_v51 = vmul.f32 %v21578_v46, %v8151_v49  ;;  %v16247_v25 = vpop.f32.mrb[66].mxu0 }
 0x5cf   : > { %v8249_v50 = vsel %vm8184_vm0, %v8152_v8, %v8217_v1  ;;  %v8154_v62 = vadd.f32 %v16247_v25, %v21575_v53  ;;  %v7963_v38 = vpop.f32.mrb[67].mxu0 }
 0x5d0   : > { %v12667_v18 = vsel %vm12665_vm1, %v8249_v50, %v12444_v45  ;;  %v8248_v58 = vsel %vm8183_vm6, %v8151_v49, %v8216_v51  ;;  %v8153_v21 = vadd.f32 %v21575_v53, %v7963_v38 }
 0x5d1   : > { %v12700_v37 = vsel %vm12698_vm9, %v12667_v18, %v21450_v24  ;;  %v12666_v29 = vsel %vm12665_vm1, %v8248_v58, %v12442_v33  ;;  %vm8186_vm8 = vcmp.gt.f32.partialorder %v8154_v62, 0.0  ;;  %v8219_v35 = vmul.f32 %v21578_v46, %v8154_v62  ;;  %v21627_v18 = vpop.permute.xlu0 %12469 }
 0x5d2   : > { %12733 = vst.msk [vmem:[%s21601_s13 + $0x8] sm:$0xff] %vm12731_vm7, %v12700_v37  ;;  %v12699_v4 = vsel %vm12698_vm9, %v12666_v29, %v21453_v12  ;;  %vm8185_vm10 = vcmp.gt.f32.partialorder %v8153_v21, 0.0  ;;  %v8218_v24 = vmul.f32 %v21578_v46, %v8153_v21  ;;  %v16250_v0 = vpop.f32.mrb[68].mxu0 }
 0x5d3   : > { %12732 = vst.msk [vmem:[%s21601_s13] sm:$0xff] %vm12731_vm7, %v12699_v4  ;;  %v8251_v45 = vsel %vm8186_vm8, %v8154_v62, %v8219_v35  ;;  %v8156_v33 = vadd.f32 %v16250_v0, %v21575_v53  ;;  %v7973_v15 = vpop.f32.mrb[69].mxu0  ;;  %v21622_v62 = vpop.permute.xlu1 %12471 }
 0x5d4   : > { %v12669_v8 = vsel %vm12665_vm1, %v8251_v45, %v12448_v3  ;;  %v8250_v39 = vsel %vm8185_vm10, %v8153_v21, %v8218_v24  ;;  %v8155_v49 = vadd.f32 %v21575_v53, %v7973_v15 }
 0x5d5   : > { %v12702_v1 = vsel %vm12698_vm9, %v12669_v8, %v21462_v52  ;;  %v12668_v12 = vsel %vm12665_vm1, %v8250_v39, %v12446_v5  ;;  %vm8188_vm2 = vcmp.gt.f32.partialorder %v8156_v33, 0.0  ;;  %v8221_v51 = vmul.f32 %v21578_v46, %v8156_v33 }
 0x5d6   : > { %12735 = vst.msk [vmem:[%s21601_s13 + $0x18] sm:$0xff] %vm12731_vm7, %v12702_v1  ;;  %v12701_v25 = vsel %vm12698_vm9, %v12668_v12, %v21466_v34  ;;  %vm8187_vm11 = vcmp.gt.f32.partialorder %v8155_v49, 0.0  ;;  %v8220_v3 = vmul.f32 %v21578_v46, %v8155_v49  ;;  %v16253_v50 = vpop.f32.mrb[70].mxu0  ;;  %v21655_v1 = vpop.permute.xlu0 %12473 }
 0x5d7   : > { %12734 = vst.msk [vmem:[%s21601_s13 + $0x10] sm:$0xff] %vm12731_vm7, %v12701_v25  ;;  %v8253_v52 = vsel %vm8188_vm2, %v8156_v33, %v8221_v51  ;;  %v8158_v5 = vadd.f32 %v16253_v50, %v21575_v53  ;;  %v7983_v38 = vpop.f32.mrb[71].mxu0  ;;  %v21648_v8 = vpop.permute.xlu1 %12475 }
 0x5d8   : > { %v12671_v58 = vsel %vm12665_vm1, %v8253_v52, %v21560_v9  ;;  %v8252_v34 = vsel %vm8187_vm11, %v8155_v49, %v8220_v3  ;;  %v8157_v21 = vadd.f32 %v21575_v53, %v7983_v38 }
 0x5d9   : > { %v12704_v37 = vsel %vm12698_vm9, %v12671_v58, %v21476_v27  ;;  %v12670_v29 = vsel %vm12665_vm1, %v8252_v34, %v21562_v41  ;;  %vm8190_vm12 = vcmp.gt.f32.partialorder %v8158_v5, 0.0  ;;  %v8223_v35 = vmul.f32 %v21578_v46, %v8158_v5 }
 0x5da   : > { %12737 = vst.msk [vmem:[%s21601_s13 + $0x28] sm:$0xff] %vm12731_vm7, %v12704_v37  ;;  %v12703_v4 = vsel %vm12698_vm9, %v12670_v29, %v21479_v17  ;;  %vm8189_vm13 = vcmp.gt.f32.partialorder %v8157_v21, 0.0  ;;  %v8222_v9 = vmul.f32 %v21578_v46, %v8157_v21  ;;  %v16256_v24 = vpop.f32.mrb[72].mxu0  ;;  %v21683_v29 = vpop.permute.xlu0 %12477 }
 0x5db   : > { %12736 = vst.msk [vmem:[%s21601_s13 + $0x20] sm:$0xff] %vm12731_vm7, %v12703_v4  ;;  %v8255_v0 = vsel %vm8190_vm12, %v8158_v5, %v8223_v35  ;;  %v8160_v27 = vadd.f32 %v16256_v24, %v21575_v53  ;;  %v7993_v41 = vpop.f32.mrb[73].mxu0 }
 0x5dc   : > { %v12673_v45 = vsel %vm12665_vm1, %v8255_v0, %v21564_v57  ;;  %v8254_v33 = vsel %vm8189_vm13, %v8157_v21, %v8222_v9  ;;  %v8159_v15 = vadd.f32 %v21575_v53, %v7993_v41  ;;  %v21678_v21 = vpop.permute.xlu1 %12479 }
 0x5dd   : > { %v12706_v17 = vsel %vm12698_vm9, %v12673_v45, %v21493_v36  ;;  %v12672_v39 = vsel %vm12665_vm1, %v8254_v33, %v21566_v14  ;;  %vm8192_vm14 = vcmp.gt.f32.partialorder %v8160_v27, 0.0  ;;  %v8225_v49 = vmul.f32 %v21578_v46, %v8160_v27 }
 0x5de   : > { %12739 = vst.msk [vmem:[%s21601_s13 + $0x38] sm:$0xff] %vm12731_vm7, %v12706_v17  ;;  %v12705_v57 = vsel %vm12698_vm9, %v12672_v39, %v21498_v22  ;;  %vm8191_vm15 = vcmp.gt.f32.partialorder %v8159_v15, 0.0  ;;  %v8224_v12 = vmul.f32 %v21578_v46, %v8159_v15  ;;  %v16259_v51 = vpop.f32.mrb[74].mxu0 }
 0x5df   : > { %12738 = vst.msk [vmem:[%s21601_s13 + $0x30] sm:$0xff] %vm12731_vm7, %v12705_v57  ;;  %v8257_v36 = vsel %vm8192_vm14, %v8160_v27, %v8225_v49  ;;  %v8162_v14 = vadd.f32 %v16259_v51, %v21575_v53  ;;  %v8003_v25 = vpop.f32.mrb[75].mxu0 }
 0x5e0   : > { %v12675_v3 = vsel %vm12665_vm1, %v8257_v36, %v21568_v31  ;;  %v8256_v50 = vsel %vm8191_vm15, %v8159_v15, %v8224_v12  ;;  %v8161_v52 = vadd.f32 %v21575_v53, %v8003_v25  ;;  %v21704_v39 = vpop.permute.xlu1 %12483  ;;  %v21711_v12 = vpop.permute.xlu0 %12481 }
 0x5e1   : > { %v12708_v22 = vsel %vm12698_vm9, %v12675_v3, %v21511_v30  ;;  %v12674_v5 = vsel %vm12665_vm1, %v8256_v50, %v21570_v48  ;;  %vm8194_vm3 = vcmp.gt.f32.partialorder %v8162_v14, 0.0  ;;  %v8227_v38 = vmul.f32 %v21578_v46, %v8162_v14 }
 0x5e2   : > { %12741 = vst.msk [vmem:[%s21601_s13 + $0x48] sm:$0xff] %vm12731_vm7, %v12708_v22  ;;  %v12707_v58 = vsel %vm12698_vm9, %v12674_v5, %v21514_v60  ;;  %vm8193_vm4 = vcmp.gt.f32.partialorder %v8161_v52, 0.0  ;;  %v8226_v31 = vmul.f32 %v21578_v46, %v8161_v52  ;;  %v16262_v34 = vpop.f32.mrb[76].mxu0 }
 0x5e3   : > { %12740 = vst.msk [vmem:[%s21601_s13 + $0x40] sm:$0xff] %vm12731_vm7, %v12707_v58  ;;  %v8259_v30 = vsel %vm8194_vm3, %v8162_v14, %v8227_v38  ;;  %v8164_v48 = vadd.f32 %v16262_v34, %v21575_v53  ;;  %v8013_v37 = vpop.f32.mrb[77].mxu0 }
 0x5e4   : > { %v12677_v35 = vsel %vm12665_vm1, %v8259_v30, %v21580_v19  ;;  %v8258_v60 = vsel %vm8193_vm4, %v8161_v52, %v8226_v31  ;;  %v8163_v4 = vadd.f32 %v21575_v53, %v8013_v37  ;;  %v12488_v58 = vpop.permute.xlu1 %12487  ;;  %v12486_v34 = vpop.permute.xlu0 %12485 }
 0x5e5   : > { %v12710_v9 = vsel %vm12698_vm9, %v12677_v35, %v21519_v54  ;;  %v12676_v24 = vsel %vm12665_vm1, %v8258_v60, %v21583_v11  ;;  %vm8196_vm5 = vcmp.gt.f32.partialorder %v8164_v48, 0.0  ;;  %v8229_v0 = vmul.f32 %v21578_v46, %v8164_v48 }
 0x5e6   : > { %12743 = vst.msk [vmem:[%s21601_s13 + $0x58] sm:$0xff] %vm12731_vm7, %v12710_v9  ;;  %v12709_v27 = vsel %vm12698_vm9, %v12676_v24, %v21521_v61  ;;  %vm8195_vm0 = vcmp.gt.f32.partialorder %v8163_v4, 0.0  ;;  %v8228_v19 = vmul.f32 %v21578_v46, %v8163_v4  ;;  %v16265_v41 = vpop.f32.mrb[78].mxu0 }
 0x5e7   : > { %12742 = vst.msk [vmem:[%s21601_s13 + $0x50] sm:$0xff] %vm12731_vm7, %v12709_v27  ;;  %v8261_v45 = vsel %vm8196_vm5, %v8164_v48, %v8229_v0  ;;  %v8166_v54 = vadd.f32 %v16265_v41, %v21575_v53  ;;  %v8023_v11 = vpop.f32.mrb[79].mxu0 }
 0x5e8   : > { %v12679_v33 = vsel %vm12665_vm1, %v8261_v45, %v21593_v26  ;;  %v8260_v15 = vsel %vm8195_vm0, %v8163_v4, %v8228_v19  ;;  %v8165_v17 = vadd.f32 %v21575_v53, %v8023_v11  ;;  %v12492_v41 = vpop.permute.xlu1 %12491  ;;  %v12490_v11 = vpop.permute.xlu0 %12489 }
 0x5e9   : > { %v12712_v61 = vsel %vm12698_vm9, %v12679_v33, %v21524_v23  ;;  %v12678_v49 = vsel %vm12665_vm1, %v8260_v15, %v21599_v13  ;;  %vm8198_vm6 = vcmp.gt.f32.partialorder %v8166_v54, 0.0  ;;  %v8231_v57 = vmul.f32 %v21578_v46, %v8166_v54 }
 0x5ea   : > { %12745 = vst.msk [vmem:[%s21601_s13 + $0x68] sm:$0xff] %vm12731_vm7, %v12712_v61  ;;  %v12711_v26 = vsel %vm12698_vm9, %v12678_v49, %v21526_v7  ;;  %vm8197_vm8 = vcmp.gt.f32.partialorder %v8165_v17, 0.0  ;;  %v8230_v51 = vmul.f32 %v21578_v46, %v8165_v17  ;;  %v16268_v36 = vpop.f32.mrb[80].mxu0 }
 0x5eb   : > { %12744 = vst.msk [vmem:[%s21601_s13 + $0x60] sm:$0xff] %vm12731_vm7, %v12711_v26  ;;  %v8263_v23 = vsel %vm8198_vm6, %v8166_v54, %v8231_v57  ;;  %v8168_v13 = vadd.f32 %v16268_v36, %v21575_v53  ;;  %v8033_v14 = vpop.f32.mrb[81].mxu0 }
 0x5ec   : > { %v12681_v25 = vsel %vm12665_vm1, %v8263_v23, %v21622_v62  ;;  %v8262_v3 = vsel %vm8197_vm8, %v8165_v17, %v8230_v51  ;;  %v8167_v50 = vadd.f32 %v21575_v53, %v8033_v14 }
 0x5ed   : > { %v12714_v7 = vsel %vm12698_vm9, %v12681_v25, %v21528_v10  ;;  %v12680_v52 = vsel %vm12665_vm1, %v8262_v3, %v21627_v18  ;;  %vm8200_vm10 = vcmp.gt.f32.partialorder %v8168_v13, 0.0  ;;  %v8233_v22 = vmul.f32 %v21578_v46, %v8168_v13  ;;  %v12494_v25 = vpop.permute.xlu0 %12493 }
 0x5ee   : > { %12747 = vst.msk [vmem:[%s21601_s13 + $0x78] sm:$0xff] %vm12731_vm7, %v12714_v7  ;;  %v12713_v5 = vsel %vm12698_vm9, %v12680_v52, %v21530_v2  ;;  %vm8199_vm2 = vcmp.gt.f32.partialorder %v8167_v50, 0.0  ;;  %v8232_v62 = vmul.f32 %v21578_v46, %v8167_v50  ;;  %v16271_v38 = vpop.f32.mrb[82].mxu0 }
 0x5ef   : > { %12746 = vst.msk [vmem:[%s21601_s13 + $0x70] sm:$0xff] %vm12731_vm7, %v12713_v5  ;;  %v8265_v10 = vsel %vm8200_vm10, %v8168_v13, %v8233_v22  ;;  %v8170_v18 = vadd.f32 %v16271_v38, %v21575_v53  ;;  %v8043_v31 = vpop.f32.mrb[83].mxu0  ;;  %v12496_v13 = vpop.permute.xlu1 %12495 }
 0x5f0   : > { %v12683_v30 = vsel %vm12665_vm1, %v8265_v10, %v21648_v8  ;;  %v8264_v48 = vsel %vm8199_vm2, %v8167_v50, %v8232_v62  ;;  %v8169_v2 = vadd.f32 %v21575_v53, %v8043_v31 }
 0x5f1   : > { %v12716_v37 = vsel %vm12698_vm9, %v12683_v30, %v21532_v47  ;;  %v12682_v35 = vsel %vm12665_vm1, %v8264_v48, %v21655_v1  ;;  %vm8202_vm11 = vcmp.gt.f32.partialorder %v8170_v18, 0.0  ;;  %v8235_v60 = vmul.f32 %v21578_v46, %v8170_v18 }
 0x5f2   : > { %12749 = vst.msk [vmem:[%s21601_s13 + $0x88] sm:$0xff] %vm12731_vm7, %v12716_v37  ;;  %v12715_v4 = vsel %vm12698_vm9, %v12682_v35, %v21534_v40  ;;  %vm8201_vm12 = vcmp.gt.f32.partialorder %v8169_v2, 0.0  ;;  %v8234_v8 = vmul.f32 %v21578_v46, %v8169_v2  ;;  %v16274_v9 = vpop.f32.mrb[84].mxu0  ;;  %v12498_v37 = vpop.permute.xlu0 %12497 }
 0x5f3   : > { %12748 = vst.msk [vmem:[%s21601_s13 + $0x80] sm:$0xff] %vm12731_vm7, %v12715_v4  ;;  %v8267_v24 = vsel %vm8202_vm11, %v8170_v18, %v8235_v60  ;;  %v8172_v47 = vadd.f32 %v16274_v9, %v21575_v53  ;;  %v8053_v1 = vpop.f32.mrb[85].mxu0  ;;  %v12500_v30 = vpop.permute.xlu1 %12499 }
 0x5f4   : > { %v12685_v0 = vsel %vm12665_vm1, %v8267_v24, %v21678_v21  ;;  %v8266_v27 = vsel %vm8201_vm12, %v8169_v2, %v8234_v8  ;;  %v8171_v19 = vadd.f32 %v21575_v53, %v8053_v1 }
 0x5f5   : > { %v12718_v40 = vsel %vm12698_vm9, %v12685_v0, %v21536_v55  ;;  %v12684_v45 = vsel %vm12665_vm1, %v8266_v27, %v21683_v29  ;;  %vm8204_vm13 = vcmp.gt.f32.partialorder %v8172_v47, 0.0  ;;  %v8237_v54 = vmul.f32 %v21578_v46, %v8172_v47 }
 0x5f6   : > { %12751 = vst.msk [vmem:[%s21601_s13 + $0x98] sm:$0xff] %vm12731_vm7, %v12718_v40  ;;  %v12717_v21 = vsel %vm12698_vm9, %v12684_v45, %v21538_v6  ;;  %vm8203_vm14 = vcmp.gt.f32.partialorder %v8171_v19, 0.0  ;;  %v8236_v33 = vmul.f32 %v21578_v46, %v8171_v19  ;;  %v16277_v15 = vpop.f32.mrb[86].mxu0 }
 0x5f7   : > { %12750 = vst.msk [vmem:[%s21601_s13 + $0x90] sm:$0xff] %vm12731_vm7, %v12717_v21  ;;  %v8269_v55 = vsel %vm8204_vm13, %v8172_v47, %v8237_v54  ;;  %v8174_v29 = vadd.f32 %v16277_v15, %v21575_v53  ;;  %v8063_v17 = vpop.f32.mrb[87].mxu0  ;;  %v12504_v40 = vpop.permute.xlu1 %12503 }
 0x5f8   : > { %v12687_v61 = vsel %vm12665_vm1, %v8269_v55, %v21704_v39  ;;  %v8268_v49 = vsel %vm8203_vm14, %v8171_v19, %v8236_v33  ;;  %v8173_v57 = vadd.f32 %v21575_v53, %v8063_v17  ;;  %v12502_v54 = vpop.permute.xlu0 %12501 }
 0x5f9   : > { %v12720_v6 = vsel %vm12698_vm9, %v12687_v61, %v21540_v44  ;;  %v12686_v26 = vsel %vm12665_vm1, %v8268_v49, %v21711_v12  ;;  %vm8206_vm15 = vcmp.gt.f32.partialorder %v8174_v29, 0.0  ;;  %v8239_v51 = vmul.f32 %v21578_v46, %v8174_v29 }
 0x5fa   : > { %12753 = vst.msk [vmem:[%s21601_s13 + $0xa8] sm:$0xff] %vm12731_vm7, %v12720_v6  ;;  %v12719_v36 = vsel %vm12698_vm9, %v12686_v26, %v21542_v20  ;;  %vm8205_vm3 = vcmp.gt.f32.partialorder %v8173_v57, 0.0  ;;  %v8238_v39 = vmul.f32 %v21578_v46, %v8173_v57  ;;  %v16280_v23 = vpop.f32.mrb[88].mxu0 }
 0x5fb   : > { %12752 = vst.msk [vmem:[%s21601_s13 + $0xa0] sm:$0xff] %vm12731_vm7, %v12719_v36  ;;  %v8271_v44 = vsel %vm8206_vm15, %v8174_v29, %v8239_v51  ;;  %v8176_v12 = vadd.f32 %v16280_v23, %v21575_v53  ;;  %v8073_v14 = vpop.f32.mrb[89].mxu0 }
 0x5fc   : > { %v12689_v3 = vsel %vm12665_vm1, %v8271_v44, %v12488_v58  ;;  %v8270_v50 = vsel %vm8205_vm3, %v8173_v57, %v8238_v39  ;;  %v8175_v7 = vadd.f32 %v21575_v53, %v8073_v14  ;;  %v12630_v57 = vpop.permute.xlu0 %12629 }
 0x5fd   : > { %v12722_v20 = vsel %vm12698_vm9, %v12689_v3, %v21544_v16  ;;  %v12688_v52 = vsel %vm12665_vm1, %v8270_v50, %v12486_v34  ;;  %vm8208_vm4 = vcmp.gt.f32.partialorder %v8176_v12, 0.0  ;;  %v8241_v22 = vmul.f32 %v21578_v46, %v8176_v12 }
 0x5fe   : > { %12755 = vst.msk [vmem:[%s21601_s13 + $0xb8] sm:$0xff] %vm12731_vm7, %v12722_v20  ;;  %v12721_v5 = vsel %vm12698_vm9, %v12688_v52, %v21546_v32  ;;  %vm8207_vm5 = vcmp.gt.f32.partialorder %v8175_v7, 0.0  ;;  %v8240_v62 = vmul.f32 %v21578_v46, %v8175_v7  ;;  %v16283_v38 = vpop.f32.mrb[90].mxu0 }
 0x5ff   : > { %12754 = vst.msk [vmem:[%s21601_s13 + $0xb0] sm:$0xff] %vm12731_vm7, %v12721_v5  ;;  %v8273_v58 = vsel %vm8208_vm4, %v8176_v12, %v8241_v22  ;;  %v8178_v16 = vadd.f32 %v16283_v38, %v21575_v53  ;;  %v8083_v10 = vpop.f32.mrb[91].mxu0 }
 0x600   : > { %v12691_v18 = vsel %vm12665_vm1, %v8273_v58, %v12492_v41  ;;  %v8272_v31 = vsel %vm8207_vm5, %v8175_v7, %v8240_v62  ;;  %v8177_v34 = vadd.f32 %v21575_v53, %v8083_v10 }
 0x601   : > { %v12724_v32 = vsel %vm12698_vm9, %v12691_v18, %v21548_v42  ;;  %v12690_v48 = vsel %vm12665_vm1, %v8272_v31, %v12490_v11  ;;  %vm8210_vm0 = vcmp.gt.f32.partialorder %v8178_v16, 0.0  ;;  %v8243_v2 = vmul.f32 %v21578_v46, %v8178_v16 }
 0x602   : > { %12757 = vst.msk [vmem:[%s21601_s13 + $0xc8] sm:$0xff] %vm12731_vm7, %v12724_v32  ;;  %v12723_v35 = vsel %vm12698_vm9, %v12690_v48, %v21550_v28  ;;  %vm8209_vm6 = vcmp.gt.f32.partialorder %v8177_v34, 0.0  ;;  %v8242_v60 = vmul.f32 %v21578_v46, %v8177_v34  ;;  %v16286_v4 = vpop.f32.mrb[92].mxu0 }
 0x603   : > { %12756 = vst.msk [vmem:[%s21601_s13 + $0xc0] sm:$0xff] %vm12731_vm7, %v12723_v35  ;;  %v8275_v42 = vsel %vm8210_vm0, %v8178_v16, %v8243_v2  ;;  %v8180_v8 = vadd.f32 %v16286_v4, %v21575_v53  ;;  %v8093_v9 = vpop.f32.mrb[93].mxu0 }
 0x604   : > { %v12693_v24 = vsel %vm12665_vm1, %v8275_v42, %v12496_v13  ;;  %v8274_v47 = vsel %vm8209_vm6, %v8177_v34, %v8242_v60  ;;  %v8179_v1 = vadd.f32 %v21575_v53, %v8093_v9 }
 0x605   : > { %v12726_v0 = vsel %vm12698_vm9, %v12693_v24, %v21552_v56  ;;  %v12692_v28 = vsel %vm12665_vm1, %v8274_v47, %v12494_v25  ;;  %vm8212_vm8 = vcmp.gt.f32.partialorder %v8180_v8, 0.0  ;;  %v8245_v27 = vmul.f32 %v21578_v46, %v8180_v8 }
 0x606   : > { %12759 = vst.msk [vmem:[%s21601_s13 + $0xd8] sm:$0xff] %vm12731_vm7, %v12726_v0  ;;  %v12725_v19 = vsel %vm12698_vm9, %v12692_v28, %v21554_v43  ;;  %vm8211_vm10 = vcmp.gt.f32.partialorder %v8179_v1, 0.0  ;;  %v8244_v41 = vmul.f32 %v21578_v46, %v8179_v1 }
 0x607   : > { %12758 = vst.msk [vmem:[%s21601_s13 + $0xd0] sm:$0xff] %vm12731_vm7, %v12725_v19  ;;  %v8277_v56 = vsel %vm8212_vm8, %v8180_v8, %v8245_v27  ;;  %v16289_v45 = vpop.f32.mrb[94].mxu0 }
 0x608   : > { %v12695_v11 = vsel %vm12665_vm1, %v8277_v56, %v12500_v30  ;;  %v8276_v21 = vsel %vm8211_vm10, %v8179_v1, %v8244_v41  ;;  %v8182_v33 = vadd.f32 %v16289_v45, %v21575_v53  ;;  %v8103_v15 = vpop.f32.mrb[95].mxu0 }
 0x609   : > { %v12728_v43 = vsel %vm12698_vm9, %v12695_v11, %v21556_v59  ;;  %v12694_v55 = vsel %vm12665_vm1, %v8276_v21, %v12498_v37  ;;  %v8181_v29 = vadd.f32 %v21575_v53, %v8103_v15  ;;  %v12632_v53 = vpop.permute.xlu1 %12631 }
 0x60a   : > { %12761 = vst.msk [vmem:[%s21601_s13 + $0xe8] sm:$0xff] %vm12731_vm7, %v12728_v43  ;;  %v12727_v17 = vsel %vm12698_vm9, %v12694_v55, %v21558_v63  ;;  %vm8214_vm2 = vcmp.gt.f32.partialorder %v8182_v33, 0.0  ;;  %v8247_v61 = vmul.f32 %v21578_v46, %v8182_v33 }
 0x60b   : > { %12760 = vst.msk [vmem:[%s21601_s13 + $0xe0] sm:$0xff] %vm12731_vm7, %v12727_v17  ;;  %vm8213_vm11 = vcmp.gt.f32.partialorder %v8181_v29, 0.0  ;;  %v8246_v59 = vmul.f32 %v21578_v46, %v8181_v29 }
 0x60c   : > { %v8279_v49 = vsel %vm8214_vm2, %v8182_v33, %v8247_v61 }
 0x60d   : > { %v8278_v6 = vsel %vm8213_vm11, %v8181_v29, %v8246_v59  ;;  %v12697_v63 = vsel %vm12665_vm1, %v8279_v49, %v12504_v40 }
 0x60e   : > { %v12730_v26 = vsel %vm12698_vm9, %v12697_v63, %v12632_v53  ;;  %v12696_v46 = vsel %vm12665_vm1, %v8278_v6, %v12502_v54 }
 0x60f   : > { %12763 = vst.msk [vmem:[%s21601_s13 + $0xf8] sm:$0xff] %vm12731_vm7, %v12730_v26  ;;  %v12729_v51 = vsel %vm12698_vm9, %v12696_v46, %v12630_v57 }
 0x610   : > { %12762 = vst.msk [vmem:[%s21601_s13 + $0xf0] sm:$0xff] %vm12731_vm7, %v12729_v51 }
 0x611   : > { %17752 = shalt.err (!%p17749_p2)
}
 0x612   : > { %s17753_s30 = scalar_lea.hbm %s21846_s2, 4096  ;;  %s17757_s24 = scalar_lea.hbm %s21911_s11, 8192 }
 0x613   : > { %p17754_p3 = scmp.ne.s32.totalorder %s21846_s2, %s17753_s30  ;;  %p17758_p8 = scmp.lt.u32.totalorder %s21846_s2, %s21911_s11 }
 0x614   : > { %p17759_p11 = scmp.lt.u32.totalorder %s17757_s24, %s17753_s30  ;;  %p17761_p10 = scmp.lt.u32.totalorder %s17753_s30, %s21846_s2 }
 0x615   : > { %p17755_p4 = pnand %p17754_p3, %p17913_p5 }
 0x616   : > { %p17760_p9 = por %p17759_p11, %p17758_p8 }
 0x617   : > { %p17756_p7 = pneg %p17755_p4 }
 0x618   : > { %p17762_p12 = por %p17761_p10, %p17760_p9 }
 0x61a   : > { %p17763_p13 = pnand %p17762_p12, %p17756_p7 }
 0x61c   : > { %17766 = shalt.err (!%p17763_p13)
}
 0x61d   : > { %s17813_s16 = smov 128   ;;  %s17814_s14 = smov 8  }
 0x61e   : > { %17639 = dma.vmem_to_hbm [thread:$0]  (%p17913_p5), %s21848_s25, 4096, %s21846_s2, %s21859_s21, %s17813_s16, %s17813_s16, %s17814_s14  }
 0x61f PF: > { %p17651_p0 = scmp.ge.s32.totalorder %s17805_s20, 2  ;;  %s12793_s22 = sand.u32 1, %s17793_s17  }
 0x620   : > { %s12794_s29 = scalar_lea.sflag [#allocation5], %s12793_s22 }
 0x621   : > { %p17646_p1 = pnand %p17651_p0, %p17917_p6 }
 0x623   : > { %17788 = dma.done.wait (!%p17646_p1), %s12794_s29, 4096  }
 0x624   : > { %17790 = vsyncadd (!%p17646_p1), %s12794_s29, 4294963200  ;;  %p22_p2 = scmp.ge.s32.totalorder %s17900_s23, 4   ;;  %s22249_s17 = smov %s17797_s18 }
 0x625   : > { %s22250_s18 = smov %s17801_s19  ;;  %s22251_s19 = smov %s17911_s26 }
 0x626   : > { %s22252_s20 = smov %s17900_s23  ;;  %24 = sbr.rel (!%p22_p2) target bundleno = 7 (0x7), region = 139 }
 0x62d   :  { %12799 = vsyncpa [#allocation5], 1 }
 0x62e   :  { %12801 = vsyncpa [#allocation5 + $0x1], 1 }
 0x62f   :  { %12802 = vsyncpa [#allocation6], 1 }
 0x630   :  { %12804 = vsyncpa [#allocation6 + $0x1], 1 }

</bundles_post_ra>
